<compile_context>
chip_gen: v5e
topology: v5e:2x2
jax: 0.10.0
libtpu: 0.0.40
codegen_flags: <defaults>
</compile_context>

<pallas_src>
import functools

import jax
import jax.numpy as jnp
from jax import lax
from jax.experimental import pallas as pl
from jax.experimental.pallas import tpu as pltpu

LANE = 128


def _round_up(x, m):
    return ((x + m - 1) // m) * m


def _pick_strip_rows(H, W, target_m=128):
    """Largest row count r dividing H with r*W ~ target_m (bounds acc live range)."""
    r = max(1, min(H, target_m // max(W, 1)))
    while H % r:
        r -= 1
    return r


def _dilation_block_kernel(x_ref, w1_ref, w2_ref, b1_ref, b2_ref, o_ref,
                           xw_ref, y1w_ref, *, H, W, C1, C2, d, rows):
    """Fused conv1+BN1+ReLU -> conv2+BN2+ReLU for one image.

    x_ref:   (1, Hp*W, C1)   H-zero-padded flat input, bf16
    w1_ref:  (3, 3*C1, C2)   per-kh weights, kw folded into K (BN1 scale folded), bf16
    w2_ref:  (3, 3*C2, C2)   same for layer 2, bf16
    b*_ref:  (1, C2)         folded BN bias, f32
    o_ref:   (1, H*W, C2)    output, f32
    xw_ref:  (Hp*W, 3*C1)    scratch: [x shifted -d cols | x | x shifted +d cols], bf16
    y1w_ref: (Hp*W, 3*C2)    scratch: same three copies of the intermediate, bf16
    """
    HW = H * W
    dW = d * W
    M = rows * W
    n_strips = H // rows
    aligned = (W % 8 == 0)

    # column-validity masks shared by both layers (w-d >= 0 / w+d < W)
    col = lax.broadcasted_iota(jnp.int32, (HW, 1), 0) % W
    mask_l = col >= d
    mask_r = col < (W - d)

    # Zero only the d-row halo ring (2*d*W rows) of the shifted-copy scratches.
    # The interiors are fully overwritten below; doing the (cheap) ring every
    # step keeps correctness independent of scratch state from other steps/cores.
    zx = jnp.zeros((dW, 3 * C1), jnp.bfloat16)
    zy = jnp.zeros((dW, 3 * C2), jnp.bfloat16)
    xw_ref[:dW, :] = zx
    xw_ref[dW + HW:, :] = zx
    y1w_ref[:dW, :] = zy
    y1w_ref[dW + HW:, :] = zy

    def fill_lr(read, dst_ref, C):
        # One masked column-shifted copy per direction (instead of one strided
        # window extraction per tap); the stores are sublane/lane aligned.
        vl = read(dW - d)
        dst_ref[pl.ds(dW, HW), pl.ds(0, C)] = jnp.where(mask_l, vl, jnp.zeros_like(vl))
        vr = read(dW + d)
        dst_ref[pl.ds(dW, HW), pl.ds(2 * C, C)] = jnp.where(mask_r, vr, jnp.zeros_like(vr))

    def conv_layer(src_ref, w_ref, b_ref, store):
        def strip(i, carry):
            m0 = i * M
            if aligned:
                m0 = pl.multiple_of(m0, 8)
            acc = jnp.zeros((M, C2), jnp.float32)
            for kh in range(3):        # one K = 3*C matmul per tap row
                lhs = src_ref[pl.ds(m0 + kh * dW, M), :]
                acc = acc + jnp.dot(lhs, w_ref[kh],
                                    preferred_element_type=jnp.float32)
            store(m0, jnp.maximum(acc + b_ref[...], 0.0))
            return carry
        lax.fori_loop(0, n_strips, strip, 0, unroll=True)

    # ---------------- layer 1: dilated conv + folded BN + ReLU ----------------
    # centre lanes: straight aligned copy of the (already H-padded) input block
    xw_ref[pl.ds(dW, HW), pl.ds(C1, C1)] = x_ref[0, pl.ds(dW, HW), :]
    fill_lr(lambda s: x_ref[0, pl.ds(s, HW), :], xw_ref, C1)

    def store_y1(m0, y):
        y1w_ref[pl.ds(dW + m0, M), pl.ds(C2, C2)] = y.astype(jnp.bfloat16)

    conv_layer(xw_ref, w1_ref, b1_ref, store_y1)

    # ---------------- layer 2 (intermediate never leaves VMEM) ----------------
    fill_lr(lambda s: y1w_ref[pl.ds(s, HW), pl.ds(C2, C2)], y1w_ref, C2)

    def store_out(m0, y):
        o_ref[0, pl.ds(m0, M), :] = y.astype(o_ref.dtype)

    conv_layer(y1w_ref, w2_ref, b2_ref, store_out)


def fold_bn(gamma, beta, mean, var, eps=1e-5):
    scale = gamma / jnp.sqrt(var + eps)
    bias = beta - mean * scale
    return scale, bias


def _prep_weight(w_hwio, scale, cin_p, cout_p):
    """Fold BN scale, lane-pad channels, collapse (kw, cin) into one K axis."""
    cin, cout = w_hwio.shape[2], w_hwio.shape[3]
    w = w_hwio * scale[None, None, None, :]
    w = jnp.pad(w, ((0, 0), (0, 0), (0, cin_p - cin), (0, cout_p - cout)))
    return w.reshape(3, 3 * cin_p, cout_p).astype(jnp.bfloat16)


def _prep_bias(bias, cout_p):
    # padded entries must stay exactly 0 so padded channels are 0 after ReLU
    return jnp.pad(bias, (0, cout_p - bias.shape[0])).reshape(1, cout_p).astype(jnp.float32)


def dilation_conv_forward(x_nchw, params, dilation):
    """Full DilationConv forward. Input/output are NCHW (PyTorch convention)."""
    d = int(dilation)
    N, Cin, H, W = map(int, x_nchw.shape)
    Cout = int(params["w1"].shape[-1])
    C1 = _round_up(Cin, LANE)
    C2 = _round_up(Cout, LANE)
    Hp = H + 2 * d
    HW, HpW = H * W, Hp * W
    rows = _pick_strip_rows(H, W)

    # NCHW -> N x (Hp*W) x C: channels lane-padded, H zero-padded by d.
    # (W-direction conv padding is handled in-kernel via masked column shifts,
    #  so there is no unaligned (Hp, Wp) layout padding at all.)
    x = jnp.transpose(x_nchw, (0, 2, 3, 1))
    x = jnp.pad(x, ((0, 0), (d, d), (0, 0), (0, C1 - Cin)))
    x = x.reshape(N, HpW, C1).astype(jnp.bfloat16)

    s1, b1 = fold_bn(params["bn1_gamma"], params["bn1_beta"],
                     params["bn1_mean"], params["bn1_var"])
    s2, b2 = fold_bn(params["bn2_gamma"], params["bn2_beta"],
                     params["bn2_mean"], params["bn2_var"])
    w1 = _prep_weight(params["w1"], s1, C1, C2)
    w2 = _prep_weight(params["w2"], s2, C2, C2)
    b1 = _prep_bias(b1, C2)
    b2 = _prep_bias(b2, C2)

    kernel = functools.partial(_dilation_block_kernel, H=H, W=W, C1=C1, C2=C2,
                               d=d, rows=rows)

    out = pl.pallas_call(
        kernel,
        out_shape=jax.ShapeDtypeStruct((N, HW, C2), jnp.float32),
        grid_spec=pltpu.PrefetchScalarGridSpec(
            num_scalar_prefetch=0,
            grid=(N,),
            in_specs=[
                pl.BlockSpec((1, HpW, C1), lambda n: (n, 0, 0)),
                pl.BlockSpec((3, 3 * C1, C2), lambda n: (0, 0, 0)),
                pl.BlockSpec((3, 3 * C2, C2), lambda n: (0, 0, 0)),
                pl.BlockSpec((1, C2), lambda n: (0, 0)),
                pl.BlockSpec((1, C2), lambda n: (0, 0)),
            ],
            out_specs=pl.BlockSpec((1, HW, C2), lambda n: (n, 0, 0)),
            scratch_shapes=[
                pltpu.VMEM((HpW, 3 * C1), jnp.bfloat16),   # [x<<d | x | x>>d]
                pltpu.VMEM((HpW, 3 * C2), jnp.bfloat16),   # same for intermediate
            ],
        ),
        compiler_params=pltpu.CompilerParams(
            dimension_semantics=("parallel",),     # batch across TCs (v7x)
            vmem_limit_bytes=32 * 1024 * 1024,
        ),
    )(x, w1, w2, b1, b2)

    # drop channel padding, back to NCHW.
    out = out[:, :, :Cout].reshape(N, H, W, Cout)
    return jnp.transpose(out, (0, 3, 1, 2))


def _reference_forward(x_nchw, params, dilation):
    """Plain-JAX reference matching the kernel's folded-bf16 / f32-accum precision."""
    d = int(dilation)
    x = jnp.transpose(x_nchw, (0, 2, 3, 1))

    def layer(inp, w, gamma, beta, mean, var):
        s, b = fold_bn(gamma, beta, mean, var)
        wf = (w * s[None, None, None, :]).astype(jnp.bfloat16)
        y = lax.conv_general_dilated(
            inp.astype(jnp.bfloat16), wf,
            window_strides=(1, 1), padding=[(d, d), (d, d)],
            rhs_dilation=(d, d),
            dimension_numbers=("NHWC", "HWIO", "NHWC"),
            preferred_element_type=jnp.float32)
        return jnp.maximum(y + b, 0.0)

    y = layer(x, params["w1"], params["bn1_gamma"], params["bn1_beta"],
              params["bn1_mean"], params["bn1_var"])
    y = layer(y, params["w2"], params["bn2_gamma"], params["bn2_beta"],
              params["bn2_mean"], params["bn2_var"])
    return jnp.transpose(y, (0, 3, 1, 2))


def make_params(key, in_channels, out_channels):
    ks = jax.random.split(key, 6)
    # conv weights stored HWIO (3,3,Cin,Cout); equivalent to PyTorch OIHW transposed.
    w1 = jax.random.normal(ks[0], (3, 3, in_channels, out_channels), jnp.float32) * 0.1
    w2 = jax.random.normal(ks[1], (3, 3, out_channels, out_channels), jnp.float32) * 0.1
    return {
        "w1": w1, "w2": w2,
        "bn1_gamma": 1.0 + 0.1 * jax.random.normal(ks[2], (out_channels,), jnp.float32),
        "bn1_beta": 0.1 * jax.random.normal(ks[3], (out_channels,), jnp.float32),
        "bn1_mean": jnp.zeros((out_channels,), jnp.float32),
        "bn1_var": jnp.ones((out_channels,), jnp.float32),
        "bn2_gamma": 1.0 + 0.1 * jax.random.normal(ks[4], (out_channels,), jnp.float32),
        "bn2_beta": 0.1 * jax.random.normal(ks[5], (out_channels,), jnp.float32),
        "bn2_mean": jnp.zeros((out_channels,), jnp.float32),
        "bn2_var": jnp.ones((out_channels,), jnp.float32),
    }


if __name__ == "__main__":
    key = jax.random.PRNGKey(0)
    k_x, k_p = jax.random.split(key)

    N, Cin, Cout, H, W = 2, 4, 8, 16, 16
    dilation = 2

    x = jax.random.normal(k_x, (N, Cin, H, W), jnp.float32)   # NCHW like PyTorch
    params = make_params(k_p, Cin, Cout)

    out = jax.block_until_ready(dilation_conv_forward(x, params, dilation))
    ref = jax.block_until_ready(_reference_forward(x, params, dilation))

    assert out.shape == (N, Cout, H, W), out.shape
    max_err = float(jnp.max(jnp.abs(out - ref)))
    assert max_err < 5e-3, max_err

    print("KERNEL_OK")
</pallas_src>

<mosaic_0001>
module attributes {stable_mosaic.version = 11 : i64} {
  func.func @_dilation_block_kernel(%arg0: i32, %arg1: memref<1x320x128xbf16, #tpu.memory_space<vmem>>, %arg2: memref<3x384x128xbf16, #tpu.memory_space<vmem>>, %arg3: memref<3x384x128xbf16, #tpu.memory_space<vmem>>, %arg4: memref<1x128xf32, #tpu.memory_space<vmem>>, %arg5: memref<1x128xf32, #tpu.memory_space<vmem>>, %arg6: memref<1x256x128xf32, #tpu.memory_space<vmem>>, %arg7: memref<320x384xbf16, #tpu.memory_space<vmem>>, %arg8: memref<320x384xbf16, #tpu.memory_space<vmem>>) attributes {dimension_semantics = [#tpu.dimension_semantics<parallel>], iteration_bounds = array<i64: 2>, scalar_prefetch = 0 : i64, scratch_operands = 2 : i64, tpu.core_type = #tpu.core_type<tc>, window_params = [{transform_indices = @transform_0, window_bounds = array<i64: 1, 320, 128>}, {pipeline_mode = #tpu.pipeline_mode<synchronous>, transform_indices = @transform_1, window_bounds = array<i64: 3, 384, 128>}, {pipeline_mode = #tpu.pipeline_mode<synchronous>, transform_indices = @transform_2, window_bounds = array<i64: 3, 384, 128>}, {pipeline_mode = #tpu.pipeline_mode<synchronous>, transform_indices = @transform_3, window_bounds = array<i64: 1, 128>}, {pipeline_mode = #tpu.pipeline_mode<synchronous>, transform_indices = @transform_4, window_bounds = array<i64: 1, 128>}, {transform_indices = @transform_5, window_bounds = array<i64: 1, 256, 128>}]} {
    %0 = tpu.iota {dimensions = array<i32: 0>} : vector<256x1xi32>
    %c16_i32 = arith.constant 16 : i32
    %c0_i32 = arith.constant 0 : i32
    %1 = arith.cmpi eq, %c16_i32, %c0_i32 : i32
    %c1_i32 = arith.constant 1 : i32
    %2 = arith.select %1, %c1_i32, %c16_i32 : i32
    %3 = vector.broadcast %2 : i32 to vector<256x1xi32>
    %4 = arith.remsi %0, %3 : vector<256x1xi32>
    %c0_i32_0 = arith.constant 0 : i32
    %5 = vector.broadcast %c0_i32_0 : i32 to vector<256x1xi32>
    %6 = arith.cmpi ne, %4, %5 : vector<256x1xi32>
    %c0_i32_1 = arith.constant 0 : i32
    %7 = vector.broadcast %c0_i32_1 : i32 to vector<256x1xi32>
    %8 = arith.cmpi slt, %4, %7 : vector<256x1xi32>
    %c0_i32_2 = arith.constant 0 : i32
    %9 = arith.cmpi slt, %2, %c0_i32_2 : i32
    %10 = vector.broadcast %9 : i1 to vector<256x1xi1>
    %11 = vector.broadcast %10 : vector<256x1xi1> to vector<256x1xi1>
    %12 = arith.xori %8, %11 : vector<256x1xi1>
    %13 = arith.andi %12, %6 : vector<256x1xi1>
    %14 = vector.broadcast %2 : i32 to vector<256x1xi32>
    %15 = arith.addi %4, %14 : vector<256x1xi32>
    %16 = arith.select %13, %15, %4 : vector<256x1xi1>, vector<256x1xi32>
    %c2_i32 = arith.constant 2 : i32
    %17 = vector.broadcast %c2_i32 : i32 to vector<256x1xi32>
    %18 = arith.cmpi sge, %16, %17 : vector<256x1xi32>
    %c14_i32 = arith.constant 14 : i32
    %19 = vector.broadcast %c14_i32 : i32 to vector<256x1xi32>
    %20 = arith.cmpi slt, %16, %19 : vector<256x1xi32>
    %cst = arith.constant 0.000000e+00 : bf16
    %21 = vector.broadcast %cst : bf16 to vector<32x384xbf16>
    %cst_3 = arith.constant 0.000000e+00 : bf16
    %22 = vector.broadcast %cst_3 : bf16 to vector<32x384xbf16>
    %c0 = arith.constant 0 : index
    %c0_4 = arith.constant 0 : index
    %23 = vector.load %arg7[%c0, %c0_4] : memref<320x384xbf16, #tpu.memory_space<vmem>>, vector<32x384xbf16>
    tpu.vector_store %arg7[%c0, %c0_4], %21 {strides = array<i32>} : memref<320x384xbf16, #tpu.memory_space<vmem>>, vector<32x384xbf16>,
    %c288 = arith.constant 288 : index
    %c0_5 = arith.constant 0 : index
    %24 = vector.load %arg7[%c288, %c0_5] : memref<320x384xbf16, #tpu.memory_space<vmem>>, vector<32x384xbf16>
    tpu.vector_store %arg7[%c288, %c0_5], %21 {strides = array<i32>} : memref<320x384xbf16, #tpu.memory_space<vmem>>, vector<32x384xbf16>,
    %c0_6 = arith.constant 0 : index
    %c0_7 = arith.constant 0 : index
    %25 = vector.load %arg8[%c0_6, %c0_7] : memref<320x384xbf16, #tpu.memory_space<vmem>>, vector<32x384xbf16>
    tpu.vector_store %arg8[%c0_6, %c0_7], %22 {strides = array<i32>} : memref<320x384xbf16, #tpu.memory_space<vmem>>, vector<32x384xbf16>,
    %c288_8 = arith.constant 288 : index
    %c0_9 = arith.constant 0 : index
    %26 = vector.load %arg8[%c288_8, %c0_9] : memref<320x384xbf16, #tpu.memory_space<vmem>>, vector<32x384xbf16>
    tpu.vector_store %arg8[%c288_8, %c0_9], %22 {strides = array<i32>} : memref<320x384xbf16, #tpu.memory_space<vmem>>, vector<32x384xbf16>,
    %c0_10 = arith.constant 0 : index
    %c32 = arith.constant 32 : index
    %c0_11 = arith.constant 0 : index
    %27 = vector.load %arg1[%c0_10, %c32, %c0_11] : memref<1x320x128xbf16, #tpu.memory_space<vmem>>, vector<1x256x128xbf16>
    %28 = vector.shape_cast %27 : vector<1x256x128xbf16> to vector<256x128xbf16>
    %c32_12 = arith.constant 32 : index
    %c128 = arith.constant 128 : index
    %29 = vector.load %arg7[%c32_12, %c128] : memref<320x384xbf16, #tpu.memory_space<vmem>>, vector<256x128xbf16>
    tpu.vector_store %arg7[%c32_12, %c128], %28 {strides = array<i32>} : memref<320x384xbf16, #tpu.memory_space<vmem>>, vector<256x128xbf16>,
    %c0_13 = arith.constant 0 : index
    %c30 = arith.constant 30 : index
    %c0_14 = arith.constant 0 : index
    %30 = vector.load %arg1[%c0_13, %c30, %c0_14] : memref<1x320x128xbf16, #tpu.memory_space<vmem>>, vector<1x256x128xbf16>
    %31 = vector.shape_cast %30 : vector<1x256x128xbf16> to vector<256x128xbf16>
    %cst_15 = arith.constant 0.000000e+00 : bf16
    %32 = vector.broadcast %cst_15 : bf16 to vector<256x128xbf16>
    %33 = vector.shape_cast %18 : vector<256x1xi1> to vector<256x1xi1>
    %34 = vector.broadcast %33 : vector<256x1xi1> to vector<256x128xi1>
    %35 = arith.select %34, %31, %32 : vector<256x128xi1>, vector<256x128xbf16>
    %c32_16 = arith.constant 32 : index
    %c0_17 = arith.constant 0 : index
    %36 = vector.load %arg7[%c32_16, %c0_17] : memref<320x384xbf16, #tpu.memory_space<vmem>>, vector<256x128xbf16>
    tpu.vector_store %arg7[%c32_16, %c0_17], %35 {strides = array<i32>} : memref<320x384xbf16, #tpu.memory_space<vmem>>, vector<256x128xbf16>,
    %c0_18 = arith.constant 0 : index
    %c34 = arith.constant 34 : index
    %c0_19 = arith.constant 0 : index
    %37 = vector.load %arg1[%c0_18, %c34, %c0_19] : memref<1x320x128xbf16, #tpu.memory_space<vmem>>, vector<1x256x128xbf16>
    %38 = vector.shape_cast %37 : vector<1x256x128xbf16> to vector<256x128xbf16>
    %cst_20 = arith.constant 0.000000e+00 : bf16
    %39 = vector.broadcast %cst_20 : bf16 to vector<256x128xbf16>
    %40 = vector.shape_cast %20 : vector<256x1xi1> to vector<256x1xi1>
    %41 = vector.broadcast %40 : vector<256x1xi1> to vector<256x128xi1>
    %42 = arith.select %41, %38, %39 : vector<256x128xi1>, vector<256x128xbf16>
    %c32_21 = arith.constant 32 : index
    %c256 = arith.constant 256 : index
    %43 = vector.load %arg7[%c32_21, %c256] : memref<320x384xbf16, #tpu.memory_space<vmem>>, vector<256x128xbf16>
    tpu.vector_store %arg7[%c32_21, %c256], %42 {strides = array<i32>} : memref<320x384xbf16, #tpu.memory_space<vmem>>, vector<256x128xbf16>,
    %c0_i32_22 = arith.constant 0 : i32
    %c128_i32 = arith.constant 128 : i32
    %44 = arith.muli %c0_i32_22, %c128_i32 : i32
    %45 = tpu.assume_multiple %44, 8 : i32
    %cst_23 = arith.constant 0.000000e+00 : f32
    %46 = vector.broadcast %cst_23 : f32 to vector<128x128xf32>
    %c0_i32_24 = arith.constant 0 : i32
    %47 = arith.addi %45, %c0_i32_24 : i32
    %48 = arith.index_cast %47 : i32 to index
    %c0_25 = arith.constant 0 : index
    %49 = vector.load %arg7[%48, %c0_25] : memref<320x384xbf16, #tpu.memory_space<vmem>>, vector<128x384xbf16>
    %c0_26 = arith.constant 0 : index
    %c0_27 = arith.constant 0 : index
    %c0_28 = arith.constant 0 : index
    %50 = vector.load %arg2[%c0_26, %c0_27, %c0_28] : memref<3x384x128xbf16, #tpu.memory_space<vmem>>, vector<1x384x128xbf16>
    %51 = vector.shape_cast %50 : vector<1x384x128xbf16> to vector<384x128xbf16>
    %cst_29 = arith.constant dense<0.000000e+00> : vector<128x128xf32>
    %52 = tpu.matmul %49, %51, %cst_29 {dimension_numbers = #tpu.dot_dimension_numbers<[1], [0], [0], [1], [0, 0, 1, 1], [], []>} : vector<128x384xbf16>, vector<384x128xbf16>, vector<128x128xf32> -> vector<128x128xf32>
    %53 = arith.addf %46, %52 : vector<128x128xf32>
    %c32_i32 = arith.constant 32 : i32
    %54 = arith.addi %45, %c32_i32 : i32
    %55 = arith.index_cast %54 : i32 to index
    %c0_30 = arith.constant 0 : index
    %56 = vector.load %arg7[%55, %c0_30] : memref<320x384xbf16, #tpu.memory_space<vmem>>, vector<128x384xbf16>
    %c1 = arith.constant 1 : index
    %c0_31 = arith.constant 0 : index
    %c0_32 = arith.constant 0 : index
    %57 = vector.load %arg2[%c1, %c0_31, %c0_32] : memref<3x384x128xbf16, #tpu.memory_space<vmem>>, vector<1x384x128xbf16>
    %58 = vector.shape_cast %57 : vector<1x384x128xbf16> to vector<384x128xbf16>
    %cst_33 = arith.constant dense<0.000000e+00> : vector<128x128xf32>
    %59 = tpu.matmul %56, %58, %cst_33 {dimension_numbers = #tpu.dot_dimension_numbers<[1], [0], [0], [1], [0, 0, 1, 1], [], []>} : vector<128x384xbf16>, vector<384x128xbf16>, vector<128x128xf32> -> vector<128x128xf32>
    %60 = arith.addf %53, %59 : vector<128x128xf32>
    %c64_i32 = arith.constant 64 : i32
    %61 = arith.addi %45, %c64_i32 : i32
    %62 = arith.index_cast %61 : i32 to index
    %c0_34 = arith.constant 0 : index
    %63 = vector.load %arg7[%62, %c0_34] : memref<320x384xbf16, #tpu.memory_space<vmem>>, vector<128x384xbf16>
    %c2 = arith.constant 2 : index
    %c0_35 = arith.constant 0 : index
    %c0_36 = arith.constant 0 : index
    %64 = vector.load %arg2[%c2, %c0_35, %c0_36] : memref<3x384x128xbf16, #tpu.memory_space<vmem>>, vector<1x384x128xbf16>
    %65 = vector.shape_cast %64 : vector<1x384x128xbf16> to vector<384x128xbf16>
    %cst_37 = arith.constant dense<0.000000e+00> : vector<128x128xf32>
    %66 = tpu.matmul %63, %65, %cst_37 {dimension_numbers = #tpu.dot_dimension_numbers<[1], [0], [0], [1], [0, 0, 1, 1], [], []>} : vector<128x384xbf16>, vector<384x128xbf16>, vector<128x128xf32> -> vector<128x128xf32>
    %67 = arith.addf %60, %66 : vector<128x128xf32>
    %c0_38 = arith.constant 0 : index
    %c0_39 = arith.constant 0 : index
    %68 = vector.load %arg4[%c0_38, %c0_39] : memref<1x128xf32, #tpu.memory_space<vmem>>, vector<1x128xf32>
    %69 = vector.broadcast %68 : vector<1x128xf32> to vector<128x128xf32>
    %70 = arith.addf %67, %69 : vector<128x128xf32>
    %cst_40 = arith.constant 0.000000e+00 : f32
    %71 = vector.broadcast %cst_40 : f32 to vector<128x128xf32>
    %72 = arith.maximumf %70, %71 : vector<128x128xf32>
    %73 = arith.truncf %72 : vector<128x128xf32> to vector<128x128xbf16>
    %c32_i32_41 = arith.constant 32 : i32
    %74 = arith.addi %c32_i32_41, %45 : i32
    %75 = arith.index_cast %74 : i32 to index
    %c128_42 = arith.constant 128 : index
    %76 = vector.load %arg8[%75, %c128_42] : memref<320x384xbf16, #tpu.memory_space<vmem>>, vector<128x128xbf16>
    tpu.vector_store %arg8[%75, %c128_42], %73 {strides = array<i32>} : memref<320x384xbf16, #tpu.memory_space<vmem>>, vector<128x128xbf16>,
    %c1_i32_43 = arith.constant 1 : i32
    %c128_i32_44 = arith.constant 128 : i32
    %77 = arith.muli %c1_i32_43, %c128_i32_44 : i32
    %78 = tpu.assume_multiple %77, 8 : i32
    %cst_45 = arith.constant 0.000000e+00 : f32
    %79 = vector.broadcast %cst_45 : f32 to vector<128x128xf32>
    %c0_i32_46 = arith.constant 0 : i32
    %80 = arith.addi %78, %c0_i32_46 : i32
    %81 = arith.index_cast %80 : i32 to index
    %c0_47 = arith.constant 0 : index
    %82 = vector.load %arg7[%81, %c0_47] : memref<320x384xbf16, #tpu.memory_space<vmem>>, vector<128x384xbf16>
    %c0_48 = arith.constant 0 : index
    %c0_49 = arith.constant 0 : index
    %c0_50 = arith.constant 0 : index
    %83 = vector.load %arg2[%c0_48, %c0_49, %c0_50] : memref<3x384x128xbf16, #tpu.memory_space<vmem>>, vector<1x384x128xbf16>
    %84 = vector.shape_cast %83 : vector<1x384x128xbf16> to vector<384x128xbf16>
    %cst_51 = arith.constant dense<0.000000e+00> : vector<128x128xf32>
    %85 = tpu.matmul %82, %84, %cst_51 {dimension_numbers = #tpu.dot_dimension_numbers<[1], [0], [0], [1], [0, 0, 1, 1], [], []>} : vector<128x384xbf16>, vector<384x128xbf16>, vector<128x128xf32> -> vector<128x128xf32>
    %86 = arith.addf %79, %85 : vector<128x128xf32>
    %c32_i32_52 = arith.constant 32 : i32
    %87 = arith.addi %78, %c32_i32_52 : i32
    %88 = arith.index_cast %87 : i32 to index
    %c0_53 = arith.constant 0 : index
    %89 = vector.load %arg7[%88, %c0_53] : memref<320x384xbf16, #tpu.memory_space<vmem>>, vector<128x384xbf16>
    %c1_54 = arith.constant 1 : index
    %c0_55 = arith.constant 0 : index
    %c0_56 = arith.constant 0 : index
    %90 = vector.load %arg2[%c1_54, %c0_55, %c0_56] : memref<3x384x128xbf16, #tpu.memory_space<vmem>>, vector<1x384x128xbf16>
    %91 = vector.shape_cast %90 : vector<1x384x128xbf16> to vector<384x128xbf16>
    %cst_57 = arith.constant dense<0.000000e+00> : vector<128x128xf32>
    %92 = tpu.matmul %89, %91, %cst_57 {dimension_numbers = #tpu.dot_dimension_numbers<[1], [0], [0], [1], [0, 0, 1, 1], [], []>} : vector<128x384xbf16>, vector<384x128xbf16>, vector<128x128xf32> -> vector<128x128xf32>
    %93 = arith.addf %86, %92 : vector<128x128xf32>
    %c64_i32_58 = arith.constant 64 : i32
    %94 = arith.addi %78, %c64_i32_58 : i32
    %95 = arith.index_cast %94 : i32 to index
    %c0_59 = arith.constant 0 : index
    %96 = vector.load %arg7[%95, %c0_59] : memref<320x384xbf16, #tpu.memory_space<vmem>>, vector<128x384xbf16>
    %c2_60 = arith.constant 2 : index
    %c0_61 = arith.constant 0 : index
    %c0_62 = arith.constant 0 : index
    %97 = vector.load %arg2[%c2_60, %c0_61, %c0_62] : memref<3x384x128xbf16, #tpu.memory_space<vmem>>, vector<1x384x128xbf16>
    %98 = vector.shape_cast %97 : vector<1x384x128xbf16> to vector<384x128xbf16>
    %cst_63 = arith.constant dense<0.000000e+00> : vector<128x128xf32>
    %99 = tpu.matmul %96, %98, %cst_63 {dimension_numbers = #tpu.dot_dimension_numbers<[1], [0], [0], [1], [0, 0, 1, 1], [], []>} : vector<128x384xbf16>, vector<384x128xbf16>, vector<128x128xf32> -> vector<128x128xf32>
    %100 = arith.addf %93, %99 : vector<128x128xf32>
    %c0_64 = arith.constant 0 : index
    %c0_65 = arith.constant 0 : index
    %101 = vector.load %arg4[%c0_64, %c0_65] : memref<1x128xf32, #tpu.memory_space<vmem>>, vector<1x128xf32>
    %102 = vector.broadcast %101 : vector<1x128xf32> to vector<128x128xf32>
    %103 = arith.addf %100, %102 : vector<128x128xf32>
    %cst_66 = arith.constant 0.000000e+00 : f32
    %104 = vector.broadcast %cst_66 : f32 to vector<128x128xf32>
    %105 = arith.maximumf %103, %104 : vector<128x128xf32>
    %106 = arith.truncf %105 : vector<128x128xf32> to vector<128x128xbf16>
    %c32_i32_67 = arith.constant 32 : i32
    %107 = arith.addi %c32_i32_67, %78 : i32
    %108 = arith.index_cast %107 : i32 to index
    %c128_68 = arith.constant 128 : index
    %109 = vector.load %arg8[%108, %c128_68] : memref<320x384xbf16, #tpu.memory_space<vmem>>, vector<128x128xbf16>
    tpu.vector_store %arg8[%108, %c128_68], %106 {strides = array<i32>} : memref<320x384xbf16, #tpu.memory_space<vmem>>, vector<128x128xbf16>,
    %c2_i32_69 = arith.constant 2 : i32
    %c30_70 = arith.constant 30 : index
    %c128_71 = arith.constant 128 : index
    %110 = vector.load %arg8[%c30_70, %c128_71] : memref<320x384xbf16, #tpu.memory_space<vmem>>, vector<256x128xbf16>
    %cst_72 = arith.constant 0.000000e+00 : bf16
    %111 = vector.broadcast %cst_72 : bf16 to vector<256x128xbf16>
    %112 = vector.shape_cast %18 : vector<256x1xi1> to vector<256x1xi1>
    %113 = vector.broadcast %112 : vector<256x1xi1> to vector<256x128xi1>
    %114 = arith.select %113, %110, %111 : vector<256x128xi1>, vector<256x128xbf16>
    %c32_73 = arith.constant 32 : index
    %c0_74 = arith.constant 0 : index
    %115 = vector.load %arg8[%c32_73, %c0_74] : memref<320x384xbf16, #tpu.memory_space<vmem>>, vector<256x128xbf16>
    tpu.vector_store %arg8[%c32_73, %c0_74], %114 {strides = array<i32>} : memref<320x384xbf16, #tpu.memory_space<vmem>>, vector<256x128xbf16>,
    %c34_75 = arith.constant 34 : index
    %c128_76 = arith.constant 128 : index
    %116 = vector.load %arg8[%c34_75, %c128_76] : memref<320x384xbf16, #tpu.memory_space<vmem>>, vector<256x128xbf16>
    %cst_77 = arith.constant 0.000000e+00 : bf16
    %117 = vector.broadcast %cst_77 : bf16 to vector<256x128xbf16>
    %118 = vector.shape_cast %20 : vector<256x1xi1> to vector<256x1xi1>
    %119 = vector.broadcast %118 : vector<256x1xi1> to vector<256x128xi1>
    %120 = arith.select %119, %116, %117 : vector<256x128xi1>, vector<256x128xbf16>
    %c32_78 = arith.constant 32 : index
    %c256_79 = arith.constant 256 : index
    %121 = vector.load %arg8[%c32_78, %c256_79] : memref<320x384xbf16, #tpu.memory_space<vmem>>, vector<256x128xbf16>
    tpu.vector_store %arg8[%c32_78, %c256_79], %120 {strides = array<i32>} : memref<320x384xbf16, #tpu.memory_space<vmem>>, vector<256x128xbf16>,
    %c0_i32_80 = arith.constant 0 : i32
    %c128_i32_81 = arith.constant 128 : i32
    %122 = arith.muli %c0_i32_80, %c128_i32_81 : i32
    %123 = tpu.assume_multiple %122, 8 : i32
    %cst_82 = arith.constant 0.000000e+00 : f32
    %124 = vector.broadcast %cst_82 : f32 to vector<128x128xf32>
    %c0_i32_83 = arith.constant 0 : i32
    %125 = arith.addi %123, %c0_i32_83 : i32
    %126 = arith.index_cast %125 : i32 to index
    %c0_84 = arith.constant 0 : index
    %127 = vector.load %arg8[%126, %c0_84] : memref<320x384xbf16, #tpu.memory_space<vmem>>, vector<128x384xbf16>
    %c0_85 = arith.constant 0 : index
    %c0_86 = arith.constant 0 : index
    %c0_87 = arith.constant 0 : index
    %128 = vector.load %arg3[%c0_85, %c0_86, %c0_87] : memref<3x384x128xbf16, #tpu.memory_space<vmem>>, vector<1x384x128xbf16>
    %129 = vector.shape_cast %128 : vector<1x384x128xbf16> to vector<384x128xbf16>
    %cst_88 = arith.constant dense<0.000000e+00> : vector<128x128xf32>
    %130 = tpu.matmul %127, %129, %cst_88 {dimension_numbers = #tpu.dot_dimension_numbers<[1], [0], [0], [1], [0, 0, 1, 1], [], []>} : vector<128x384xbf16>, vector<384x128xbf16>, vector<128x128xf32> -> vector<128x128xf32>
    %131 = arith.addf %124, %130 : vector<128x128xf32>
    %c32_i32_89 = arith.constant 32 : i32
    %132 = arith.addi %123, %c32_i32_89 : i32
    %133 = arith.index_cast %132 : i32 to index
    %c0_90 = arith.constant 0 : index
    %134 = vector.load %arg8[%133, %c0_90] : memref<320x384xbf16, #tpu.memory_space<vmem>>, vector<128x384xbf16>
    %c1_91 = arith.constant 1 : index
    %c0_92 = arith.constant 0 : index
    %c0_93 = arith.constant 0 : index
    %135 = vector.load %arg3[%c1_91, %c0_92, %c0_93] : memref<3x384x128xbf16, #tpu.memory_space<vmem>>, vector<1x384x128xbf16>
    %136 = vector.shape_cast %135 : vector<1x384x128xbf16> to vector<384x128xbf16>
    %cst_94 = arith.constant dense<0.000000e+00> : vector<128x128xf32>
    %137 = tpu.matmul %134, %136, %cst_94 {dimension_numbers = #tpu.dot_dimension_numbers<[1], [0], [0], [1], [0, 0, 1, 1], [], []>} : vector<128x384xbf16>, vector<384x128xbf16>, vector<128x128xf32> -> vector<128x128xf32>
    %138 = arith.addf %131, %137 : vector<128x128xf32>
    %c64_i32_95 = arith.constant 64 : i32
    %139 = arith.addi %123, %c64_i32_95 : i32
    %140 = arith.index_cast %139 : i32 to index
    %c0_96 = arith.constant 0 : index
    %141 = vector.load %arg8[%140, %c0_96] : memref<320x384xbf16, #tpu.memory_space<vmem>>, vector<128x384xbf16>
    %c2_97 = arith.constant 2 : index
    %c0_98 = arith.constant 0 : index
    %c0_99 = arith.constant 0 : index
    %142 = vector.load %arg3[%c2_97, %c0_98, %c0_99] : memref<3x384x128xbf16, #tpu.memory_space<vmem>>, vector<1x384x128xbf16>
    %143 = vector.shape_cast %142 : vector<1x384x128xbf16> to vector<384x128xbf16>
    %cst_100 = arith.constant dense<0.000000e+00> : vector<128x128xf32>
    %144 = tpu.matmul %141, %143, %cst_100 {dimension_numbers = #tpu.dot_dimension_numbers<[1], [0], [0], [1], [0, 0, 1, 1], [], []>} : vector<128x384xbf16>, vector<384x128xbf16>, vector<128x128xf32> -> vector<128x128xf32>
    %145 = arith.addf %138, %144 : vector<128x128xf32>
    %c0_101 = arith.constant 0 : index
    %c0_102 = arith.constant 0 : index
    %146 = vector.load %arg5[%c0_101, %c0_102] : memref<1x128xf32, #tpu.memory_space<vmem>>, vector<1x128xf32>
    %147 = vector.broadcast %146 : vector<1x128xf32> to vector<128x128xf32>
    %148 = arith.addf %145, %147 : vector<128x128xf32>
    %cst_103 = arith.constant 0.000000e+00 : f32
    %149 = vector.broadcast %cst_103 : f32 to vector<128x128xf32>
    %150 = arith.maximumf %148, %149 : vector<128x128xf32>
    %c0_104 = arith.constant 0 : index
    %151 = arith.index_cast %123 : i32 to index
    %c0_105 = arith.constant 0 : index
    %152 = vector.load %arg6[%c0_104, %151, %c0_105] : memref<1x256x128xf32, #tpu.memory_space<vmem>>, vector<1x128x128xf32>
    %153 = vector.shape_cast %152 : vector<1x128x128xf32> to vector<128x128xf32>
    %154 = vector.shape_cast %150 : vector<128x128xf32> to vector<1x128x128xf32>
    tpu.vector_store %arg6[%c0_104, %151, %c0_105], %154 {strides = array<i32>} : memref<1x256x128xf32, #tpu.memory_space<vmem>>, vector<1x128x128xf32>,
    %c1_i32_106 = arith.constant 1 : i32
    %c128_i32_107 = arith.constant 128 : i32
    %155 = arith.muli %c1_i32_106, %c128_i32_107 : i32
    %156 = tpu.assume_multiple %155, 8 : i32
    %cst_108 = arith.constant 0.000000e+00 : f32
    %157 = vector.broadcast %cst_108 : f32 to vector<128x128xf32>
    %c0_i32_109 = arith.constant 0 : i32
    %158 = arith.addi %156, %c0_i32_109 : i32
    %159 = arith.index_cast %158 : i32 to index
    %c0_110 = arith.constant 0 : index
    %160 = vector.load %arg8[%159, %c0_110] : memref<320x384xbf16, #tpu.memory_space<vmem>>, vector<128x384xbf16>
    %c0_111 = arith.constant 0 : index
    %c0_112 = arith.constant 0 : index
    %c0_113 = arith.constant 0 : index
    %161 = vector.load %arg3[%c0_111, %c0_112, %c0_113] : memref<3x384x128xbf16, #tpu.memory_space<vmem>>, vector<1x384x128xbf16>
    %162 = vector.shape_cast %161 : vector<1x384x128xbf16> to vector<384x128xbf16>
    %cst_114 = arith.constant dense<0.000000e+00> : vector<128x128xf32>
    %163 = tpu.matmul %160, %162, %cst_114 {dimension_numbers = #tpu.dot_dimension_numbers<[1], [0], [0], [1], [0, 0, 1, 1], [], []>} : vector<128x384xbf16>, vector<384x128xbf16>, vector<128x128xf32> -> vector<128x128xf32>
    %164 = arith.addf %157, %163 : vector<128x128xf32>
    %c32_i32_115 = arith.constant 32 : i32
    %165 = arith.addi %156, %c32_i32_115 : i32
    %166 = arith.index_cast %165 : i32 to index
    %c0_116 = arith.constant 0 : index
    %167 = vector.load %arg8[%166, %c0_116] : memref<320x384xbf16, #tpu.memory_space<vmem>>, vector<128x384xbf16>
    %c1_117 = arith.constant 1 : index
    %c0_118 = arith.constant 0 : index
    %c0_119 = arith.constant 0 : index
    %168 = vector.load %arg3[%c1_117, %c0_118, %c0_119] : memref<3x384x128xbf16, #tpu.memory_space<vmem>>, vector<1x384x128xbf16>
    %169 = vector.shape_cast %168 : vector<1x384x128xbf16> to vector<384x128xbf16>
    %cst_120 = arith.constant dense<0.000000e+00> : vector<128x128xf32>
    %170 = tpu.matmul %167, %169, %cst_120 {dimension_numbers = #tpu.dot_dimension_numbers<[1], [0], [0], [1], [0, 0, 1, 1], [], []>} : vector<128x384xbf16>, vector<384x128xbf16>, vector<128x128xf32> -> vector<128x128xf32>
    %171 = arith.addf %164, %170 : vector<128x128xf32>
    %c64_i32_121 = arith.constant 64 : i32
    %172 = arith.addi %156, %c64_i32_121 : i32
    %173 = arith.index_cast %172 : i32 to index
    %c0_122 = arith.constant 0 : index
    %174 = vector.load %arg8[%173, %c0_122] : memref<320x384xbf16, #tpu.memory_space<vmem>>, vector<128x384xbf16>
    %c2_123 = arith.constant 2 : index
    %c0_124 = arith.constant 0 : index
    %c0_125 = arith.constant 0 : index
    %175 = vector.load %arg3[%c2_123, %c0_124, %c0_125] : memref<3x384x128xbf16, #tpu.memory_space<vmem>>, vector<1x384x128xbf16>
    %176 = vector.shape_cast %175 : vector<1x384x128xbf16> to vector<384x128xbf16>
    %cst_126 = arith.constant dense<0.000000e+00> : vector<128x128xf32>
    %177 = tpu.matmul %174, %176, %cst_126 {dimension_numbers = #tpu.dot_dimension_numbers<[1], [0], [0], [1], [0, 0, 1, 1], [], []>} : vector<128x384xbf16>, vector<384x128xbf16>, vector<128x128xf32> -> vector<128x128xf32>
    %178 = arith.addf %171, %177 : vector<128x128xf32>
    %c0_127 = arith.constant 0 : index
    %c0_128 = arith.constant 0 : index
    %179 = vector.load %arg5[%c0_127, %c0_128] : memref<1x128xf32, #tpu.memory_space<vmem>>, vector<1x128xf32>
    %180 = vector.broadcast %179 : vector<1x128xf32> to vector<128x128xf32>
    %181 = arith.addf %178, %180 : vector<128x128xf32>
    %cst_129 = arith.constant 0.000000e+00 : f32
    %182 = vector.broadcast %cst_129 : f32 to vector<128x128xf32>
    %183 = arith.maximumf %181, %182 : vector<128x128xf32>
    %c0_130 = arith.constant 0 : index
    %184 = arith.index_cast %156 : i32 to index
    %c0_131 = arith.constant 0 : index
    %185 = vector.load %arg6[%c0_130, %184, %c0_131] : memref<1x256x128xf32, #tpu.memory_space<vmem>>, vector<1x128x128xf32>
    %186 = vector.shape_cast %185 : vector<1x128x128xf32> to vector<128x128xf32>
    %187 = vector.shape_cast %183 : vector<128x128xf32> to vector<1x128x128xf32>
    tpu.vector_store %arg6[%c0_130, %184, %c0_131], %187 {strides = array<i32>} : memref<1x256x128xf32, #tpu.memory_space<vmem>>, vector<1x128x128xf32>,
    %c2_i32_132 = arith.constant 2 : i32
    return
  }
  func.func @transform_0(%arg0: i32) -> (i32, i32, i32) {
    %c0_i32 = arith.constant 0 : i32
    %c0_i32_0 = arith.constant 0 : i32
    %c0_i32_1 = arith.constant 0 : i32
    return %arg0, %c0_i32, %c0_i32_0 : i32, i32, i32
  }
  func.func @transform_1(%arg0: i32) -> (i32, i32, i32) {
    %c0_i32 = arith.constant 0 : i32
    %c0_i32_0 = arith.constant 0 : i32
    %c0_i32_1 = arith.constant 0 : i32
    %c0_i32_2 = arith.constant 0 : i32
    return %c0_i32, %c0_i32_0, %c0_i32_1 : i32, i32, i32
  }
  func.func @transform_2(%arg0: i32) -> (i32, i32, i32) {
    %c0_i32 = arith.constant 0 : i32
    %c0_i32_0 = arith.constant 0 : i32
    %c0_i32_1 = arith.constant 0 : i32
    %c0_i32_2 = arith.constant 0 : i32
    return %c0_i32, %c0_i32_0, %c0_i32_1 : i32, i32, i32
  }
  func.func @transform_3(%arg0: i32) -> (i32, i32) {
    %c0_i32 = arith.constant 0 : i32
    %c0_i32_0 = arith.constant 0 : i32
    %c0_i32_1 = arith.constant 0 : i32
    return %c0_i32, %c0_i32_0 : i32, i32
  }
  func.func @transform_4(%arg0: i32) -> (i32, i32) {
    %c0_i32 = arith.constant 0 : i32
    %c0_i32_0 = arith.constant 0 : i32
    %c0_i32_1 = arith.constant 0 : i32
    return %c0_i32, %c0_i32_0 : i32, i32
  }
  func.func @transform_5(%arg0: i32) -> (i32, i32, i32) {
    %c0_i32 = arith.constant 0 : i32
    %c0_i32_0 = arith.constant 0 : i32
    %c0_i32_1 = arith.constant 0 : i32
    return %arg0, %c0_i32, %c0_i32_0 : i32, i32, i32
  }
}

</mosaic_0001>

<bundles_post_ra>
// kernel: tpu_custom_call.1
= control target key start
LH: loop header
LB: loop body
LE: loop exit
PB: predicated region body
PF: predicated region fallthrough
CT: control target
= control target key end

     0   :  { %s15948_s0 = inlined_call_operand.hbm [shape: bf16[2,320,128], index: 0, kind: input, shape index: {}]   ;;  %s15949_s1 = inlined_call_operand.hbm [shape: bf16[3,384,128], index: 1, kind: input, shape index: {}]   ;;  %s15950_s2 = inlined_call_operand.hbm [shape: bf16[3,384,128], index: 2, kind: input, shape index: {}]   ;;  %s15951_s3 = inlined_call_operand.vmem [shape: f32[1,128], index: 3, kind: input, shape index: {}]   ;;  %s15952_s4 = inlined_call_operand.vmem [shape: f32[1,128], index: 4, kind: input, shape index: {}]   ;;  %s15953_s5 = inlined_call_operand.hbm [shape: f32[2,256,128], index: 5, kind: output, shape index: {}]  }
   0x1   :  { %16275 = sst [smem:[#allocation138_spill]] %s15949_s1 }
   0x2   :  { %10 = vsyncpa [#allocation5], 0 }
   0x3   :  { %12 = vsyncpa [#allocation5 + $0x1], 0 }
   0x4   :  { %13 = vsyncpa [#allocation8], 0 }
   0x5   :  { %14 = vsyncpa [#allocation6], 0 }
   0x6   :  { %16 = vsyncpa [#allocation6 + $0x1], 0  ;;  %s12478_s18 = smov 0   ;;  %s12480_s19 = smov 0  }
   0x7   :  { %s12482_s20 = smov 0   ;;  %s12484_s21 = smov 0  }
   0x8 LB: > { %s12499_s22 = sadd.s32 4294967295, %s12438_s21   ;;  %s9277_s23 = sadd.s32 4294967294, %s12438_s21   ;;  %s12438_s21 = sphi %s12484_s21, %s17060_s21   ;;  %s12434_s20 = sphi %s12482_s20, %s17059_s20   ;;  %s12430_s19 = sphi %s12480_s19, %s17058_s19   ;;  %s12426_s18 = sphi %s12478_s18, %s17057_s18  }
   0x9   : > { %p42_p0 = scmp.ne.s32.totalorder %s12430_s19, %s12426_s18  ;;  %p43_p1 = scmp.eq.s32.totalorder %s12499_s22, 0 }
   0xa   : > { %p150_p2 = scmp.eq.s32.totalorder %s12499_s22, 1  ;;  %p156_p3 = scmp.eq.s32.totalorder %s9277_s23, 1 }
   0xb   : > { %p12508_p4 = por %p43_p1, %p42_p0  ;;  %p9278_p5 = scmp.ge.s32.totalorder %s12438_s21, 1 }
   0xc   : > { %p12513_p6 = por %p156_p3, %p42_p0  ;;  %p163_p7 = scmp.lt.s32.totalorder %s12438_s21, 3 }
   0xd   : > { %s16278_s1 = sld [smem:[#allocation138_spill]]  ;;  %s12440_s30 = smov [#allocation7]  }
   0xe   : > { %p12521_p8 = pnand %p9278_p5, %p163_p7  ;;  %s176_s6 = sshll.u32 %s12440_s30, 4  ;;  %s177_s6 = int_to_ptr.vmem [resolvable:$true] %s176_s6 }
   0xf   : > { %s188_s9 = sshll.u32 %s15950_s2, 4  ;;  %s15954_s10 = smov 64   ;;  %s189_s9 = int_to_ptr.hbm [resolvable:$true] %s188_s9 }
  0x10   : > { %p12208_p9 = pneg %p12521_p8  ;;  %s15955_s11 = smov 4  }
  0x11   : > { %s12443_s12 = smov [#allocation9]   ;;  %s12540_s14 = sadd.s32 1, %s12438_s21  }
  0x12   : > { %p12209_p10 = pnand %p12208_p9, %p43_p1  ;;  %s190_s13 = sshll.u32 %s12443_s12, 4  ;;  %s191_s13 = int_to_ptr.vmem [resolvable:$true] %s190_s13 }
  0x13   : > { %s174_s28 = sshll.u32 %s16278_s1, 4  ;;  %s29_s15 = sadd.s32 1, %s12434_s20  ;;  %s175_s28 = int_to_ptr.hbm [resolvable:$true] %s174_s28 }
  0x14   : > { %12211 = dma.hbm_to_vmem [thread:$0]  (!%p12209_p10), %s175_s28, 9216, %s177_s6, [#allocation8], %s15954_s10, %s15954_s10, %s15955_s11  }
  0x15   : > { %12214 = dma.hbm_to_vmem [thread:$0]  (!%p12209_p10), %s189_s9, 9216, %s191_s13, [#allocation8], %s15954_s10, %s15954_s10, %s15955_s11  }
  0x16   : > { %s26_s16 = ssub.s32 %s12438_s21, %s12540_s14  ;;  %p36_p12 = scmp.ne.s32.totalorder %s12434_s20, %s12430_s19 }
  0x17   : > { %p27_p13 = scmp.eq.s32.totalorder %s26_s16, 0  ;;  %p37_p0 = scmp.eq.s32.totalorder %s12438_s21, 0 }
  0x18   : > { %p12550_p3 = por %p150_p2, %p36_p12  ;;  %p12225_p5 = scmp.lt.s32.totalorder %s12438_s21, 2 }
  0x19   : > { %s12556_s23 = scalar_select %p27_p13, %s12434_s20, %s29_s15  }
  0x1a   : > { %p38_p7 = por %p37_p0, %p36_p12  ;;  %s210_s26 = sand.u32 1, %s12434_s20  }
  0x1b   : > { %s12193_s27 = smul.u32 160, %s210_s26  ;;  %s211_s15 = scalar_lea.sflag [#allocation5], %s210_s26 }
  0x1c   : > { %s12194_s28 = smul.u32 160, %s12438_s21  ;;  %p12560_p9 = pnand %p12225_p5, %p38_p7 }
  0x1d   : > { %s214_s9 = scalar_lea.vmem [#allocation4], %s12193_s27  ;;  %s12345_s6 = scalar_lea.hbm %s15948_s0, 320 }
  0x1e   : > { %s219_s8 = scalar_lea.hbm %s15948_s0, %s12194_s28  ;;  %s222_s12 = sshll.u32 %s214_s9, 4  ;;  %s223_s12 = int_to_ptr.vmem [resolvable:$true] %s222_s12 }
  0x1f   : > { %s220_s13 = sshll.u32 %s219_s8, 4  ;;  %p12342_p10 = pneg %p12560_p9  ;;  %s221_s13 = int_to_ptr.hbm [resolvable:$true] %s220_s13 }
  0x20   : > { %s12338_s16 = sshra.s32 %s221_s13, 4  ;;  %s12339_s16 = int_to_ptr.hbm [resolvable:$true] %s12338_s16 }
  0x21   : > { %s12340_s10 = scalar_lea.hbm %s12339_s16, 160  ;;  %p12346_p0 = scmp.lt.s32.totalorder %s12339_s16, %s15948_s0 }
  0x22   : > { %p12341_p2 = scmp.ne.s32.totalorder %s12339_s16, %s12340_s10  ;;  %p12347_p5 = scmp.lt.s32.totalorder %s12345_s6, %s12340_s10 }
  0x24   : > { %p12343_p12 = pnand %p12342_p10, %p12341_p2  ;;  %p12348_p7 = por %p12347_p5, %p12346_p0 }
  0x26   : > { %p12344_p13 = pneg %p12343_p12 }
  0x28   : > { %p12349_p11 = pnand %p12348_p7, %p12344_p13 }
  0x2a   : > { %12352 = shalt.err (!%p12349_p11)
}
  0x2b   : > { %s16282_s26 = smov 4   ;;  %s16283_s27 = smov 64  }
  0x2c   : > { %12218 = dma.hbm_to_vmem [thread:$0]  (!%p12560_p9), %s221_s13, 2560, %s223_s12, %s211_s15, %s16283_s27, %s16283_s27, %s16282_s26  }
  0x2d   : > { %234 = sbr.rel (%p12521_p8) target bundleno = 1421 (0x58d), region = 40 }
  0x32   : > { %s12583_s1 = sand.u32 1, %s12430_s19  }
  0x33   : > { %s12195_s11 = smul.u32 160, %s12583_s1  ;;  %s237_s10 = scalar_lea.sflag [#allocation5], %s12583_s1 }
  0x35   : > { %s12587_s8 = scalar_lea.vmem [#allocation4], %s12195_s11 }
  0x36   : > { %12413 = dma.done.wait (%p12508_p4), %s237_s10, 2560  }
  0x37   : > { %12415 = vsyncadd (%p12508_p4), %s237_s10, 4294964736 }
  0x38   : > { %12417 = dma.done.wait (%p43_p1), [#allocation8], 18432  }
  0x39   : > { %12419 = vsyncadd (%p43_p1), [#allocation8], 4294948864  ;;  %v281_v0 = vlaneseq  ;;  %v12444_v1 = vmov 0   ;;  %v11695_v3 = vld [vmem:[#allocation7 + $0xf8] sm:$0xff]  ;;  %v11694_v8 = vld [vmem:[#allocation7 + $0xf0] sm:$0xff]  ;;  %vm12445_vm0 = vmmov 1  }
  0x3a   : > { %784 = vst [vmem:[#allocation3 + $0x24] sm:$0xff] %v12444_v1  ;;  %v11703_v4 = vld [vmem:[#allocation7 + $0x138] sm:$0xff]  ;;  %2734 = vmatpush.bf16.msra.mxu0 %v11695_v3  ;;  %v11702_v9 = vld [vmem:[#allocation7 + $0x130] sm:$0xff]  ;;  %vm956_vm1 = vmpackc.low %vm12445_vm0, %vm12445_vm0  ;;  %vm1019_vm4 = vcmask 1042432   ;;  %vm1020_vm7 = vcmask 1046532   ;;  %v12644_v35 = vunpack.c.l.b16 %v12444_v1  ;;  %v12647_v36 = vunpack.c.h.b16 %v12444_v1  ;;  %s9286_s28 = sshll.u32 %s12583_s1, 8 }
  0x3b   : > { %762 = vst [vmem:[#allocation2] sm:$0xff] %v12444_v1  ;;  %v12601_v2 = vshrl.u32 %v281_v0, 7  ;;  %v11711_v5 = vld [vmem:[#allocation7 + $0x178] sm:$0xff]  ;;  %2783 = vmatpush.bf16.msra.mxu1 %v11703_v4  ;;  %v11710_v11 = vld [vmem:[#allocation7 + $0x170] sm:$0xff]  ;;  %v988_v15 = vsel %vm956_vm1, 65537, %v12444_v1  ;;  %v11693_v17 = vld [vmem:[#allocation7 + $0xe8] sm:$0xff] }
  0x3c   : > { %763 = vst [vmem:[#allocation2 + $0x8] sm:$0xf] %v12444_v1  ;;  %v11647_v6 = vld [vmem:[#allocation7 + $0x38] sm:$0xff]  ;;  %2832 = vmatpush.bf16.msra.mxu2 %v11711_v5  ;;  %v11646_v12 = vld [vmem:[#allocation7 + $0x30] sm:$0xff]  ;;  %v11701_v18 = vld [vmem:[#allocation7 + $0x128] sm:$0xff]  ;;  %v12623_v24 = vrot.slane %v988_v15, 5 }
  0x3d   : > { %764 = vst [vmem:[#allocation2 + $0xc] sm:$0xff] %v12444_v1  ;;  %v284_v7 = vadd.s32 16, %v12601_v2  ;;  %v283_v10 = vadd.s32 8, %v12601_v2  ;;  %3153 = vmatpush.bf16.msra.mxu3 %v11647_v6  ;;  %v318_v13 = vand.u32 15, %v12601_v2  ;;  %v286_v16 = vadd.s32 32, %v12601_v2  ;;  %v11709_v20 = vld [vmem:[#allocation7 + $0x168] sm:$0xff]  ;;  %vm12674_vm13 = vmor %vm1019_vm4, %vm1020_vm7 }
  0x3e   : > { %765 = vst [vmem:[#allocation2 + $0x14] sm:$0xf] %v12444_v1  ;;  %2735 = vmatpush.bf16.msra.mxu0 %v11694_v8  ;;  %v11645_v21 = vld [vmem:[#allocation7 + $0x28] sm:$0xff]  ;;  %v285_v22 = vadd.s32 24, %v12601_v2  ;;  %v12625_v25 = vrot.slane %v988_v15, 7  ;;  %v11692_v28 = vld [vmem:[#allocation7 + $0xe0] sm:$0xff] }
  0x3f   : > { %766 = vst [vmem:[#allocation2 + $0x18] sm:$0xff] %v12444_v1  ;;  %v332_v14 = vand.u32 15, %v284_v7  ;;  %2784 = vmatpush.bf16.msra.mxu1 %v11702_v9  ;;  %v325_v19 = vand.u32 15, %v283_v10  ;;  %vm12619_vm2 = vcmp.ge.s32.totalorder %v318_v13, 2  ;;  %v346_v27 = vand.u32 15, %v286_v16  ;;  %v11700_v29 = vld [vmem:[#allocation7 + $0x120] sm:$0xff] }
  0x40   : > { %767 = vst [vmem:[#allocation2 + $0x20] sm:$0xf] %v12444_v1  ;;  %2833 = vmatpush.bf16.msra.mxu2 %v11710_v11  ;;  %v1834_v31 = vunpack.c.l.b16 %v12625_v25  ;;  %v1835_v32 = vunpack.c.h.b16 %v12625_v25  ;;  %v11708_v33 = vld [vmem:[#allocation7 + $0x160] sm:$0xff]  ;;  %vm955_vm6 = vmpackc.low %vm12619_vm2, %vm12619_vm2  ;;  %v339_v37 = vand.u32 15, %v285_v22  ;;  %v12655_v39 = vrot.slane %v12623_v24, 4  ;;  %v11691_v44 = vld [vmem:[#allocation7 + $0xd8] sm:$0xff] }
  0x41   : > { %768 = vst [vmem:[#allocation2 + $0x24] sm:$0xff] %v12444_v1  ;;  %3154 = vmatpush.bf16.msra.mxu3 %v11646_v12  ;;  %vm12628_vm3 = vcmp.ge.s32.totalorder %v332_v14, 2  ;;  %vm12634_vm5 = vcmp.lt.s32.totalorder %v325_v19, 14  ;;  %v11644_v34 = vld [vmem:[#allocation7 + $0x20] sm:$0xff]  ;;  %v987_v38 = vsel %vm955_vm6, 65537, %v12444_v1  ;;  %vm1414_vm9 = vcmask 1040384  }
  0x42   : > { %769 = vst [vmem:[#allocation2 + $0x2c] sm:$0xf] %v12444_v1  ;;  %2736 = vmatpush.bf16.msra.mxu0 %v11693_v17  ;;  %vm957_vm8 = vmpackc.low %vm12628_vm3, %vm12628_vm3  ;;  %vm1415_vm10 = vcmask 1044484   ;;  %v1022_v41 = vrot.slane %v987_v38, 5  ;;  %v12666_v42 = vrot.slane %v12625_v25, 4  ;;  %vm12668_vm12 = vcmp.ge.s32.totalorder %v346_v27, 2 }
  0x43   : > { %770 = vst [vmem:[#allocation2 + $0x1b0] sm:$0xff] %v12444_v1  ;;  %2785 = vmatpush.bf16.msra.mxu1 %v11701_v18  ;;  %v12659_v40 = vsel %vm957_vm8, 65537, %v12444_v1  ;;  %vm1676_vm11 = vmpackc.low %vm12634_vm5, %vm12634_vm5  ;;  %v11699_v45 = vld [vmem:[#allocation7 + $0x118] sm:$0xff]  ;;  %vm12682_vm14 = vcmp.ne.s32.totalorder %v1834_v31, %v12644_v35  ;;  %v16294_v49 = vmov 0  ;;  %vm12687_vm15 = vcmp.ne.s32.totalorder %v1835_v32, %v12647_v36  ;;  %v11690_v58 = vld [vmem:[#allocation7 + $0xd0] sm:$0xff]  ;;  %s15737_s26 = scalar_lea.vmem [#allocation10], %s9286_s28 }
  0x44   : > { %771 = vst [vmem:[#allocation2 + $0x1b8] sm:$0xf] %v12444_v1  ;;  %2834 = vmatpush.bf16.msra.mxu2 %v11709_v20  ;;  %v1027_v47 = vrot.slane %v12659_v40, 5  ;;  %v1708_v48 = vsel %vm1676_vm11, 65537, %v12444_v1  ;;  %v16295_v49 = vsel %vm12682_vm14, 4294967295, %v16294_v49  ;;  %v11707_v51 = vld [vmem:[#allocation7 + $0x158] sm:$0xff]  ;;  %v1117_v54 = vunpack.c.l.b16 %v1022_v41  ;;  %vm12693_vm0 = vmor %vm1414_vm9, %vm1415_vm10 }
  0x45   : > { %772 = vst [vmem:[#allocation2 + $0x1bc] sm:$0xff] %v12444_v1  ;;  %3155 = vmatpush.bf16.msra.mxu3 %v11645_v21  ;;  %v11643_v52 = vld [vmem:[#allocation7 + $0x18] sm:$0xff]  ;;  %v1023_v53 = vrot.slane %v1022_v41, 4  ;;  %v1118_v55 = vunpack.c.h.b16 %v1022_v41  ;;  %vm12698_vm1 = vcmp.lt.s32.totalorder %v339_v37, 14  ;;  %v858_v59 = vld [vmem:[%s12587_s8 + $0xc] sm:$0x8]  ;;  %vm15956_vm4 = vmpackc.low %vm12687_vm15, %vm12682_vm14 }
  0x46   : > { %773 = vst [vmem:[#allocation2 + $0x1c4] sm:$0xf] %v12444_v1  ;;  %2737 = vmatpush.bf16.msra.mxu0 %v11692_v28  ;;  %v1028_v60 = vsel %vm12674_vm13, %v12655_v39, %v1027_v47  ;;  %v1741_v61 = vrot.slane %v1708_v48, 7  ;;  %v11698_v62 = vld [vmem:[#allocation7 + $0x110] sm:$0xff]  ;;  %vm12713_vm2 = vcmp.ne.s32.totalorder %v1117_v54, %v12644_v35  ;;  %v16306_v13 = vmov 0  ;;  %v11689_v17 = vld [vmem:[#allocation7 + $0xc8] sm:$0xff]  ;;  %vm16326_vm14 = vmpackc.low %vm12668_vm12, %vm12668_vm12 }
  0x47   : > { %774 = vst [vmem:[#allocation2 + $0x1c8] sm:$0xff] %v12444_v1  ;;  %2786 = vmatpush.bf16.msra.mxu1 %v11700_v29  ;;  %v1025_v63 = vsel %vm12674_vm13, %v1023_v53, %v12623_v24  ;;  %vm12718_vm3 = vcmp.ne.s32.totalorder %v1118_v55, %v12647_v36  ;;  %v1131_v4 = vunpack.c.l.b16 %v1028_v60  ;;  %v1578_v5 = vld [vmem:[%s12587_s8 + $0x10] sm:$0xe]  ;;  %v1132_v10 = vunpack.c.h.b16 %v1028_v60  ;;  %v11697_v18 = vld [vmem:[#allocation7 + $0x108] sm:$0xff]  ;;  %v860_v19 = vld [vmem:[%s12587_s8 + $0x14] sm:$0xf] }
  0x48   : > { %775 = vst [vmem:[#allocation2 + $0x1d0] sm:$0xf] %v12444_v1  ;;  %2835 = vmatpush.bf16.msra.mxu2 %v11708_v33  ;;  %v11706_v6 = vld [vmem:[#allocation7 + $0x150] sm:$0xff]  ;;  %vm15958_vm5 = vmpackc.low %vm12718_vm3, %vm12713_vm2  ;;  %v1124_v8 = vunpack.c.l.b16 %v1025_v63  ;;  %v1125_v9 = vunpack.c.h.b16 %v1025_v63  ;;  %v1742_v11 = vsel %vm12693_vm0, %v12666_v42, %v1741_v61  ;;  %v1743_v15 = vrot.slane %v1741_v61, 4  ;;  %v11705_v26 = vld [vmem:[#allocation7 + $0x148] sm:$0xff]  ;;  %s12192_s10 = sshll.u32 %s12499_s22, 8 }
  0x49   : > { %776 = vst [vmem:[#allocation2 + $0x1d4] sm:$0xff] %v12444_v1  ;;  %3156 = vmatpush.bf16.msra.mxu3 %v11644_v34  ;;  %v859_v7 = vld [vmem:[%s12587_s8 + $0x10] sm:$0xf]  ;;  %vm12738_vm6 = vcmp.ne.s32.totalorder %v1131_v4, %v12644_v35  ;;  %v1348_v14 = vsel %vm15958_vm5, %v858_v59, 0  ;;  %v12749_v16 = vadd.s32 40, %v12601_v2  ;;  %vm12763_vm9 = vcmp.ne.s32.totalorder %v1132_v10, %v12647_v36  ;;  %v11641_v27 = vld [vmem:[#allocation7 + $0x8] sm:$0xff]  ;;  %vm16327_vm12 = vmpackc.low %vm12698_vm1, %vm12698_vm1  ;;  %s9163_s29 = scalar_lea.hbm %s15953_s5, %s12192_s10 }
  0x4a   : > { %777 = vst [vmem:[#allocation2 + $0x1dc] sm:$0xf] %v12444_v1  ;;  %2738 = vmatpush.bf16.msra.mxu0 %v11691_v44  ;;  %v11642_v12 = vld [vmem:[#allocation7 + $0x10] sm:$0xff]  ;;  %v16307_v13 = vsel %vm12738_vm6, 4294967295, %v16306_v13  ;;  %vm12753_vm7 = vcmp.ne.s32.totalorder %v1124_v8, %v12644_v35  ;;  %vm12758_vm8 = vcmp.ne.s32.totalorder %v1125_v9, %v12647_v36  ;;  %v16312_v22 = vmov 0  ;;  %v11688_v53 = vld [vmem:[#allocation7 + $0xc0] sm:$0xff] }
  0x4b   : > { %778 = vst [vmem:[#allocation3] sm:$0xff] %v12444_v1  ;;  %2787 = vmatpush.bf16.msra.mxu1 %v11699_v45  ;;  %v16313_v22 = vsel %vm12763_vm9, 4294967295, %v16312_v22  ;;  %v12773_v23 = vsel %vm15956_vm4, %v1578_v5, 0  ;;  %vm15957_vm11 = vmpackc.low %vm12758_vm8, %vm12753_vm7  ;;  %v9287_v28 = vrot.slane %v1348_v14, 11  ;;  %v1745_v29 = vsel %vm12693_vm0, %v1743_v15, %v12625_v25  ;;  %v794_v33 = vld [vmem:[%s12587_s8 + $0x10] sm:$0xf] }
  0x4c   : > { %779 = vst [vmem:[#allocation3 + $0x8] sm:$0xf] %v12444_v1  ;;  %2836 = vmatpush.bf16.msra.mxu2 %v11707_v51  ;;  %v1841_v30 = vunpack.c.l.b16 %v1742_v11  ;;  %v1842_v31 = vunpack.c.h.b16 %v1742_v11  ;;  %vm15959_vm4 = vmpackc.low %vm12763_vm9, %vm12738_vm6  ;;  %v1349_v32 = vsel %vm15957_vm11, %v859_v7, 0  ;;  %v1579_v34 = vld [vmem:[%s12587_s8 + $0x14] sm:$0xf]  ;;  %v1848_v38 = vunpack.c.l.b16 %v1745_v29  ;;  %v11696_v54 = vld [vmem:[#allocation7 + $0x100] sm:$0xff] }
  0x4d   : > { %780 = vst [vmem:[#allocation3 + $0xc] sm:$0xff] %v12444_v1  ;;  %3157 = vmatpush.bf16.msra.mxu3 %v11643_v52  ;;  %v1580_v37 = vld [vmem:[%s12587_s8 + $0x18] sm:$0xf]  ;;  %v1849_v41 = vunpack.c.h.b16 %v1745_v29  ;;  %v1350_v44 = vsel %vm15959_vm4, %v860_v19, 0  ;;  %v1419_v45 = vrot.slane %v1349_v32, 7  ;;  %v16314_v48 = vmov 0 }
  0x4e   : > { %781 = vst [vmem:[#allocation3 + $0x14] sm:$0xf] %v12444_v1  ;;  %2739 = vmatpush.bf16.msra.mxu0 %v11690_v58  ;;  %vm12806_vm11 = vcmp.ne.s32.totalorder %v1841_v30, %v12644_v35  ;;  %vm12811_vm5 = vcmp.ne.s32.totalorder %v1842_v31, %v12647_v36  ;;  %v16317_v51 = vmov 0  ;;  %v12815_v52 = vld [vmem:[#allocation2] sm:$0xf]  ;;  %v1422_v55 = vrot.slane %v1350_v44, 7 }
  0x4f   : > { %782 = vst [vmem:[#allocation3 + $0x18] sm:$0xff] %v12444_v1  ;;  %2788 = vmatpush.bf16.msra.mxu1 %v11698_v62  ;;  %v16315_v48 = vsel %vm12806_vm11, 4294967295, %v16314_v48  ;;  %v16318_v51 = vsel %vm12811_vm5, 4294967295, %v16317_v51  ;;  %v795_v58 = vld [vmem:[%s12587_s8 + $0x14] sm:$0xf]  ;;  %vm15964_vm4 = vmpackc.low %vm12811_vm5, %vm12806_vm11  ;;  %vm12827_vm6 = vcmp.ne.s32.totalorder %v1848_v38, %v12644_v35  ;;  %v16320_v59 = vmov 0 }
  0x50   : > { %783 = vst [vmem:[#allocation3 + $0x20] sm:$0xf] %v12444_v1  ;;  %2837 = vmatpush.bf16.msra.mxu2 %v11706_v6  ;;  %v16321_v59 = vsel %vm12827_vm6, 4294967295, %v16320_v59  ;;  %vm12832_vm9 = vcmp.ne.s32.totalorder %v1849_v41, %v12647_v36  ;;  %v16323_v60 = vmov 0  ;;  %v9288_v61 = vrot.slane %v12773_v23, 9  ;;  %v11704_v63 = vld [vmem:[#allocation7 + $0x140] sm:$0xff] }
  0x51   : > { %785 = vst [vmem:[#allocation3 + $0x2c] sm:$0xf] %v12444_v1  ;;  %3158 = vmatpush.bf16.msra.mxu3 %v11642_v12  ;;  %v16324_v60 = vsel %vm12832_vm9, 4294967295, %v16323_v60  ;;  %v12837_v62 = vld [vmem:[#allocation2 + $0x8] sm:$0xf0]  ;;  %v11640_v4 = vld [vmem:[#allocation7] sm:$0xff]  ;;  %v1420_v5 = vsel %vm12693_vm0, %v9287_v28, %v1419_v45  ;;  %vm15963_vm10 = vmpackc.low %vm12832_vm9, %vm12827_vm6 }
  0x52   : > { %786 = vst [vmem:[#allocation3 + $0x1b0] sm:$0xff] %v12444_v1  ;;  %v1421_v6 = vrot.slane %v1419_v45, 4  ;;  %v2066_v7 = vsel %vm15964_vm4, %v1579_v34, 0  ;;  %v12857_v8 = vsel %vm16326_vm14, 65537, %v12444_v1  ;;  %2740 = vmatpush.bf16.msra.mxu0 %v11689_v17  ;;  %v2067_v9 = vsel %vm15963_vm10, %v1580_v37, 0  ;;  %v11743_v11 = vld [vmem:[#allocation7 + $0x1b8] sm:$0xff] }
  0x53   : > { %787 = vst [vmem:[#allocation3 + $0x1b8] sm:$0xf] %v12444_v1  ;;  %2789 = vmatpush.bf16.msra.mxu1 %v11697_v18  ;;  %v2133_v10 = vrot.slane %v2066_v7, 5  ;;  %v1029_v12 = vrot.slane %v1027_v47, 4  ;;  %v1033_v43 = vrot.slane %v12857_v8, 5  ;;  %v2136_v15 = vrot.slane %v2067_v9, 5 }
  0x54   : > { %788 = vst [vmem:[#allocation3 + $0x1bc] sm:$0xff] %v12444_v1  ;;  %2838 = vmatpush.bf16.msra.mxu2 %v11705_v26  ;;  %v1423_v14 = vsel %vm12693_vm0, %v1421_v6, %v1422_v55  ;;  %v9484_v17 = vor.u32 %v12837_v62, %v12815_v52  ;;  %v11751_v18 = vld [vmem:[#allocation7 + $0x1f8] sm:$0xff]  ;;  %v1710_v40 = vsel %vm16327_vm12, 65537, %v12444_v1  ;;  %v1424_v41 = vrot.slane %v1422_v55, 4  ;;  %v11742_v52 = vld [vmem:[#allocation7 + $0x1b0] sm:$0xff]  ;;  %s9164_s30 = sshll.u32 %s15737_s26, 4  ;;  %s9165_s30 = int_to_ptr.vmem [resolvable:$true] %s9164_s30 }
  0x55   : > { %789 = vst [vmem:[#allocation3 + $0x1c4] sm:$0xf] %v12444_v1  ;;  %3159 = vmatpush.bf16.msra.mxu3 %v11641_v27  ;;  %v11663_v19 = vld [vmem:[#allocation7 + $0xb8] sm:$0xff]  ;;  %v2134_v47 = vsel %vm12674_vm13, %v9288_v61, %v2133_v10  ;;  %v2135_v23 = vrot.slane %v2133_v10, 4  ;;  %v1031_v28 = vsel %vm12674_vm13, %v1029_v12, %v12623_v24  ;;  %v1034_v29 = vsel %vm12674_vm13, %v12655_v39, %v1033_v43  ;;  %v11662_v61 = vld [vmem:[#allocation7 + $0xb0] sm:$0xff]  ;;  %s9166_s9 = sshll.u32 %s9163_s29, 4  ;;  %s9167_s9 = int_to_ptr.hbm [resolvable:$true] %s9166_s9 }
  0x56   : > { %790 = vst [vmem:[#allocation3 + $0x1c8] sm:$0xff] %v12444_v1  ;;  %v11655_v26 = vld [vmem:[#allocation7 + $0x78] sm:$0xff]  ;;  %v1138_v30 = vunpack.c.l.b16 %v1031_v28  ;;  %v1139_v31 = vunpack.c.h.b16 %v1031_v28  ;;  %v1145_v32 = vunpack.c.l.b16 %v1034_v29  ;;  %2741 = vmatpush.bf16.msra.mxu0 %v11688_v53  ;;  %v1747_v44 = vrot.slane %v1710_v40, 7  ;;  %v11654_v62 = vld [vmem:[#allocation7 + $0x70] sm:$0xff]  ;;  %v799_v9 = vld [vmem:[%s12587_s8 + $0x24] sm:$0xf] }
  0x57   : > { %791 = vst [vmem:[#allocation3 + $0x1d0] sm:$0xf] %v12444_v1  ;;  %v861_v27 = vld [vmem:[%s12587_s8 + $0x18] sm:$0xf]  ;;  %v862_v57 = vld [vmem:[%s12587_s8 + $0x1c] sm:$0xf]  ;;  %2790 = vmatpush.bf16.msra.mxu1 %v11696_v54  ;;  %v2137_v38 = vsel %vm12674_vm13, %v2135_v23, %v2136_v15 }
  0x58   : > { %16316 = vst [vmem:[#allocation14_spill] sm:$0xff] %v16315_v48  ;;  %v796_v34 = vld [vmem:[%s12587_s8 + $0x18] sm:$0xf]  ;;  %v797_v37 = vld [vmem:[%s12587_s8 + $0x1c] sm:$0xf]  ;;  %v12891_v45 = vrot.slane %v2136_v15, 4  ;;  %2839 = vmatpush.bf16.msra.mxu2 %v11704_v63  ;;  %vm12894_vm14 = vcmp.ne.s32.totalorder %v1138_v30, %v12644_v35  ;;  %vm12899_vm1 = vcmp.ne.s32.totalorder %v1139_v31, %v12647_v36  ;;  %vm12904_vm12 = vcmp.ne.s32.totalorder %v1145_v32, %v12644_v35 }
  0x59   : > { %16319 = vst [vmem:[#allocation15_spill] sm:$0xff] %v16318_v51  ;;  %3160 = vmatpush.bf16.msra.mxu3 %v11640_v4  ;;  %v16328_v53 = vmov 0  ;;  %v16331_v54 = vmov 0  ;;  %v16334_v55 = vmov 0  ;;  %v798_v63 = vld [vmem:[%s12587_s8 + $0x20] sm:$0xf]  ;;  %v1748_v6 = vsel %vm12693_vm0, %v12666_v42, %v1747_v44  ;;  %vm16340_vm6 = vmpackc.low %vm12899_vm1, %vm12894_vm14 }
  0x5a   : > { %792 = vst [vmem:[#allocation3 + $0x1d4] sm:$0xff] %v12444_v1  ;;  %v16329_v53 = vsel %vm12894_vm14, 4294967295, %v16328_v53  ;;  %v16332_v54 = vsel %vm12899_vm1, 4294967295, %v16331_v54  ;;  %v16335_v55 = vsel %vm12904_vm12, 4294967295, %v16334_v55  ;;  %v16337_v4 = vmov 0  ;;  %3202 = vmatpush.bf16.msrb.mxu0 %v11655_v26  ;;  %s9152_s22 = scalar_lea.sflag [#allocation6], %s12583_s1 }
  0x5b   : > { %16322 = vst [vmem:[#allocation16_spill] sm:$0xff] %v16321_v59  ;;  %v1749_v7 = vrot.slane %v1747_v44, 4  ;;  %v288_v8 = vadd.s32 48, %v12601_v2  ;;  %3251 = vmatpush.bf16.msrb.mxu1 %v11663_v19  ;;  %v1855_v12 = vunpack.c.l.b16 %v1748_v6  ;;  %v1035_v15 = vrot.slane %v1033_v43, 4  ;;  %v1582_v28 = vld [vmem:[%s12587_s8 + $0x20] sm:$0xf] }
  0x5c   : > { %16325 = vst [vmem:[#allocation17_spill] sm:$0xff] %v16324_v60  ;;  %3659 = vmatpush.bf16.msrb.mxu2 %v11743_v11  ;;  %v1351_v11 = vsel %vm16340_vm6, %v861_v27, 0  ;;  %3161 = vmatmul.bf16.vlgmr.msra.gmra.mxu3 %v9484_v17  ;;  %v16341_v43 = vmov 0  ;;  %v16344_v17 = vmov 0  ;;  %v11790_v60 = vld [vmem:[#allocation7 + $0x30] sm:$0xff]  ;;  %s12382_s12 = sshra.s32 %s9167_s9, 4  ;;  %s12383_s12 = int_to_ptr.hbm [resolvable:$true] %s12382_s12 }
  0x5d   : > { %793 = vst [vmem:[#allocation3 + $0x1dc] sm:$0xf] %v12444_v1  ;;  %3708 = vmatpush.bf16.msrb.mxu3 %v11751_v18  ;;  %v1425_v40 = vrot.slane %v1351_v11, 7  ;;  %v360_v23 = vand.u32 15, %v288_v8  ;;  %vm12943_vm6 = vcmp.ne.s32.totalorder %v1855_v12, %v12644_v35  ;;  %v863_v11 = vld [vmem:[%s12587_s8 + $0x20] sm:$0xf]  ;;  %p12389_p11 = scmp.lt.s32.totalorder %s12383_s12, %s15953_s5 }
  0x5e   : > { %1546 = vst [vmem:[#allocation2 + $0x30] sm:$0xf] %v1420_v5  ;;  %v1581_v5 = vld [vmem:[%s12587_s8 + $0x1c] sm:$0xf]  ;;  %v16342_v43 = vsel %vm12943_vm6, 4294967295, %v16341_v43  ;;  %3203 = vmatpush.bf16.msrb.mxu0 %v11654_v62  ;;  %s12384_s13 = scalar_lea.hbm %s12383_s12, 256 }
  0x5f   : > { %826 = vst [vmem:[#allocation2 + $0x34] sm:$0xf] %v794_v33  ;;  %v1146_v33 = vunpack.c.h.b16 %v1034_v29  ;;  %v1426_v31 = vsel %vm12693_vm0, %v1424_v41, %v1425_v40  ;;  %v1427_v32 = vrot.slane %v1425_v40, 4  ;;  %3252 = vmatpush.bf16.msrb.mxu1 %v11662_v61  ;;  %v9495_v40 = vld [vmem:[#allocation2 + $0x18] sm:$0xf]  ;;  %p12385_p1 = scmp.ne.s32.totalorder %s12383_s12, %s12384_s13  ;;  %s12388_s6 = scalar_lea.hbm %s15953_s5, 512 }
  0x60   : > { %1547 = vst [vmem:[#allocation2 + $0x3c] sm:$0xf] %v1423_v14  ;;  %v1856_v14 = vunpack.c.h.b16 %v1748_v6  ;;  %3660 = vmatpush.bf16.msrb.mxu2 %v11742_v52  ;;  %v815_v51 = vld [vmem:[%s12587_s8 + $0x64] sm:$0xf]  ;;  %v16754_v50 = vld [vmem:[#allocation15_spill] sm:$0xff]  ;;  %p12390_p9 = scmp.lt.s32.totalorder %s12388_s6, %s12384_s13 }
  0x61   : > { %827 = vst [vmem:[#allocation2 + $0x40] sm:$0xf] %v795_v58  ;;  %v11750_v58 = vld [vmem:[#allocation7 + $0x1f0] sm:$0xff]  ;;  %vm12914_vm4 = vcmp.ne.s32.totalorder %v1146_v33, %v12647_v36  ;;  %p12386_p4 = pnand %p12385_p1, %p12550_p3 }
  0x62   : > { %2260 = vst [vmem:[#allocation2 + $0x38] sm:$0xf] %v2134_v47  ;;  %v16338_v4 = vsel %vm12914_vm4, 4294967295, %v16337_v4  ;;  %vm15967_vm10 = vmpackc.low %vm12914_vm4, %vm12904_vm12  ;;  %v1751_v47 = vsel %vm12693_vm0, %v1749_v7, %v12625_v25  ;;  %vm12948_vm9 = vcmp.ne.s32.totalorder %v1856_v14, %v12647_v36  ;;  %3709 = vmatpush.bf16.msrb.mxu3 %v11750_v58  ;;  %vm704_vm4 = vcmp.ge.s32.totalorder %v360_v23, 2  ;;  %p12391_p2 = por %p12390_p9, %p12389_p11 }
  0x63   : > { %2261 = vst [vmem:[#allocation2 + $0x44] sm:$0xf] %v2137_v38  ;;  %v1352_v19 = vsel %vm15967_vm10, %v862_v57, 0  ;;  %v16345_v17 = vsel %vm12948_vm9, 4294967295, %v16344_v17  ;;  %v1862_v29 = vunpack.c.l.b16 %v1751_v47  ;;  %vm15972_vm10 = vmpackc.low %vm12948_vm9, %vm12943_vm6  ;;  %v1863_v33 = vunpack.c.h.b16 %v1751_v47  ;;  %p12387_p8 = pneg %p12386_p4 }
  0x64   : > { %16330 = vst [vmem:[#allocation18_spill] sm:$0xff] %v16329_v53  ;;  %v1428_v27 = vrot.slane %v1352_v19, 7  ;;  %v16347_v38 = vmov 0  ;;  %v2068_v41 = vsel %vm15972_vm10, %v1581_v5, 0  ;;  %v16350_v58 = vmov 0  ;;  %vm961_vm1 = vmpackc.low %vm704_vm4, %vm704_vm4  ;;  %v11741_v19 = vld [vmem:[#allocation7 + $0x1a8] sm:$0xff] }
  0x65   : > { %16333 = vst [vmem:[#allocation19_spill] sm:$0xff] %v16332_v54  ;;  %v9291_v10 = vld [vmem:[#allocation2 + $0x30] sm:$0xf]  ;;  %vm12959_vm12 = vcmp.ne.s32.totalorder %v1862_v29, %v12644_v35  ;;  %vm12971_vm14 = vcmp.ne.s32.totalorder %v1863_v33, %v12647_v36  ;;  %v1037_v5 = vsel %vm12674_vm13, %v1035_v15, %v12623_v24  ;;  %v993_v62 = vsel %vm961_vm1, 65537, %v12444_v1  ;;  %v864_v29 = vld [vmem:[%s12587_s8 + $0x24] sm:$0xf]  ;;  %3661 = vmatpush.bf16.msrb.mxu2 %v11741_v19  ;;  %p12392_p10 = pnand %p12391_p2, %p12387_p8 }
  0x66   : > { %16336 = vst [vmem:[#allocation20_spill] sm:$0xff] %v16335_v55  ;;  %v11664_v18 = vld [vmem:[#allocation2 + $0x34] sm:$0xf]  ;;  %v16348_v38 = vsel %vm12959_vm12, 4294967295, %v16347_v38  ;;  %v1429_v52 = vsel %vm12693_vm0, %v1427_v32, %v1428_v27  ;;  %v16351_v58 = vsel %vm12971_vm14, 4294967295, %v16350_v58  ;;  %vm15973_vm10 = vmpackc.low %vm12971_vm14, %vm12959_vm12  ;;  %v1152_v6 = vunpack.c.l.b16 %v1037_v5  ;;  %v11749_v32 = vld [vmem:[#allocation7 + $0x1e8] sm:$0xff] }
  0x67   : > { %16339 = vst [vmem:[#allocation21_spill] sm:$0xff] %v16338_v4  ;;  %v11665_v26 = vld [vmem:[#allocation2 + $0x38] sm:$0xf0]  ;;  %v1153_v7 = vunpack.c.h.b16 %v1037_v5  ;;  %v2069_v8 = vsel %vm15973_vm10, %v1582_v28, 0  ;;  %v1039_v12 = vrot.slane %v993_v62, 5  ;;  %v16353_v15 = vmov 0  ;;  %3710 = vmatpush.bf16.msrb.mxu3 %v11749_v32 }
  0x68   : > { %828 = vst [vmem:[#allocation2 + $0x4c] sm:$0xf] %v796_v34  ;;  %v9292_v57 = vor.u32 %v11665_v26, %v9291_v10  ;;  %v9293_v30 = vld [vmem:[#allocation2 + $0x3c] sm:$0xf0]  ;;  %v2142_v14 = vrot.slane %v2069_v8, 5  ;;  %vm12993_vm4 = vcmp.ne.s32.totalorder %v1152_v6, %v12644_v35  ;;  %v1430_v23 = vrot.slane %v1428_v27, 4 }
  0x69   : > { %829 = vst [vmem:[#allocation2 + $0x58] sm:$0xf] %v797_v37  ;;  %v9296_v34 = vor.u32 %v11664_v18, %v9293_v30  ;;  %v9299_v37 = vld [vmem:[#allocation2 + $0x38] sm:$0xf]  ;;  %v16354_v15 = vsel %vm12993_vm4, 4294967295, %v16353_v15  ;;  %vm12998_vm1 = vcmp.ne.s32.totalorder %v1153_v7, %v12647_v36  ;;  %v16356_v18 = vmov 0 }
  0x6a   : > { %16343 = vst [vmem:[#allocation22_spill] sm:$0xff] %v16342_v43  ;;  %2742 = vmatmul.bf16.vlgmr.msra.gmra.mxu0 %v9292_v57  ;;  %v11666_v44 = vld [vmem:[#allocation2 + $0x40] sm:$0xf0]  ;;  %v16357_v18 = vsel %vm12998_vm1, 4294967295, %v16356_v18  ;;  %v1040_v47 = vsel %vm12674_vm13, %v12655_v39, %v1039_v12  ;;  %vm15976_vm10 = vmpackc.low %vm12998_vm1, %vm12993_vm4  ;;  %v353_v26 = vand.u32 15, %v12749_v16  ;;  %v11661_v33 = vld [vmem:[#allocation7 + $0xa8] sm:$0xff] }
  0x6b   : > { %16346 = vst [vmem:[#allocation23_spill] sm:$0xff] %v16345_v17  ;;  %2791 = vmatmul.bf16.vlgmr.msra.gmra.mxu1 %v9296_v34  ;;  %v9300_v61 = vor.u32 %v11666_v44, %v9299_v37  ;;  %v1159_v57 = vunpack.c.l.b16 %v1040_v47  ;;  %v1160_v30 = vunpack.c.h.b16 %v1040_v47  ;;  %v16364_v44 = vmov 0  ;;  %v1583_v32 = vld [vmem:[%s12587_s8 + $0x24] sm:$0xf]  ;;  %v11791_v55 = vld [vmem:[#allocation7 + $0x38] sm:$0xff] }
  0x6c   : > { %830 = vst [vmem:[#allocation2 + $0x64] sm:$0xf] %v798_v63  ;;  %v2139_v63 = vrot.slane %v2068_v41, 5  ;;  %vm13020_vm12 = vcmp.lt.s32.totalorder %v353_v26, 14  ;;  %v16361_v41 = vmov 0  ;;  %3253 = vmatpush.bf16.msrb.mxu1 %v11661_v33  ;;  %v16588_v53 = vmov 0 }
  0x6d   : > { %831 = vst [vmem:[#allocation2 + $0x70] sm:$0xf] %v799_v9  ;;  %2840 = vmatmul.bf16.vlgmr.msra.gmra.mxu2 %v9300_v61  ;;  %vm13027_vm14 = vcmp.ne.s32.totalorder %v1159_v57, %v12644_v35  ;;  %vm1680_vm4 = vmpackc.low %vm13020_vm12, %vm13020_vm12  ;;  %v800_v26 = vld [vmem:[%s12587_s8 + $0x28] sm:$0xf]  ;;  %v16591_v54 = vmov 0 }
  0x6e   : > { %1548 = vst [vmem:[#allocation2 + $0x48] sm:$0xf] %v1426_v31  ;;  %v2140_v9 = vsel %vm12674_vm13, %v12891_v45, %v2139_v63  ;;  %v2141_v10 = vrot.slane %v2139_v63, 4  ;;  %v11620_v45 = vld [vmem:[#allocation2 + $0x20] sm:$0xf0]  ;;  %v1353_v31 = vsel %vm15976_vm10, %v863_v11, 0  ;;  %vm13032_vm10 = vcmp.ne.s32.totalorder %v1160_v30, %v12647_v36 }
  0x6f   : > { %16349 = vst [vmem:[#allocation24_spill] sm:$0xff] %v16348_v38  ;;  %v13018_v34 = vld [vmem:[#allocation2 + $0x4c] sm:$0xf]  ;;  %v1431_v27 = vrot.slane %v1353_v31, 7  ;;  %v16362_v41 = vsel %vm13027_vm14, 4294967295, %v16361_v41  ;;  %v16365_v44 = vsel %vm13032_vm10, 4294967295, %v16364_v44  ;;  %v9496_v62 = vor.u32 %v11620_v45, %v9495_v40  ;;  %vm15979_vm1 = vmpackc.low %vm13032_vm10, %vm13027_vm14 }
  0x70   : > { %16352 = vst [vmem:[#allocation25_spill] sm:$0xff] %v16351_v58  ;;  %v2143_v28 = vsel %vm12674_vm13, %v2141_v10, %v2142_v14  ;;  %v13024_v37 = vld [vmem:[#allocation2 + $0x54] sm:$0xf0]  ;;  %v290_v63 = vadd.s32 64, %v12601_v2  ;;  %v1712_v8 = vsel %vm1680_vm4, 65537, %v12444_v1  ;;  %v2144_v11 = vrot.slane %v2142_v14, 4 }
  0x71   : > { %1549 = vst [vmem:[#allocation2 + $0x54] sm:$0xf] %v1429_v52  ;;  %v11653_v52 = vld [vmem:[#allocation7 + $0x68] sm:$0xff]  ;;  %v1432_v6 = vsel %vm12693_vm0, %v1430_v23, %v1431_v27  ;;  %v1433_v7 = vrot.slane %v1431_v27, 4  ;;  %v1753_v10 = vrot.slane %v1712_v8, 7  ;;  %v9308_v40 = vor.u32 %v13018_v34, %v13024_v37  ;;  %3166 = vmatmul.bf16.gmra.mxu3 %v9496_v62 }
  0x72   : > { %2262 = vst [vmem:[#allocation2 + $0x50] sm:$0xf] %v2140_v9  ;;  %v1354_v9 = vsel %vm15979_vm1, %v864_v29, 0  ;;  %3204 = vmatpush.bf16.msrb.mxu0 %v11653_v52  ;;  %v374_v19 = vand.u32 15, %v290_v63  ;;  %v1041_v23 = vrot.slane %v1039_v12, 4  ;;  %v16369_v62 = vmov 0 }
  0x73   : > { %16355 = vst [vmem:[#allocation26_spill] sm:$0xff] %v16354_v15  ;;  %v1434_v47 = vrot.slane %v1354_v9, 7  ;;  %v1754_v57 = vsel %vm12693_vm0, %v12666_v42, %v1753_v10  ;;  %v1755_v29 = vrot.slane %v1753_v10, 4  ;;  %v801_v14 = vld [vmem:[%s12587_s8 + $0x2c] sm:$0xf]  ;;  %v16375_v10 = vmov 0 }
  0x74   : > { %16358 = vst [vmem:[#allocation27_spill] sm:$0xff] %v16357_v18  ;;  %vm13058_vm12 = vcmp.ge.s32.totalorder %v374_v19, 2  ;;  %v1869_v33 = vunpack.c.l.b16 %v1754_v57  ;;  %v1870_v12 = vunpack.c.h.b16 %v1754_v57  ;;  %v865_v34 = vld [vmem:[%s12587_s8 + $0x28] sm:$0xf]  ;;  %v1043_v27 = vsel %vm12674_vm13, %v1041_v23, %v12623_v24 }
  0x75   : > { %2263 = vst [vmem:[#allocation2 + $0x5c] sm:$0xf] %v2143_v28  ;;  %v9303_v5 = vld [vmem:[#allocation2 + $0x48] sm:$0xf]  ;;  %v1435_v31 = vsel %vm12693_vm0, %v1433_v7, %v1434_v47  ;;  %vm963_vm4 = vmpackc.low %vm13058_vm12, %vm13058_vm12  ;;  %v1757_v37 = vsel %vm12693_vm0, %v1755_v29, %v12625_v25  ;;  %v1166_v63 = vunpack.c.l.b16 %v1043_v27  ;;  %v16378_v19 = vmov 0 }
  0x76   : > { %16363 = vst [vmem:[#allocation28_spill] sm:$0xff] %v16362_v41  ;;  %v13077_v52 = vsel %vm963_vm4, 65537, %v12444_v1  ;;  %vm13080_vm12 = vcmp.ne.s32.totalorder %v1869_v33, %v12644_v35  ;;  %vm13085_vm1 = vcmp.ne.s32.totalorder %v1870_v12, %v12647_v36  ;;  %v1876_v7 = vunpack.c.l.b16 %v1757_v37  ;;  %v13120_v29 = vld [vmem:[#allocation2 + $0x64] sm:$0xf] }
  0x77   : > { %16366 = vst [vmem:[#allocation29_spill] sm:$0xff] %v16365_v44  ;;  %v16370_v62 = vsel %vm13080_vm12, 4294967295, %v16369_v62  ;;  %vm15985_vm4 = vmpackc.low %vm13085_vm1, %vm13080_vm12  ;;  %v1877_v8 = vunpack.c.h.b16 %v1757_v37  ;;  %v1045_v9 = vrot.slane %v13077_v52, 5  ;;  %vm13095_vm14 = vcmp.ne.s32.totalorder %v1166_v63, %v12644_v35 }
  0x78   : > { %v11668_v61 = vld [vmem:[#allocation2 + $0x50] sm:$0xf0]  ;;  %1550 = vst [vmem:[#allocation2 + $0x60] sm:$0xf] %v1432_v6  ;;  %v16372_v6 = vmov 0  ;;  %v16376_v10 = vsel %vm13095_vm14, 4294967295, %v16375_v10  ;;  %vm13106_vm6 = vcmp.ne.s32.totalorder %v1876_v7, %v12644_v35 }
  0x79   : > { %v9311_v45 = vld [vmem:[#allocation2 + $0x50] sm:$0xf]  ;;  %v9304_v28 = vor.u32 %v11668_v61, %v9303_v5  ;;  %832 = vst [vmem:[#allocation2 + $0x7c] sm:$0xf] %v800_v26  ;;  %v1167_v5 = vunpack.c.h.b16 %v1043_v27  ;;  %v16373_v6 = vsel %vm13085_vm1, 4294967295, %v16372_v6  ;;  %v16381_v23 = vmov 0 }
  0x7a   : > { %833 = vst [vmem:[#allocation2 + $0x88] sm:$0xf] %v801_v14  ;;  %v16382_v23 = vsel %vm13106_vm6, 4294967295, %v16381_v23  ;;  %v2070_v26 = vsel %vm15985_vm4, %v1583_v32, 0  ;;  %v1436_v57 = vrot.slane %v1434_v47, 4  ;;  %vm13123_vm11 = vcmp.ne.s32.totalorder %v1877_v8, %v12647_v36  ;;  %v11740_v8 = vld [vmem:[#allocation7 + $0x1a0] sm:$0xff] }
  0x7b   : > { %1551 = vst [vmem:[#allocation2 + $0x6c] sm:$0xf] %v1435_v31  ;;  %vm13100_vm10 = vcmp.ne.s32.totalorder %v1167_v5, %v12647_v36  ;;  %2747 = vmatmul.bf16.gmra.mxu0 %v9304_v28  ;;  %v289_v28 = vadd.s32 56, %v12601_v2  ;;  %2796 = vmatmul.bf16.gmra.mxu1 %v9308_v40  ;;  %v16384_v30 = vmov 0  ;;  %v2145_v14 = vrot.slane %v2070_v26, 5  ;;  %vm15988_vm4 = vmpackc.low %vm13123_vm11, %vm13106_vm6  ;;  %v11748_v26 = vld [vmem:[#allocation7 + $0x1e0] sm:$0xff] }
  0x7c   : > { %v11669_v16 = vld [vmem:[#allocation2 + $0x58] sm:$0xf0]  ;;  %16371 = vst [vmem:[#allocation30_spill] sm:$0xff] %v16370_v62  ;;  %v16379_v19 = vsel %vm13100_vm10, 4294967295, %v16378_v19  ;;  %vm15986_vm9 = vmpackc.low %vm13100_vm10, %vm13095_vm14  ;;  %v16385_v30 = vsel %vm13123_vm11, 4294967295, %v16384_v30  ;;  %v1046_v31 = vsel %vm12674_vm13, %v12655_v39, %v1045_v9  ;;  %3662 = vmatpush.bf16.msrb.mxu2 %v11740_v8  ;;  %3711 = vmatpush.bf16.msrb.mxu3 %v11748_v26  ;;  %v1047_v8 = vrot.slane %v1045_v9, 4 }
  0x7d   : > { %v9312_v61 = vor.u32 %v11669_v16, %v9311_v45  ;;  %16374 = vst [vmem:[#allocation31_spill] sm:$0xff] %v16373_v6  ;;  %v1584_v45 = vld [vmem:[%s12587_s8 + $0x28] sm:$0xf]  ;;  %v1355_v47 = vsel %vm15986_vm9, %v865_v34, 0  ;;  %v13135_v32 = vld [vmem:[#allocation2 + $0x6c] sm:$0xf0]  ;;  %v1173_v33 = vunpack.c.l.b16 %v1046_v31  ;;  %v1174_v12 = vunpack.c.h.b16 %v1046_v31 }
  0x7e   : > { %16377 = vst [vmem:[#allocation32_spill] sm:$0xff] %v16376_v10  ;;  %v866_v40 = vld [vmem:[%s12587_s8 + $0x2c] sm:$0xf]  ;;  %v1437_v27 = vrot.slane %v1355_v47, 7  ;;  %v367_v16 = vand.u32 15, %v289_v28  ;;  %v2071_v34 = vsel %vm15988_vm4, %v1584_v45, 0  ;;  %v2146_v52 = vsel %vm12674_vm13, %v2144_v11, %v2145_v14 }
  0x7f   : > { %16380 = vst [vmem:[#allocation33_spill] sm:$0xff] %v16379_v19  ;;  %2845 = vmatmul.bf16.gmra.mxu2 %v9312_v61  ;;  %v13142_v37 = vld [vmem:[#allocation2 + $0x60] sm:$0xf]  ;;  %v2147_v63 = vrot.slane %v2145_v14, 4  ;;  %v9507_v5 = vld [vmem:[#allocation2 + $0x30] sm:$0xf]  ;;  %vm13154_vm9 = vcmp.ne.s32.totalorder %v1173_v33, %v12644_v35  ;;  %vm13159_vm6 = vcmp.ne.s32.totalorder %v1174_v12, %v12647_v36 }
  0x80   : > { %16383 = vst [vmem:[#allocation34_spill] sm:$0xff] %v16382_v23  ;;  %v11623_v7 = vld [vmem:[#allocation2 + $0x38] sm:$0xf0]  ;;  %v2148_v28 = vrot.slane %v2071_v34, 5  ;;  %v16387_v61 = vmov 0  ;;  %v16390_v45 = vmov 0  ;;  %v1438_v11 = vsel %vm12693_vm0, %v1436_v57, %v1437_v27  ;;  %vm15994_vm4 = vmpackc.low %vm13159_vm6, %vm13154_vm9 }
  0x81   : > { %16386 = vst [vmem:[#allocation35_spill] sm:$0xff] %v16385_v30  ;;  %v16388_v61 = vsel %vm13154_vm9, 4294967295, %v16387_v61  ;;  %v16391_v45 = vsel %vm13159_vm6, 4294967295, %v16390_v45  ;;  %v11660_v14 = vld [vmem:[#allocation7 + $0xa0] sm:$0xff]  ;;  %v1439_v47 = vrot.slane %v1437_v27, 4  ;;  %vm737_vm11 = vcmp.lt.s32.totalorder %v367_v16, 14 }
  0x82   : > { %v13151_v31 = vld [vmem:[#allocation2 + $0x68] sm:$0xf0]  ;;  %2264 = vst [vmem:[#allocation2 + $0x68] sm:$0xf] %v2146_v52  ;;  %v11652_v33 = vld [vmem:[#allocation7 + $0x60] sm:$0xff]  ;;  %v2149_v34 = vsel %vm12674_vm13, %v2147_v63, %v2148_v28  ;;  %v1356_v57 = vsel %vm15994_vm4, %v866_v40, 0  ;;  %vm1682_vm14 = vmpackc.low %vm737_vm11, %vm737_vm11  ;;  %3254 = vmatpush.bf16.msrb.mxu1 %v11660_v14 }
  0x83   : > { %16389 = vst [vmem:[#allocation36_spill] sm:$0xff] %v16388_v61  ;;  %v292_v27 = vadd.s32 80, %v12601_v2  ;;  %v1440_v16 = vrot.slane %v1356_v57, 7  ;;  %v1714_v52 = vsel %vm1682_vm14, 65537, %v12444_v1  ;;  %3205 = vmatpush.bf16.msrb.mxu0 %v11652_v33  ;;  %v291_v26 = vadd.s32 72, %v12601_v2 }
  0x84   : > { %16392 = vst [vmem:[#allocation37_spill] sm:$0xff] %v16391_v45  ;;  %v9316_v63 = vor.u32 %v13151_v31, %v13142_v37  ;;  %v1759_v12 = vrot.slane %v1714_v52, 7  ;;  %v802_v45 = vld [vmem:[%s12587_s8 + $0x30] sm:$0xf]  ;;  %v803_v40 = vld [vmem:[%s12587_s8 + $0x34] sm:$0xf] }
  0x85   : > { %1552 = vst [vmem:[#allocation2 + $0x78] sm:$0xf] %v1438_v11  ;;  %v9508_v11 = vor.u32 %v11623_v7, %v9507_v5  ;;  %v388_v61 = vand.u32 15, %v292_v27  ;;  %v1441_v14 = vsel %vm12693_vm0, %v1439_v47, %v1440_v16  ;;  %v2150_v23 = vrot.slane %v2148_v28, 4  ;;  %v1585_v57 = vld [vmem:[%s12587_s8 + $0x2c] sm:$0xf] }
  0x86   : > { %2265 = vst [vmem:[#allocation2 + $0x74] sm:$0xf] %v2149_v34  ;;  %v1049_v34 = vsel %vm12674_vm13, %v1047_v8, %v12623_v24  ;;  %v381_v9 = vand.u32 15, %v291_v26  ;;  %v1760_v37 = vsel %vm12693_vm0, %v12666_v42, %v1759_v12  ;;  %v1761_v5 = vrot.slane %v1759_v12, 4  ;;  %v1586_v8 = vld [vmem:[%s12587_s8 + $0x30] sm:$0xf] }
  0x87   : > { %834 = vst [vmem:[#allocation2 + $0x94] sm:$0xf] %v802_v45  ;;  %vm708_vm11 = vcmp.ge.s32.totalorder %v388_v61, 2  ;;  %v1180_v7 = vunpack.c.l.b16 %v1049_v34  ;;  %v1883_v31 = vunpack.c.l.b16 %v1760_v37  ;;  %v1884_v33 = vunpack.c.h.b16 %v1760_v37  ;;  %3171 = vmatmul.bf16.gmra.mxu3 %v9508_v11 }
  0x88   : > { %1553 = vst [vmem:[#allocation2 + $0x84] sm:$0xf] %v1441_v14  ;;  %vm965_vm14 = vmpackc.low %vm708_vm11, %vm708_vm11  ;;  %v1181_v28 = vunpack.c.h.b16 %v1049_v34  ;;  %vm13193_vm4 = vcmp.lt.s32.totalorder %v381_v9, 14  ;;  %v1763_v12 = vsel %vm12693_vm0, %v1761_v5, %v12625_v25  ;;  %v16395_v27 = vmov 0  ;;  %v867_v34 = vld [vmem:[%s12587_s8 + $0x30] sm:$0xf] }
  0x89   : > { %835 = vst [vmem:[#allocation2 + $0xa0] sm:$0xf] %v803_v40  ;;  %v9323_v45 = vld [vmem:[#allocation2 + $0x68] sm:$0xf]  ;;  %v13202_v61 = vsel %vm965_vm14, 65537, %v12444_v1  ;;  %vm13205_vm9 = vcmp.ne.s32.totalorder %v1180_v7, %v12644_v35  ;;  %v1442_v52 = vrot.slane %v1440_v16, 4  ;;  %vm1684_vm11 = vmpackc.low %vm13193_vm4, %vm13193_vm4  ;;  %vm13214_vm6 = vcmp.ne.s32.totalorder %v1883_v31, %v12644_v35 }
  0x8a   : > { %v16396_v27 = vsel %vm13205_vm9, 4294967295, %v16395_v27  ;;  %v16398_v26 = vmov 0  ;;  %vm13219_vm10 = vcmp.ne.s32.totalorder %v1884_v33, %v12647_v36  ;;  %v16401_v11 = vmov 0  ;;  %847 = vst [vmem:[#allocation2 + $0x130] sm:$0xf] %v815_v51 }
  0x8b   : > { %16397 = vst [vmem:[#allocation38_spill] sm:$0xff] %v16396_v27  ;;  %v16399_v26 = vsel %vm13214_vm6, 4294967295, %v16398_v26  ;;  %v16402_v11 = vsel %vm13219_vm10, 4294967295, %v16401_v11  ;;  %v1890_v40 = vunpack.c.l.b16 %v1763_v12  ;;  %v1891_v14 = vunpack.c.h.b16 %v1763_v12  ;;  %vm16007_vm4 = vmpackc.low %vm13219_vm10, %vm13214_vm6  ;;  %2752 = vmatmul.bf16.gmra.mxu0 %v9316_v63  ;;  %v13261_v12 = vld [vmem:[#allocation2 + $0x50] sm:$0xf0] }
  0x8c   : > { %16400 = vst [vmem:[#allocation39_spill] sm:$0xff] %v16399_v26  ;;  %v16001_v16 = vrot.slane %v13202_v61, 5  ;;  %vm13230_vm14 = vcmp.ne.s32.totalorder %v1181_v28, %v12647_v36  ;;  %v16404_v37 = vmov 0  ;;  %v1716_v5 = vsel %vm1684_vm11, 65537, %v12444_v1 }
  0x8d   : > { %16403 = vst [vmem:[#allocation40_spill] sm:$0xff] %v16402_v11  ;;  %v11672_v9 = vld [vmem:[#allocation2 + $0x70] sm:$0xf0]  ;;  %v16405_v37 = vsel %vm13230_vm14, 4294967295, %v16404_v37  ;;  %v294_v7 = vadd.s32 96, %v12601_v2  ;;  %vm13237_vm12 = vcmp.ne.s32.totalorder %v1890_v40, %v12644_v35  ;;  %v16407_v33 = vmov 0  ;;  %vm16006_vm11 = vmpackc.low %vm13230_vm14, %vm13205_vm9 }
  0x8e   : > { %16406 = vst [vmem:[#allocation41_spill] sm:$0xff] %v16405_v37  ;;  %v9324_v31 = vor.u32 %v11672_v9, %v9323_v45  ;;  %v16408_v33 = vsel %vm13237_vm12, 4294967295, %v16407_v33  ;;  %vm13242_vm1 = vcmp.ne.s32.totalorder %v1891_v14, %v12647_v36  ;;  %v16410_v47 = vmov 0  ;;  %v13259_v45 = vld [vmem:[#allocation2 + $0x48] sm:$0xf] }
  0x8f   : > { %16409 = vst [vmem:[#allocation42_spill] sm:$0xff] %v16408_v33  ;;  %v16411_v47 = vsel %vm13242_vm1, 4294967295, %v16410_v47  ;;  %v2072_v28 = vsel %vm16007_vm4, %v1585_v57, 0  ;;  %vm16008_vm5 = vmpackc.low %vm13242_vm1, %vm13237_vm12  ;;  %v1052_v57 = vsel %vm12674_vm13, %v12655_v39, %v16001_v16  ;;  %v1357_v63 = vsel %vm16006_vm11, %v867_v34, 0  ;;  %v13276_v9 = vld [vmem:[#allocation2 + $0x7c] sm:$0xf] }
  0x90   : > { %16412 = vst [vmem:[#allocation43_spill] sm:$0xff] %v16411_v47  ;;  %v2151_v1 = vrot.slane %v2072_v28, 5  ;;  %v1765_v40 = vrot.slane %v1716_v5, 7  ;;  %v16413_v14 = vor.u32 %v13120_v29, %v13135_v32  ;;  %v13278_v28 = vld [vmem:[#allocation2 + $0x84] sm:$0xf0]  ;;  %v2073_v16 = vsel %vm16008_vm5, %v1586_v8, 0  ;;  %2850 = vmatmul.bf16.gmra.mxu2 %v9324_v31 }
  0x91   : > { %v1187_v37 = vunpack.c.l.b16 %v1052_v57  ;;  %v1188_v26 = vunpack.c.h.b16 %v1052_v57  ;;  %v1443_v27 = vrot.slane %v1357_v63, 7  ;;  %v2154_v11 = vrot.slane %v2073_v16, 5  ;;  %v868_v29 = vld [vmem:[%s12587_s8 + $0x34] sm:$0xf]  ;;  %v11659_v16 = vld [vmem:[#allocation7 + $0x98] sm:$0xff] }
  0x92   : > { %2801 = vmatmul.bf16.gmra.mxu1 %v16413_v14  ;;  %v2152_v34 = vsel %vm12674_vm13, %v2150_v23, %v2151_v1  ;;  %v2153_v5 = vrot.slane %v2151_v1, 4  ;;  %v402_v32 = vand.u32 15, %v294_v7  ;;  %v16414_v14 = vmov 0  ;;  %v11739_v23 = vld [vmem:[#allocation7 + $0x198] sm:$0xff]  ;;  %v11714_v59 = vld [vmem:[#allocation2 + $0x70] sm:$0xf0] }
  0x93   : > { %2266 = vst [vmem:[#allocation2 + $0x80] sm:$0xf] %v2152_v34  ;;  %vm13289_vm11 = vcmp.ne.s32.totalorder %v1187_v37, %v12644_v35  ;;  %vm13294_vm4 = vcmp.ne.s32.totalorder %v1188_v26, %v12647_v36  ;;  %v16417_v8 = vmov 0  ;;  %v1444_v57 = vsel %vm12693_vm0, %v1442_v52, %v1443_v27  ;;  %v11747_v1 = vld [vmem:[#allocation7 + $0x1d8] sm:$0xff]  ;;  %3663 = vmatpush.bf16.msrb.mxu2 %v11739_v23 }
  0x94   : > { %v16415_v14 = vsel %vm13289_vm11, 4294967295, %v16414_v14  ;;  %v16418_v8 = vsel %vm13294_vm4, 4294967295, %v16417_v8  ;;  %v2155_v7 = vsel %vm12674_vm13, %v2153_v5, %v2154_v11  ;;  %vm16012_vm5 = vmpackc.low %vm13294_vm4, %vm13289_vm11  ;;  %v1445_v26 = vrot.slane %v1443_v27, 4  ;;  %1554 = vst [vmem:[#allocation2 + $0x90] sm:$0xf] %v1444_v57  ;;  %v11651_v31 = vld [vmem:[#allocation7 + $0x58] sm:$0xff]  ;;  %3712 = vmatpush.bf16.msrb.mxu3 %v11747_v1  ;;  %3255 = vmatpush.bf16.msrb.mxu1 %v11659_v16 }
  0x95   : > { %16416 = vst [vmem:[#allocation44_spill] sm:$0xff] %v16415_v14  ;;  %v1766_v37 = vsel %vm12693_vm0, %v12666_v42, %v1765_v40  ;;  %v1767_v52 = vrot.slane %v1765_v40, 4  ;;  %v9520_v63 = vor.u32 %v13261_v12, %v13259_v45  ;;  %v1358_v34 = vsel %vm16012_vm5, %v868_v29, 0  ;;  %v1587_v40 = vld [vmem:[%s12587_s8 + $0x34] sm:$0xf]  ;;  %3206 = vmatpush.bf16.msrb.mxu0 %v11651_v31 }
  0x96   : > { %16419 = vst [vmem:[#allocation45_spill] sm:$0xff] %v16418_v8  ;;  %v1897_v5 = vunpack.c.l.b16 %v1766_v37  ;;  %v1898_v33 = vunpack.c.h.b16 %v1766_v37  ;;  %v1446_v57 = vrot.slane %v1358_v34, 7  ;;  %v1588_v47 = vld [vmem:[%s12587_s8 + $0x38] sm:$0xf]  ;;  %vm710_vm12 = vcmp.ge.s32.totalorder %v402_v32, 2 }
  0x97   : > { %2267 = vst [vmem:[#allocation2 + $0x8c] sm:$0xf] %v2155_v7  ;;  %v1769_v45 = vsel %vm12693_vm0, %v1767_v52, %v12625_v25  ;;  %v9327_v12 = vld [vmem:[#allocation2 + $0x78] sm:$0xf]  ;;  %v11674_v29 = vld [vmem:[#allocation2 + $0x80] sm:$0xf0]  ;;  %vm967_vm4 = vmpackc.low %vm710_vm12, %vm710_vm12  ;;  %3176 = vmatmul.bf16.gmra.mxu3 %v9520_v63 }
  0x98   : > { %vm13324_vm5 = vcmp.ne.s32.totalorder %v1897_v5, %v12644_v35  ;;  %v16420_v23 = vmov 0  ;;  %vm13329_vm11 = vcmp.ne.s32.totalorder %v1898_v33, %v12647_v36  ;;  %v16423_v1 = vmov 0  ;;  %v13339_v52 = vld [vmem:[#allocation3 + $0x24] sm:$0xff]  ;;  %v804_v5 = vld [vmem:[%s12587_s8 + $0x38] sm:$0xf] }
  0x99   : > { %v16421_v23 = vsel %vm13324_vm5, 4294967295, %v16420_v23  ;;  %v16424_v1 = vsel %vm13329_vm11, 4294967295, %v16423_v1  ;;  %v1904_v7 = vunpack.c.l.b16 %v1769_v45  ;;  %v1905_v37 = vunpack.c.h.b16 %v1769_v45  ;;  %vm16022_vm1 = vmpackc.low %vm13329_vm11, %vm13324_vm5  ;;  %836 = vst [vmem:[#allocation2 + $0xac] sm:$0xf] %v804_v5 }
  0x9a   : > { %16422 = vst [vmem:[#allocation46_spill] sm:$0xff] %v16421_v23  ;;  %v1447_v16 = vsel %vm12693_vm0, %v1445_v26, %v1446_v57  ;;  %v2156_v32 = vrot.slane %v2154_v11, 4  ;;  %v999_v33 = vsel %vm967_vm4, 65537, %v13339_v52  ;;  %v16426_v31 = vrot.slane %v13202_v61, 5  ;;  %v9335_v23 = vld [vmem:[#allocation2 + $0x80] sm:$0xf] }
  0x9b   : > { %16425 = vst [vmem:[#allocation47_spill] sm:$0xff] %v16424_v1  ;;  %vm13346_vm12 = vcmp.ne.s32.totalorder %v1904_v7, %v12644_v35  ;;  %v16427_v45 = vmov 0  ;;  %vm13351_vm9 = vcmp.ne.s32.totalorder %v1905_v37, %v12647_v36  ;;  %v16430_v26 = vmov 0  ;;  %v9551_v58 = vld [vmem:[#allocation2 + $0x80] sm:$0xf] }
  0x9c   : > { %v1053_v34 = vrot.slane %v16426_v31, 4  ;;  %1555 = vst [vmem:[#allocation2 + $0x9c] sm:$0xf] %v1447_v16  ;;  %v16428_v45 = vsel %vm13346_vm12, 4294967295, %v16427_v45  ;;  %v16431_v26 = vsel %vm13351_vm9, 4294967295, %v16430_v26  ;;  %v2074_v11 = vsel %vm16022_vm1, %v1587_v40, 0  ;;  %vm16021_vm4 = vmpackc.low %vm13351_vm9, %vm13346_vm12 }
  0x9d   : > { %16429 = vst [vmem:[#allocation48_spill] sm:$0xff] %v16428_v45  ;;  %v1057_v61 = vrot.slane %v999_v33, 5  ;;  %v805_v31 = vld [vmem:[%s12587_s8 + $0x3c] sm:$0xf]  ;;  %v9328_v27 = vor.u32 %v11674_v29, %v9327_v12  ;;  %v2157_v7 = vrot.slane %v2074_v11, 5  ;;  %v293_v16 = vadd.s32 88, %v12601_v2 }
  0x9e   : > { %16432 = vst [vmem:[#allocation49_spill] sm:$0xff] %v16431_v26  ;;  %v1055_v37 = vsel %vm12674_vm13, %v1053_v34, %v12623_v24  ;;  %v2075_v40 = vsel %vm16021_vm4, %v1588_v47, 0  ;;  %v11675_v11 = vld [vmem:[#allocation2 + $0x88] sm:$0xf0]  ;;  %v869_v26 = vld [vmem:[%s12587_s8 + $0x38] sm:$0xf] }
  0x9f   : > { %v1058_v12 = vsel %vm12674_vm13, %v12655_v39, %v1057_v61  ;;  %v1194_v29 = vunpack.c.l.b16 %v1055_v37  ;;  %v1195_v33 = vunpack.c.h.b16 %v1055_v37  ;;  %837 = vst [vmem:[#allocation2 + $0xb8] sm:$0xf] %v805_v31  ;;  %v2158_v34 = vsel %vm12674_vm13, %v2156_v32, %v2157_v7  ;;  %2757 = vmatmul.bf16.gmra.mxu0 %v9328_v27 }
  0xa0   : > { %v2159_v5 = vrot.slane %v2157_v7, 4  ;;  %v2160_v1 = vrot.slane %v2075_v40, 5  ;;  %v1201_v14 = vunpack.c.l.b16 %v1058_v12  ;;  %2268 = vst [vmem:[#allocation2 + $0x98] sm:$0xf] %v2158_v34  ;;  %v16433_v47 = vmov 0 }
  0xa1   : > { %vm13381_vm4 = vcmp.ne.s32.totalorder %v1194_v29, %v12644_v35  ;;  %vm13386_vm1 = vcmp.ne.s32.totalorder %v1195_v33, %v12647_v36  ;;  %v16436_v37 = vmov 0  ;;  %v1202_v31 = vunpack.c.h.b16 %v1058_v12  ;;  %v870_v7 = vld [vmem:[%s12587_s8 + $0x3c] sm:$0xf] }
  0xa2   : > { %v16434_v47 = vsel %vm13381_vm4, 4294967295, %v16433_v47  ;;  %v16437_v37 = vsel %vm13386_vm1, 4294967295, %v16436_v37  ;;  %v1448_v63 = vrot.slane %v1446_v57, 4  ;;  %v9336_v45 = vor.u32 %v11675_v11, %v9335_v23  ;;  %vm16029_vm12 = vmpackc.low %vm13386_vm1, %vm13381_vm4  ;;  %v13415_v11 = vld [vmem:[#allocation2 + $0x68] sm:$0xf0] }
  0xa3   : > { %16435 = vst [vmem:[#allocation50_spill] sm:$0xff] %v16434_v47  ;;  %v2161_v32 = vsel %vm12674_vm13, %v2159_v5, %v2160_v1  ;;  %vm13398_vm9 = vcmp.ne.s32.totalorder %v1201_v14, %v12644_v35  ;;  %v16439_v40 = vmov 0  ;;  %v395_v29 = vand.u32 15, %v293_v16  ;;  %v13413_v14 = vld [vmem:[#allocation2 + $0x60] sm:$0xf] }
  0xa4   : > { %16438 = vst [vmem:[#allocation51_spill] sm:$0xff] %v16437_v37  ;;  %v16440_v40 = vsel %vm13398_vm9, 4294967295, %v16439_v40  ;;  %vm13403_vm5 = vcmp.ne.s32.totalorder %v1202_v31, %v12647_v36  ;;  %v16442_v57 = vmov 0  ;;  %v1359_v23 = vsel %vm16029_vm12, %v869_v26, 0  ;;  %v13424_v26 = vld [vmem:[#allocation2 + $0x90] sm:$0xf]  ;;  %2855 = vmatmul.bf16.gmra.mxu2 %v9336_v45 }
  0xa5   : > { %16441 = vst [vmem:[#allocation52_spill] sm:$0xff] %v16440_v40  ;;  %v16443_v57 = vsel %vm13403_vm5, 4294967295, %v16442_v57  ;;  %v296_v12 = vadd.s32 112, %v12601_v2  ;;  %v1059_v33 = vrot.slane %v1057_v61, 4  ;;  %vm16032_vm11 = vmpackc.low %vm13403_vm5, %vm13398_vm9  ;;  %v1449_v16 = vrot.slane %v1359_v23, 7  ;;  %v11746_v40 = vld [vmem:[#allocation7 + $0x1d0] sm:$0xff] }
  0xa6   : > { %2269 = vst [vmem:[#allocation2 + $0xa4] sm:$0xf] %v2161_v32  ;;  %vm741_vm14 = vcmp.lt.s32.totalorder %v395_v29, 14  ;;  %v16445_v34 = vor.u32 %v13276_v9, %v13278_v28  ;;  %v13426_v5 = vld [vmem:[#allocation2 + $0x98] sm:$0xf0]  ;;  %v1360_v27 = vsel %vm16032_vm11, %v870_v7, 0  ;;  %v9532_v23 = vor.u32 %v13415_v11, %v13413_v14  ;;  %3713 = vmatpush.bf16.msrb.mxu3 %v11746_v40 }
  0xa7   : > { %16444 = vst [vmem:[#allocation53_spill] sm:$0xff] %v16443_v57  ;;  %vm1686_vm12 = vmpackc.low %vm741_vm14, %vm741_vm14  ;;  %v416_v61 = vand.u32 15, %v296_v12  ;;  %v1061_v31 = vsel %vm12674_vm13, %v1059_v33, %v12623_v24  ;;  %v1450_v9 = vsel %vm12693_vm0, %v1448_v63, %v1449_v16  ;;  %v1451_v28 = vrot.slane %v1449_v16, 4  ;;  %v11738_v7 = vld [vmem:[#allocation7 + $0x190] sm:$0xff]  ;;  %v806_v47 = vld [vmem:[%s12587_s8 + $0x40] sm:$0xf] }
  0xa8   : > { %2806 = vmatmul.bf16.gmra.mxu1 %v16445_v34  ;;  %v1452_v32 = vrot.slane %v1360_v27, 7  ;;  %v1718_v29 = vsel %vm1686_vm12, 65537, %v13339_v52  ;;  %1556 = vst [vmem:[#allocation2 + $0xa8] sm:$0xf] %v1450_v9  ;;  %v11658_v12 = vld [vmem:[#allocation7 + $0x90] sm:$0xff]  ;;  %v1208_v57 = vunpack.c.l.b16 %v1061_v31  ;;  %v1209_v45 = vunpack.c.h.b16 %v1061_v31  ;;  %3664 = vmatpush.bf16.msrb.mxu2 %v11738_v7 }
  0xa9   : > { %v1771_v34 = vrot.slane %v1718_v29, 7  ;;  %v11650_v16 = vld [vmem:[#allocation7 + $0x50] sm:$0xff]  ;;  %vm13445_vm14 = vcmp.ge.s32.totalorder %v416_v61, 2  ;;  %v2162_v9 = vrot.slane %v2160_v1, 4  ;;  %v16448_v61 = vmov 0  ;;  %3256 = vmatpush.bf16.msrb.mxu1 %v11658_v12  ;;  %3181 = vmatmul.bf16.gmra.mxu3 %v9532_v23 }
  0xaa   : > { %v1453_v63 = vsel %vm12693_vm0, %v1451_v28, %v1452_v32  ;;  %vm969_vm12 = vmpackc.low %vm13445_vm14, %vm13445_vm14  ;;  %vm13456_vm11 = vcmp.ne.s32.totalorder %v1208_v57, %v12644_v35  ;;  %3207 = vmatpush.bf16.msrb.mxu0 %v11650_v16  ;;  %v871_v29 = vld [vmem:[%s12587_s8 + $0x40] sm:$0xf]  ;;  %vm13463_vm9 = vcmp.ne.s32.totalorder %v1209_v45, %v12647_v36  ;;  %v16451_v40 = vmov 0  ;;  %v11676_v16 = vld [vmem:[#allocation2 + $0x94] sm:$0xf] }
  0xab   : > { %1557 = vst [vmem:[#allocation2 + $0xb4] sm:$0xf] %v1453_v63  ;;  %v1772_v14 = vsel %vm12693_vm0, %v12666_v42, %v1771_v34  ;;  %v1773_v11 = vrot.slane %v1771_v34, 4  ;;  %v16449_v61 = vsel %vm13456_vm11, 4294967295, %v16448_v61  ;;  %v1001_v1 = vsel %vm969_vm12, 65537, %v13339_v52  ;;  %vm16460_vm4 = vmpackc.low %vm13463_vm9, %vm13456_vm11 }
  0xac   : > { %16450 = vst [vmem:[#allocation54_spill] sm:$0xff] %v16449_v61  ;;  %v1911_v31 = vunpack.c.l.b16 %v1772_v14  ;;  %v1912_v28 = vunpack.c.h.b16 %v1772_v14  ;;  %v16452_v40 = vsel %vm13463_vm9, 4294967295, %v16451_v40  ;;  %v1589_v34 = vld [vmem:[%s12587_s8 + $0x3c] sm:$0xf]  ;;  %v1063_v7 = vrot.slane %v1001_v1, 5 }
  0xad   : > { %16453 = vst [vmem:[#allocation55_spill] sm:$0xff] %v16452_v40  ;;  %v1775_v57 = vsel %vm12693_vm0, %v1773_v11, %v12625_v25  ;;  %v1454_v12 = vrot.slane %v1452_v32, 4  ;;  %v295_v63 = vadd.s32 104, %v12601_v2  ;;  %v9341_v27 = vld [vmem:[#allocation2 + $0x9c] sm:$0xf0]  ;;  %v16454_v14 = vmov 0 }
  0xae   : > { %v1590_v45 = vld [vmem:[%s12587_s8 + $0x40] sm:$0xf]  ;;  %vm13478_vm12 = vcmp.ne.s32.totalorder %v1911_v31, %v12644_v35  ;;  %vm13483_vm5 = vcmp.ne.s32.totalorder %v1912_v28, %v12647_v36  ;;  %v16457_v11 = vmov 0  ;;  %v1918_v1 = vunpack.c.l.b16 %v1775_v57  ;;  %v807_v37 = vld [vmem:[%s12587_s8 + $0x44] sm:$0xf] }
  0xaf   : > { %v16455_v14 = vsel %vm13478_vm12, 4294967295, %v16454_v14  ;;  %v16458_v11 = vsel %vm13483_vm5, 4294967295, %v16457_v11  ;;  %v1919_v33 = vunpack.c.h.b16 %v1775_v57  ;;  %v1064_v32 = vsel %vm12674_vm13, %v12655_v39, %v1063_v7  ;;  %838 = vst [vmem:[#allocation2 + $0xc4] sm:$0xf] %v806_v47  ;;  %v9347_v8 = vld [vmem:[#allocation2 + $0x98] sm:$0xf] }
  0xb0   : > { %16456 = vst [vmem:[#allocation56_spill] sm:$0xff] %v16455_v14  ;;  %v1361_v31 = vsel %vm16460_vm4, %v871_v29, 0  ;;  %v409_v28 = vand.u32 15, %v295_v63  ;;  %v298_v57 = vadd.s32 128, %v12601_v2  ;;  %vm13503_vm1 = vcmp.ne.s32.totalorder %v1918_v1, %v12644_v35  ;;  %vm16467_vm4 = vmpackc.low %vm13483_vm5, %vm13478_vm12  ;;  %v11678_v63 = vld [vmem:[#allocation2 + $0xa0] sm:$0xf0] }
  0xb1   : > { %16459 = vst [vmem:[#allocation57_spill] sm:$0xff] %v16458_v11  ;;  %v16461_v30 = vmov 0  ;;  %vm13508_vm14 = vcmp.ne.s32.totalorder %v1919_v33, %v12647_v36  ;;  %v16464_v10 = vmov 0  ;;  %v2076_v47 = vsel %vm16467_vm4, %v1589_v34, 0  ;;  %v9711_v6 = vld [vmem:[#allocation2 + $0xa8] sm:$0xf] }
  0xb2   : > { %v16462_v30 = vsel %vm13503_vm1, 4294967295, %v16461_v30  ;;  %v16465_v10 = vsel %vm13508_vm14, 4294967295, %v16464_v10  ;;  %v1215_v29 = vunpack.c.l.b16 %v1064_v32  ;;  %839 = vst [vmem:[#allocation2 + $0xd0] sm:$0xf] %v807_v37  ;;  %vm16050_vm11 = vmpackc.low %vm13508_vm14, %vm13503_vm1  ;;  %v2163_v1 = vrot.slane %v2076_v47, 5 }
  0xb3   : > { %16463 = vst [vmem:[#allocation58_spill] sm:$0xff] %v16462_v30  ;;  %v1216_v33 = vunpack.c.h.b16 %v1064_v32  ;;  %v1455_v61 = vrot.slane %v1361_v31, 7  ;;  %vm13521_vm9 = vcmp.lt.s32.totalorder %v409_v28, 14  ;;  %v2077_v37 = vsel %vm16050_vm11, %v1590_v45, 0  ;;  %v872_v30 = vld [vmem:[%s12587_s8 + $0x44] sm:$0xf] }
  0xb4   : > { %16466 = vst [vmem:[#allocation59_spill] sm:$0xff] %v16465_v10  ;;  %vm13531_vm4 = vcmp.ne.s32.totalorder %v1215_v29, %v12644_v35  ;;  %v16470_v34 = vmov 0  ;;  %vm1688_vm12 = vmpackc.low %vm13521_vm9, %vm13521_vm9  ;;  %v430_v32 = vand.u32 15, %v298_v57  ;;  %v1065_v31 = vrot.slane %v1063_v7, 4  ;;  %v11722_v41 = vld [vmem:[#allocation2 + $0xb0] sm:$0xf0] }
  0xb5   : > { %v16471_v34 = vsel %vm13531_vm4, 4294967295, %v16470_v34  ;;  %v9344_v28 = vor.u32 %v11676_v16, %v9341_v27  ;;  %v2164_v23 = vsel %vm12674_vm13, %v2162_v9, %v2163_v1  ;;  %v2165_v47 = vrot.slane %v2163_v1, 4 }
  0xb6   : > { %16472 = vst [vmem:[#allocation60_spill] sm:$0xff] %v16471_v34  ;;  %v2166_v10 = vrot.slane %v2077_v37, 5  ;;  %v9348_v14 = vor.u32 %v11678_v63, %v9347_v8  ;;  %vm13542_vm11 = vcmp.ne.s32.totalorder %v1216_v33, %v12647_v36  ;;  %v16473_v45 = vmov 0  ;;  %v1591_v63 = vld [vmem:[%s12587_s8 + $0x44] sm:$0xf] }
  0xb7   : > { %2270 = vst [vmem:[#allocation2 + $0xb0] sm:$0xf] %v2164_v23  ;;  %v16474_v45 = vsel %vm13542_vm11, 4294967295, %v16473_v45  ;;  %v1456_v40 = vsel %vm12693_vm0, %v1454_v12, %v1455_v61  ;;  %v1720_v57 = vsel %vm1688_vm12, 65537, %v13339_v52  ;;  %vm16052_vm9 = vmpackc.low %vm13542_vm11, %vm13531_vm4  ;;  %v1457_v8 = vrot.slane %v1455_v61, 4  ;;  %v11657_v23 = vld [vmem:[#allocation7 + $0x88] sm:$0xff] }
  0xb8   : > { %16475 = vst [vmem:[#allocation61_spill] sm:$0xff] %v16474_v45  ;;  %v2167_v7 = vsel %vm12674_vm13, %v2165_v47, %v2166_v10  ;;  %v1777_v9 = vrot.slane %v1720_v57, 7  ;;  %vm714_vm1 = vcmp.ge.s32.totalorder %v430_v32, 2  ;;  %v16476_v16 = vor.u32 %v13426_v5, %v13424_v26  ;;  %2811 = vmatmul.bf16.gmra.mxu1 %v9344_v28  ;;  %2860 = vmatmul.bf16.gmra.mxu2 %v9348_v14  ;;  %v11745_v28 = vld [vmem:[#allocation7 + $0x1c8] sm:$0xff]  ;;  %v9543_v57 = vld [vmem:[#allocation2 + $0x78] sm:$0xf] }
  0xb9   : > { %1558 = vst [vmem:[#allocation2 + $0xc0] sm:$0xf] %v1456_v40  ;;  %v1362_v12 = vsel %vm16052_vm9, %v872_v30, 0  ;;  %vm971_vm12 = vmpackc.low %vm714_vm1, %vm714_vm1  ;;  %v1067_v27 = vsel %vm12674_vm13, %v1065_v31, %v12623_v24  ;;  %v11737_v31 = vld [vmem:[#allocation7 + $0x188] sm:$0xff]  ;;  %v297_v40 = vadd.s32 120, %v12601_v2  ;;  %v16477_v14 = vmov 0  ;;  %3714 = vmatpush.bf16.msrb.mxu3 %v11745_v28  ;;  %3257 = vmatpush.bf16.msrb.mxu1 %v11657_v23 }
  0xba   : > { %2762 = vmatmul.bf16.gmra.mxu0 %v16476_v16  ;;  %2271 = vst [vmem:[#allocation2 + $0xbc] sm:$0xf] %v2167_v7  ;;  %v1458_v61 = vrot.slane %v1362_v12, 7  ;;  %v1778_v29 = vsel %vm12693_vm0, %v12666_v42, %v1777_v9  ;;  %v1779_v26 = vrot.slane %v1777_v9, 4  ;;  %v1222_v5 = vunpack.c.l.b16 %v1067_v27  ;;  %v11649_v16 = vld [vmem:[#allocation7 + $0x48] sm:$0xff]  ;;  %3665 = vmatpush.bf16.msrb.mxu2 %v11737_v31 }
  0xbb   : > { %v1925_v1 = vunpack.c.l.b16 %v1778_v29  ;;  %v1926_v33 = vunpack.c.h.b16 %v1778_v29  ;;  %v13571_v37 = vsel %vm971_vm12, 65537, %v13339_v52  ;;  %v16480_v7 = vmov 0  ;;  %v11632_v12 = vld [vmem:[#allocation2 + $0x80] sm:$0xf0]  ;;  %v1592_v29 = vld [vmem:[%s12587_s8 + $0x48] sm:$0xf]  ;;  %3208 = vmatpush.bf16.msrb.mxu0 %v11649_v16 }
  0xbc   : > { %v1459_v30 = vsel %vm12693_vm0, %v1457_v8, %v1458_v61  ;;  %v1781_v32 = vsel %vm12693_vm0, %v1779_v26, %v12625_v25  ;;  %v16058_v47 = vrot.slane %v13571_v37, 5  ;;  %v2168_v26 = vrot.slane %v2166_v10, 4  ;;  %v9351_v31 = vld [vmem:[#allocation2 + $0xa8] sm:$0xf]  ;;  %v9353_v34 = vld [vmem:[#allocation2 + $0xb4] sm:$0xf0] }
  0xbd   : > { %1559 = vst [vmem:[#allocation2 + $0xcc] sm:$0xf] %v1459_v30  ;;  %vm13581_vm1 = vcmp.ne.s32.totalorder %v1925_v1, %v12644_v35  ;;  %vm13586_vm12 = vcmp.ne.s32.totalorder %v1926_v33, %v12647_v36  ;;  %v1932_v8 = vunpack.c.l.b16 %v1781_v32  ;;  %v1933_v9 = vunpack.c.h.b16 %v1781_v32 }
  0xbe   : > { %v16478_v14 = vsel %vm13581_vm1, 4294967295, %v16477_v14  ;;  %v16481_v7 = vsel %vm13586_vm12, 4294967295, %v16480_v7  ;;  %v1070_v1 = vsel %vm12674_vm13, %v12655_v39, %v16058_v47  ;;  %v1223_v33 = vunpack.c.h.b16 %v1067_v27  ;;  %vm16492_vm14 = vmpackc.low %vm13586_vm12, %vm13581_vm1 }
  0xbf   : > { %16479 = vst [vmem:[#allocation62_spill] sm:$0xff] %v16478_v14  ;;  %vm13601_vm4 = vcmp.ne.s32.totalorder %v1222_v5, %v12644_v35  ;;  %v16483_v30 = vmov 0  ;;  %vm13606_vm11 = vcmp.ne.s32.totalorder %v1932_v8, %v12644_v35  ;;  %v16486_v32 = vmov 0  ;;  %v873_v8 = vld [vmem:[%s12587_s8 + $0x48] sm:$0xf] }
  0xc0   : > { %16482 = vst [vmem:[#allocation63_spill] sm:$0xff] %v16481_v7  ;;  %v16484_v30 = vsel %vm13601_vm4, 4294967295, %v16483_v30  ;;  %v16487_v32 = vsel %vm13606_vm11, 4294967295, %v16486_v32  ;;  %vm13611_vm9 = vcmp.ne.s32.totalorder %v1933_v9, %v12647_v36  ;;  %v16489_v10 = vmov 0  ;;  %v874_v9 = vld [vmem:[%s12587_s8 + $0x4c] sm:$0xf] }
  0xc1   : > { %16485 = vst [vmem:[#allocation64_spill] sm:$0xff] %v16484_v30  ;;  %v16490_v10 = vsel %vm13611_vm9, 4294967295, %v16489_v10  ;;  %v2078_v27 = vsel %vm16492_vm14, %v1591_v63, 0  ;;  %v1229_v5 = vunpack.c.l.b16 %v1070_v1  ;;  %vm16064_vm5 = vmpackc.low %vm13611_vm9, %vm13606_vm11  ;;  %vm13627_vm6 = vcmp.ne.s32.totalorder %v1223_v33, %v12647_v36  ;;  %v11679_v14 = vld [vmem:[#allocation2 + $0xac] sm:$0xf] }
  0xc2   : > { %16488 = vst [vmem:[#allocation65_spill] sm:$0xff] %v16487_v32  ;;  %v2169_v28 = vrot.slane %v2078_v27, 5  ;;  %v16493_v47 = vmov 0  ;;  %v1230_v63 = vunpack.c.h.b16 %v1070_v1  ;;  %v1460_v23 = vrot.slane %v1458_v61, 4  ;;  %v808_v1 = vld [vmem:[%s12587_s8 + $0x48] sm:$0xf]  ;;  %vm16502_vm11 = vmpackc.low %vm13627_vm6, %vm13601_vm4 }
  0xc3   : > { %16491 = vst [vmem:[#allocation66_spill] sm:$0xff] %v16490_v10  ;;  %v16494_v47 = vsel %vm13627_vm6, 4294967295, %v16493_v47  ;;  %v9544_v16 = vor.u32 %v11632_v12, %v9543_v57  ;;  %v2079_v7 = vsel %vm16064_vm5, %v1592_v29, 0  ;;  %vm13641_vm1 = vcmp.ne.s32.totalorder %v1229_v5, %v12644_v35  ;;  %v809_v61 = vld [vmem:[%s12587_s8 + $0x4c] sm:$0xf] }
  0xc4   : > { %16495 = vst [vmem:[#allocation67_spill] sm:$0xff] %v16494_v47  ;;  %v16496_v33 = vmov 0  ;;  %v423_v27 = vand.u32 15, %v297_v40  ;;  %v11680_v57 = vld [vmem:[#allocation2 + $0xb0] sm:$0xf0]  ;;  %v2170_v12 = vsel %vm12674_vm13, %v2168_v26, %v2169_v28  ;;  %v2171_v32 = vrot.slane %v2169_v28, 4 }
  0xc5   : > { %v16497_v33 = vsel %vm13641_vm1, 4294967295, %v16496_v33  ;;  %v2172_v10 = vrot.slane %v2079_v7, 5  ;;  %vm13650_vm5 = vcmp.ne.s32.totalorder %v1230_v63, %v12647_v36  ;;  %v16499_v29 = vmov 0  ;;  %840 = vst [vmem:[#allocation2 + $0xdc] sm:$0xf] %v808_v1  ;;  %3186 = vmatmul.bf16.gmra.mxu3 %v9544_v16 }
  0xc6   : > { %16498 = vst [vmem:[#allocation68_spill] sm:$0xff] %v16497_v33  ;;  %v16500_v29 = vsel %vm13650_vm5, 4294967295, %v16499_v29  ;;  %vm16071_vm14 = vmpackc.low %vm13650_vm5, %vm13641_vm1  ;;  %v1363_v40 = vsel %vm16502_vm11, %v873_v8, 0  ;;  %vm745_vm9 = vcmp.lt.s32.totalorder %v423_v27, 14  ;;  %v9359_v7 = vld [vmem:[#allocation2 + $0xb0] sm:$0xf]  ;;  %v9352_v63 = vor.u32 %v11680_v57, %v9351_v31 }
  0xc7   : > { %16501 = vst [vmem:[#allocation69_spill] sm:$0xff] %v16500_v29  ;;  %v2173_v26 = vsel %vm12674_vm13, %v2171_v32, %v2172_v10  ;;  %v13670_v5 = vsel %vm16071_vm14, %v874_v9, 0  ;;  %v1461_v28 = vrot.slane %v1363_v40, 7  ;;  %vm1690_vm12 = vmpackc.low %vm745_vm9, %vm745_vm9  ;;  %v11681_v1 = vld [vmem:[#allocation2 + $0xb8] sm:$0xf0]  ;;  %v9356_v32 = vor.u32 %v11679_v14, %v9353_v34 }
  0xc8   : > { %2272 = vst [vmem:[#allocation2 + $0xc8] sm:$0xf] %v2170_v12  ;;  %v16074_v8 = vrot.slane %v13670_v5, 7  ;;  %v1722_v27 = vsel %vm1690_vm12, 65537, %v13339_v52  ;;  %v9360_v9 = vor.u32 %v11681_v1, %v9359_v7  ;;  %v16503_v40 = vmov 0 }
  0xc9   : > { %841 = vst [vmem:[#allocation2 + $0xe8] sm:$0xf] %v809_v61  ;;  %v1462_v12 = vsel %vm12693_vm0, %v1460_v23, %v1461_v28  ;;  %v1463_v33 = vrot.slane %v1461_v28, 4  ;;  %v1783_v29 = vrot.slane %v1722_v27, 7  ;;  %2816 = vmatmul.bf16.gmra.mxu1 %v9356_v32  ;;  %v1593_v23 = vld [vmem:[%s12587_s8 + $0x4c] sm:$0xf] }
  0xca   : > { %2273 = vst [vmem:[#allocation2 + $0xd4] sm:$0xf] %v2173_v26  ;;  %2767 = vmatmul.bf16.gmra.mxu0 %v9352_v63  ;;  %2865 = vmatmul.bf16.gmra.mxu2 %v9360_v9  ;;  %v1594_v26 = vld [vmem:[%s12587_s8 + $0x50] sm:$0xf]  ;;  %v2174_v28 = vrot.slane %v2172_v10, 4  ;;  %v11736_v63 = vld [vmem:[#allocation7 + $0x180] sm:$0xff] }
  0xcb   : > { %1560 = vst [vmem:[#allocation2 + $0xd8] sm:$0xf] %v1462_v12  ;;  %v1465_v31 = vsel %vm12693_vm0, %v1463_v33, %v16074_v8  ;;  %v1784_v16 = vsel %vm12693_vm0, %v12666_v42, %v1783_v29  ;;  %v1785_v61 = vrot.slane %v1783_v29, 4  ;;  %v16506_v33 = vmov 0  ;;  %v11744_v12 = vld [vmem:[#allocation7 + $0x1c0] sm:$0xff]  ;;  %3666 = vmatpush.bf16.msrb.mxu2 %v11736_v63 }
  0xcc   : > { %1561 = vst [vmem:[#allocation2 + $0xe4] sm:$0xf] %v1465_v31  ;;  %v1939_v34 = vunpack.c.l.b16 %v1784_v16  ;;  %v1940_v14 = vunpack.c.h.b16 %v1784_v16  ;;  %v16509_v1 = vmov 0  ;;  %v16512_v27 = vmov 0  ;;  %v11656_v9 = vld [vmem:[#allocation7 + $0x80] sm:$0xff]  ;;  %3715 = vmatpush.bf16.msrb.mxu3 %v11744_v12 }
  0xcd   : > { %v1787_v57 = vsel %vm12693_vm0, %v1785_v61, %v12625_v25  ;;  %v11648_v10 = vld [vmem:[#allocation7 + $0x40] sm:$0xff]  ;;  %v9555_v31 = vld [vmem:[#allocation2 + $0x90] sm:$0xf]  ;;  %v11635_v16 = vld [vmem:[#allocation2 + $0x98] sm:$0xf0]  ;;  %3258 = vmatpush.bf16.msrb.mxu1 %v11656_v9 }
  0xce   : > { %vm13688_vm11 = vcmp.ne.s32.totalorder %v1939_v34, %v12644_v35  ;;  %vm13693_vm9 = vcmp.ne.s32.totalorder %v1940_v14, %v12647_v36  ;;  %v1946_v29 = vunpack.c.l.b16 %v1787_v57  ;;  %v1947_v7 = vunpack.c.h.b16 %v1787_v57  ;;  %3209 = vmatpush.bf16.msrb.mxu0 %v11648_v10  ;;  %v11683_v63 = vld [vmem:[#allocation2 + $0xc8] sm:$0xf0]  ;;  %v9365_v8 = vld [vmem:[#allocation2 + $0xcc] sm:$0xf0]  ;;  %v11847_v10 = vld [vmem:[#allocation7 + $0x138] sm:$0xff] }
  0xcf   : > { %v16504_v40 = vsel %vm13688_vm11, 4294967295, %v16503_v40  ;;  %v16507_v33 = vsel %vm13693_vm9, 4294967295, %v16506_v33  ;;  %vm16089_vm12 = vmpackc.low %vm13693_vm9, %vm13688_vm11  ;;  %v9371_v9 = vld [vmem:[#allocation2 + $0xc8] sm:$0xf]  ;;  %4382 = vmatpush.bf16.msra.mxu2 %v11847_v10  ;;  %v9677_v10 = vld [vmem:[#allocation2 + $0x6c] sm:$0xf0] }
  0xd0   : > { %16505 = vst [vmem:[#allocation70_spill] sm:$0xff] %v16504_v40  ;;  %vm13703_vm14 = vcmp.ne.s32.totalorder %v1946_v29, %v12644_v35  ;;  %vm13708_vm1 = vcmp.ne.s32.totalorder %v1947_v7, %v12647_v36  ;;  %v2080_v32 = vsel %vm16089_vm12, %v1593_v23, 0  ;;  %v9556_v29 = vor.u32 %v11635_v16, %v9555_v31  ;;  %v9363_v7 = vld [vmem:[#allocation2 + $0xc0] sm:$0xf]  ;;  %v11855_v31 = vld [vmem:[#allocation7 + $0x178] sm:$0xff] }
  0xd1   : > { %16508 = vst [vmem:[#allocation71_spill] sm:$0xff] %v16507_v33  ;;  %v16510_v1 = vsel %vm13703_vm14, 4294967295, %v16509_v1  ;;  %v16513_v27 = vsel %vm13708_vm1, 4294967295, %v16512_v27  ;;  %vm16088_vm5 = vmpackc.low %vm13708_vm1, %vm13703_vm14  ;;  %v2175_v61 = vrot.slane %v2080_v32, 5  ;;  %v9364_v12 = vor.u32 %v11683_v63, %v9363_v7  ;;  %v9567_v16 = vld [vmem:[#allocation2 + $0xa8] sm:$0xf]  ;;  %4431 = vmatpush.bf16.msra.mxu3 %v11855_v31 }
  0xd2   : > { %16511 = vst [vmem:[#allocation72_spill] sm:$0xff] %v16510_v1  ;;  %v13726_v34 = vsel %vm16088_vm5, %v1594_v26, 0  ;;  %v11682_v26 = vld [vmem:[#allocation2 + $0xc4] sm:$0xf]  ;;  %v11684_v1 = vld [vmem:[#allocation2 + $0xd0] sm:$0xf0] }
  0xd3   : > { %16514 = vst [vmem:[#allocation73_spill] sm:$0xff] %v16513_v27  ;;  %v2176_v14 = vsel %vm12674_vm13, %v2174_v28, %v2175_v61  ;;  %v2177_v23 = vrot.slane %v2175_v61, 4  ;;  %v16077_v57 = vrot.slane %v13726_v34, 5  ;;  %v9368_v28 = vor.u32 %v11682_v26, %v9365_v8  ;;  %v9375_v27 = vld [vmem:[#allocation2 + $0xd8] sm:$0xf] }
  0xd4   : > { %2274 = vst [vmem:[#allocation2 + $0xe0] sm:$0xf] %v2176_v14  ;;  %v9372_v61 = vor.u32 %v11684_v1, %v9371_v9  ;;  %v11638_v14 = vld [vmem:[#allocation2 + $0xb0] sm:$0xf0]  ;;  %v11839_v40 = vld [vmem:[#allocation7 + $0xf8] sm:$0xff] }
  0xd5   : > { %v2179_v32 = vsel %vm12674_vm13, %v2177_v23, %v16077_v57  ;;  %3191 = vmatmul.bf16.gmra.mxu3 %v9556_v29  ;;  %v9568_v23 = vor.u32 %v11638_v14, %v9567_v16  ;;  %v11686_v57 = vld [vmem:[#allocation2 + $0xe0] sm:$0xf0]  ;;  %v11685_v7 = vld [vmem:[#allocation2 + $0xdc] sm:$0xf]  ;;  %v9377_v63 = vld [vmem:[#allocation2 + $0xe4] sm:$0xf0]  ;;  %4333 = vmatpush.bf16.msra.mxu1 %v11839_v40 }
  0xd6   : > { %2275 = vst [vmem:[#allocation2 + $0xec] sm:$0xf] %v2179_v32  ;;  %v11759_v32 = vld [vmem:[#allocation7 + $0x238] sm:$0xff]  ;;  %v9376_v8 = vor.u32 %v11686_v57, %v9375_v27  ;;  %v9380_v26 = vor.u32 %v11685_v7, %v9377_v63  ;;  %v11846_v9 = vld [vmem:[#allocation7 + $0x130] sm:$0xff]  ;;  %v11616_v31 = vld [vmem:[#allocation2 + $0x4] sm:$0xf] }
  0xd7   : > { %3757 = vmatpush.bf16.msra.mxu0 %v11759_v32  ;;  %4383 = vmatpush.bf16.msra.mxu2 %v11846_v9  ;;  %v9485_v14 = vld [vmem:[#allocation2 + $0xc] sm:$0xf0]  ;;  %v9491_v27 = vld [vmem:[#allocation2 + $0x8] sm:$0xf]  ;;  %v11618_v57 = vld [vmem:[#allocation2 + $0x10] sm:$0xf0] }
  0xd8   : > { %v11838_v40 = vld [vmem:[#allocation7 + $0xf0] sm:$0xff]  ;;  %v9675_v7 = vld [vmem:[#allocation2 + $0x60] sm:$0xf]  ;;  %v11713_v63 = vld [vmem:[#allocation2 + $0x68] sm:$0xf0] }
  0xd9   : > { %2821 = vmatmul.bf16.gmra.mxu1 %v9368_v28  ;;  %v11854_v28 = vld [vmem:[#allocation7 + $0x170] sm:$0xff]  ;;  %v11715_v33 = vld [vmem:[#allocation2 + $0x7c] sm:$0xf]  ;;  %v9689_v30 = vld [vmem:[#allocation2 + $0x84] sm:$0xf0] }
  0xda   : > { %2772 = vmatmul.bf16.gmra.mxu0 %v9364_v12  ;;  %2870 = vmatmul.bf16.gmra.mxu2 %v9372_v61  ;;  %v11712_v61 = vld [vmem:[#allocation2 + $0x64] sm:$0xf]  ;;  %v11758_v32 = vld [vmem:[#allocation7 + $0x230] sm:$0xff]  ;;  %v9687_v47 = vld [vmem:[#allocation2 + $0x78] sm:$0xf] }
  0xdb   : > { %v9383_v1 = vld [vmem:[#allocation2 + $0xe0] sm:$0xf]  ;;  %4432 = vmatpush.bf16.msra.mxu3 %v11854_v28  ;;  %v9680_v16 = vor.u32 %v11712_v61, %v9677_v10  ;;  %4334 = vmatpush.bf16.msra.mxu1 %v11838_v40  ;;  %v11845_v28 = vld [vmem:[#allocation7 + $0x128] sm:$0xff] }
  0xdc   : > { %3758 = vmatpush.bf16.msra.mxu0 %v11758_v32  ;;  %v11853_v61 = vld [vmem:[#allocation7 + $0x168] sm:$0xff]  ;;  %4384 = vmatpush.bf16.msra.mxu2 %v11845_v28  ;;  %v11716_v28 = vld [vmem:[#allocation2 + $0x80] sm:$0xf0] }
  0xdd   : > { %v11687_v29 = vld [vmem:[#allocation2 + $0xe8] sm:$0xf0] }
  0xde   : > { %v9384_v12 = vor.u32 %v11687_v29, %v9383_v1  ;;  %v9492_v1 = vor.u32 %v11618_v57, %v9491_v27  ;;  %v11619_v27 = vld [vmem:[#allocation2 + $0x1c] sm:$0xf]  ;;  %v9692_v57 = vor.u32 %v11715_v33, %v9689_v30  ;;  %v9688_v30 = vor.u32 %v11716_v28, %v9687_v47  ;;  %v11725_v44 = vld [vmem:[#allocation2 + $0xc8] sm:$0xf0] }
  0xdf   : > { %v3162_v9 = vpop.f32.mrf.mxu3  ;;  %4433 = vmatpush.bf16.msra.mxu3 %v11853_v61 }
  0xe5   : > { %3196 = vmatmul.bf16.gmra.mxu3 %v9568_v23  ;;  %v9488_v23 = vor.u32 %v11616_v31, %v9485_v14 }
  0xe7   : > { %v3164_v32 = vpop.f32.mrf.mxu3 }
  0xe8   : > { %v2792_v29 = vpop.f32.mrf.mxu1 }
  0xe9   : > { %2826 = vmatmul.bf16.gmra.mxu1 %v9380_v26 }
  0xea   : > { %2777 = vmatmul.bf16.gmra.mxu0 %v9376_v8  ;;  %2875 = vmatmul.bf16.gmra.mxu2 %v9384_v12  ;;  %v2743_v8 = vpop.f32.mrf.mxu0  ;;  %v9676_v12 = vor.u32 %v11713_v63, %v9675_v7  ;;  %v9497_v7 = vld [vmem:[#allocation2 + $0x24] sm:$0xf0] }
  0xeb   : > { %v2793_v26 = vadd.f32 %v2792_v29, %v2743_v8  ;;  %v11757_v63 = vld [vmem:[#allocation7 + $0x228] sm:$0xff] }
  0xec   : > { %v11621_v29 = vld [vmem:[#allocation2 + $0x28] sm:$0xf0]  ;;  %3759 = vmatpush.bf16.msra.mxu0 %v11757_v63 }
  0xf0   : > { %v2841_v31 = vpop.f32.mrf.mxu2  ;;  %v2794_v14 = vpop.f32.mrf.mxu1 }
  0xf1   : > { %v2842_v40 = vadd.f32 %v2841_v31, %v2793_v26 }
  0xf2   : > { %v2745_v10 = vpop.f32.mrf.mxu0 }
  0xf3   : > { %v13735_v8 = vadd.f32 %v3162_v9, %v2842_v40  ;;  %v11844_v40 = vld [vmem:[#allocation7 + $0x120] sm:$0xff] }
  0xf4   : > { %v3167_v33 = vpop.f32.mrf.mxu3  ;;  %4385 = vmatpush.bf16.msra.mxu2 %v11844_v40  ;;  %v11719_v40 = vld [vmem:[#allocation2 + $0x98] sm:$0xf0] }
  0xf5   : > { %3716 = vmatmul.bf16.vlgmr.msrb.gmra.mxu3 %v9680_v16  ;;  %v2795_v16 = vadd.f32 %v2794_v14, %v2745_v10 }
  0xf8   : > { %v2843_v26 = vpop.f32.mrf.mxu2  ;;  %v2797_v10 = vpop.f32.mrf.mxu1 }
  0xf9   : > { %3259 = vmatmul.bf16.vlgmr.msrb.gmra.mxu1 %v9492_v1  ;;  %v9503_v1 = vld [vmem:[#allocation2 + $0x20] sm:$0xf]  ;;  %v2844_v31 = vadd.f32 %v2843_v26, %v2795_v16  ;;  %v9515_v26 = vld [vmem:[#allocation2 + $0x38] sm:$0xf] }
  0xfa   : > { %3210 = vmatmul.bf16.vlgmr.msrb.gmra.mxu0 %v9488_v23  ;;  %3667 = vmatmul.bf16.vlgmr.msrb.gmra.mxu2 %v9676_v12  ;;  %v11837_v23 = vld [vmem:[#allocation7 + $0xe8] sm:$0xff]  ;;  %v9500_v12 = vor.u32 %v11619_v27, %v9497_v7  ;;  %v2748_v61 = vpop.f32.mrf.mxu0  ;;  %v9504_v45 = vor.u32 %v11621_v29, %v9503_v1  ;;  %v11718_v27 = vld [vmem:[#allocation2 + $0x94] sm:$0xf]  ;;  %v9701_v7 = vld [vmem:[#allocation2 + $0x9c] sm:$0xf0] }
  0xfb   : > { %4335 = vmatpush.bf16.msra.mxu1 %v11837_v23  ;;  %v2798_v14 = vadd.f32 %v2797_v10, %v2748_v61  ;;  %v13737_v9 = vadd.f32 %v3164_v32, %v2844_v31  ;;  %v11852_v23 = vld [vmem:[#allocation7 + $0x160] sm:$0xff]  ;;  %v11622_v61 = vld [vmem:[#allocation2 + $0x34] sm:$0xf]  ;;  %v9704_v47 = vor.u32 %v11718_v27, %v9701_v7 }
  0xfc   : > { %4434 = vmatpush.bf16.msra.mxu3 %v11852_v23  ;;  %v3169_v16 = vpop.f32.mrf.mxu3  ;;  %v9509_v32 = vld [vmem:[#allocation2 + $0x3c] sm:$0xf0]  ;;  %v11624_v10 = vld [vmem:[#allocation2 + $0x40] sm:$0xf0] }
  0xfd   : > { %v9512_v31 = vor.u32 %v11622_v61, %v9509_v32  ;;  %v9516_v19 = vor.u32 %v11624_v10, %v9515_v26  ;;  %v11721_v61 = vld [vmem:[#allocation2 + $0xac] sm:$0xf]  ;;  %v9713_v32 = vld [vmem:[#allocation2 + $0xb4] sm:$0xf0] }
 0x100   : > { %v2799_v1 = vpop.f32.mrf.mxu1 }
 0x102   : > { %v2750_v63 = vpop.f32.mrf.mxu0 }
 0x103   : > { %v2800_v11 = vadd.f32 %v2799_v1, %v2750_v63 }
 0x105   : > { %3721 = vmatmul.bf16.gmra.mxu3 %v9692_v57  ;;  %v2846_v57 = vpop.f32.mrf.mxu2 }
 0x106   : > { %v2847_v29 = vadd.f32 %v2846_v57, %v2798_v14 }
 0x108   : > { %v13739_v28 = vadd.f32 %v3167_v33, %v2847_v29  ;;  %v11843_v29 = vld [vmem:[#allocation7 + $0x118] sm:$0xff] }
 0x109   : > { %3264 = vmatmul.bf16.gmra.mxu1 %v9504_v45  ;;  %v11756_v45 = vld [vmem:[#allocation7 + $0x220] sm:$0xff]  ;;  %4386 = vmatpush.bf16.msra.mxu2 %v11843_v29  ;;  %v9527_v29 = vld [vmem:[#allocation2 + $0x50] sm:$0xf] }
 0x10a   : > { %3215 = vmatmul.bf16.gmra.mxu0 %v9500_v12  ;;  %3672 = vmatmul.bf16.gmra.mxu2 %v9688_v30  ;;  %v11836_v12 = vld [vmem:[#allocation7 + $0xe0] sm:$0xff]  ;;  %v9699_v30 = vld [vmem:[#allocation2 + $0x90] sm:$0xf]  ;;  %v2753_v23 = vpop.f32.mrf.mxu0  ;;  %v3172_v33 = vpop.f32.mrf.mxu3 }
 0x10b   : > { %4336 = vmatpush.bf16.msra.mxu1 %v11836_v12  ;;  %3760 = vmatpush.bf16.msra.mxu0 %v11756_v45  ;;  %v9700_v27 = vor.u32 %v11719_v40, %v9699_v30  ;;  %v11851_v12 = vld [vmem:[#allocation7 + $0x158] sm:$0xff]  ;;  %v300_v30 = vadd.s32 144, %v12601_v2  ;;  %v11625_v40 = vld [vmem:[#allocation2 + $0x4c] sm:$0xf] }
 0x10c   : > { %4435 = vmatpush.bf16.msra.mxu3 %v11851_v12  ;;  %v11627_v12 = vld [vmem:[#allocation2 + $0x58] sm:$0xf0] }
 0x10d   : > { %v2848_v14 = vpop.f32.mrf.mxu2 }
 0x10e   : > { %v2849_v57 = vadd.f32 %v2848_v14, %v2800_v11  ;;  %v11755_v14 = vld [vmem:[#allocation7 + $0x218] sm:$0xff] }
 0x10f   : > { %v2802_v63 = vpop.f32.mrf.mxu1  ;;  %3761 = vmatpush.bf16.msra.mxu0 %v11755_v14  ;;  %v875_v14 = vld [vmem:[%s12587_s8 + $0x50] sm:$0xf] }
 0x110   : > { %v2803_v1 = vadd.f32 %v2802_v63, %v2753_v23  ;;  %v13741_v7 = vadd.f32 %v3169_v16, %v2849_v57  ;;  %v11835_v23 = vld [vmem:[#allocation7 + $0xd8] sm:$0xff]  ;;  %v444_v63 = vand.u32 15, %v300_v30  ;;  %v16515_v57 = vrot.slane %v13571_v37, 5 }
 0x111   : > { %4337 = vmatpush.bf16.msra.mxu1 %v11835_v23  ;;  %v9712_v37 = vor.u32 %v11722_v41, %v9711_v6  ;;  %v16516_v6 = vmov 0 }
 0x112   : > { %v2755_v45 = vpop.f32.mrf.mxu0  ;;  %v3174_v11 = vpop.f32.mrf.mxu3  ;;  %vm716_vm5 = vcmp.ge.s32.totalorder %v444_v63, 2 }
 0x113   : > { %vm973_vm12 = vmpackc.low %vm716_vm5, %vm716_vm5 }
 0x115   : > { %3726 = vmatmul.bf16.gmra.mxu3 %v9704_v47  ;;  %v2851_v47 = vpop.f32.mrf.mxu2 }
 0x116   : > { %v2852_v10 = vadd.f32 %v2851_v47, %v2803_v1 }
 0x117   : > { %v2804_v26 = vpop.f32.mrf.mxu1 }
 0x118   : > { %v2805_v62 = vadd.f32 %v2804_v26, %v2755_v45  ;;  %v13744_v16 = vadd.f32 %v3172_v33, %v2852_v10  ;;  %v9528_v33 = vor.u32 %v11627_v12, %v9527_v29  ;;  %v11850_v29 = vld [vmem:[#allocation7 + $0x150] sm:$0xff] }
 0x119   : > { %3269 = vmatmul.bf16.gmra.mxu1 %v9516_v19  ;;  %v9521_v19 = vld [vmem:[#allocation2 + $0x54] sm:$0xf0]  ;;  %4436 = vmatpush.bf16.msra.mxu3 %v11850_v29 }
 0x11a   : > { %3220 = vmatmul.bf16.gmra.mxu0 %v9512_v31  ;;  %3677 = vmatmul.bf16.gmra.mxu2 %v9700_v27  ;;  %v9716_v31 = vor.u32 %v11721_v61, %v9713_v32  ;;  %v1071_v27 = vrot.slane %v16515_v57, 4  ;;  %v9524_v1 = vor.u32 %v11625_v40, %v9521_v19  ;;  %v13749_v61 = vsel %vm973_vm12, 65537, %v13339_v52  ;;  %v3177_v40 = vpop.f32.mrf.mxu3 }
 0x11b   : > { %v16094_v10 = vrot.slane %v13749_v61, 5 }
 0x11c   : > { %v2758_v45 = vpop.f32.mrf.mxu0  ;;  %v1073_v26 = vsel %vm12674_vm13, %v1071_v27, %v12623_v24  ;;  %v11842_v27 = vld [vmem:[#allocation7 + $0x110] sm:$0xff] }
 0x11d   : > { %v2853_v32 = vpop.f32.mrf.mxu2  ;;  %v1237_v19 = vunpack.c.h.b16 %v1073_v26  ;;  %v1076_v52 = vsel %vm12674_vm13, %v12655_v39, %v16094_v10  ;;  %4387 = vmatpush.bf16.msra.mxu2 %v11842_v27  ;;  %v9533_v27 = vld [vmem:[#allocation2 + $0x6c] sm:$0xf0]  ;;  %v9539_v10 = vld [vmem:[#allocation2 + $0x68] sm:$0xf] }
 0x11e   : > { %v2854_v30 = vadd.f32 %v2853_v32, %v2805_v62  ;;  %v16519_v62 = vmov 0  ;;  %v1243_v63 = vunpack.c.l.b16 %v1076_v52  ;;  %v1244_v57 = vunpack.c.h.b16 %v1076_v52 }
 0x11f   : > { %vm13768_vm12 = vcmp.ne.s32.totalorder %v1237_v19, %v12647_v36 }
 0x120   : > { %v13760_v41 = vadd.f32 %v3174_v11, %v2854_v30  ;;  %v16520_v62 = vsel %vm13768_vm12, 4294967295, %v16519_v62  ;;  %v16522_v11 = vrot.slane %v13670_v5, 7  ;;  %vm13781_vm1 = vcmp.ne.s32.totalorder %v1243_v63, %v12644_v35  ;;  %v11724_v5 = vld [vmem:[#allocation2 + $0xc4] sm:$0xf] }
 0x121   : > { %16521 = vst [vmem:[#allocation75_spill] sm:$0xff] %v16520_v62  ;;  %vm13786_vm11 = vcmp.ne.s32.totalorder %v1244_v57, %v12647_v36  ;;  %v11628_v57 = vld [vmem:[#allocation2 + $0x64] sm:$0xf] }
 0x122   : > { %v1466_v12 = vrot.slane %v16522_v11, 4  ;;  %vm16100_vm9 = vmpackc.low %vm13786_vm11, %vm13781_vm1  ;;  %v3179_v63 = vpop.f32.mrf.mxu3 }
 0x125   : > { %3731 = vmatmul.bf16.gmra.mxu3 %v9716_v31  ;;  %v2807_v47 = vpop.f32.mrf.mxu1  ;;  %v1236_v31 = vunpack.c.l.b16 %v1073_v26 }
 0x126   : > { %v2808_v23 = vadd.f32 %v2807_v47, %v2758_v45  ;;  %v16523_v45 = vmov 0  ;;  %v2760_v47 = vpop.f32.mrf.mxu0 }
 0x127   : > { %vm13763_vm5 = vcmp.ne.s32.totalorder %v1236_v31, %v12644_v35  ;;  %v16524_v45 = vsel %vm13781_vm1, 4294967295, %v16523_v45  ;;  %v2856_v30 = vpop.f32.mrf.mxu2 }
 0x128   : > { %v16517_v6 = vsel %vm13763_vm5, 4294967295, %v16516_v6  ;;  %vm16102_vm14 = vmpackc.low %vm13768_vm12, %vm13763_vm5  ;;  %16525 = vst [vmem:[#allocation76_spill] sm:$0xff] %v16524_v45  ;;  %v2857_v52 = vadd.f32 %v2856_v30, %v2808_v23  ;;  %v302_v45 = vadd.s32 160, %v12601_v2  ;;  %v11754_v23 = vld [vmem:[#allocation7 + $0x210] sm:$0xff] }
 0x129   : > { %3274 = vmatmul.bf16.gmra.mxu1 %v9528_v33  ;;  %16518 = vst [vmem:[#allocation74_spill] sm:$0xff] %v16517_v6  ;;  %v16526_v33 = vmov 0  ;;  %v1365_v32 = vsel %vm16102_vm14, %v875_v14, 0  ;;  %v811_v30 = vld [vmem:[%s12587_s8 + $0x54] sm:$0xf]  ;;  %3762 = vmatpush.bf16.msra.mxu0 %v11754_v23 }
 0x12a   : > { %3225 = vmatmul.bf16.gmra.mxu0 %v9524_v1  ;;  %3682 = vmatmul.bf16.gmra.mxu2 %v9712_v37  ;;  %v876_v1 = vld [vmem:[%s12587_s8 + $0x54] sm:$0xf]  ;;  %v16527_v33 = vsel %vm13786_vm11, 4294967295, %v16526_v33  ;;  %v9725_v37 = vld [vmem:[#allocation2 + $0xcc] sm:$0xf0]  ;;  %v1467_v26 = vrot.slane %v1365_v32, 7  ;;  %v13811_v62 = vadd.f32 %v3177_v40, %v2857_v52 }
 0x12b   : > { %16528 = vst [vmem:[#allocation77_spill] sm:$0xff] %v16527_v33  ;;  %v13804_v19 = vsel %vm16100_vm9, %v876_v1, 0  ;;  %v9728_v32 = vor.u32 %v11724_v5, %v9725_v37  ;;  %v810_v33 = vld [vmem:[%s12587_s8 + $0x50] sm:$0xf]  ;;  %v458_v5 = vand.u32 15, %v302_v45  ;;  %v16529_v40 = vrot.slane %v13749_v61, 5 }
 0x12c   : > { %v1469_v29 = vrot.slane %v1467_v26, 4  ;;  %v1470_v11 = vrot.slane %v13804_v19, 7  ;;  %v1468_v6 = vsel %vm12693_vm0, %v1466_v12, %v1467_v26  ;;  %v11834_v1 = vld [vmem:[#allocation7 + $0xd0] sm:$0xff]  ;;  %v9723_v37 = vld [vmem:[#allocation2 + $0xc0] sm:$0xf]  ;;  %v9536_v12 = vor.u32 %v11628_v57, %v9533_v27  ;;  %v13820_v45 = vld [vmem:[#allocation3 + $0x24] sm:$0xff]  ;;  %v3182_v61 = vpop.f32.mrf.mxu3 }
 0x12d   : > { %v2809_v31 = vpop.f32.mrf.mxu1  ;;  %1562 = vst [vmem:[#allocation2 + $0xf0] sm:$0xf] %v1468_v6  ;;  %4338 = vmatpush.bf16.msra.mxu1 %v11834_v1  ;;  %vm718_vm9 = vcmp.ge.s32.totalorder %v458_v5, 2  ;;  %v1077_v26 = vrot.slane %v16529_v40, 4  ;;  %v16533_v5 = vmov 0 }
 0x12e   : > { %v2810_v14 = vadd.f32 %v2809_v31, %v2760_v47  ;;  %v1471_v47 = vsel %vm12693_vm0, %v1469_v29, %v1470_v11  ;;  %v11630_v31 = vld [vmem:[#allocation2 + $0x70] sm:$0xf0]  ;;  %842 = vst [vmem:[#allocation2 + $0xf4] sm:$0xf] %v810_v33  ;;  %vm975_vm14 = vmpackc.low %vm718_vm9, %vm718_vm9  ;;  %v878_v40 = vld [vmem:[%s12587_s8 + $0x5c] sm:$0xf] }
 0x12f   : > { %1563 = vst [vmem:[#allocation2 + $0xfc] sm:$0xf] %v1471_v47  ;;  %v9540_v38 = vor.u32 %v11630_v31, %v9539_v10  ;;  %v2858_v6 = vpop.f32.mrf.mxu2  ;;  %v9724_v47 = vor.u32 %v11725_v44, %v9723_v37  ;;  %v13823_v1 = vsel %vm975_vm14, 65537, %v13820_v45  ;;  %v1079_v33 = vsel %vm12674_vm13, %v1077_v26, %v12623_v24  ;;  %v877_v31 = vld [vmem:[%s12587_s8 + $0x58] sm:$0xf]  ;;  %v11849_v37 = vld [vmem:[#allocation7 + $0x148] sm:$0xff] }
 0x130   : > { %843 = vst [vmem:[#allocation2 + $0x100] sm:$0xf] %v811_v30  ;;  %v2859_v57 = vadd.f32 %v2858_v6, %v2810_v14  ;;  %v16107_v10 = vrot.slane %v13823_v1, 5  ;;  %v1251_v23 = vunpack.c.h.b16 %v1079_v33  ;;  %v16530_v14 = vmov 0  ;;  %v11727_v6 = vld [vmem:[#allocation2 + $0xdc] sm:$0xf]  ;;  %4437 = vmatpush.bf16.msra.mxu3 %v11849_v37 }
 0x131   : > { %v16536_v26 = vmov 0 }
 0x132   : > { %v13829_v30 = vadd.f32 %v3179_v63, %v2859_v57  ;;  %v1082_v44 = vsel %vm12674_vm13, %v12655_v39, %v16107_v10  ;;  %vm13843_vm9 = vcmp.ne.s32.totalorder %v1251_v23, %v12647_v36  ;;  %v299_v57 = vadd.s32 136, %v12601_v2  ;;  %v11631_v10 = vld [vmem:[#allocation2 + $0x7c] sm:$0xf] }
 0x133   : > { %v16534_v5 = vsel %vm13843_vm9, 4294967295, %v16533_v5  ;;  %v1257_v63 = vunpack.c.l.b16 %v1082_v44 }
 0x134   : > { %16535 = vst [vmem:[#allocation79_spill] sm:$0xff] %v16534_v5  ;;  %v437_v5 = vand.u32 15, %v299_v57 }
 0x135   : > { %3736 = vmatmul.bf16.gmra.mxu3 %v9728_v32  ;;  %v2812_v29 = vpop.f32.mrf.mxu1  ;;  %v1250_v32 = vunpack.c.l.b16 %v1079_v33  ;;  %vm13853_vm11 = vcmp.ne.s32.totalorder %v1257_v63, %v12644_v35 }
 0x136   : > { %v16537_v26 = vsel %vm13853_vm11, 4294967295, %v16536_v26 }
 0x137   : > { %v2763_v52 = vpop.f32.mrf.mxu0  ;;  %vm13837_vm14 = vcmp.ne.s32.totalorder %v1250_v32, %v12644_v35  ;;  %16538 = vst [vmem:[#allocation80_spill] sm:$0xff] %v16537_v26  ;;  %v11633_v26 = vld [vmem:[#allocation2 + $0x88] sm:$0xf0] }
 0x138   : > { %v2813_v27 = vadd.f32 %v2812_v29, %v2763_v52  ;;  %v16531_v14 = vsel %vm13837_vm14, 4294967295, %v16530_v14  ;;  %vm16113_vm1 = vmpackc.low %vm13843_vm9, %vm13837_vm14  ;;  %v9737_v29 = vld [vmem:[#allocation2 + $0xe4] sm:$0xf0] }
 0x139   : > { %3279 = vmatmul.bf16.gmra.mxu1 %v9540_v38  ;;  %16532 = vst [vmem:[#allocation78_spill] sm:$0xff] %v16531_v14  ;;  %v11841_v38 = vld [vmem:[#allocation7 + $0x108] sm:$0xff]  ;;  %v1367_v33 = vsel %vm16113_vm1, %v877_v31, 0  ;;  %v9740_v15 = vor.u32 %v11727_v6, %v9737_v29  ;;  %vm747_vm1 = vcmp.lt.s32.totalorder %v437_v5, 14  ;;  %v11728_v29 = vld [vmem:[#allocation2 + $0xe0] sm:$0xf0] }
 0x13a   : > { %3230 = vmatmul.bf16.gmra.mxu0 %v9536_v12  ;;  %3687 = vmatmul.bf16.gmra.mxu2 %v9724_v47  ;;  %v1258_v12 = vunpack.c.h.b16 %v1082_v44  ;;  %v16539_v47 = vmov 0  ;;  %v1472_v44 = vrot.slane %v1470_v11, 4  ;;  %v1473_v63 = vrot.slane %v1367_v33, 7  ;;  %v9545_v31 = vld [vmem:[#allocation2 + $0x84] sm:$0xf0] }
 0x13b   : > { %4388 = vmatpush.bf16.msra.mxu2 %v11841_v38  ;;  %v2861_v32 = vpop.f32.mrf.mxu2  ;;  %v813_v33 = vld [vmem:[%s12587_s8 + $0x5c] sm:$0xf]  ;;  %v9548_v57 = vor.u32 %v11631_v10, %v9545_v31  ;;  %v16542_v10 = vmov 0 }
 0x13c   : > { %vm13858_vm5 = vcmp.ne.s32.totalorder %v1258_v12, %v12647_v36  ;;  %v2862_v38 = vadd.f32 %v2861_v32, %v2813_v27  ;;  %v3184_v12 = vpop.f32.mrf.mxu3  ;;  %v1474_v19 = vsel %vm12693_vm0, %v1472_v44, %v1473_v63  ;;  %v1475_v11 = vrot.slane %v1473_v63, 4  ;;  %845 = vst [vmem:[#allocation2 + $0x118] sm:$0xf] %v813_v33  ;;  %v11840_v33 = vld [vmem:[#allocation7 + $0x100] sm:$0xff] }
 0x13d   : > { %v16540_v47 = vsel %vm13858_vm5, 4294967295, %v16539_v47  ;;  %v2814_v23 = vpop.f32.mrf.mxu1  ;;  %vm16115_vm12 = vmpackc.low %vm13858_vm5, %vm13853_vm11  ;;  %1564 = vst [vmem:[#allocation2 + $0x108] sm:$0xf] %v1474_v19  ;;  %v9552_v63 = vor.u32 %v11633_v26, %v9551_v58  ;;  %v16545_v26 = vmov 0 }
 0x13e   : > { %16541 = vst [vmem:[#allocation81_spill] sm:$0xff] %v16540_v47  ;;  %v13879_v14 = vsel %vm16115_vm12, %v878_v40, 0  ;;  %v13886_v32 = vadd.f32 %v3182_v61, %v2862_v38  ;;  %v11753_v47 = vld [vmem:[#allocation7 + $0x208] sm:$0xff]  ;;  %v9735_v40 = vld [vmem:[#allocation2 + $0xd8] sm:$0xf]  ;;  %vm1692_vm12 = vmpackc.low %vm747_vm1, %vm747_vm1 }
 0x13f   : > { %v2765_v52 = vpop.f32.mrf.mxu0  ;;  %v16117_v27 = vrot.slane %v13879_v14, 7  ;;  %3763 = vmatpush.bf16.msra.mxu0 %v11753_v47  ;;  %v1724_v61 = vsel %vm1692_vm12, 65537, %v13820_v45  ;;  %v9736_v18 = vor.u32 %v11728_v29, %v9735_v40  ;;  %v11848_v40 = vld [vmem:[#allocation7 + $0x140] sm:$0xff]  ;;  %4389 = vmatpush.bf16.msra.mxu2 %v11840_v33 }
 0x140   : > { %v2815_v37 = vadd.f32 %v2814_v23, %v2765_v52  ;;  %v812_v52 = vld [vmem:[%s12587_s8 + $0x58] sm:$0xf]  ;;  %v11833_v23 = vld [vmem:[#allocation7 + $0xc8] sm:$0xff]  ;;  %v1789_v44 = vrot.slane %v1724_v61, 7  ;;  %4438 = vmatpush.bf16.msra.mxu3 %v11848_v40  ;;  %v11634_v40 = vld [vmem:[#allocation2 + $0x94] sm:$0xf] }
 0x141   : > { %v1477_v6 = vsel %vm12693_vm0, %v1475_v11, %v16117_v27  ;;  %844 = vst [vmem:[#allocation2 + $0x10c] sm:$0xf] %v812_v52  ;;  %4339 = vmatpush.bf16.msra.mxu1 %v11833_v23  ;;  %v1596_v61 = vld [vmem:[%s12587_s8 + $0x58] sm:$0xf] }
 0x142   : > { %1565 = vst [vmem:[#allocation2 + $0x114] sm:$0xf] %v1477_v6  ;;  %v1790_v11 = vsel %vm12693_vm0, %v12666_v42, %v1789_v44  ;;  %v1791_v52 = vrot.slane %v1789_v44, 4 }
 0x143   : > { %v2863_v38 = vpop.f32.mrf.mxu2  ;;  %v1953_v27 = vunpack.c.l.b16 %v1790_v11  ;;  %v1954_v43 = vunpack.c.h.b16 %v1790_v11 }
 0x144   : > { %v2864_v23 = vadd.f32 %v2863_v38, %v2815_v37  ;;  %v1793_v58 = vsel %vm12693_vm0, %v1791_v52, %v12625_v25  ;;  %v1595_v37 = vld [vmem:[%s12587_s8 + $0x54] sm:$0xf]  ;;  %v9749_v38 = vld [vmem:[#allocation2 + $0xfc] sm:$0xf0] }
 0x145   : > { %3741 = vmatmul.bf16.gmra.mxu3 %v9740_v15  ;;  %vm13902_vm1 = vcmp.ne.s32.totalorder %v1953_v27, %v12644_v35  ;;  %vm13907_vm12 = vcmp.ne.s32.totalorder %v1954_v43, %v12647_v36  ;;  %v1960_v31 = vunpack.c.l.b16 %v1793_v58  ;;  %v16548_v27 = vrot.slane %v13726_v34, 5 }
 0x146   : > { %v2817_v19 = vpop.f32.mrf.mxu1  ;;  %v13899_v15 = vadd.f32 %v3184_v12, %v2864_v23  ;;  %v16543_v10 = vsel %vm13902_vm1, 4294967295, %v16542_v10  ;;  %v16546_v26 = vsel %vm13907_vm12, 4294967295, %v16545_v26  ;;  %vm16122_vm11 = vmpackc.low %vm13907_vm12, %vm13902_vm1  ;;  %v1961_v12 = vunpack.c.h.b16 %v1793_v58 }
 0x147   : > { %v2768_v5 = vpop.f32.mrf.mxu0  ;;  %16544 = vst [vmem:[#allocation82_spill] sm:$0xff] %v16543_v10  ;;  %v2082_v43 = vsel %vm16122_vm11, %v1595_v37, 0  ;;  %v2180_v29 = vrot.slane %v16548_v27, 4  ;;  %vm13925_vm5 = vcmp.ne.s32.totalorder %v1960_v31, %v12644_v35  ;;  %v301_v34 = vadd.s32 152, %v12601_v2 }
 0x148   : > { %v2818_v47 = vadd.f32 %v2817_v19, %v2768_v5  ;;  %v3187_v6 = vpop.f32.mrf.mxu3  ;;  %16547 = vst [vmem:[#allocation83_spill] sm:$0xff] %v16546_v26  ;;  %vm13930_vm14 = vcmp.ne.s32.totalorder %v1961_v12, %v12647_v36  ;;  %v2181_v44 = vrot.slane %v2082_v43, 5  ;;  %v9557_v43 = vld [vmem:[#allocation2 + $0x9c] sm:$0xf0] }
 0x149   : > { %3284 = vmatmul.bf16.gmra.mxu1 %v9552_v63  ;;  %v11730_v63 = vld [vmem:[#allocation2 + $0xf4] sm:$0xf]  ;;  %vm16127_vm11 = vmpackc.low %vm13930_vm14, %vm13925_vm5  ;;  %v451_v33 = vand.u32 15, %v301_v34  ;;  %v9747_v34 = vld [vmem:[#allocation2 + $0xf0] sm:$0xf] }
 0x14a   : > { %3235 = vmatmul.bf16.gmra.mxu0 %v9548_v57  ;;  %3692 = vmatmul.bf16.gmra.mxu2 %v9736_v18  ;;  %v16549_v57 = vmov 0  ;;  %v16552_v18 = vmov 0  ;;  %v13944_v52 = vsel %vm16127_vm11, %v1596_v61, 0  ;;  %v2183_v23 = vrot.slane %v2181_v44, 4  ;;  %v9563_v61 = vld [vmem:[#allocation2 + $0x98] sm:$0xf] }
 0x14b   : > { %v16550_v57 = vsel %vm13925_vm5, 4294967295, %v16549_v57  ;;  %v16553_v18 = vsel %vm13930_vm14, 4294967295, %v16552_v18  ;;  %v16129_v12 = vrot.slane %v13944_v52, 5  ;;  %v9752_v27 = vor.u32 %v11730_v63, %v9749_v38  ;;  %v11731_v63 = vld [vmem:[#allocation2 + $0xf8] sm:$0xf0] }
 0x14c   : > { %16551 = vst [vmem:[#allocation84_spill] sm:$0xff] %v16550_v57  ;;  %v2182_v10 = vsel %vm12674_vm13, %v2180_v29, %v2181_v44  ;;  %v11752_v57 = vld [vmem:[#allocation7 + $0x200] sm:$0xff]  ;;  %vm749_vm11 = vcmp.lt.s32.totalorder %v451_v33, 14  ;;  %v9560_v29 = vor.u32 %v11634_v40, %v9557_v43 }
 0x14d   : > { %16554 = vst [vmem:[#allocation85_spill] sm:$0xff] %v16553_v18  ;;  %v2866_v19 = vpop.f32.mrf.mxu2  ;;  %v11832_v18 = vld [vmem:[#allocation7 + $0xc0] sm:$0xff]  ;;  %vm1694_vm5 = vmpackc.low %vm749_vm11, %vm749_vm11  ;;  %3764 = vmatpush.bf16.msra.mxu0 %v11752_v57 }
 0x14e   : > { %v2819_v11 = vpop.f32.mrf.mxu1  ;;  %v2867_v58 = vadd.f32 %v2866_v19, %v2818_v47  ;;  %v2185_v47 = vsel %vm12674_vm13, %v2183_v23, %v16129_v12  ;;  %2276 = vst [vmem:[#allocation2 + $0xf8] sm:$0xf] %v2182_v10  ;;  %4340 = vmatpush.bf16.msra.mxu1 %v11832_v18  ;;  %v9748_v10 = vor.u32 %v11731_v63, %v9747_v34  ;;  %v11807_v63 = vld [vmem:[#allocation7 + $0xb8] sm:$0xff] }
 0x14f   : > { %v2770_v5 = vpop.f32.mrf.mxu0  ;;  %2277 = vst [vmem:[#allocation2 + $0x104] sm:$0xf] %v2185_v47  ;;  %4850 = vmatpush.bf16.msrb.mxu2 %v11807_v63 }
 0x150   : > { %v2820_v37 = vadd.f32 %v2819_v11, %v2770_v5  ;;  %v3189_v31 = vpop.f32.mrf.mxu3  ;;  %v13949_v26 = vadd.f32 %v3187_v6, %v2867_v58  ;;  %v11636_v5 = vld [vmem:[#allocation2 + $0xa0] sm:$0xf0]  ;;  %v1726_v6 = vsel %vm1694_vm5, 65537, %v13820_v45 }
 0x151   : > { %v1795_v44 = vrot.slane %v1726_v6, 7  ;;  %v9564_v19 = vor.u32 %v11636_v5, %v9563_v61  ;;  %v1597_v61 = vld [vmem:[%s12587_s8 + $0x5c] sm:$0xf]  ;;  %4752 = vmatpush.bf16.msrb.mxu0 %v11791_v55 }
 0x152   : > { %v11887_v6 = vld [vmem:[#allocation7 + $0x1b8] sm:$0xff] }
 0x153   : > { %v1796_v58 = vsel %vm12693_vm0, %v12666_v42, %v1795_v44  ;;  %v1797_v33 = vrot.slane %v1795_v44, 4  ;;  %5257 = vmatpush.bf16.msrb.mxu3 %v11887_v6 }
 0x154   : > { %v1967_v57 = vunpack.c.l.b16 %v1796_v58  ;;  %v1968_v17 = vunpack.c.h.b16 %v1796_v58 }
 0x155   : > { %3746 = vmatmul.bf16.gmra.mxu3 %v9752_v27  ;;  %v2868_v11 = vpop.f32.mrf.mxu2  ;;  %v1799_v40 = vsel %vm12693_vm0, %v1797_v33, %v12625_v25  ;;  %v16555_v27 = vmov 0  ;;  %4753 = vmatpush.bf16.msrb.mxu0 %v11790_v60 }
 0x156   : > { %v2822_v23 = vpop.f32.mrf.mxu1  ;;  %v2869_v47 = vadd.f32 %v2868_v11, %v2820_v37  ;;  %vm13965_vm11 = vcmp.ne.s32.totalorder %v1967_v57, %v12644_v35  ;;  %vm13970_vm5 = vcmp.ne.s32.totalorder %v1968_v17, %v12647_v36  ;;  %v16558_v37 = vmov 0  ;;  %v9761_v11 = vld [vmem:[#allocation2 + $0x114] sm:$0xf0] }
 0x157   : > { %v2773_v38 = vpop.f32.mrf.mxu0  ;;  %v16556_v27 = vsel %vm13965_vm11, 4294967295, %v16555_v27  ;;  %v16559_v37 = vsel %vm13970_vm5, 4294967295, %v16558_v37  ;;  %v1974_v5 = vunpack.c.l.b16 %v1799_v40  ;;  %v1975_v34 = vunpack.c.h.b16 %v1799_v40  ;;  %vm16142_vm14 = vmpackc.low %vm13970_vm5, %vm13965_vm11 }
 0x158   : > { %v2823_v12 = vadd.f32 %v2822_v23, %v2773_v38  ;;  %v3192_v18 = vpop.f32.mrf.mxu3  ;;  %v13962_v43 = vadd.f32 %v3189_v31, %v2869_v47  ;;  %16557 = vst [vmem:[#allocation86_spill] sm:$0xff] %v16556_v27  ;;  %v1598_v31 = vld [vmem:[%s12587_s8 + $0x60] sm:$0xf]  ;;  %v16564_v17 = vmov 0  ;;  %v2084_v44 = vsel %vm16142_vm14, %v1597_v61, 0 }
 0x159   : > { %3289 = vmatmul.bf16.gmra.mxu1 %v9564_v19  ;;  %16560 = vst [vmem:[#allocation87_spill] sm:$0xff] %v16559_v37  ;;  %vm13981_vm9 = vcmp.ne.s32.totalorder %v1974_v5, %v12644_v35  ;;  %vm13986_vm1 = vcmp.ne.s32.totalorder %v1975_v34, %v12647_v36  ;;  %v11733_v19 = vld [vmem:[#allocation2 + $0x10c] sm:$0xf]  ;;  %v2187_v23 = vrot.slane %v2084_v44, 5  ;;  %v16567_v57 = vrot.slane %v13944_v52, 5  ;;  %v11799_v37 = vld [vmem:[#allocation7 + $0x78] sm:$0xff] }
 0x15a   : > { %3240 = vmatmul.bf16.gmra.mxu0 %v9560_v29  ;;  %3697 = vmatmul.bf16.gmra.mxu2 %v9748_v10  ;;  %v16561_v29 = vmov 0  ;;  %v16565_v17 = vsel %vm13986_vm1, 4294967295, %v16564_v17  ;;  %vm16141_vm12 = vmpackc.low %vm13986_vm1, %vm13981_vm9  ;;  %v303_v10 = vadd.s32 168, %v12601_v2  ;;  %v11637_v44 = vld [vmem:[#allocation2 + $0xac] sm:$0xf]  ;;  %v9764_v27 = vor.u32 %v11733_v19, %v9761_v11 }
 0x15b   : > { %v16562_v29 = vsel %vm13981_vm9, 4294967295, %v16561_v29  ;;  %16566 = vst [vmem:[#allocation89_spill] sm:$0xff] %v16565_v17  ;;  %v14005_v47 = vsel %vm16141_vm12, %v1598_v31, 0  ;;  %v2186_v40 = vrot.slane %v16567_v57, 4  ;;  %v2189_v63 = vrot.slane %v2187_v23, 4  ;;  %4801 = vmatpush.bf16.msrb.mxu1 %v11799_v37 }
 0x15c   : > { %16563 = vst [vmem:[#allocation88_spill] sm:$0xff] %v16562_v29  ;;  %v16150_v6 = vrot.slane %v14005_v47, 5  ;;  %v304_v29 = vadd.s32 176, %v12601_v2  ;;  %v465_v31 = vand.u32 15, %v303_v10  ;;  %v9569_v52 = vld [vmem:[#allocation2 + $0xb4] sm:$0xf0] }
 0x15d   : > { %v2871_v58 = vpop.f32.mrf.mxu2  ;;  %v2188_v17 = vsel %vm12674_vm13, %v2186_v40, %v2187_v23  ;;  %v9575_v57 = vld [vmem:[#allocation2 + $0xb0] sm:$0xf]  ;;  %v9759_v11 = vld [vmem:[#allocation2 + $0x108] sm:$0xf]  ;;  %v11734_v23 = vld [vmem:[#allocation2 + $0x110] sm:$0xf0]  ;;  %v9572_v10 = vor.u32 %v11637_v44, %v9569_v52 }
 0x15e   : > { %v2824_v33 = vpop.f32.mrf.mxu1  ;;  %v2872_v61 = vadd.f32 %v2871_v58, %v2823_v12  ;;  %v2191_v12 = vsel %vm12674_vm13, %v2189_v63, %v16150_v6  ;;  %2278 = vst [vmem:[#allocation2 + $0x110] sm:$0xf] %v2188_v17  ;;  %v472_v19 = vand.u32 15, %v304_v29  ;;  %vm751_vm12 = vcmp.lt.s32.totalorder %v465_v31, 14 }
 0x15f   : > { %v2775_v38 = vpop.f32.mrf.mxu0  ;;  %2279 = vst [vmem:[#allocation2 + $0x11c] sm:$0xf] %v2191_v12  ;;  %vm1696_vm14 = vmpackc.low %vm751_vm12, %vm751_vm12  ;;  %v9760_v63 = vor.u32 %v11734_v23, %v9759_v11  ;;  %v14034_v11 = vld [vmem:[#allocation2 + $0xf8] sm:$0xf]  ;;  %v14036_v23 = vld [vmem:[#allocation2 + $0x100] sm:$0xf0] }
 0x160   : > { %v2825_v5 = vadd.f32 %v2824_v33, %v2775_v38  ;;  %v3194_v34 = vpop.f32.mrf.mxu3  ;;  %v14013_v4 = vadd.f32 %v3192_v18, %v2872_v61  ;;  %v11639_v38 = vld [vmem:[#allocation2 + $0xb8] sm:$0xf0]  ;;  %vm720_vm9 = vcmp.ge.s32.totalorder %v472_v19, 2  ;;  %v16568_v18 = vrot.slane %v13823_v1, 5 }
 0x161   : > { %v1728_v33 = vsel %vm1696_vm14, 65537, %v13820_v45  ;;  %v9576_v61 = vor.u32 %v11639_v38, %v9575_v57  ;;  %vm977_vm1 = vmpackc.low %vm720_vm9, %vm720_vm9 }
 0x162   : > { %v1083_v58 = vrot.slane %v16568_v18, 4  ;;  %v1801_v17 = vrot.slane %v1728_v33, 7  ;;  %v14023_v29 = vsel %vm977_vm1, 65537, %v13820_v45  ;;  %v879_v18 = vld [vmem:[%s12587_s8 + $0x60] sm:$0xf]  ;;  %v11806_v33 = vld [vmem:[#allocation7 + $0xb0] sm:$0xff] }
 0x163   : > { %v16149_v52 = vrot.slane %v14023_v29, 5  ;;  %4851 = vmatpush.bf16.msrb.mxu2 %v11806_v33  ;;  %v14084_v33 = vld [vmem:[#allocation2 + $0x68] sm:$0xf] }
 0x164   : > { %v1802_v38 = vsel %vm12693_vm0, %v12666_v42, %v1801_v17 }
 0x165   : > { %3751 = vmatmul.bf16.gmra.mxu3 %v9764_v27  ;;  %v2873_v37 = vpop.f32.mrf.mxu2  ;;  %v1085_v27 = vsel %vm12674_vm13, %v1083_v58, %v12623_v24 }
 0x166   : > { %v2827_v55 = vpop.f32.mrf.mxu1  ;;  %v2874_v44 = vadd.f32 %v2873_v37, %v2825_v5  ;;  %v1264_v12 = vunpack.c.l.b16 %v1085_v27  ;;  %v1265_v57 = vunpack.c.h.b16 %v1085_v27  ;;  %v1088_v5 = vsel %vm12674_vm13, %v12655_v39, %v16149_v52 }
 0x167   : > { %v2778_v40 = vpop.f32.mrf.mxu0  ;;  %v1271_v58 = vunpack.c.l.b16 %v1088_v5  ;;  %v1803_v37 = vrot.slane %v1801_v17, 4  ;;  %v9876_v27 = vor.u32 %v14036_v23, %v14034_v11  ;;  %v16578_v17 = vmov 0 }
 0x168   : > { %v2828_v1 = vadd.f32 %v2827_v55, %v2778_v40  ;;  %v3197_v31 = vpop.f32.mrf.mxu3  ;;  %v14032_v19 = vadd.f32 %v3194_v34, %v2874_v44  ;;  %vm14044_vm14 = vcmp.ne.s32.totalorder %v1264_v12, %v12644_v35  ;;  %vm14050_vm9 = vcmp.ne.s32.totalorder %v1265_v57, %v12647_v36  ;;  %v11886_v40 = vld [vmem:[#allocation7 + $0x1b0] sm:$0xff]  ;;  %v880_v44 = vld [vmem:[%s12587_s8 + $0x64] sm:$0xf] }
 0x169   : > { %3294 = vmatmul.bf16.gmra.mxu1 %v9576_v61  ;;  %v16572_v34 = vmov 0  ;;  %vm16147_vm1 = vmpackc.low %vm14050_vm9, %vm14044_vm14  ;;  %v1272_v61 = vunpack.c.h.b16 %v1088_v5  ;;  %v1981_v55 = vunpack.c.l.b16 %v1802_v38  ;;  %vm14062_vm12 = vcmp.ne.s32.totalorder %v1271_v58, %v12644_v35  ;;  %5258 = vmatpush.bf16.msrb.mxu3 %v11886_v40 }
 0x16a   : > { %3245 = vmatmul.bf16.gmra.mxu0 %v9572_v10  ;;  %v16569_v10 = vmov 0  ;;  %v16573_v34 = vsel %vm14050_vm9, 4294967295, %v16572_v34  ;;  %3702 = vmatmul.bf16.gmra.mxu2 %v9760_v63  ;;  %v16575_v12 = vmov 0  ;;  %v1369_v63 = vsel %vm16147_vm1, %v879_v18, 0 }
 0x16b   : > { %v16570_v10 = vsel %vm14044_vm14, 4294967295, %v16569_v10  ;;  %16574 = vst [vmem:[#allocation91_spill] sm:$0xff] %v16573_v34  ;;  %v16576_v12 = vsel %vm14062_vm12, 4294967295, %v16575_v12  ;;  %v1982_v57 = vunpack.c.h.b16 %v1802_v38  ;;  %vm14072_vm11 = vcmp.ne.s32.totalorder %v1272_v61, %v12647_v36 }
 0x16c   : > { %16571 = vst [vmem:[#allocation90_spill] sm:$0xff] %v16570_v10  ;;  %v16579_v17 = vsel %vm14072_vm11, 4294967295, %v16578_v17  ;;  %v1479_v11 = vrot.slane %v1369_v63, 7  ;;  %v1805_v23 = vsel %vm12693_vm0, %v1803_v37, %v12625_v25  ;;  %vm14080_vm5 = vcmp.ne.s32.totalorder %v1981_v55, %v12644_v35  ;;  %vm16158_vm1 = vmpackc.low %vm14072_vm11, %vm14062_vm12  ;;  %v1599_v63 = vld [vmem:[%s12587_s8 + $0x64] sm:$0xf] }
 0x16d   : > { %16577 = vst [vmem:[#allocation92_spill] sm:$0xff] %v16576_v12  ;;  %v16581_v58 = vmov 0  ;;  %v2876_v38 = vpop.f32.mrf.mxu2  ;;  %v16584_v40 = vrot.slane %v13879_v14, 7  ;;  %vm14094_vm14 = vcmp.ne.s32.totalorder %v1982_v57, %v12647_v36  ;;  %v16585_v37 = vmov 0  ;;  %v1600_v57 = vld [vmem:[%s12587_s8 + $0x68] sm:$0xf] }
 0x16e   : > { %16580 = vst [vmem:[#allocation93_spill] sm:$0xff] %v16579_v17  ;;  %v16582_v58 = vsel %vm14080_vm5, 4294967295, %v16581_v58  ;;  %v2829_v18 = vpop.f32.mrf.mxu1  ;;  %v16586_v37 = vsel %vm14094_vm14, 4294967295, %v16585_v37  ;;  %v1988_v55 = vunpack.c.l.b16 %v1805_v23  ;;  %v1989_v52 = vunpack.c.h.b16 %v1805_v23  ;;  %v11809_v23 = vld [vmem:[#allocation2 + $0xf8] sm:$0xf0]  ;;  %vm16594_vm11 = vmpackc.low %vm14094_vm14, %vm14080_vm5 }
 0x16f   : > { %v2780_v5 = vpop.f32.mrf.mxu0  ;;  %16583 = vst [vmem:[#allocation94_spill] sm:$0xff] %v16582_v58  ;;  %v1478_v61 = vrot.slane %v16584_v40, 4  ;;  %v2877_v6 = vadd.f32 %v2876_v38, %v2828_v1  ;;  %v14103_v14 = vsel %vm16158_vm1, %v880_v44, 0  ;;  %v1481_v40 = vrot.slane %v1479_v11, 4  ;;  %v9867_v1 = vld [vmem:[#allocation2 + $0xf0] sm:$0xf] }
 0x170   : > { %16587 = vst [vmem:[#allocation95_spill] sm:$0xff] %v16586_v37  ;;  %v2830_v10 = vadd.f32 %v2829_v18, %v2780_v5  ;;  %v3199_v34 = vpop.f32.mrf.mxu3  ;;  %v11808_v5 = vld [vmem:[#allocation2 + $0xf4] sm:$0xf]  ;;  %v9869_v38 = vld [vmem:[#allocation2 + $0xfc] sm:$0xf0]  ;;  %v16165_v44 = vrot.slane %v14103_v14, 7  ;;  %vm14115_vm1 = vcmp.ne.s32.totalorder %v1988_v55, %v12644_v35  ;;  %vm14120_vm12 = vcmp.ne.s32.totalorder %v1989_v52, %v12647_v36 }
 0x171   : > { %v11798_v18 = vld [vmem:[#allocation7 + $0x70] sm:$0xff]  ;;  %v1480_v12 = vsel %vm12693_vm0, %v1478_v61, %v1479_v11  ;;  %v814_v17 = vld [vmem:[%s12587_s8 + $0x60] sm:$0xf]  ;;  %v16589_v53 = vsel %vm14115_vm1, 4294967295, %v16588_v53  ;;  %v16592_v54 = vsel %vm14120_vm12, 4294967295, %v16591_v54  ;;  %v14124_v48 = vadd.f32 %v3197_v31, %v2877_v6  ;;  %vm16167_vm9 = vmpackc.low %vm14120_vm12, %vm14115_vm1 }
 0x172   : > { %16590 = vst [vmem:[#allocation96_spill] sm:$0xff] %v16589_v53  ;;  %v2086_v11 = vsel %vm16594_vm11, %v1599_v63, 0  ;;  %v16595_v52 = vrot.slane %v14005_v47, 5  ;;  %4802 = vmatpush.bf16.msrb.mxu1 %v11798_v18  ;;  %v1483_v6 = vsel %vm12693_vm0, %v1481_v40, %v16165_v44  ;;  %v14147_v31 = vsel %vm16167_vm9, %v1600_v57, 0 }
 0x173   : > { %16593 = vst [vmem:[#allocation97_spill] sm:$0xff] %v16592_v54  ;;  %v306_v63 = vadd.s32 192, %v12601_v2  ;;  %v9684_v47 = vor.u32 %v11714_v59, %v14084_v33  ;;  %v305_v55 = vadd.s32 184, %v12601_v2  ;;  %v16596_v57 = vrot.slane %v14023_v29, 5  ;;  %v14212_v54 = vld [vmem:[#allocation2 + $0x110] sm:$0xf0] }
 0x174   : > { %1566 = vst [vmem:[#allocation2 + $0x120] sm:$0xf] %v1480_v12  ;;  %v2192_v61 = vrot.slane %v16595_v52, 4  ;;  %v2193_v12 = vrot.slane %v2086_v11, 5  ;;  %v9868_v44 = vor.u32 %v11809_v23, %v9867_v1  ;;  %v9872_v53 = vor.u32 %v11808_v5, %v9869_v38 }
 0x175   : > { %846 = vst [vmem:[#allocation2 + $0x124] sm:$0xf] %v814_v17  ;;  %4439 = vmatmul.bf16.vlgmr.msra.gmra.mxu3 %v9876_v27  ;;  %v486_v18 = vand.u32 15, %v306_v63  ;;  %v1089_v52 = vrot.slane %v16596_v57, 4  ;;  %v479_v59 = vand.u32 15, %v305_v55  ;;  %v2878_v33 = vpop.f32.mrf.mxu2  ;;  %v16597_v27 = vrot.slane %v14147_v31, 5 }
 0x176   : > { %1567 = vst [vmem:[#allocation2 + $0x12c] sm:$0xf] %v1483_v6  ;;  %v2194_v17 = vsel %vm12674_vm13, %v2192_v61, %v2193_v12  ;;  %v2195_v40 = vrot.slane %v2193_v12, 4  ;;  %v3260_v60 = vpop.f32.mrf.mxu1  ;;  %v2879_v61 = vadd.f32 %v2878_v33, %v2830_v10  ;;  %v16598_v63 = vmov 0  ;;  %v881_v10 = vld [vmem:[%s12587_s8 + $0x68] sm:$0xf] }
 0x177   : > { %v3211_v11 = vpop.f32.mrf.mxu0  ;;  %2280 = vst [vmem:[#allocation2 + $0x128] sm:$0xf] %v2194_v17  ;;  %vm722_vm11 = vcmp.ge.s32.totalorder %v486_v18, 2  ;;  %v1091_v29 = vsel %vm12674_vm13, %v1089_v52, %v12623_v24  ;;  %vm753_vm1 = vcmp.lt.s32.totalorder %v479_v59, 14  ;;  %v11813_v18 = vld [vmem:[#allocation2 + $0x118] sm:$0xf0] }
 0x178   : > { %v3212_v6 = vadd.f32 %v3211_v11, %v13735_v8  ;;  %v2197_v51 = vsel %vm12674_vm13, %v2195_v40, %v16597_v27  ;;  %v3717_v1 = vpop.f32.mrf.mxu3  ;;  %vm979_vm9 = vmpackc.low %vm722_vm11, %vm722_vm11  ;;  %v1278_v23 = vunpack.c.l.b16 %v1091_v29  ;;  %v1279_v5 = vunpack.c.h.b16 %v1091_v29  ;;  %v9887_v40 = vld [vmem:[#allocation2 + $0x110] sm:$0xf]  ;;  %v14194_v11 = vld [vmem:[#allocation2 + $0x80] sm:$0xf] }
 0x179   : > { %2281 = vst [vmem:[#allocation2 + $0x134] sm:$0xf] %v2197_v51  ;;  %v14167_v38 = vadd.f32 %v3199_v34, %v2879_v61  ;;  %4341 = vmatmul.bf16.vlgmr.msra.gmra.mxu1 %v9868_v44  ;;  %v14170_v12 = vsel %vm979_vm9, 65537, %v13820_v45  ;;  %vm1698_vm5 = vmpackc.low %vm753_vm1, %vm753_vm1  ;;  %v11805_v44 = vld [vmem:[#allocation7 + $0xa8] sm:$0xff] }
 0x17a   : > { %v14165_v8 = vadd.f32 %v3260_v60, %v3212_v6  ;;  %3765 = vmatmul.bf16.vlgmr.msra.gmra.mxu0 %v9684_v47  ;;  %vm14173_vm12 = vcmp.ne.s32.totalorder %v1278_v23, %v12644_v35  ;;  %v16171_v55 = vrot.slane %v14170_v12, 5  ;;  %vm14180_vm11 = vcmp.ne.s32.totalorder %v1279_v5, %v12647_v36  ;;  %4390 = vmatmul.bf16.vlgmr.msra.gmra.mxu2 %v9872_v53  ;;  %v11885_v47 = vld [vmem:[#allocation7 + $0x1a8] sm:$0xff] }
 0x17b   : > { %v16599_v63 = vsel %vm14173_vm12, 4294967295, %v16598_v63  ;;  %v16601_v60 = vmov 0  ;;  %v1730_v34 = vsel %vm1698_vm5, 65537, %v13820_v45  ;;  %vm16174_vm9 = vmpackc.low %vm14180_vm11, %vm14173_vm12  ;;  %4852 = vmatpush.bf16.msrb.mxu2 %v11805_v44  ;;  %5259 = vmatpush.bf16.msrb.mxu3 %v11885_v47  ;;  %v882_v61 = vld [vmem:[%s12587_s8 + $0x6c] sm:$0xf]  ;;  %v16604_v23 = vrot.slane %v14103_v14, 7 }
 0x17c   : > { %16600 = vst [vmem:[#allocation98_spill] sm:$0xff] %v16599_v63  ;;  %v16602_v60 = vsel %vm14180_vm11, 4294967295, %v16601_v60  ;;  %v1807_v17 = vrot.slane %v1730_v34, 7  ;;  %v1094_v57 = vsel %vm12674_vm13, %v12655_v39, %v16171_v55  ;;  %v1371_v33 = vsel %vm16174_vm9, %v881_v10, 0  ;;  %v11717_v55 = vld [vmem:[#allocation2 + $0x88] sm:$0xf0] }
 0x17d   : > { %16603 = vst [vmem:[#allocation99_spill] sm:$0xff] %v16602_v60  ;;  %v1285_v53 = vunpack.c.l.b16 %v1094_v57  ;;  %v1286_v59 = vunpack.c.h.b16 %v1094_v57  ;;  %v3668_v27 = vpop.f32.mrf.mxu2  ;;  %v1484_v5 = vrot.slane %v16604_v23, 4  ;;  %v1485_v34 = vrot.slane %v1371_v33, 7  ;;  %v14210_v10 = vld [vmem:[#allocation2 + $0x108] sm:$0xf] }
 0x17e   : > { %v1808_v6 = vsel %vm12693_vm0, %v12666_v42, %v1807_v17  ;;  %v3262_v29 = vpop.f32.mrf.mxu1  ;;  %v1809_v44 = vrot.slane %v1807_v17, 4  ;;  %v14208_v47 = vadd.f32 %v3717_v1, %v3668_v27  ;;  %v9888_v63 = vor.u32 %v11813_v18, %v9887_v40  ;;  %v14226_v17 = vld [vmem:[#allocation2 + $0x10c] sm:$0xf] }
 0x17f   : > { %v3213_v52 = vpop.f32.mrf.mxu0  ;;  %vm14215_vm5 = vcmp.ne.s32.totalorder %v1285_v53, %v12644_v35  ;;  %vm14220_vm1 = vcmp.ne.s32.totalorder %v1286_v59, %v12647_v36  ;;  %v16608_v14 = vmov 0  ;;  %v11797_v33 = vld [vmem:[#allocation7 + $0x68] sm:$0xff]  ;;  %v1486_v40 = vsel %vm12693_vm0, %v1484_v5, %v1485_v34 }
 0x180   : > { %v3214_v51 = vadd.f32 %v3213_v52, %v13737_v9  ;;  %v3719_v57 = vpop.f32.mrf.mxu3  ;;  %v16605_v9 = vmov 0  ;;  %v16609_v14 = vsel %vm14220_vm1, 4294967295, %v16608_v14  ;;  %v14228_v52 = vld [vmem:[#allocation2 + $0x114] sm:$0xf0]  ;;  %v11789_v27 = vld [vmem:[#allocation7 + $0x28] sm:$0xff]  ;;  %vm16179_vm9 = vmpackc.low %vm14220_vm1, %vm14215_vm5  ;;  %v1487_v18 = vrot.slane %v1485_v34, 4  ;;  %4803 = vmatpush.bf16.msrb.mxu1 %v11797_v33 }
 0x181   : > { %v16606_v9 = vsel %vm14215_vm5, 4294967295, %v16605_v9  ;;  %16610 = vst [vmem:[#allocation101_spill] sm:$0xff] %v16609_v14  ;;  %v1601_v53 = vld [vmem:[%s12587_s8 + $0x6c] sm:$0xf]  ;;  %v1811_v59 = vsel %vm12693_vm0, %v1809_v44, %v12625_v25  ;;  %v1995_v23 = vunpack.c.l.b16 %v1808_v6  ;;  %v1996_v60 = vunpack.c.h.b16 %v1808_v6  ;;  %4754 = vmatpush.bf16.msrb.mxu0 %v11789_v27 }
 0x182   : > { %16607 = vst [vmem:[#allocation100_spill] sm:$0xff] %v16606_v9  ;;  %v14224_v1 = vadd.f32 %v3262_v29, %v3214_v51  ;;  %v14245_v51 = vsel %vm16179_vm9, %v882_v61, 0  ;;  %v816_v29 = vld [vmem:[%s12587_s8 + $0x68] sm:$0xf]  ;;  %v2002_v58 = vunpack.c.l.b16 %v1811_v59  ;;  %v9696_v5 = vor.u32 %v11717_v55, %v14194_v11  ;;  %v817_v14 = vld [vmem:[%s12587_s8 + $0x6c] sm:$0xf] }
 0x183   : > { %1568 = vst [vmem:[#allocation2 + $0x138] sm:$0xf] %v1486_v40  ;;  %v9880_v34 = vor.u32 %v14212_v54, %v14210_v10  ;;  %v16190_v44 = vrot.slane %v14245_v51, 7  ;;  %v2003_v9 = vunpack.c.h.b16 %v1811_v59  ;;  %v1602_v61 = vld [vmem:[%s12587_s8 + $0x70] sm:$0xf]  ;;  %vm14255_vm9 = vcmp.ne.s32.totalorder %v1995_v23, %v12644_v35 }
 0x184   : > { %848 = vst [vmem:[#allocation2 + $0x13c] sm:$0xf] %v816_v29  ;;  %v16611_v40 = vmov 0  ;;  %vm14260_vm5 = vcmp.ne.s32.totalorder %v1996_v60, %v12647_v36  ;;  %v16614_v55 = vmov 0  ;;  %vm14265_vm1 = vcmp.ne.s32.totalorder %v2002_v58, %v12644_v35 }
 0x185   : > { %849 = vst [vmem:[#allocation2 + $0x148] sm:$0xf] %v817_v14  ;;  %v16612_v40 = vsel %vm14255_vm9, 4294967295, %v16611_v40  ;;  %v16615_v55 = vsel %vm14260_vm5, 4294967295, %v16614_v55  ;;  %v16617_v54 = vmov 0  ;;  %v308_v11 = vadd.s32 208, %v12601_v2  ;;  %4444 = vmatmul.bf16.gmra.mxu3 %v9888_v63  ;;  %vm16625_vm14 = vmpackc.low %vm14260_vm5, %vm14255_vm9 }
 0x186   : > { %16613 = vst [vmem:[#allocation102_spill] sm:$0xff] %v16612_v40  ;;  %v16618_v54 = vsel %vm14265_vm1, 4294967295, %v16617_v54  ;;  %v1489_v6 = vsel %vm12693_vm0, %v1487_v18, %v16190_v44  ;;  %vm14279_vm11 = vcmp.ne.s32.totalorder %v2003_v9, %v12647_v36  ;;  %v16620_v60 = vmov 0  ;;  %v3670_v18 = vpop.f32.mrf.mxu2  ;;  %v3265_v29 = vpop.f32.mrf.mxu1 }
 0x187   : > { %16616 = vst [vmem:[#allocation103_spill] sm:$0xff] %v16615_v55  ;;  %v16621_v60 = vsel %vm14279_vm11, 4294967295, %v16620_v60  ;;  %v16623_v58 = vrot.slane %v14147_v31, 5  ;;  %v16624_v63 = vrot.slane %v14170_v12, 5  ;;  %v3216_v33 = vpop.f32.mrf.mxu0  ;;  %v9884_v27 = vor.u32 %v14226_v17, %v14228_v52  ;;  %vm16185_vm12 = vmpackc.low %vm14279_vm11, %vm14265_vm1 }
 0x188   : > { %16619 = vst [vmem:[#allocation104_spill] sm:$0xff] %v16618_v54  ;;  %v2088_v31 = vsel %vm16625_vm14, %v1601_v53, 0  ;;  %v500_v9 = vand.u32 15, %v308_v11  ;;  %v307_v12 = vadd.s32 200, %v12601_v2  ;;  %v3217_v59 = vadd.f32 %v3216_v33, %v13739_v28  ;;  %v3722_v11 = vpop.f32.mrf.mxu3  ;;  %v14321_v33 = vld [vmem:[#allocation2 + $0xa0] sm:$0xf0] }
 0x189   : > { %16622 = vst [vmem:[#allocation105_spill] sm:$0xff] %v16621_v60  ;;  %v2198_v10 = vrot.slane %v16623_v58, 4  ;;  %v1095_v14 = vrot.slane %v16624_v63, 4  ;;  %v14305_v17 = vsel %vm16185_vm12, %v1602_v61, 0  ;;  %v2199_v52 = vrot.slane %v2088_v31, 5  ;;  %4346 = vmatmul.bf16.gmra.mxu1 %v9880_v34  ;;  %v11884_v28 = vld [vmem:[#allocation7 + $0x1a0] sm:$0xff] }
 0x18a   : > { %1569 = vst [vmem:[#allocation2 + $0x144] sm:$0xf] %v1489_v6  ;;  %v14310_v53 = vadd.f32 %v3719_v57, %v3670_v18  ;;  %v16189_v6 = vrot.slane %v14305_v17, 5  ;;  %vm14313_vm14 = vcmp.ge.s32.totalorder %v500_v9, 2  ;;  %v14317_v63 = vadd.f32 %v3265_v29, %v3217_v59  ;;  %3770 = vmatmul.bf16.gmra.mxu0 %v9696_v5  ;;  %v14319_v61 = vld [vmem:[#allocation2 + $0x98] sm:$0xf]  ;;  %4395 = vmatmul.bf16.gmra.mxu2 %v9884_v27 }
 0x18b   : > { %v1097_v23 = vsel %vm12674_vm13, %v1095_v14, %v12623_v24  ;;  %v2200_v57 = vsel %vm12674_vm13, %v2198_v10, %v2199_v52  ;;  %v14325_v31 = vld [vmem:[#allocation2 + $0x120] sm:$0xf]  ;;  %v2201_v9 = vrot.slane %v2199_v52, 4  ;;  %vm981_vm12 = vmpackc.low %vm14313_vm14, %vm14313_vm14  ;;  %v16628_v5 = vmov 0  ;;  %v14335_v59 = vld [vmem:[#allocation2 + $0x128] sm:$0xf0]  ;;  %5260 = vmatpush.bf16.msrb.mxu3 %v11884_v28 }
 0x18c   : > { %v1292_v58 = vunpack.c.l.b16 %v1097_v23  ;;  %v1293_v14 = vunpack.c.h.b16 %v1097_v23  ;;  %2282 = vst [vmem:[#allocation2 + $0x140] sm:$0xf] %v2200_v57  ;;  %v493_v18 = vand.u32 15, %v307_v12  ;;  %v883_v29 = vld [vmem:[%s12587_s8 + $0x70] sm:$0xf]  ;;  %v14339_v10 = vsel %vm981_vm12, 65537, %v13820_v45 }
 0x18d   : > { %v16631_v34 = vmov 0  ;;  %v2203_v52 = vsel %vm12674_vm13, %v2201_v9, %v16189_v6  ;;  %v11804_v23 = vld [vmem:[#allocation7 + $0xa0] sm:$0xff]  ;;  %v16194_v12 = vrot.slane %v14339_v10, 5  ;;  %v9899_v57 = vld [vmem:[#allocation2 + $0x128] sm:$0xf]  ;;  %v16634_v54 = vrot.slane %v14245_v51, 7 }
 0x18e   : > { %vm14331_vm1 = vcmp.ne.s32.totalorder %v1292_v58, %v12644_v35  ;;  %vm14342_vm11 = vcmp.ne.s32.totalorder %v1293_v14, %v12647_v36  ;;  %vm755_vm14 = vcmp.lt.s32.totalorder %v493_v18, 14  ;;  %v11816_v27 = vld [vmem:[#allocation2 + $0x130] sm:$0xf0]  ;;  %2283 = vst [vmem:[#allocation2 + $0x14c] sm:$0xf] %v2203_v52  ;;  %4853 = vmatpush.bf16.msrb.mxu2 %v11804_v23  ;;  %v3673_v6 = vpop.f32.mrf.mxu2  ;;  %v3267_v44 = vpop.f32.mrf.mxu1  ;;  %v16636_v51 = vmov 0 }
 0x18f   : > { %v16629_v5 = vsel %vm14331_vm1, 4294967295, %v16628_v5  ;;  %v16632_v34 = vsel %vm14342_vm11, 4294967295, %v16631_v34  ;;  %vm16199_vm12 = vmpackc.low %vm14342_vm11, %vm14331_vm1  ;;  %v3218_v14 = vpop.f32.mrf.mxu0  ;;  %v1100_v18 = vsel %vm12674_vm13, %v12655_v39, %v16194_v12  ;;  %v1490_v60 = vrot.slane %v16634_v54, 4 }
 0x190   : > { %16630 = vst [vmem:[#allocation106_spill] sm:$0xff] %v16629_v5  ;;  %vm1700_vm9 = vmpackc.low %vm755_vm14, %vm755_vm14  ;;  %v1373_v52 = vsel %vm16199_vm12, %v883_v29, 0  ;;  %v3219_v9 = vadd.f32 %v3218_v14, %v13741_v7  ;;  %v1299_v23 = vunpack.c.l.b16 %v1100_v18  ;;  %v1300_v28 = vunpack.c.h.b16 %v1100_v18  ;;  %v3724_v12 = vpop.f32.mrf.mxu3  ;;  %v884_v29 = vld [vmem:[%s12587_s8 + $0x74] sm:$0xf]  ;;  %v14380_v7 = vld [vmem:[#allocation2 + $0x12c] sm:$0xf0] }
 0x191   : > { %16633 = vst [vmem:[#allocation107_spill] sm:$0xff] %v16632_v34  ;;  %v1732_v58 = vsel %vm1700_vm9, 65537, %v13820_v45  ;;  %v14373_v40 = vadd.f32 %v3722_v11, %v3673_v6  ;;  %v14375_v34 = vld [vmem:[#allocation2 + $0x124] sm:$0xf]  ;;  %v9900_v5 = vor.u32 %v11816_v27, %v9899_v57  ;;  %v1491_v55 = vrot.slane %v1373_v52, 7 }
 0x192   : > { %v1813_v45 = vrot.slane %v1732_v58, 7  ;;  %v14378_v37 = vadd.f32 %v3267_v44, %v3219_v9  ;;  %v11796_v14 = vld [vmem:[#allocation7 + $0x60] sm:$0xff]  ;;  %vm14383_vm9 = vcmp.ne.s32.totalorder %v1299_v23, %v12644_v35  ;;  %vm14388_vm14 = vcmp.ne.s32.totalorder %v1300_v28, %v12647_v36  ;;  %v818_v58 = vld [vmem:[%s12587_s8 + $0x70] sm:$0xf]  ;;  %v819_v57 = vld [vmem:[%s12587_s8 + $0x74] sm:$0xf] }
 0x193   : > { %v11788_v18 = vld [vmem:[#allocation7 + $0x20] sm:$0xff]  ;;  %v16637_v51 = vsel %vm14383_vm9, 4294967295, %v16636_v51  ;;  %v16639_v54 = vmov 0  ;;  %v310_v11 = vadd.s32 224, %v12601_v2  ;;  %vm16200_vm12 = vmpackc.low %vm14388_vm14, %vm14383_vm9  ;;  %v1492_v44 = vsel %vm12693_vm0, %v1490_v60, %v1491_v55  ;;  %4804 = vmatpush.bf16.msrb.mxu1 %v11796_v14  ;;  %850 = vst [vmem:[#allocation2 + $0x154] sm:$0xf] %v818_v58 }
 0x194   : > { %16635 = vst [vmem:[#allocation108_spill] sm:$0xff] %v14378_v37  ;;  %v16640_v54 = vsel %vm14388_vm14, 4294967295, %v16639_v54  ;;  %v1493_v6 = vrot.slane %v1491_v55, 4  ;;  %v1814_v27 = vsel %vm12693_vm0, %v12666_v42, %v1813_v45  ;;  %v1815_v9 = vrot.slane %v1813_v45, 4  ;;  %4755 = vmatpush.bf16.msrb.mxu0 %v11788_v18  ;;  %v1603_v45 = vld [vmem:[%s12587_s8 + $0x74] sm:$0xf] }
 0x195   : > { %16638 = vst [vmem:[#allocation109_spill] sm:$0xff] %v16637_v51  ;;  %v14409_v52 = vsel %vm16200_vm12, %v884_v29, 0  ;;  %v2009_v60 = vunpack.c.l.b16 %v1814_v27  ;;  %v2010_v23 = vunpack.c.h.b16 %v1814_v27  ;;  %v514_v55 = vand.u32 15, %v310_v11  ;;  %4449 = vmatmul.bf16.gmra.mxu3 %v9900_v5  ;;  %v1604_v51 = vld [vmem:[%s12587_s8 + $0x78] sm:$0xf] }
 0x196   : > { %16641 = vst [vmem:[#allocation110_spill] sm:$0xff] %v16640_v54  ;;  %v9896_v28 = vor.u32 %v14375_v34, %v14380_v7  ;;  %v16209_v37 = vrot.slane %v14409_v52, 7  ;;  %v1817_v14 = vsel %vm12693_vm0, %v1815_v9, %v12625_v25  ;;  %v309_v18 = vadd.s32 216, %v12601_v2 }
 0x197   : > { %1570 = vst [vmem:[#allocation2 + $0x150] sm:$0xf] %v1492_v44  ;;  %vm14420_vm12 = vcmp.ne.s32.totalorder %v2009_v60, %v12644_v35  ;;  %v16642_v29 = vmov 0  ;;  %vm14425_vm9 = vcmp.ne.s32.totalorder %v2010_v23, %v12647_v36  ;;  %v16645_v34 = vmov 0  ;;  %v3221_v58 = vpop.f32.mrf.mxu0  ;;  %v3675_v60 = vpop.f32.mrf.mxu2 }
 0x198   : > { %851 = vst [vmem:[#allocation2 + $0x160] sm:$0xf] %v819_v57  ;;  %v16643_v29 = vsel %vm14420_vm12, 4294967295, %v16642_v29  ;;  %v16646_v34 = vsel %vm14425_vm9, 4294967295, %v16645_v34  ;;  %v2016_v7 = vunpack.c.l.b16 %v1817_v14  ;;  %v16648_v11 = vrot.slane %v14305_v17, 5  ;;  %vm16208_vm14 = vmpackc.low %vm14425_vm9, %vm14420_vm12 }
 0x199   : > { %16644 = vst [vmem:[#allocation111_spill] sm:$0xff] %v16643_v29  ;;  %v1495_v5 = vsel %vm12693_vm0, %v1493_v6, %v16209_v37  ;;  %v2017_v57 = vunpack.c.h.b16 %v1817_v14  ;;  %vm14439_vm1 = vcmp.ge.s32.totalorder %v514_v55, 2  ;;  %v16651_v9 = vrot.slane %v14339_v10, 5  ;;  %v3727_v14 = vpop.f32.mrf.mxu3  ;;  %v886_v37 = vld [vmem:[%s12587_s8 + $0x7c] sm:$0xf] }
 0x19a   : > { %16647 = vst [vmem:[#allocation112_spill] sm:$0xff] %v16646_v34  ;;  %v2204_v44 = vrot.slane %v16648_v11, 4  ;;  %v3222_v23 = vadd.f32 %v3221_v58, %v13744_v16  ;;  %v3270_v11 = vpop.f32.mrf.mxu1  ;;  %vm14448_vm11 = vcmp.ne.s32.totalorder %v2016_v7, %v12644_v35  ;;  %v16652_v6 = vmov 0  ;;  %vm983_vm5 = vmpackc.low %vm14439_vm1, %vm14439_vm1  ;;  %4400 = vmatmul.bf16.gmra.mxu2 %v9896_v28  ;;  %v11818_v34 = vld [vmem:[#allocation2 + $0x140] sm:$0xf0] }
 0x19b   : > { %v1101_v17 = vrot.slane %v16651_v9, 4  ;;  %1571 = vst [vmem:[#allocation2 + $0x15c] sm:$0xf] %v1495_v5  ;;  %v16653_v6 = vsel %vm14448_vm11, 4294967295, %v16652_v6  ;;  %v2090_v55 = vsel %vm16208_vm14, %v1603_v45, 0  ;;  %v507_v10 = vand.u32 15, %v309_v18 }
 0x19c   : > { %16654 = vst [vmem:[#allocation113_spill] sm:$0xff] %v16653_v6  ;;  %v14460_v16 = vadd.f32 %v3724_v12, %v3675_v60  ;;  %vm14463_vm4 = vcmp.ne.s32.totalorder %v2017_v57, %v12647_v36  ;;  %v16655_v7 = vmov 0  ;;  %v2205_v58 = vrot.slane %v2090_v55, 5  ;;  %v14467_v5 = vld [vmem:[#allocation3 + $0x24] sm:$0xff]  ;;  %v11803_v55 = vld [vmem:[#allocation7 + $0x98] sm:$0xff] }
 0x19d   : > { %v16656_v7 = vsel %vm14463_vm4, 4294967295, %v16655_v7  ;;  %v14470_v9 = vsel %vm983_vm5, 65537, %v14467_v5  ;;  %v14472_v45 = vadd.f32 %v3270_v11, %v3222_v23  ;;  %v16659_v27 = vor.u32 %v14321_v33, %v14319_v61  ;;  %vm16210_vm1 = vmpackc.low %vm14463_vm4, %vm14448_vm11  ;;  %v14512_v11 = vld [vmem:[#allocation2 + $0xb8] sm:$0xf0]  ;;  %4854 = vmatpush.bf16.msrb.mxu2 %v11803_v55 }
 0x19e   : > { %16657 = vst [vmem:[#allocation114_spill] sm:$0xff] %v16656_v7  ;;  %v1103_v12 = vsel %vm12674_vm13, %v1101_v17, %v12623_v24  ;;  %v16211_v18 = vrot.slane %v14470_v9, 5  ;;  %vm14485_vm14 = vcmp.lt.s32.totalorder %v507_v10, 14  ;;  %v16662_v60 = vor.u32 %v14335_v59, %v14325_v31  ;;  %v11883_v10 = vld [vmem:[#allocation7 + $0x198] sm:$0xff]  ;;  %v14555_v7 = vld [vmem:[#allocation2 + $0x144] sm:$0xf0] }
 0x19f   : > { %16658 = vst [vmem:[#allocation115_spill] sm:$0xff] %v14472_v45  ;;  %3775 = vmatmul.bf16.gmra.mxu0 %v16659_v27  ;;  %v14497_v61 = vsel %vm16210_vm1, %v1604_v51, 0  ;;  %v2206_v33 = vsel %vm12674_vm13, %v2204_v44, %v2205_v58  ;;  %v2207_v17 = vrot.slane %v2205_v58, 4  ;;  %v1306_v51 = vunpack.c.l.b16 %v1103_v12  ;;  %v14510_v44 = vld [vmem:[#allocation2 + $0xb0] sm:$0xf]  ;;  %vm16669_vm11 = vmpackc.low %vm14485_vm14, %vm14485_vm14  ;;  %5261 = vmatpush.bf16.msrb.mxu3 %v11883_v10 }
 0x1a0   : > { %4351 = vmatmul.bf16.gmra.mxu1 %v16662_v60  ;;  %v16213_v31 = vrot.slane %v14497_v61, 5  ;;  %2284 = vst [vmem:[#allocation2 + $0x158] sm:$0xf] %v2206_v33  ;;  %v1106_v59 = vsel %vm12674_vm13, %v12655_v39, %v16211_v18  ;;  %v1307_v23 = vunpack.c.h.b16 %v1103_v12  ;;  %v885_v33 = vld [vmem:[%s12587_s8 + $0x78] sm:$0xf]  ;;  %v16663_v18 = vmov 0 }
 0x1a1   : > { %v1313_v58 = vunpack.c.l.b16 %v1106_v59  ;;  %v1314_v27 = vunpack.c.h.b16 %v1106_v59  ;;  %vm14521_vm1 = vcmp.ne.s32.totalorder %v1306_v51, %v12644_v35  ;;  %v16666_v28 = vmov 0  ;;  %v9911_v59 = vld [vmem:[#allocation2 + $0x140] sm:$0xf]  ;;  %v14551_v10 = vld [vmem:[#allocation2 + $0x138] sm:$0xf]  ;;  %v3729_v29 = vpop.f32.mrf.mxu3 }
 0x1a2   : > { %v2209_v60 = vsel %vm12674_vm13, %v2207_v17, %v16213_v31  ;;  %v16664_v18 = vsel %vm14521_vm1, 4294967295, %v16663_v18  ;;  %vm14526_vm5 = vcmp.ne.s32.totalorder %v1307_v23, %v12647_v36  ;;  %v1734_v12 = vsel %vm16669_vm11, 65537, %v14467_v5  ;;  %v3223_v17 = vpop.f32.mrf.mxu0  ;;  %v11819_v31 = vld [vmem:[#allocation2 + $0x148] sm:$0xf0]  ;;  %v3678_v23 = vpop.f32.mrf.mxu2  ;;  %v14553_v6 = vld [vmem:[#allocation2 + $0x13c] sm:$0xf] }
 0x1a3   : > { %16665 = vst [vmem:[#allocation116_spill] sm:$0xff] %v16664_v18  ;;  %v16667_v28 = vsel %vm14526_vm5, 4294967295, %v16666_v28  ;;  %vm16226_vm4 = vmpackc.low %vm14526_vm5, %vm14521_vm1  ;;  %vm14541_vm12 = vcmp.ne.s32.totalorder %v1313_v58, %v12644_v35  ;;  %v16670_v51 = vmov 0  ;;  %vm14546_vm9 = vcmp.ne.s32.totalorder %v1314_v27, %v12647_v36  ;;  %v3272_v55 = vpop.f32.mrf.mxu1  ;;  %v10275_v20 = vld [vmem:[#allocation2 + $0x150] sm:$0xf] }
 0x1a4   : > { %16668 = vst [vmem:[#allocation117_spill] sm:$0xff] %v16667_v28  ;;  %v16671_v51 = vsel %vm14541_vm12, 4294967295, %v16670_v51  ;;  %v16673_v57 = vmov 0  ;;  %vm16225_vm11 = vmpackc.low %vm14546_vm9, %vm14541_vm12  ;;  %v1375_v58 = vsel %vm16226_vm4, %v885_v33, 0  ;;  %v1819_v28 = vrot.slane %v1734_v12, 7 }
 0x1a5   : > { %2285 = vst [vmem:[#allocation2 + $0x164] sm:$0xf] %v2209_v60  ;;  %v16674_v57 = vsel %vm14546_vm9, 4294967295, %v16673_v57  ;;  %v3224_v60 = vadd.f32 %v3223_v17, %v13760_v41  ;;  %v16676_v41 = vrot.slane %v14409_v52, 7  ;;  %v14568_v17 = vadd.f32 %v3727_v14, %v3678_v23  ;;  %v11795_v14 = vld [vmem:[#allocation7 + $0x58] sm:$0xff] }
 0x1a6   : > { %16672 = vst [vmem:[#allocation118_spill] sm:$0xff] %v16671_v51  ;;  %v14575_v54 = vsel %vm16225_vm11, %v886_v37, 0  ;;  %v1497_v45 = vrot.slane %v1375_v58, 7  ;;  %v9720_v52 = vor.u32 %v14512_v11, %v14510_v44  ;;  %v9912_v33 = vor.u32 %v11819_v31, %v9911_v59  ;;  %v11787_v23 = vld [vmem:[#allocation7 + $0x18] sm:$0xff]  ;;  %4805 = vmatpush.bf16.msrb.mxu1 %v11795_v14  ;;  %v1606_v14 = vld [vmem:[%s12587_s8 + $0x80] sm:$0xf] }
 0x1a7   : > { %16675 = vst [vmem:[#allocation119_spill] sm:$0xff] %v16674_v57  ;;  %v1496_v27 = vrot.slane %v16676_v41, 4  ;;  %v14577_v18 = vadd.f32 %v3272_v55, %v3224_v60  ;;  %v16227_v41 = vrot.slane %v14575_v54, 7  ;;  %v1820_v12 = vsel %vm12693_vm0, %v12666_v42, %v1819_v28  ;;  %4756 = vmatpush.bf16.msrb.mxu0 %v11787_v23  ;;  %v821_v31 = vld [vmem:[%s12587_s8 + $0x7c] sm:$0xf] }
 0x1a8   : > { %16677 = vst [vmem:[#allocation120_spill] sm:$0xff] %v14568_v17  ;;  %v820_v17 = vld [vmem:[%s12587_s8 + $0x78] sm:$0xf]  ;;  %v1499_v37 = vrot.slane %v1497_v45, 4  ;;  %v1821_v60 = vrot.slane %v1819_v28, 4  ;;  %v2023_v44 = vunpack.c.l.b16 %v1820_v12  ;;  %v2024_v11 = vunpack.c.h.b16 %v1820_v12  ;;  %4454 = vmatmul.bf16.gmra.mxu3 %v9912_v33 }
 0x1a9   : > { %v1498_v51 = vsel %vm12693_vm0, %v1496_v27, %v1497_v45  ;;  %v312_v59 = vadd.s32 240, %v12601_v2  ;;  %v311_v55 = vadd.s32 232, %v12601_v2  ;;  %v9904_v58 = vor.u32 %v11818_v34, %v14551_v10  ;;  %852 = vst [vmem:[#allocation2 + $0x16c] sm:$0xf] %v820_v17  ;;  %v1605_v27 = vld [vmem:[%s12587_s8 + $0x7c] sm:$0xf] }
 0x1aa   : > { %1572 = vst [vmem:[#allocation2 + $0x168] sm:$0xf] %v1498_v51  ;;  %v9908_v45 = vor.u32 %v14553_v6, %v14555_v7  ;;  %v1501_v28 = vsel %vm12693_vm0, %v1499_v37, %v16227_v41  ;;  %v1823_v51 = vsel %vm12693_vm0, %v1821_v60, %v12625_v25  ;;  %vm14604_vm14 = vcmp.ne.s32.totalorder %v2023_v44, %v12644_v35  ;;  %v3226_v17 = vpop.f32.mrf.mxu0 }
 0x1ab   : > { %1573 = vst [vmem:[#allocation2 + $0x174] sm:$0xf] %v1501_v28  ;;  %v16678_v34 = vmov 0  ;;  %vm14609_vm11 = vcmp.ne.s32.totalorder %v2024_v11, %v12647_v36  ;;  %v16681_v6 = vmov 0  ;;  %v2030_v7 = vunpack.c.l.b16 %v1823_v51  ;;  %v3680_v11 = vpop.f32.mrf.mxu2  ;;  %v3275_v41 = vpop.f32.mrf.mxu1 }
 0x1ac   : > { %v16679_v34 = vsel %vm14604_vm14, 4294967295, %v16678_v34  ;;  %v16682_v6 = vsel %vm14609_vm11, 4294967295, %v16681_v6  ;;  %v2031_v10 = vunpack.c.h.b16 %v1823_v51  ;;  %853 = vst [vmem:[#allocation2 + $0x178] sm:$0xf] %v821_v31  ;;  %vm16232_vm4 = vmpackc.low %vm14609_vm11, %vm14604_vm14  ;;  %v16684_v33 = vrot.slane %v14497_v61, 5  ;;  %4405 = vmatmul.bf16.gmra.mxu2 %v9908_v45 }
 0x1ad   : > { %16680 = vst [vmem:[#allocation121_spill] sm:$0xff] %v16679_v34  ;;  %v528_v37 = vand.u32 15, %v312_v59  ;;  %v16685_v12 = vrot.slane %v14470_v9, 5  ;;  %v521_v44 = vand.u32 15, %v311_v55  ;;  %v3227_v28 = vadd.f32 %v3226_v17, %v13811_v62  ;;  %v3732_v62 = vpop.f32.mrf.mxu3  ;;  %v11820_v34 = vld [vmem:[#allocation2 + $0x154] sm:$0xf] }
 0x1ae   : > { %16683 = vst [vmem:[#allocation122_spill] sm:$0xff] %v16682_v6  ;;  %v2210_v23 = vrot.slane %v16684_v33, 4  ;;  %vm14623_vm12 = vcmp.ne.s32.totalorder %v2030_v7, %v12644_v35  ;;  %v16686_v31 = vmov 0  ;;  %vm14628_vm9 = vcmp.ne.s32.totalorder %v2031_v10, %v12647_v36  ;;  %v888_v6 = vld [vmem:[%s12587_s8 + $0x84] sm:$0xf] }
 0x1af   : > { %v1107_v60 = vrot.slane %v16685_v12, 4  ;;  %v16687_v31 = vsel %vm14623_vm12, 4294967295, %v16686_v31  ;;  %v16689_v51 = vmov 0  ;;  %v2092_v9 = vsel %vm16232_vm4, %v1605_v27, 0  ;;  %vm16234_vm1 = vmpackc.low %vm14628_vm9, %vm14623_vm12  ;;  %3780 = vmatmul.bf16.gmra.mxu0 %v9720_v52 }
 0x1b0   : > { %16688 = vst [vmem:[#allocation123_spill] sm:$0xff] %v16687_v31  ;;  %v16690_v51 = vsel %vm14628_vm9, 4294967295, %v16689_v51  ;;  %v14637_v61 = vadd.f32 %v3729_v29, %v3680_v11  ;;  %v2211_v59 = vrot.slane %v2092_v9, 5  ;;  %vm14643_vm5 = vcmp.ge.s32.totalorder %v528_v37, 2  ;;  %4356 = vmatmul.bf16.gmra.mxu1 %v9904_v58  ;;  %v887_v37 = vld [vmem:[%s12587_s8 + $0x80] sm:$0xf] }
 0x1b1   : > { %16691 = vst [vmem:[#allocation124_spill] sm:$0xff] %v16690_v51  ;;  %v1109_v7 = vsel %vm12674_vm13, %v1107_v60, %v12623_v24  ;;  %v14650_v10 = vadd.f32 %v3275_v41, %v3227_v28  ;;  %v14657_v29 = vsel %vm16234_vm1, %v1606_v14, 0  ;;  %vm985_vm4 = vmpackc.low %vm14643_vm5, %vm14643_vm5  ;;  %v16694_v12 = vmov 0  ;;  %v11882_v60 = vld [vmem:[#allocation7 + $0x190] sm:$0xff]  ;;  %v9923_v9 = vld [vmem:[#allocation2 + $0x158] sm:$0xf] }
 0x1b2   : > { %v1320_v27 = vunpack.c.l.b16 %v1109_v7  ;;  %v1321_v17 = vunpack.c.h.b16 %v1109_v7  ;;  %v2212_v33 = vsel %vm12674_vm13, %v2210_v23, %v2211_v59  ;;  %v2213_v41 = vrot.slane %v2211_v59, 4  ;;  %v11802_v23 = vld [vmem:[#allocation7 + $0x90] sm:$0xff]  ;;  %v11822_v59 = vld [vmem:[#allocation2 + $0x160] sm:$0xf0]  ;;  %v3228_v45 = vpop.f32.mrf.mxu0  ;;  %5262 = vmatpush.bf16.msrb.mxu3 %v11882_v60  ;;  %v11821_v31 = vld [vmem:[#allocation2 + $0x158] sm:$0xf0] }
 0x1b3   : > { %v16236_v52 = vrot.slane %v14657_v29, 5  ;;  %2286 = vst [vmem:[#allocation2 + $0x170] sm:$0xf] %v2212_v33  ;;  %v16697_v14 = vmov 0  ;;  %v14681_v11 = vsel %vm985_vm4, 65537, %v14467_v5  ;;  %vm14683_vm5 = vcmp.lt.s32.totalorder %v521_v44, 14  ;;  %4855 = vmatpush.bf16.msrb.mxu2 %v11802_v23  ;;  %v3683_v7 = vpop.f32.mrf.mxu2 }
 0x1b4   : > { %vm14667_vm14 = vcmp.ne.s32.totalorder %v1320_v27, %v12644_v35  ;;  %vm14672_vm1 = vcmp.ne.s32.totalorder %v1321_v17, %v12647_v36  ;;  %v1111_v55 = vrot.slane %v14681_v11, 5  ;;  %vm1704_vm4 = vmpackc.low %vm14683_vm5, %vm14683_vm5  ;;  %v3229_v27 = vadd.f32 %v3228_v45, %v13829_v30  ;;  %v3277_v17 = vpop.f32.mrf.mxu1  ;;  %v14701_v33 = vld [vmem:[#allocation2 + $0xc8] sm:$0xf] }
 0x1b5   : > { %v16695_v12 = vsel %vm14667_vm14, 4294967295, %v16694_v12  ;;  %v16698_v14 = vsel %vm14672_vm1, 4294967295, %v16697_v14  ;;  %v2215_v58 = vsel %vm12674_vm13, %v2213_v41, %v16236_v52  ;;  %vm16244_vm12 = vmpackc.low %vm14672_vm1, %vm14667_vm14  ;;  %v14703_v41 = vld [vmem:[#allocation2 + $0xd0] sm:$0xf0]  ;;  %v1736_v11 = vsel %vm1704_vm4, 65537, %v14467_v5  ;;  %v3734_v28 = vpop.f32.mrf.mxu3 }
 0x1b6   : > { %16696 = vst [vmem:[#allocation125_spill] sm:$0xff] %v16695_v12  ;;  %v1377_v44 = vsel %vm16244_vm12, %v887_v37, 0  ;;  %v14708_v37 = vadd.f32 %v3732_v62, %v3683_v7  ;;  %v9915_v52 = vld [vmem:[#allocation2 + $0x150] sm:$0xf]  ;;  %v9924_v51 = vor.u32 %v11822_v59, %v9923_v9  ;;  %v1112_v30 = vsel %vm12674_vm13, %v12655_v39, %v1111_v55  ;;  %v822_v7 = vld [vmem:[%s12587_s8 + $0x80] sm:$0xf] }
 0x1b7   : > { %16699 = vst [vmem:[#allocation126_spill] sm:$0xff] %v16698_v14  ;;  %v1503_v60 = vrot.slane %v1377_v44, 7  ;;  %v1825_v45 = vrot.slane %v1736_v11, 7  ;;  %v14713_v12 = vadd.f32 %v3277_v17, %v3229_v27  ;;  %v1327_v44 = vunpack.c.l.b16 %v1112_v30  ;;  %v9917_v27 = vld [vmem:[#allocation2 + $0x15c] sm:$0xf0] }
 0x1b8   : > { %2287 = vst [vmem:[#allocation2 + $0x17c] sm:$0xf] %v2215_v58  ;;  %v16702_v58 = vrot.slane %v14575_v54, 7  ;;  %v11794_v54 = vld [vmem:[#allocation7 + $0x50] sm:$0xff]  ;;  %v1328_v14 = vunpack.c.h.b16 %v1112_v30  ;;  %v16703_v17 = vmov 0  ;;  %v9916_v57 = vor.u32 %v11821_v31, %v9915_v52  ;;  %4459 = vmatmul.bf16.gmra.mxu3 %v9924_v51 }
 0x1b9   : > { %v1826_v9 = vsel %vm12693_vm0, %v12666_v42, %v1825_v45  ;;  %v1827_v59 = vrot.slane %v1825_v45, 4  ;;  %4806 = vmatpush.bf16.msrb.mxu1 %v11794_v54  ;;  %vm14723_vm5 = vcmp.ne.s32.totalorder %v1327_v44, %v12644_v35  ;;  %v823_v11 = vld [vmem:[%s12587_s8 + $0x84] sm:$0xf]  ;;  %854 = vst [vmem:[#allocation2 + $0x184] sm:$0xf] %v822_v7  ;;  %v9732_v45 = vor.u32 %v14703_v41, %v14701_v33 }
 0x1ba   : > { %v1502_v23 = vrot.slane %v16702_v58, 4  ;;  %v11786_v58 = vld [vmem:[#allocation7 + $0x10] sm:$0xff]  ;;  %v16704_v17 = vsel %vm14723_vm5, 4294967295, %v16703_v17  ;;  %vm14728_vm4 = vcmp.ne.s32.totalorder %v1328_v14, %v12647_v36  ;;  %v2037_v30 = vunpack.c.l.b16 %v1826_v9  ;;  %855 = vst [vmem:[#allocation2 + $0x190] sm:$0xf] %v823_v11  ;;  %v3231_v41 = vpop.f32.mrf.mxu0 }
 0x1bb   : > { %4757 = vmatpush.bf16.msrb.mxu0 %v11786_v58  ;;  %16705 = vst [vmem:[#allocation127_spill] sm:$0xff] %v16704_v17  ;;  %vm16250_vm12 = vmpackc.low %vm14728_vm4, %vm14723_vm5  ;;  %v1505_v54 = vrot.slane %v1503_v60, 4  ;;  %v1607_v58 = vld [vmem:[%s12587_s8 + $0x84] sm:$0xf]  ;;  %v1829_v14 = vsel %vm12693_vm0, %v1827_v59, %v12625_v25  ;;  %v16709_v52 = vmov 0  ;;  %v16711_v33 = vmov 0  ;;  %v3685_v7 = vpop.f32.mrf.mxu2 }
 0x1bc   : > { %v1504_v62 = vsel %vm12693_vm0, %v1502_v23, %v1503_v60  ;;  %v16706_v23 = vmov 0  ;;  %v1378_v31 = vsel %vm16250_vm12, %v888_v6, 0  ;;  %vm14749_vm9 = vcmp.ne.s32.totalorder %v2037_v30, %v12644_v35  ;;  %v3280_v59 = vpop.f32.mrf.mxu1  ;;  %v1608_v30 = vld [vmem:[%s12587_s8 + $0x88] sm:$0xf] }
 0x1bd   : > { %1574 = vst [vmem:[#allocation2 + $0x180] sm:$0xf] %v1504_v62  ;;  %v16707_v23 = vsel %vm14728_vm4, 4294967295, %v16706_v23  ;;  %v2038_v62 = vunpack.c.h.b16 %v1826_v9  ;;  %v16710_v52 = vsel %vm14749_vm9, 4294967295, %v16709_v52  ;;  %v313_v25 = vadd.s32 248, %v12601_v2 }
 0x1be   : > { %16708 = vst [vmem:[#allocation128_spill] sm:$0xff] %v16707_v23  ;;  %v1506_v51 = vrot.slane %v1378_v31, 7  ;;  %v2044_v6 = vunpack.c.l.b16 %v1829_v14  ;;  %v2045_v60 = vunpack.c.h.b16 %v1829_v14  ;;  %v1113_v44 = vrot.slane %v1111_v55, 4  ;;  %v3737_v23 = vpop.f32.mrf.mxu3 }
 0x1bf   : > { %vm14754_vm14 = vcmp.ne.s32.totalorder %v2038_v62, %v12647_v36  ;;  %v3232_v9 = vadd.f32 %v3231_v41, %v13886_v32  ;;  %v9920_v11 = vor.u32 %v11820_v34, %v9917_v27  ;;  %v16713_v62 = vrot.slane %v14657_v29, 5  ;;  %3785 = vmatmul.bf16.gmra.mxu0 %v9732_v45 }
 0x1c0   : > { %v16712_v33 = vsel %vm14754_vm14, 4294967295, %v16711_v33  ;;  %vm16252_vm5 = vmpackc.low %vm14754_vm14, %vm14749_vm9  ;;  %v14772_v17 = vadd.f32 %v3734_v28, %v3685_v7  ;;  %v1507_v55 = vsel %vm12693_vm0, %v1505_v54, %v1506_v51  ;;  %vm14777_vm12 = vcmp.ne.s32.totalorder %v2044_v6, %v12644_v35  ;;  %4361 = vmatmul.bf16.gmra.mxu1 %v9916_v57  ;;  %v889_v7 = vld [vmem:[%s12587_s8 + $0x88] sm:$0xf] }
 0x1c1   : > { %v2094_v2 = vsel %vm16252_vm5, %v1607_v58, 0  ;;  %v2216_v31 = vrot.slane %v16713_v62, 4  ;;  %v16714_v32 = vmov 0  ;;  %vm14782_vm4 = vcmp.ne.s32.totalorder %v2045_v60, %v12647_v36  ;;  %1575 = vst [vmem:[#allocation2 + $0x18c] sm:$0xf] %v1507_v55  ;;  %4410 = vmatmul.bf16.gmra.mxu2 %v9920_v11 }
 0x1c2   : > { %v16715_v32 = vsel %vm14777_vm12, 4294967295, %v16714_v32  ;;  %v16717_v34 = vmov 0  ;;  %v14786_v27 = vadd.f32 %v3280_v59, %v3232_v9  ;;  %vm16253_vm5 = vmpackc.low %vm14782_vm4, %vm14777_vm12  ;;  %v1115_v29 = vsel %vm12674_vm13, %v1113_v44, %v12623_v24  ;;  %v11881_v44 = vld [vmem:[#allocation7 + $0x188] sm:$0xff]  ;;  %v3233_v62 = vpop.f32.mrf.mxu0  ;;  %v11825_v55 = vld [vmem:[#allocation2 + $0x178] sm:$0xf0] }
 0x1c3   : > { %16716 = vst [vmem:[#allocation129_spill] sm:$0xff] %v16715_v32  ;;  %v16718_v34 = vsel %vm14782_vm4, 4294967295, %v16717_v34  ;;  %v535_v28 = vand.u32 15, %v313_v25  ;;  %v14800_v45 = vsel %vm16253_vm5, %v1608_v30, 0  ;;  %v2217_v54 = vrot.slane %v2094_v2, 5  ;;  %v11801_v25 = vld [vmem:[#allocation7 + $0x88] sm:$0xff]  ;;  %5263 = vmatpush.bf16.msrb.mxu3 %v11881_v44 }
 0x1c4   : > { %16719 = vst [vmem:[#allocation130_spill] sm:$0xff] %v16718_v34  ;;  %v1334_v58 = vunpack.c.l.b16 %v1115_v29  ;;  %v16261_v14 = vrot.slane %v14800_v45, 5  ;;  %v1335_v41 = vunpack.c.h.b16 %v1115_v29  ;;  %v1341_v6 = vunpack.c.l.b16 %v12655_v39  ;;  %v890_v59 = vld [vmem:[%s12587_s8 + $0x8c] sm:$0x7]  ;;  %4856 = vmatpush.bf16.msrb.mxu2 %v11801_v25  ;;  %v11824_v2 = vld [vmem:[#allocation2 + $0x170] sm:$0xf0] }
 0x1c5   : > { %v1342_v60 = vunpack.c.h.b16 %v12655_v39  ;;  %v2218_v24 = vsel %vm12674_vm13, %v2216_v31, %v2217_v54  ;;  %v2219_v57 = vrot.slane %v2217_v54, 4  ;;  %v16720_v9 = vmov 0  ;;  %v9935_v31 = vld [vmem:[#allocation2 + $0x170] sm:$0xf]  ;;  %v3688_v54 = vpop.f32.mrf.mxu2  ;;  %v825_v32 = vld [vmem:[%s12587_s8 + $0x8c] sm:$0xf] }
 0x1c6   : > { %vm14809_vm5 = vcmp.ne.s32.totalorder %v1334_v58, %v12644_v35  ;;  %2288 = vst [vmem:[#allocation2 + $0x188] sm:$0xf] %v2218_v24  ;;  %vm14815_vm12 = vcmp.ne.s32.totalorder %v1335_v41, %v12647_v36  ;;  %vm14820_vm4 = vcmp.ne.s32.totalorder %v1341_v6, %v12644_v35  ;;  %v16725_v39 = vmov 0  ;;  %v3282_v58 = vpop.f32.mrf.mxu1  ;;  %v3739_v24 = vpop.f32.mrf.mxu3  ;;  %v11894_v34 = vld [vmem:[#allocation7 + $0x1f0] sm:$0xff] }
 0x1c7   : > { %v16721_v9 = vsel %vm14809_vm5, 4294967295, %v16720_v9  ;;  %v16726_v39 = vsel %vm14820_vm4, 4294967295, %v16725_v39  ;;  %vm14825_vm9 = vcmp.ne.s32.totalorder %v1342_v60, %v12647_v36  ;;  %v16728_v11 = vmov 0  ;;  %vm16266_vm1 = vmpackc.low %vm14815_vm12, %vm14809_vm5  ;;  %857 = vst [vmem:[#allocation2 + $0x1a8] sm:$0xf] %v825_v32 }
 0x1c8   : > { %16722 = vst [vmem:[#allocation131_spill] sm:$0xff] %v16721_v9  ;;  %v16729_v11 = vsel %vm14825_vm9, 4294967295, %v16728_v11  ;;  %vm14829_vm14 = vcmp.lt.s32.totalorder %v535_v28, 14  ;;  %v2221_v29 = vsel %vm12674_vm13, %v2219_v57, %v16261_v14  ;;  %v3234_v28 = vadd.f32 %v3233_v62, %v13899_v15  ;;  %vm16265_vm11 = vmpackc.low %vm14825_vm9, %vm14820_vm4  ;;  %v9743_v15 = vld [vmem:[#allocation2 + $0xe0] sm:$0xf] }
 0x1c9   : > { %16727 = vst [vmem:[#allocation132_spill] sm:$0xff] %v16726_v39  ;;  %v1379_v41 = vsel %vm16266_vm1, %v889_v7, 0  ;;  %v1508_v6 = vrot.slane %v1506_v51, 4  ;;  %v14851_v60 = vadd.f32 %v3737_v23, %v3688_v54  ;;  %v11729_v57 = vld [vmem:[#allocation2 + $0xe8] sm:$0xf0]  ;;  %v1380_v25 = vsel %vm16265_vm11, %v890_v59, 0  ;;  %vm1706_vm6 = vmpackc.low %vm14829_vm14, %vm14829_vm14 }
 0x1ca   : > { %16730 = vst [vmem:[#allocation133_spill] sm:$0xff] %v16729_v11  ;;  %v1509_v44 = vrot.slane %v1379_v41, 7  ;;  %v14861_v62 = vadd.f32 %v3282_v58, %v3234_v28  ;;  %v9936_v51 = vor.u32 %v11825_v55, %v9935_v31  ;;  %v11793_v23 = vld [vmem:[#allocation7 + $0x48] sm:$0xff]  ;;  %v1738_v14 = vsel %vm1706_vm6, 65537, %v14467_v5  ;;  %v11763_v9 = vld [vmem:[#allocation2 + $0xdc] sm:$0xf] }
 0x1cb   : > { %2289 = vst [vmem:[#allocation2 + $0x194] sm:$0xf] %v2221_v29  ;;  %v11785_v7 = vld [vmem:[#allocation7 + $0x8] sm:$0xff]  ;;  %v1512_v29 = vrot.slane %v1380_v25, 7  ;;  %v1831_v59 = vrot.slane %v1738_v14, 7  ;;  %4807 = vmatpush.bf16.msrb.mxu1 %v11793_v23  ;;  %v9744_v28 = vor.u32 %v11729_v57, %v9743_v15  ;;  %v16736_v15 = vmov 0 }
 0x1cc   : > { %v824_v54 = vld [vmem:[%s12587_s8 + $0x88] sm:$0xf]  ;;  %v1510_v11 = vsel %vm12693_vm0, %v1508_v6, %v1509_v44  ;;  %v1511_v39 = vrot.slane %v1509_v44, 4  ;;  %4758 = vmatpush.bf16.msrb.mxu0 %v11785_v7  ;;  %v11823_v58 = vld [vmem:[#allocation2 + $0x16c] sm:$0xf]  ;;  %4464 = vmatmul.bf16.gmra.mxu3 %v9936_v51  ;;  %v3236_v44 = vpop.f32.mrf.mxu0 }
 0x1cd   : > { %856 = vst [vmem:[#allocation2 + $0x19c] sm:$0xf] %v824_v54  ;;  %v9927_v41 = vld [vmem:[#allocation2 + $0x168] sm:$0xf]  ;;  %v1832_v5 = vsel %vm12693_vm0, %v12666_v42, %v1831_v59  ;;  %v1833_v55 = vrot.slane %v1831_v59, 4  ;;  %v3237_v32 = vadd.f32 %v3236_v44, %v13949_v26  ;;  %v16733_v42 = vmov 0 }
 0x1ce   : > { %1576 = vst [vmem:[#allocation2 + $0x198] sm:$0xf] %v1510_v11  ;;  %v1513_v31 = vsel %vm12693_vm0, %v1511_v39, %v1512_v29  ;;  %v9929_v6 = vld [vmem:[#allocation2 + $0x174] sm:$0xf0]  ;;  %v2051_v14 = vunpack.c.l.b16 %v1832_v5  ;;  %v2052_v25 = vunpack.c.h.b16 %v1832_v5  ;;  %v9928_v11 = vor.u32 %v11824_v2, %v9927_v41  ;;  %v3690_v39 = vpop.f32.mrf.mxu2  ;;  %v3285_v29 = vpop.f32.mrf.mxu1  ;;  %v1609_v54 = vld [vmem:[%s12587_s8 + $0x8c] sm:$0xf] }
 0x1cf   : > { %1577 = vst [vmem:[#allocation2 + $0x1a4] sm:$0xf] %v1513_v31  ;;  %v2058_v23 = vunpack.c.l.b16 %v1833_v55  ;;  %v2059_v7 = vunpack.c.h.b16 %v1833_v55  ;;  %v14885_v57 = vadd.f32 %v3739_v24, %v3690_v39  ;;  %v9932_v51 = vor.u32 %v11823_v58, %v9929_v6  ;;  %v3742_v59 = vpop.f32.mrf.mxu3  ;;  %v1610_v41 = vld [vmem:[%s12587_s8 + $0x90] sm:$0x1]  ;;  %3790 = vmatmul.bf16.gmra.mxu0 %v9744_v28  ;;  %v11800_v28 = vld [vmem:[#allocation7 + $0x80] sm:$0xff] }
 0x1d0   : > { %vm14876_vm6 = vcmp.ne.s32.totalorder %v2051_v14, %v12644_v35  ;;  %vm14881_vm14 = vcmp.ne.s32.totalorder %v2052_v25, %v12647_v36  ;;  %v16739_v26 = vmov 0  ;;  %v16742_v2 = vmov 0  ;;  %4366 = vmatmul.bf16.gmra.mxu1 %v9928_v11  ;;  %v11880_v58 = vld [vmem:[#allocation7 + $0x180] sm:$0xff]  ;;  %v9947_v44 = vld [vmem:[#allocation2 + $0x188] sm:$0xf]  ;;  %4857 = vmatpush.bf16.msrb.mxu2 %v11800_v28 }
 0x1d1   : > { %v16734_v42 = vsel %vm14876_vm6, 4294967295, %v16733_v42  ;;  %v16737_v15 = vsel %vm14881_vm14, 4294967295, %v16736_v15  ;;  %vm14893_vm1 = vcmp.ne.s32.totalorder %v2058_v23, %v12644_v35  ;;  %vm14898_vm4 = vcmp.ne.s32.totalorder %v2059_v7, %v12647_v36  ;;  %vm16746_vm9 = vmpackc.low %vm14881_vm14, %vm14876_vm6  ;;  %4415 = vmatmul.bf16.gmra.mxu2 %v9932_v51  ;;  %5264 = vmatpush.bf16.msrb.mxu3 %v11880_v58  ;;  %v11827_v28 = vld [vmem:[#allocation2 + $0x188] sm:$0xf0]  ;;  %v11826_v58 = vld [vmem:[#allocation2 + $0x184] sm:$0xf] }
 0x1d2   : > { %16735 = vst [vmem:[#allocation134_spill] sm:$0xff] %v16734_v42  ;;  %v16740_v26 = vsel %vm14893_vm1, 4294967295, %v16739_v26  ;;  %v16743_v2 = vsel %vm14898_vm4, 4294967295, %v16742_v2  ;;  %v14902_v24 = vadd.f32 %v3285_v29, %v3237_v32  ;;  %v16745_v31 = vrot.slane %v14800_v45, 5  ;;  %vm2064_vm11 = vmpackc.low %vm14898_vm4, %vm14893_vm1  ;;  %v11828_v11 = vld [vmem:[#allocation2 + $0x190] sm:$0xf0] }
 0x1d3   : > { %16738 = vst [vmem:[#allocation135_spill] sm:$0xff] %v16737_v15  ;;  %v2096_v35 = vsel %vm16746_vm9, %v1609_v54, 0  ;;  %v2097_v36 = vsel %vm2064_vm11, %v1610_v41, 0  ;;  %v9948_v41 = vor.u32 %v11828_v11, %v9947_v44  ;;  %vm16747_vm9 = vmpackc.low %vm12718_vm3, %vm12713_vm2  ;;  %vm16749_vm3 = vnez %v16295_v49 }
 0x1d4   : > { %16741 = vst [vmem:[#allocation136_spill] sm:$0xff] %v16740_v26  ;;  %v2222_v5 = vrot.slane %v16745_v31, 4  ;;  %v2223_v45 = vrot.slane %v2096_v35, 5  ;;  %v2226_v55 = vrot.slane %v2097_v36, 5  ;;  %v3238_v25 = vpop.f32.mrf.mxu0  ;;  %v11792_v31 = vld [vmem:[#allocation7 + $0x40] sm:$0xff]  ;;  %vm16748_vm2 = vmpackc.low %vm12758_vm8, %vm12753_vm7  ;;  %vm16751_vm8 = vnez %v16313_v22  ;;  %v11893_v22 = vld [vmem:[#allocation7 + $0x1e8] sm:$0xff] }
 0x1d5   : > { %16744 = vst [vmem:[#allocation137_spill] sm:$0xff] %v16743_v2  ;;  %v3239_v7 = vadd.f32 %v3238_v25, %v13962_v43  ;;  %v9755_v35 = vld [vmem:[#allocation2 + $0xf8] sm:$0xf]  ;;  %v11732_v36 = vld [vmem:[#allocation2 + $0x100] sm:$0xf0]  ;;  %4808 = vmatpush.bf16.msrb.mxu1 %v11792_v31  ;;  %vm16750_vm7 = vmpackc.low %vm12687_vm15, %vm16749_vm3 }
 0x1d6   : > { %v2224_v6 = vsel %vm12674_vm13, %v2222_v5, %v2223_v45  ;;  %v2225_v14 = vrot.slane %v2223_v45, 4  ;;  %v3693_v23 = vpop.f32.mrf.mxu2  ;;  %v3287_v39 = vpop.f32.mrf.mxu1  ;;  %v11784_v5 = vld [vmem:[#allocation7] sm:$0xff]  ;;  %v9756_v43 = vor.u32 %v11732_v36, %v9755_v35  ;;  %v10067_v26 = vld [vmem:[#allocation2 + $0xc8] sm:$0xf]  ;;  %v11762_v2 = vld [vmem:[#allocation2 + $0xd0] sm:$0xf0] }
 0x1d7   : > { %2290 = vst [vmem:[#allocation2 + $0x1a0] sm:$0xf] %v2224_v6  ;;  %v14925_v29 = vadd.f32 %v3742_v59, %v3693_v23  ;;  %v3744_v54 = vpop.f32.mrf.mxu3  ;;  %v14927_v51 = vadd.f32 %v3287_v39, %v3239_v7  ;;  %v9939_v45 = vld [vmem:[#allocation2 + $0x180] sm:$0xf]  ;;  %4759 = vmatpush.bf16.msrb.mxu0 %v11784_v5  ;;  %v9941_v6 = vld [vmem:[#allocation2 + $0x18c] sm:$0xf0] }
 0x1d8   : > { %v2227_v32 = vsel %vm12674_vm13, %v2225_v14, %v2226_v55  ;;  %v9940_v59 = vor.u32 %v11827_v28, %v9939_v45  ;;  %v9944_v44 = vor.u32 %v11826_v58, %v9941_v6  ;;  %v9767_v58 = vld [vmem:[#allocation2 + $0x110] sm:$0xf]  ;;  %v11735_v6 = vld [vmem:[#allocation2 + $0x118] sm:$0xf0] }
 0x1d9   : > { %2291 = vst [vmem:[#allocation2 + $0x1ac] sm:$0xf] %v2227_v32 }
 0x1dc   : > { %4469 = vmatmul.bf16.gmra.mxu3 %v9948_v41  ;;  %v3241_v55 = vpop.f32.mrf.mxu0 }
 0x1dd   : > { %v3242_v25 = vadd.f32 %v3241_v55, %v14013_v4  ;;  %v9951_v55 = vld [vmem:[#allocation2 + $0x198] sm:$0xf] }
 0x1de   : > { %v3695_v14 = vpop.f32.mrf.mxu2  ;;  %v3290_v23 = vpop.f32.mrf.mxu1  ;;  %v9959_v31 = vld [vmem:[#allocation2 + $0x1a0] sm:$0xf] }
 0x1df   : > { %v14930_v7 = vadd.f32 %v3744_v54, %v3695_v14  ;;  %v3747_v11 = vpop.f32.mrf.mxu3  ;;  %v14932_v39 = vadd.f32 %v3290_v23, %v3242_v25  ;;  %3795 = vmatmul.bf16.gmra.mxu0 %v9756_v43  ;;  %v11830_v14 = vld [vmem:[#allocation2 + $0x1a0] sm:$0xf0]  ;;  %v9768_v43 = vor.u32 %v11735_v6, %v9767_v58  ;;  %v9953_v25 = vld [vmem:[#allocation2 + $0x1a4] sm:$0xf0]  ;;  %v10251_v6 = vld [vmem:[#allocation2 + $0x120] sm:$0xf] }
 0x1e0   : > { %4371 = vmatmul.bf16.gmra.mxu1 %v9940_v59  ;;  %v11831_v5 = vld [vmem:[#allocation2 + $0x1a8] sm:$0xf0]  ;;  %v11829_v59 = vld [vmem:[#allocation2 + $0x19c] sm:$0xf] }
 0x1e1   : > { %4420 = vmatmul.bf16.gmra.mxu2 %v9944_v44  ;;  %v9960_v54 = vor.u32 %v11831_v5, %v9959_v31  ;;  %v9952_v44 = vor.u32 %v11830_v14, %v9951_v55  ;;  %v11983_v31 = vld [vmem:[#allocation9 + $0xf8] sm:$0xff] }
 0x1e2   : > { %v11991_v5 = vld [vmem:[#allocation9 + $0x138] sm:$0xff]  ;;  %6445 = vmatpush.bf16.msra.mxu2 %v11983_v31  ;;  %v14953_v31 = vld [vmem:[%s15951_s3] ss:$0 sm:$0xff] }
 0x1e3   : > { %6494 = vmatpush.bf16.msra.mxu3 %v11991_v5 }
 0x1e4   : > { %v3243_v32 = vpop.f32.mrf.mxu0 }
 0x1e5   : > { %v3244_v41 = vadd.f32 %v3243_v32, %v14032_v19 }
 0x1e6   : > { %v3698_v35 = vpop.f32.mrf.mxu2  ;;  %v3292_v36 = vpop.f32.mrf.mxu1 }
 0x1e7   : > { %v14935_v45 = vadd.f32 %v3747_v11, %v3698_v35  ;;  %v3749_v4 = vpop.f32.mrf.mxu3  ;;  %v14937_v28 = vadd.f32 %v3292_v36, %v3244_v41  ;;  %v9956_v35 = vor.u32 %v11829_v59, %v9953_v25  ;;  %v11761_v25 = vld [vmem:[#allocation2 + $0xc8] sm:$0xf0] }
 0x1ec   : > { %4474 = vmatmul.bf16.gmra.mxu3 %v9960_v54  ;;  %v3246_v23 = vpop.f32.mrf.mxu0  ;;  %v11857_v54 = vld [vmem:[#allocation2 + $0x128] sm:$0xf0] }
 0x1ed   : > { %v3247_v19 = vadd.f32 %v3246_v23, %v14124_v48  ;;  %v10252_v59 = vor.u32 %v11857_v54, %v10251_v6  ;;  %v11760_v23 = vld [vmem:[#allocation2 + $0xc4] sm:$0xf]  ;;  %v10068_v54 = vor.u32 %v11762_v2, %v10067_v26  ;;  %v5490_v2 = vld [vmem:[#allocation3 + $0x28] sm:$0x8] }
 0x1ee   : > { %v3700_v42 = vpop.f32.mrf.mxu2  ;;  %v3295_v32 = vpop.f32.mrf.mxu1 }
 0x1ef   : > { %v14940_v11 = vadd.f32 %v3749_v4, %v3700_v42  ;;  %v3752_v41 = vpop.f32.mrf.mxu3  ;;  %v14942_v36 = vadd.f32 %v3295_v32, %v3247_v19  ;;  %3800 = vmatmul.bf16.gmra.mxu0 %v9768_v43  ;;  %v10059_v43 = vld [vmem:[#allocation2 + $0xc0] sm:$0xf]  ;;  %v11903_v19 = vld [vmem:[#allocation7 + $0x238] sm:$0xff] }
 0x1f0   : > { %4376 = vmatmul.bf16.gmra.mxu1 %v9952_v44  ;;  %v10061_v44 = vld [vmem:[#allocation2 + $0xcc] sm:$0xf0]  ;;  %v11895_v32 = vld [vmem:[#allocation7 + $0x1f8] sm:$0xff] }
 0x1f1   : > { %4425 = vmatmul.bf16.gmra.mxu2 %v9956_v35  ;;  %v10060_v35 = vor.u32 %v11761_v25, %v10059_v43  ;;  %5355 = vmatpush.bf16.msra.mxu1 %v11903_v19  ;;  %v11982_v25 = vld [vmem:[#allocation9 + $0xf0] sm:$0xff]  ;;  %v11860_v19 = vld [vmem:[#allocation2 + $0x140] sm:$0xf0] }
 0x1f2   : > { %5306 = vmatpush.bf16.msra.mxu0 %v11895_v32  ;;  %6446 = vmatpush.bf16.msra.mxu2 %v11982_v25 }
 0x1f4   : > { %v3248_v58 = vpop.f32.mrf.mxu0 }
 0x1f5   : > { %v3249_v55 = vadd.f32 %v3248_v58, %v14167_v38  ;;  %v10064_v58 = vor.u32 %v11760_v23, %v10061_v44  ;;  %v10263_v44 = vld [vmem:[#allocation2 + $0x138] sm:$0xf] }
 0x1f6   : > { %v3703_v15 = vpop.f32.mrf.mxu2  ;;  %v3297_v14 = vpop.f32.mrf.mxu1  ;;  %5307 = vmatpush.bf16.msra.mxu0 %v11894_v34 }
 0x1f7   : > { %v14945_v48 = vadd.f32 %v3752_v41, %v3703_v15  ;;  %v3754_v42 = vpop.f32.mrf.mxu3  ;;  %v14947_v4 = vadd.f32 %v3297_v14, %v3249_v55 }
 0x1fa   : > { %5308 = vmatpush.bf16.msra.mxu0 %v11893_v22  ;;  %v16771_v22 = vld [vmem:[#allocation115_spill] sm:$0xff] }
 0x1fc   : > { %5265 = vmatmul.bf16.vlgmr.msrb.gmra.mxu3 %v10252_v59  ;;  %v3766_v38 = vpop.f32.mrf.mxu0 }
 0x1fd   : > { %v3767_v41 = vadd.f32 %v3766_v38, %v14208_v47  ;;  %v11990_v47 = vld [vmem:[#allocation9 + $0x130] sm:$0xff] }
 0x1fe   : > { %v3705_v15 = vpop.f32.mrf.mxu2  ;;  %v4342_v5 = vpop.f32.mrf.mxu1  ;;  %6495 = vmatpush.bf16.msra.mxu3 %v11990_v47  ;;  %v10079_v47 = vld [vmem:[#allocation2 + $0xe0] sm:$0xf] }
 0x1ff   : > { %v14955_v6 = vadd.f32 %v3754_v42, %v3705_v15  ;;  %v4440_v55 = vpop.f32.mrf.mxu3  ;;  %v3806_v14 = vadd.f32 %v3767_v41, %v14165_v8  ;;  %4760 = vmatmul.bf16.vlgmr.msrb.gmra.mxu0 %v10060_v35  ;;  %v10264_v41 = vor.u32 %v11860_v19, %v10263_v44 }
 0x200   : > { %4809 = vmatmul.bf16.vlgmr.msrb.gmra.mxu1 %v10064_v58  ;;  %v10071_v58 = vld [vmem:[#allocation2 + $0xd8] sm:$0xf] }
 0x201   : > { %v3826_v59 = vadd.f32 %v14953_v31, %v3806_v14  ;;  %4858 = vmatmul.bf16.vlgmr.msrb.gmra.mxu2 %v10068_v54  ;;  %v11764_v14 = vld [vmem:[#allocation2 + $0xe0] sm:$0xf0] }
 0x202   : > { %v10072_v25 = vor.u32 %v11764_v14, %v10071_v58 }
 0x203   : > { %v3842_v43 = vmax.f32 %v3826_v59, 0.0  ;;  %v11902_v59 = vld [vmem:[#allocation7 + $0x230] sm:$0xff] }
 0x204   : > { %v3768_v23 = vpop.f32.mrf.mxu0  ;;  %5356 = vmatpush.bf16.msra.mxu1 %v11902_v59 }
 0x205   : > { %v3858_v32 = vpack.c.bf16 %v3842_v43, %v3842_v43  ;;  %v3769_v42 = vadd.f32 %v3768_v23, %v14310_v53  ;;  %v10073_v53 = vld [vmem:[#allocation2 + $0xe4] sm:$0xf0] }
 0x206   : > { %v4391_v38 = vpop.f32.mrf.mxu2  ;;  %v4344_v15 = vpop.f32.mrf.mxu1  ;;  %v10076_v44 = vor.u32 %v11763_v9, %v10073_v53  ;;  %v11863_v53 = vld [vmem:[#allocation2 + $0x158] sm:$0xf0] }
 0x207   : > { %v4392_v26 = vadd.f32 %v4391_v38, %v4342_v5  ;;  %v4442_v8 = vpop.f32.mrf.mxu3  ;;  %3876 = vst [vmem:[#allocation3 + $0x34] sm:$0xf] %v3858_v32  ;;  %v3807_v35 = vadd.f32 %v3769_v42, %v14224_v1  ;;  %v5523_v5 = vsel %vm16747_vm9, %v5490_v2, 0  ;;  %vm16752_vm9 = vnez %v16307_v13 }
 0x208   : > { %vm16753_vm15 = vmpackc.low %vm16751_vm8, %vm16752_vm9 }
 0x209   : > { %v14961_v54 = vadd.f32 %v4440_v55, %v4392_v26  ;;  %v3827_v43 = vadd.f32 %v14953_v31, %v3807_v35  ;;  %v11765_v55 = vld [vmem:[#allocation2 + $0xe8] sm:$0xf0]  ;;  %v10441_v26 = vrot.slane %v5523_v5, 11 }
 0x20a   : > { %v10080_v3 = vor.u32 %v11765_v55, %v10079_v47 }
 0x20b   : > { %v3843_v1 = vmax.f32 %v3827_v43, 0.0 }
 0x20c   : > { %5270 = vmatmul.bf16.gmra.mxu3 %v10264_v41  ;;  %v3771_v23 = vpop.f32.mrf.mxu0  ;;  %v11989_v41 = vld [vmem:[#allocation9 + $0x128] sm:$0xff] }
 0x20d   : > { %v3859_v19 = vpack.c.bf16 %v3843_v1, %v3843_v1  ;;  %v3772_v38 = vadd.f32 %v3771_v23, %v14373_v40  ;;  %v11981_v40 = vld [vmem:[#allocation9 + $0xe8] sm:$0xff]  ;;  %6496 = vmatpush.bf16.msra.mxu3 %v11989_v41 }
 0x20e   : > { %v4393_v32 = vpop.f32.mrf.mxu2  ;;  %v4347_v42 = vpop.f32.mrf.mxu1  ;;  %v5491_v34 = vld [vmem:[#allocation3 + $0x34] sm:$0xf]  ;;  %6447 = vmatpush.bf16.msra.mxu2 %v11981_v40 }
 0x20f   : > { %v4394_v35 = vadd.f32 %v4393_v32, %v4344_v15  ;;  %v4445_v59 = vpop.f32.mrf.mxu3  ;;  %v5524_v0 = vsel %vm16748_vm2, %v5491_v34, 0  ;;  %3877 = vst [vmem:[#allocation3 + $0x40] sm:$0xf] %v3859_v19  ;;  %v3808_v2 = vadd.f32 %v3772_v38, %v14317_v63  ;;  %4765 = vmatmul.bf16.gmra.mxu0 %v10072_v25  ;;  %v5750_v14 = vld [vmem:[#allocation3 + $0x34] sm:$0xe]  ;;  %vm16755_vm2 = vnez %v16754_v50 }
 0x210   : > { %v5591_v9 = vrot.slane %v5524_v0, 7  ;;  %4814 = vmatmul.bf16.gmra.mxu1 %v10076_v44  ;;  %v5783_v63 = vsel %vm16750_vm7, %v5750_v14, 0  ;;  %v10083_v32 = vld [vmem:[#allocation2 + $0xf0] sm:$0xf]  ;;  %v11767_v38 = vld [vmem:[#allocation2 + $0xf8] sm:$0xf0] }
 0x211   : > { %v14976_v58 = vadd.f32 %v4442_v8, %v4394_v35  ;;  %v3828_v15 = vadd.f32 %v14953_v31, %v3808_v2  ;;  %4863 = vmatmul.bf16.gmra.mxu2 %v10080_v3  ;;  %v10442_v34 = vrot.slane %v5783_v63, 9  ;;  %v16756_v35 = vld [vmem:[#allocation14_spill] sm:$0xff]  ;;  %v16759_v3 = vld [vmem:[#allocation108_spill] sm:$0xff]  ;;  %v11901_v14 = vld [vmem:[#allocation7 + $0x228] sm:$0xff]  ;;  %v10084_v63 = vor.u32 %v11767_v38, %v10083_v32 }
 0x212   : > { %v5592_v21 = vsel %vm12693_vm0, %v10441_v26, %v5591_v9  ;;  %v10276_v26 = vor.u32 %v11863_v53, %v10275_v20  ;;  %vm16757_vm3 = vnez %v16756_v35  ;;  %v5593_v0 = vrot.slane %v5591_v9, 4  ;;  %v10091_v20 = vld [vmem:[#allocation2 + $0xf8] sm:$0xf]  ;;  %5357 = vmatpush.bf16.msra.mxu1 %v11901_v14  ;;  %v16763_v32 = vld [vmem:[#allocation18_spill] sm:$0xff] }
 0x213   : > { %5718 = vst [vmem:[#allocation3 + $0x30] sm:$0xf] %v5592_v21  ;;  %v3844_v43 = vmax.f32 %v3828_v15, 0.0  ;;  %vm16758_vm7 = vmpackc.low %vm16755_vm2, %vm16757_vm3  ;;  %v11766_v15 = vld [vmem:[#allocation2 + $0xf4] sm:$0xf]  ;;  %vm16764_vm9 = vnez %v16763_v32  ;;  %v16772_v32 = vld [vmem:[#allocation21_spill] sm:$0xff] }
 0x214   : > { %v3773_v8 = vpop.f32.mrf.mxu0  ;;  %v10085_v21 = vld [vmem:[#allocation2 + $0xfc] sm:$0xf0] }
 0x215   : > { %v3860_v5 = vpack.c.bf16 %v3844_v43, %v3844_v43  ;;  %v3774_v25 = vadd.f32 %v3773_v8, %v14460_v16  ;;  %v11768_v8 = vld [vmem:[#allocation2 + $0x100] sm:$0xf0] }
 0x216   : > { %v4396_v1 = vpop.f32.mrf.mxu2  ;;  %v4349_v47 = vpop.f32.mrf.mxu1  ;;  %v5492_v55 = vld [vmem:[#allocation3 + $0x40] sm:$0xf] }
 0x217   : > { %v5751_v23 = vld [vmem:[#allocation3 + $0x40] sm:$0xf]  ;;  %v4397_v44 = vadd.f32 %v4396_v1, %v4347_v42  ;;  %v4447_v19 = vpop.f32.mrf.mxu3  ;;  %v5525_v49 = vsel %vm16753_vm15, %v5492_v55, 0  ;;  %3878 = vst [vmem:[#allocation3 + $0x4c] sm:$0xf] %v3860_v5  ;;  %v3809_v42 = vadd.f32 %v3774_v25, %v16759_v3  ;;  %v10088_v5 = vor.u32 %v11766_v15, %v10085_v21  ;;  %v16760_v55 = vld [vmem:[#allocation120_spill] sm:$0xff] }
 0x218   : > { %v5784_v16 = vsel %vm16758_vm7, %v5751_v23, 0  ;;  %v5594_v2 = vrot.slane %v5525_v49, 7 }
 0x219   : > { %v5851_v40 = vrot.slane %v5784_v16, 5  ;;  %v14998_v41 = vadd.f32 %v4445_v59, %v4397_v44  ;;  %v3829_v13 = vadd.f32 %v14953_v31, %v3809_v42  ;;  %v10092_v16 = vor.u32 %v11768_v8, %v10091_v20  ;;  %v11988_v20 = vld [vmem:[#allocation9 + $0x120] sm:$0xff]  ;;  %v10287_v8 = vld [vmem:[#allocation2 + $0x168] sm:$0xf] }
 0x21a   : > { %v5595_v43 = vsel %vm12693_vm0, %v5593_v0, %v5594_v2  ;;  %v16768_v0 = vld [vmem:[#allocation16_spill] sm:$0xff]  ;;  %6497 = vmatpush.bf16.msra.mxu3 %v11988_v20 }
 0x21b   : > { %v5852_v53 = vsel %vm12674_vm13, %v10442_v34, %v5851_v40  ;;  %v3845_v9 = vmax.f32 %v3829_v13, 0.0  ;;  %5719 = vst [vmem:[#allocation3 + $0x3c] sm:$0xf] %v5595_v43  ;;  %v5853_v42 = vrot.slane %v5851_v40, 4  ;;  %v16761_v34 = vld [vmem:[#allocation19_spill] sm:$0xff]  ;;  %vm16769_vm3 = vnez %v16768_v0  ;;  %v11980_v40 = vld [vmem:[#allocation9 + $0xe0] sm:$0xff] }
 0x21c   : > { %5275 = vmatmul.bf16.gmra.mxu3 %v10276_v26  ;;  %v3776_v59 = vpop.f32.mrf.mxu0  ;;  %5978 = vst [vmem:[#allocation3 + $0x38] sm:$0xf] %v5852_v53  ;;  %vm16762_vm8 = vnez %v16761_v34  ;;  %v16766_v26 = vld [vmem:[#allocation17_spill] sm:$0xff]  ;;  %v5596_v43 = vrot.slane %v5594_v2, 4  ;;  %6448 = vmatpush.bf16.msra.mxu2 %v11980_v40  ;;  %v16777_v0 = vld [vmem:[#allocation23_spill] sm:$0xff] }
 0x21d   : > { %v3861_v1 = vpack.c.bf16 %v3845_v9, %v3845_v9  ;;  %v3777_v23 = vadd.f32 %v3776_v59, %v16760_v55  ;;  %vm16765_vm15 = vmpackc.low %vm16762_vm8, %vm16764_vm9  ;;  %vm16767_vm2 = vnez %v16766_v26  ;;  %vm16773_vm8 = vnez %v16772_v32 }
 0x21e   : > { %v4398_v25 = vpop.f32.mrf.mxu2  ;;  %v4352_v44 = vpop.f32.mrf.mxu1  ;;  %v5493_v49 = vld [vmem:[#allocation3 + $0x4c] sm:$0xf]  ;;  %vm16770_vm7 = vmpackc.low %vm16767_vm2, %vm16769_vm3  ;;  %vm16778_vm2 = vnez %v16777_v0 }
 0x21f   : > { %v5752_v50 = vld [vmem:[#allocation3 + $0x4c] sm:$0xf]  ;;  %v4399_v35 = vadd.f32 %v4398_v25, %v4349_v47  ;;  %v4450_v3 = vpop.f32.mrf.mxu3  ;;  %v5526_v38 = vsel %vm16765_vm15, %v5493_v49, 0  ;;  %3879 = vst [vmem:[#allocation3 + $0x58] sm:$0xf] %v3861_v1  ;;  %v3810_v13 = vadd.f32 %v3777_v23, %v16771_v22  ;;  %4770 = vmatmul.bf16.gmra.mxu0 %v10084_v63 }
 0x220   : > { %v5785_v14 = vsel %vm16770_vm7, %v5752_v50, 0  ;;  %v5597_v47 = vrot.slane %v5526_v38, 7  ;;  %4819 = vmatmul.bf16.gmra.mxu1 %v10088_v5  ;;  %v11866_v1 = vld [vmem:[#allocation2 + $0x170] sm:$0xf0] }
 0x221   : > { %v5854_v15 = vrot.slane %v5785_v14, 5  ;;  %v15017_v21 = vadd.f32 %v4447_v19, %v4399_v35  ;;  %v3830_v53 = vadd.f32 %v14953_v31, %v3810_v13  ;;  %4868 = vmatmul.bf16.gmra.mxu2 %v10092_v16  ;;  %v10095_v16 = vld [vmem:[#allocation2 + $0x108] sm:$0xf]  ;;  %v10288_v34 = vor.u32 %v11866_v1, %v10287_v8  ;;  %v16774_v38 = vld [vmem:[#allocation20_spill] sm:$0xff]  ;;  %v16779_v14 = vld [vmem:[#allocation22_spill] sm:$0xff] }
 0x222   : > { %v5598_v59 = vsel %vm12693_vm0, %v5596_v43, %v5597_v47  ;;  %vm16775_vm9 = vnez %v16774_v38  ;;  %vm16780_vm3 = vnez %v16779_v14  ;;  %v11900_v43 = vld [vmem:[#allocation7 + $0x220] sm:$0xff]  ;;  %v10103_v1 = vld [vmem:[#allocation2 + $0x110] sm:$0xf] }
 0x223   : > { %v5855_v9 = vsel %vm12674_vm13, %v5853_v42, %v5854_v15  ;;  %v3846_v63 = vmax.f32 %v3830_v53, 0.0  ;;  %5720 = vst [vmem:[#allocation3 + $0x48] sm:$0xf] %v5598_v59  ;;  %v11770_v42 = vld [vmem:[#allocation2 + $0x110] sm:$0xf0]  ;;  %vm16776_vm15 = vmpackc.low %vm16773_vm8, %vm16775_vm9  ;;  %v11892_v53 = vld [vmem:[#allocation7 + $0x1e0] sm:$0xff]  ;;  %5358 = vmatpush.bf16.msra.mxu1 %v11900_v43 }
 0x224   : > { %5979 = vst [vmem:[#allocation3 + $0x44] sm:$0xf] %v5855_v9  ;;  %v3778_v19 = vpop.f32.mrf.mxu0  ;;  %vm16781_vm7 = vmpackc.low %vm16778_vm2, %vm16780_vm3  ;;  %v5856_v9 = vrot.slane %v5854_v15, 4  ;;  %v11769_v59 = vld [vmem:[#allocation2 + $0x10c] sm:$0xf]  ;;  %5309 = vmatpush.bf16.msra.mxu0 %v11892_v53 }
 0x225   : > { %v3862_v5 = vpack.c.bf16 %v3846_v63, %v3846_v63  ;;  %v3779_v2 = vadd.f32 %v3778_v19, %v14637_v61  ;;  %v10097_v63 = vld [vmem:[#allocation2 + $0x114] sm:$0xf0] }
 0x226   : > { %v4401_v25 = vpop.f32.mrf.mxu2  ;;  %v4354_v55 = vpop.f32.mrf.mxu1  ;;  %v5494_v23 = vld [vmem:[#allocation3 + $0x58] sm:$0xf]  ;;  %v10100_v15 = vor.u32 %v11769_v59, %v10097_v63 }
 0x227   : > { %v5753_v49 = vld [vmem:[#allocation3 + $0x58] sm:$0xf]  ;;  %v4402_v50 = vadd.f32 %v4401_v25, %v4352_v44  ;;  %v4452_v35 = vpop.f32.mrf.mxu3  ;;  %v5527_v26 = vsel %vm16776_vm15, %v5494_v23, 0  ;;  %3880 = vst [vmem:[#allocation3 + $0x64] sm:$0xf] %v3862_v5  ;;  %v3811_v22 = vadd.f32 %v3779_v2, %v14577_v18  ;;  %v5599_v44 = vrot.slane %v5597_v47, 4 }
 0x228   : > { %v5786_v61 = vsel %vm16781_vm7, %v5753_v49, 0  ;;  %v5600_v13 = vrot.slane %v5527_v26, 7  ;;  %v10096_v5 = vor.u32 %v11770_v42, %v10095_v16  ;;  %v16787_v42 = vld [vmem:[#allocation25_spill] sm:$0xff] }
 0x229   : > { %v5857_v40 = vrot.slane %v5786_v61, 5  ;;  %v15036_v20 = vadd.f32 %v4450_v3, %v4402_v50  ;;  %v3831_v8 = vadd.f32 %v14953_v31, %v3811_v22  ;;  %v11771_v3 = vld [vmem:[#allocation2 + $0x118] sm:$0xf0]  ;;  %v16782_v61 = vld [vmem:[#allocation27_spill] sm:$0xff]  ;;  %v16784_v22 = vld [vmem:[#allocation26_spill] sm:$0xff]  ;;  %vm16788_vm2 = vnez %v16787_v42 }
 0x22a   : > { %v5601_v19 = vsel %vm12693_vm0, %v5599_v44, %v5600_v13  ;;  %v10104_v0 = vor.u32 %v11771_v3, %v10103_v1  ;;  %vm16783_vm8 = vnez %v16782_v61  ;;  %vm16785_vm9 = vnez %v16784_v22  ;;  %v11987_v59 = vld [vmem:[#allocation9 + $0x118] sm:$0xff]  ;;  %v16794_v61 = vld [vmem:[#allocation28_spill] sm:$0xff]  ;;  %v16799_v42 = vld [vmem:[#allocation30_spill] sm:$0xff] }
 0x22b   : > { %v5858_v18 = vsel %vm12674_vm13, %v5856_v9, %v5857_v40  ;;  %v3847_v47 = vmax.f32 %v3831_v8, 0.0  ;;  %5721 = vst [vmem:[#allocation3 + $0x54] sm:$0xf] %v5601_v19  ;;  %vm16786_vm15 = vmpackc.low %vm16783_vm8, %vm16785_vm9  ;;  %v5602_v43 = vrot.slane %v5600_v13, 4  ;;  %v11979_v8 = vld [vmem:[#allocation9 + $0xd8] sm:$0xff]  ;;  %v5859_v63 = vrot.slane %v5857_v40, 4  ;;  %6498 = vmatpush.bf16.msra.mxu3 %v11987_v59 }
 0x22c   : > { %5280 = vmatmul.bf16.gmra.mxu3 %v10288_v34  ;;  %v3781_v25 = vpop.f32.mrf.mxu0  ;;  %5980 = vst [vmem:[#allocation3 + $0x50] sm:$0xf] %v5858_v18  ;;  %v16789_v34 = vld [vmem:[#allocation24_spill] sm:$0xff]  ;;  %v10299_v19 = vld [vmem:[#allocation2 + $0x180] sm:$0xf]  ;;  %6449 = vmatpush.bf16.msra.mxu2 %v11979_v8  ;;  %vm16795_vm9 = vnez %v16794_v61  ;;  %v11899_v8 = vld [vmem:[#allocation7 + $0x218] sm:$0xff] }
 0x22d   : > { %v3863_v2 = vpack.c.bf16 %v3847_v47, %v3847_v47  ;;  %v3782_v49 = vadd.f32 %v3781_v25, %v14708_v37  ;;  %vm16790_vm3 = vnez %v16789_v34  ;;  %v11869_v47 = vld [vmem:[#allocation2 + $0x188] sm:$0xf0]  ;;  %v11891_v59 = vld [vmem:[#allocation7 + $0x1d8] sm:$0xff]  ;;  %5359 = vmatpush.bf16.msra.mxu1 %v11899_v8 }
 0x22e   : > { %v4403_v23 = vpop.f32.mrf.mxu2  ;;  %v4357_v50 = vpop.f32.mrf.mxu1  ;;  %v5495_v32 = vld [vmem:[#allocation3 + $0x64] sm:$0xf]  ;;  %vm16791_vm7 = vmpackc.low %vm16788_vm2, %vm16790_vm3  ;;  %vm16800_vm3 = vnez %v16799_v42  ;;  %5310 = vmatpush.bf16.msra.mxu0 %v11891_v59  ;;  %v16804_v42 = vld [vmem:[#allocation32_spill] sm:$0xff] }
 0x22f   : > { %v5754_v38 = vld [vmem:[#allocation3 + $0x64] sm:$0xf]  ;;  %v4404_v26 = vadd.f32 %v4403_v23, %v4354_v55  ;;  %v4455_v14 = vpop.f32.mrf.mxu3  ;;  %v5528_v16 = vsel %vm16786_vm15, %v5495_v32, 0  ;;  %3881 = vst [vmem:[#allocation3 + $0x70] sm:$0xf] %v3863_v2  ;;  %v3812_v37 = vadd.f32 %v3782_v49, %v14650_v10  ;;  %4775 = vmatmul.bf16.gmra.mxu0 %v10096_v5  ;;  %v11978_v59 = vld [vmem:[#allocation9 + $0xd0] sm:$0xff] }
 0x230   : > { %v5787_v44 = vsel %vm16791_vm7, %v5754_v38, 0  ;;  %v5603_v55 = vrot.slane %v5528_v16, 7  ;;  %4824 = vmatmul.bf16.gmra.mxu1 %v10100_v15  ;;  %v10107_v32 = vld [vmem:[#allocation2 + $0x120] sm:$0xf]  ;;  %v11773_v38 = vld [vmem:[#allocation2 + $0x128] sm:$0xf0]  ;;  %6450 = vmatpush.bf16.msra.mxu2 %v11978_v59 }
 0x231   : > { %v5860_v53 = vrot.slane %v5787_v44, 5  ;;  %v15055_v9 = vadd.f32 %v4452_v35, %v4404_v26  ;;  %v3832_v1 = vadd.f32 %v14953_v31, %v3812_v37  ;;  %4873 = vmatmul.bf16.gmra.mxu2 %v10104_v0  ;;  %v10300_v26 = vor.u32 %v11869_v47, %v10299_v19  ;;  %v16792_v0 = vld [vmem:[#allocation29_spill] sm:$0xff]  ;;  %v16797_v16 = vld [vmem:[#allocation31_spill] sm:$0xff]  ;;  %v11772_v19 = vld [vmem:[#allocation2 + $0x124] sm:$0xf] }
 0x232   : > { %v5604_v18 = vsel %vm12693_vm0, %v5602_v43, %v5603_v55  ;;  %vm16793_vm8 = vnez %v16792_v0  ;;  %vm16798_vm2 = vnez %v16797_v16  ;;  %v10108_v47 = vor.u32 %v11773_v38, %v10107_v32  ;;  %v16802_v16 = vld [vmem:[#allocation33_spill] sm:$0xff]  ;;  %v16807_v38 = vld [vmem:[#allocation35_spill] sm:$0xff] }
 0x233   : > { %v5861_v10 = vsel %vm12674_vm13, %v5859_v63, %v5860_v53  ;;  %v3848_v13 = vmax.f32 %v3832_v1, 0.0  ;;  %5722 = vst [vmem:[#allocation3 + $0x60] sm:$0xf] %v5604_v18  ;;  %vm16796_vm15 = vmpackc.low %vm16793_vm8, %vm16795_vm9  ;;  %v5862_v63 = vrot.slane %v5860_v53, 4  ;;  %v10109_v18 = vld [vmem:[#allocation2 + $0x12c] sm:$0xf0]  ;;  %vm16803_vm8 = vnez %v16802_v16 }
 0x234   : > { %v3783_v35 = vpop.f32.mrf.mxu0  ;;  %5981 = vst [vmem:[#allocation3 + $0x5c] sm:$0xf] %v5861_v10  ;;  %vm16801_vm7 = vmpackc.low %vm16798_vm2, %vm16800_vm3  ;;  %v10115_v10 = vld [vmem:[#allocation2 + $0x128] sm:$0xf]  ;;  %v10112_v53 = vor.u32 %v11772_v19, %v10109_v18  ;;  %vm16805_vm9 = vnez %v16804_v42  ;;  %vm16808_vm2 = vnez %v16807_v38  ;;  %v10311_v18 = vld [vmem:[#allocation2 + $0x198] sm:$0xf] }
 0x235   : > { %v3864_v5 = vpack.c.bf16 %v3848_v13, %v3848_v13  ;;  %v3784_v40 = vadd.f32 %v3783_v35, %v14772_v17  ;;  %v16818_v42 = vld [vmem:[#allocation39_spill] sm:$0xff] }
 0x236   : > { %v4406_v3 = vpop.f32.mrf.mxu2  ;;  %v4359_v25 = vpop.f32.mrf.mxu1  ;;  %v5496_v15 = vld [vmem:[#allocation3 + $0x70] sm:$0xf] }
 0x237   : > { %v5755_v2 = vld [vmem:[#allocation3 + $0x70] sm:$0xf]  ;;  %v4407_v23 = vadd.f32 %v4406_v3, %v4357_v50  ;;  %v4457_v49 = vpop.f32.mrf.mxu3  ;;  %v5529_v22 = vsel %vm16796_vm15, %v5496_v15, 0  ;;  %3882 = vst [vmem:[#allocation3 + $0x7c] sm:$0xf] %v3864_v5  ;;  %v3813_v34 = vadd.f32 %v3784_v40, %v14713_v12  ;;  %v5605_v50 = vrot.slane %v5603_v55, 4  ;;  %vm16806_vm15 = vmpackc.low %vm16803_vm8, %vm16805_vm9 }
 0x238   : > { %v5788_v17 = vsel %vm16801_vm7, %v5755_v2, 0  ;;  %v5606_v44 = vrot.slane %v5529_v22, 7 }
 0x239   : > { %v5863_v37 = vrot.slane %v5788_v17, 5  ;;  %v15074_v43 = vadd.f32 %v4455_v14, %v4407_v23  ;;  %v3833_v1 = vadd.f32 %v14953_v31, %v3813_v34  ;;  %v11774_v14 = vld [vmem:[#allocation2 + $0x130] sm:$0xf0] }
 0x23a   : > { %v5607_v13 = vsel %vm12693_vm0, %v5605_v50, %v5606_v44  ;;  %v10116_v61 = vor.u32 %v11774_v14, %v10115_v10  ;;  %v5608_v34 = vrot.slane %v5606_v44, 4 }
 0x23b   : > { %v5864_v12 = vsel %vm12674_vm13, %v5862_v63, %v5863_v37  ;;  %v3849_v55 = vmax.f32 %v3833_v1, 0.0  ;;  %5723 = vst [vmem:[#allocation3 + $0x6c] sm:$0xf] %v5607_v13  ;;  %v11986_v63 = vld [vmem:[#allocation9 + $0x110] sm:$0xff]  ;;  %v5865_v1 = vrot.slane %v5863_v37, 4 }
 0x23c   : > { %5285 = vmatmul.bf16.gmra.mxu3 %v10300_v26  ;;  %v3786_v35 = vpop.f32.mrf.mxu0  ;;  %5982 = vst [vmem:[#allocation3 + $0x68] sm:$0xf] %v5864_v12  ;;  %v16809_v26 = vld [vmem:[#allocation34_spill] sm:$0xff] }
 0x23d   : > { %v3865_v5 = vpack.c.bf16 %v3849_v55, %v3849_v55  ;;  %v3787_v40 = vadd.f32 %v3786_v35, %v14851_v60  ;;  %vm16810_vm3 = vnez %v16809_v26  ;;  %6499 = vmatpush.bf16.msra.mxu3 %v11986_v63  ;;  %v11872_v13 = vld [vmem:[#allocation2 + $0x1a0] sm:$0xf0] }
 0x23e   : > { %v4408_v3 = vpop.f32.mrf.mxu2  ;;  %v4362_v15 = vpop.f32.mrf.mxu1  ;;  %v5497_v2 = vld [vmem:[#allocation3 + $0x7c] sm:$0xf]  ;;  %vm16811_vm7 = vmpackc.low %vm16808_vm2, %vm16810_vm3  ;;  %vm16819_vm2 = vnez %v16818_v42 }
 0x23f   : > { %v5756_v23 = vld [vmem:[#allocation3 + $0x7c] sm:$0xf]  ;;  %v4409_v0 = vadd.f32 %v4408_v3, %v4359_v25  ;;  %v4460_v22 = vpop.f32.mrf.mxu3  ;;  %v5530_v32 = vsel %vm16806_vm15, %v5497_v2, 0  ;;  %3883 = vst [vmem:[#allocation3 + $0x88] sm:$0xf] %v3865_v5  ;;  %v3814_v60 = vadd.f32 %v3787_v40, %v14786_v27  ;;  %4780 = vmatmul.bf16.gmra.mxu0 %v10108_v47  ;;  %v10312_v2 = vor.u32 %v11872_v13, %v10311_v18  ;;  %vm16820_vm3 = vmpackc.low %vm13219_vm10, %vm16819_vm2 }
 0x240   : > { %v5789_v17 = vsel %vm16811_vm7, %v5756_v23, 0  ;;  %v5609_v25 = vrot.slane %v5530_v32, 7  ;;  %4829 = vmatmul.bf16.gmra.mxu1 %v10112_v53  ;;  %v10119_v3 = vld [vmem:[#allocation2 + $0x138] sm:$0xf]  ;;  %v11776_v40 = vld [vmem:[#allocation2 + $0x140] sm:$0xf0] }
 0x241   : > { %v5866_v50 = vrot.slane %v5789_v17, 5  ;;  %v15093_v8 = vadd.f32 %v4457_v49, %v4409_v0  ;;  %v3834_v19 = vadd.f32 %v14953_v31, %v3814_v60  ;;  %4878 = vmatmul.bf16.gmra.mxu2 %v10116_v61  ;;  %v16812_v23 = vld [vmem:[#allocation37_spill] sm:$0xff]  ;;  %v16814_v0 = vld [vmem:[#allocation36_spill] sm:$0xff]  ;;  %v10127_v18 = vld [vmem:[#allocation2 + $0x140] sm:$0xf] }
 0x242   : > { %v5610_v10 = vsel %vm12693_vm0, %v5608_v34, %v5609_v25  ;;  %vm16813_vm8 = vnez %v16812_v23  ;;  %vm16815_vm9 = vnez %v16814_v0  ;;  %v11898_v60 = vld [vmem:[#allocation7 + $0x210] sm:$0xff]  ;;  %v16821_v0 = vld [vmem:[#allocation41_spill] sm:$0xff] }
 0x243   : > { %v5867_v27 = vsel %vm12674_vm13, %v5865_v1, %v5866_v50  ;;  %v3850_v44 = vmax.f32 %v3834_v19, 0.0  ;;  %5724 = vst [vmem:[#allocation3 + $0x78] sm:$0xf] %v5610_v10  ;;  %vm16816_vm15 = vmpackc.low %vm16813_vm8, %vm16815_vm9  ;;  %v11890_v34 = vld [vmem:[#allocation7 + $0x1d0] sm:$0xff]  ;;  %v5868_v59 = vrot.slane %v5866_v50, 4  ;;  %5360 = vmatpush.bf16.msra.mxu1 %v11898_v60  ;;  %vm16822_vm10 = vnez %v16821_v0  ;;  %v11985_v60 = vld [vmem:[#allocation9 + $0x108] sm:$0xff] }
 0x244   : > { %v3788_v49 = vpop.f32.mrf.mxu0  ;;  %5983 = vst [vmem:[#allocation3 + $0x74] sm:$0xf] %v5867_v27  ;;  %v11775_v1 = vld [vmem:[#allocation2 + $0x13c] sm:$0xf]  ;;  %v10121_v19 = vld [vmem:[#allocation2 + $0x144] sm:$0xf0]  ;;  %5311 = vmatpush.bf16.msra.mxu0 %v11890_v34  ;;  %v10120_v27 = vor.u32 %v11776_v40, %v10119_v3  ;;  %6500 = vmatpush.bf16.msra.mxu3 %v11985_v60 }
 0x245   : > { %v3866_v12 = vpack.c.bf16 %v3850_v44, %v3850_v44  ;;  %v3789_v37 = vadd.f32 %v3788_v49, %v14885_v57  ;;  %v10124_v50 = vor.u32 %v11775_v1, %v10121_v19  ;;  %v16826_v40 = vld [vmem:[#allocation43_spill] sm:$0xff]  ;;  %v11875_v19 = vld [vmem:[#allocation2 + $0x1b8] sm:$0xf0]  ;;  %v10133_v60 = vld [vmem:[#allocation2 + $0x15c] sm:$0xf0] }
 0x246   : > { %v4411_v55 = vpop.f32.mrf.mxu2  ;;  %v4364_v47 = vpop.f32.mrf.mxu1  ;;  %v5498_v14 = vld [vmem:[#allocation3 + $0x88] sm:$0xf]  ;;  %vm16827_vm9 = vnez %v16826_v40 }
 0x247   : > { %v5757_v35 = vld [vmem:[#allocation3 + $0x88] sm:$0xf]  ;;  %v4412_v53 = vadd.f32 %v4411_v55, %v4362_v15  ;;  %v4462_v5 = vpop.f32.mrf.mxu3  ;;  %v5531_v61 = vsel %vm16816_vm15, %v5498_v14, 0  ;;  %3884 = vst [vmem:[#allocation3 + $0x94] sm:$0xf] %v3866_v12  ;;  %v3815_v32 = vadd.f32 %v3789_v37, %v14861_v62  ;;  %v5611_v15 = vrot.slane %v5609_v25, 4 }
 0x248   : > { %v5790_v57 = vsel %vm16820_vm3, %v5757_v35, 0  ;;  %v5612_v38 = vrot.slane %v5531_v61, 7  ;;  %v16823_v61 = vld [vmem:[#allocation38_spill] sm:$0xff] }
 0x249   : > { %v5869_v26 = vrot.slane %v5790_v57, 5  ;;  %v15112_v17 = vadd.f32 %v4460_v22, %v4412_v53  ;;  %v3835_v63 = vadd.f32 %v14953_v31, %v3815_v32  ;;  %v11777_v22 = vld [vmem:[#allocation2 + $0x148] sm:$0xf0]  ;;  %vm16824_vm7 = vnez %v16823_v61 }
 0x24a   : > { %v5613_v10 = vsel %vm12693_vm0, %v5611_v15, %v5612_v38  ;;  %v10128_v53 = vor.u32 %v11777_v22, %v10127_v18  ;;  %vm16825_vm8 = vmpackc.low %vm16822_vm10, %vm16824_vm7  ;;  %v5614_v42 = vrot.slane %v5612_v38, 4  ;;  %v11977_v15 = vld [vmem:[#allocation9 + $0xc8] sm:$0xff] }
 0x24b   : > { %v5870_v62 = vsel %vm12674_vm13, %v5868_v59, %v5869_v26  ;;  %v3851_v25 = vmax.f32 %v3835_v63, 0.0  ;;  %5725 = vst [vmem:[#allocation3 + $0x84] sm:$0xf] %v5613_v10  ;;  %v5871_v34 = vrot.slane %v5869_v26, 4  ;;  %v10323_v63 = vld [vmem:[#allocation2 + $0x1b0] sm:$0xf]  ;;  %6451 = vmatpush.bf16.msra.mxu2 %v11977_v15 }
 0x24c   : > { %5290 = vmatmul.bf16.gmra.mxu3 %v10312_v2  ;;  %v3791_v44 = vpop.f32.mrf.mxu0  ;;  %5984 = vst [vmem:[#allocation3 + $0x80] sm:$0xf] %v5870_v62  ;;  %v16828_v2 = vld [vmem:[#allocation42_spill] sm:$0xff]  ;;  %v11778_v15 = vld [vmem:[#allocation2 + $0x154] sm:$0xf] }
 0x24d   : > { %v3867_v13 = vpack.c.bf16 %v3851_v25, %v3851_v25  ;;  %v3792_v12 = vadd.f32 %v3791_v44, %v14925_v29  ;;  %vm16829_vm15 = vnez %v16828_v2  ;;  %v11897_v2 = vld [vmem:[#allocation7 + $0x208] sm:$0xff] }
 0x24e   : > { %v4413_v49 = vpop.f32.mrf.mxu2  ;;  %v4367_v55 = vpop.f32.mrf.mxu1  ;;  %v5499_v37 = vld [vmem:[#allocation3 + $0x94] sm:$0xf]  ;;  %vm16830_vm2 = vmpackc.low %vm16827_vm9, %vm16829_vm15  ;;  %5361 = vmatpush.bf16.msra.mxu1 %v11897_v2 }
 0x24f   : > { %v5758_v14 = vld [vmem:[#allocation3 + $0x94] sm:$0xf]  ;;  %v4414_v35 = vadd.f32 %v4413_v49, %v4364_v47  ;;  %v4465_v23 = vpop.f32.mrf.mxu3  ;;  %v5532_v3 = vsel %vm16825_vm8, %v5499_v37, 0  ;;  %3885 = vst [vmem:[#allocation3 + $0xa0] sm:$0xf] %v3867_v13  ;;  %v3816_v29 = vadd.f32 %v3792_v12, %v14902_v24  ;;  %4785 = vmatmul.bf16.gmra.mxu0 %v10120_v27  ;;  %v10324_v49 = vor.u32 %v11875_v19, %v10323_v63  ;;  %v16831_v12 = vld [vmem:[#allocation45_spill] sm:$0xff] }
 0x250   : > { %v5791_v16 = vsel %vm16830_vm2, %v5758_v14, 0  ;;  %v5615_v47 = vrot.slane %v5532_v3, 7  ;;  %4834 = vmatmul.bf16.gmra.mxu1 %v10124_v50  ;;  %v10131_v50 = vld [vmem:[#allocation2 + $0x150] sm:$0xf]  ;;  %v11779_v13 = vld [vmem:[#allocation2 + $0x158] sm:$0xf0]  ;;  %vm16832_vm3 = vnez %v16831_v12 }
 0x251   : > { %v5872_v57 = vrot.slane %v5791_v16, 5  ;;  %v15131_v32 = vadd.f32 %v4462_v5, %v4414_v35  ;;  %v3836_v59 = vadd.f32 %v14953_v31, %v3816_v29  ;;  %4883 = vmatmul.bf16.gmra.mxu2 %v10128_v53  ;;  %v16833_v37 = vld [vmem:[#allocation44_spill] sm:$0xff]  ;;  %v16836_v35 = vld [vmem:[#allocation47_spill] sm:$0xff]  ;;  %v16838_v53 = vld [vmem:[#allocation46_spill] sm:$0xff]  ;;  %v10132_v63 = vor.u32 %v11779_v13, %v10131_v50 }
 0x252   : > { %v5616_v1 = vsel %vm12693_vm0, %v5614_v42, %v5615_v47  ;;  %vm16834_vm10 = vnez %v16833_v37  ;;  %vm16837_vm8 = vnez %v16836_v35  ;;  %vm16839_vm9 = vnez %v16838_v53  ;;  %v11889_v16 = vld [vmem:[#allocation7 + $0x1c8] sm:$0xff]  ;;  %v11888_v50 = vld [vmem:[#allocation7 + $0x1c0] sm:$0xff]  ;;  %v16846_v35 = vld [vmem:[#allocation49_spill] sm:$0xff] }
 0x253   : > { %v5873_v24 = vsel %vm12674_vm13, %v5871_v34, %v5872_v57  ;;  %v3852_v38 = vmax.f32 %v3836_v59, 0.0  ;;  %5726 = vst [vmem:[#allocation3 + $0x90] sm:$0xf] %v5616_v1  ;;  %vm16835_vm7 = vmpackc.low %vm16832_vm3, %vm16834_vm10  ;;  %v5874_v29 = vrot.slane %v5872_v57, 4  ;;  %v10139_v34 = vld [vmem:[#allocation2 + $0x158] sm:$0xf]  ;;  %5312 = vmatpush.bf16.msra.mxu0 %v11889_v16  ;;  %v10136_v57 = vor.u32 %v11778_v15, %v10133_v60 }
 0x254   : > { %v3793_v5 = vpop.f32.mrf.mxu0  ;;  %5985 = vst [vmem:[#allocation3 + $0x8c] sm:$0xf] %v5873_v24  ;;  %vm16840_vm15 = vmpackc.low %vm16837_vm8, %vm16839_vm9  ;;  %v16841_v13 = vld [vmem:[#allocation51_spill] sm:$0xff]  ;;  %v16848_v53 = vld [vmem:[#allocation48_spill] sm:$0xff] }
 0x255   : > { %v3868_v18 = vpack.c.bf16 %v3852_v38, %v3852_v38  ;;  %v3794_v26 = vadd.f32 %v3793_v5, %v14930_v7  ;;  %vm16842_vm2 = vnez %v16841_v13  ;;  %vm16849_vm8 = vnez %v16848_v53  ;;  %v11878_v60 = vld [vmem:[#allocation2 + $0x1d0] sm:$0xf0]  ;;  %v10151_v53 = vld [vmem:[#allocation2 + $0x170] sm:$0xf] }
 0x256   : > { %v4416_v10 = vpop.f32.mrf.mxu2  ;;  %v4369_v62 = vpop.f32.mrf.mxu1  ;;  %v5500_v25 = vld [vmem:[#allocation3 + $0xa0] sm:$0xf] }
 0x257   : > { %v5759_v27 = vld [vmem:[#allocation3 + $0xa0] sm:$0xf]  ;;  %v4417_v22 = vadd.f32 %v4416_v10, %v4367_v55  ;;  %v4467_v44 = vpop.f32.mrf.mxu3  ;;  %v5533_v14 = vsel %vm16835_vm7, %v5500_v25, 0  ;;  %3886 = vst [vmem:[#allocation3 + $0xac] sm:$0xf] %v3868_v18  ;;  %v3817_v0 = vadd.f32 %v3794_v26, %v14927_v51  ;;  %v5617_v55 = vrot.slane %v5615_v47, 4  ;;  %5313 = vmatpush.bf16.msra.mxu0 %v11888_v50 }
 0x258   : > { %v5792_v7 = vsel %vm16840_vm15, %v5759_v27, 0  ;;  %v5618_v61 = vrot.slane %v5533_v14, 7  ;;  %v11976_v18 = vld [vmem:[#allocation9 + $0xc0] sm:$0xff]  ;;  %vm16847_vm7 = vnez %v16846_v35  ;;  %v11782_v50 = vld [vmem:[#allocation2 + $0x170] sm:$0xf0] }
 0x259   : > { %v5875_v3 = vrot.slane %v5792_v7, 5  ;;  %v15150_v40 = vadd.f32 %v4465_v23, %v4417_v22  ;;  %v3837_v42 = vadd.f32 %v14953_v31, %v3817_v0  ;;  %v11780_v23 = vld [vmem:[#allocation2 + $0x160] sm:$0xf0]  ;;  %vm16850_vm9 = vmpackc.low %vm16847_vm7, %vm16849_vm8  ;;  %6452 = vmatpush.bf16.msra.mxu2 %v11976_v18  ;;  %v10145_v35 = vld [vmem:[#allocation2 + $0x174] sm:$0xf0] }
 0x25a   : > { %v5619_v59 = vsel %vm12693_vm0, %v5617_v55, %v5618_v61  ;;  %v11984_v10 = vld [vmem:[#allocation9 + $0x100] sm:$0xff]  ;;  %v10140_v12 = vor.u32 %v11780_v23, %v10139_v34 }
 0x25b   : > { %v5876_v51 = vsel %vm12674_vm13, %v5874_v29, %v5875_v3  ;;  %v3853_v47 = vmax.f32 %v3837_v42, 0.0  ;;  %5727 = vst [vmem:[#allocation3 + $0x9c] sm:$0xf] %v5619_v59  ;;  %v11896_v26 = vld [vmem:[#allocation7 + $0x200] sm:$0xff]  ;;  %6501 = vmatpush.bf16.msra.mxu3 %v11984_v10  ;;  %v5877_v16 = vrot.slane %v5875_v3, 4  ;;  %v16856_v10 = vld [vmem:[#allocation57_spill] sm:$0xff] }
 0x25c   : > { %5295 = vmatmul.bf16.gmra.mxu3 %v10324_v49  ;;  %v3796_v1 = vpop.f32.mrf.mxu0  ;;  %5986 = vst [vmem:[#allocation3 + $0x98] sm:$0xf] %v5876_v51  ;;  %v16843_v49 = vld [vmem:[#allocation50_spill] sm:$0xff]  ;;  %5362 = vmatpush.bf16.msra.mxu1 %v11896_v26  ;;  %v10335_v42 = vld [vmem:[#allocation2 + $0x1c8] sm:$0xf]  ;;  %v16858_v26 = vld [vmem:[#allocation56_spill] sm:$0xff] }
 0x25d   : > { %v3869_v24 = vpack.c.bf16 %v3853_v47, %v3853_v47  ;;  %v3797_v19 = vadd.f32 %v3796_v1, %v14935_v45  ;;  %vm16844_vm3 = vnez %v16843_v49  ;;  %vm16859_vm7 = vnez %v16858_v26 }
 0x25e   : > { %v4418_v38 = vpop.f32.mrf.mxu2  ;;  %v4372_v5 = vpop.f32.mrf.mxu1  ;;  %v5501_v25 = vld [vmem:[#allocation3 + $0xac] sm:$0xf]  ;;  %vm16845_vm10 = vmpackc.low %vm16842_vm2, %vm16844_vm3 }
 0x25f   : > { %v5760_v27 = vld [vmem:[#allocation3 + $0xac] sm:$0xf]  ;;  %v4419_v22 = vadd.f32 %v4418_v38, %v4369_v62  ;;  %v4470_v37 = vpop.f32.mrf.mxu3  ;;  %v5534_v14 = vsel %vm16845_vm10, %v5501_v25, 0  ;;  %3887 = vst [vmem:[#allocation3 + $0xb8] sm:$0xf] %v3869_v24  ;;  %v3818_v7 = vadd.f32 %v3797_v19, %v14932_v39  ;;  %4790 = vmatmul.bf16.gmra.mxu0 %v10132_v63  ;;  %v5620_v62 = vrot.slane %v5618_v61, 4 }
 0x260   : > { %v5793_v45 = vsel %vm16850_vm9, %v5760_v27, 0  ;;  %v5621_v0 = vrot.slane %v5534_v14, 7  ;;  %4839 = vmatmul.bf16.gmra.mxu1 %v10136_v57  ;;  %v10143_v57 = vld [vmem:[#allocation2 + $0x168] sm:$0xf]  ;;  %v10336_v24 = vor.u32 %v11878_v60, %v10335_v42  ;;  %v16851_v38 = vld [vmem:[#allocation53_spill] sm:$0xff]  ;;  %v16853_v19 = vld [vmem:[#allocation52_spill] sm:$0xff]  ;;  %vm16857_vm10 = vnez %v16856_v10 }
 0x261   : > { %v5878_v55 = vrot.slane %v5793_v45, 5  ;;  %v15169_v2 = vadd.f32 %v4467_v44, %v4419_v22  ;;  %v3838_v29 = vadd.f32 %v14953_v31, %v3818_v7  ;;  %4888 = vmatmul.bf16.gmra.mxu2 %v10140_v12  ;;  %vm16852_vm15 = vnez %v16851_v38  ;;  %vm16860_vm8 = vmpackc.low %vm16857_vm10, %vm16859_vm7  ;;  %v11781_v14 = vld [vmem:[#allocation2 + $0x16c] sm:$0xf]  ;;  %v11943_v45 = vld [vmem:[#allocation9 + $0x78] sm:$0xff] }
 0x262   : > { %v5622_v15 = vsel %vm12693_vm0, %v5620_v62, %v5621_v0  ;;  %vm16854_vm2 = vnez %v16853_v19  ;;  %v5623_v27 = vrot.slane %v5621_v0, 4  ;;  %v11951_v7 = vld [vmem:[#allocation9 + $0xb8] sm:$0xff]  ;;  %6913 = vmatpush.bf16.msrb.mxu2 %v11943_v45  ;;  %v16866_v38 = vld [vmem:[#allocation59_spill] sm:$0xff]  ;;  %v16868_v19 = vld [vmem:[#allocation58_spill] sm:$0xff] }
 0x263   : > { %v5879_v39 = vsel %vm12674_vm13, %v5877_v16, %v5878_v55  ;;  %v3854_v61 = vmax.f32 %v3838_v29, 0.0  ;;  %5728 = vst [vmem:[#allocation3 + $0xa8] sm:$0xf] %v5622_v15  ;;  %vm16855_vm3 = vmpackc.low %vm16852_vm15, %vm16854_vm2  ;;  %v5880_v13 = vrot.slane %v5878_v55, 4  ;;  %v11935_v62 = vld [vmem:[#allocation9 + $0x38] sm:$0xff]  ;;  %v10144_v29 = vor.u32 %v11782_v50, %v10143_v57  ;;  %6962 = vmatpush.bf16.msrb.mxu3 %v11951_v7  ;;  %v16863_v57 = vld [vmem:[#allocation54_spill] sm:$0xff] }
 0x264   : > { %v3798_v44 = vpop.f32.mrf.mxu0  ;;  %5987 = vst [vmem:[#allocation3 + $0xa4] sm:$0xf] %v5879_v39  ;;  %v11999_v42 = vld [vmem:[#allocation9 + $0x178] sm:$0xff]  ;;  %v10148_v15 = vor.u32 %v11781_v14, %v10145_v35  ;;  %6864 = vmatpush.bf16.msrb.mxu1 %v11935_v62  ;;  %vm16864_vm15 = vnez %v16863_v57  ;;  %vm16869_vm10 = vnez %v16868_v19  ;;  %v11942_v50 = vld [vmem:[#allocation9 + $0x70] sm:$0xff]  ;;  %v12276_v57 = vld [vmem:[%s15951_s3] ss:$0 sm:$0xff] }
 0x265   : > { %v3870_v34 = vpack.c.bf16 %v3854_v61, %v3854_v61  ;;  %v3799_v3 = vadd.f32 %v3798_v44, %v14940_v11  ;;  %6543 = vmatpush.bf16.msrb.mxu0 %v11999_v42  ;;  %v16873_v42 = vld [vmem:[#allocation60_spill] sm:$0xff] }
 0x266   : > { %v4421_v59 = vpop.f32.mrf.mxu2  ;;  %v4374_v51 = vpop.f32.mrf.mxu1  ;;  %v5502_v47 = vld [vmem:[#allocation3 + $0xb8] sm:$0xf]  ;;  %6914 = vmatpush.bf16.msrb.mxu2 %v11942_v50  ;;  %v11858_v19 = vld [vmem:[#allocation2 + $0x130] sm:$0xf0] }
 0x267   : > { %v5761_v63 = vld [vmem:[#allocation3 + $0xb8] sm:$0xf]  ;;  %v4422_v23 = vadd.f32 %v4421_v59, %v4372_v5  ;;  %v4472_v1 = vpop.f32.mrf.mxu3  ;;  %v5535_v18 = vsel %vm16855_vm3, %v5502_v47, 0  ;;  %3888 = vst [vmem:[#allocation3 + $0xc4] sm:$0xf] %v3870_v34  ;;  %v3819_v11 = vadd.f32 %v3799_v3, %v14937_v28  ;;  %vm16867_vm3 = vnez %v16866_v38 }
 0x268   : > { %v5794_v25 = vsel %vm16860_vm8, %v5761_v63, 0  ;;  %v5624_v5 = vrot.slane %v5535_v18, 7  ;;  %vm16870_vm7 = vmpackc.low %vm16867_vm3, %vm16869_vm10  ;;  %v10259_v38 = vld [vmem:[#allocation2 + $0x128] sm:$0xf] }
 0x269   : > { %v5881_v22 = vrot.slane %v5794_v25, 5  ;;  %v15188_v12 = vadd.f32 %v4470_v37, %v4422_v23  ;;  %v3839_v49 = vadd.f32 %v14953_v31, %v3819_v11  ;;  %v11783_v37 = vld [vmem:[#allocation2 + $0x178] sm:$0xf0]  ;;  %v16861_v23 = vld [vmem:[#allocation55_spill] sm:$0xff] }
 0x26a   : > { %v5625_v16 = vsel %vm12693_vm0, %v5623_v27, %v5624_v5  ;;  %v10152_v47 = vor.u32 %v11783_v37, %v10151_v53  ;;  %vm16862_vm9 = vnez %v16861_v23  ;;  %v5626_v10 = vrot.slane %v5624_v5, 4  ;;  %v10447_v53 = vld [vmem:[#allocation3 + $0x3c] sm:$0xf0]  ;;  %v16871_v37 = vld [vmem:[#allocation61_spill] sm:$0xff] }
 0x26b   : > { %v5882_v28 = vsel %vm12674_vm13, %v5880_v13, %v5881_v22  ;;  %v3855_v0 = vmax.f32 %v3839_v49, 0.0  ;;  %5729 = vst [vmem:[#allocation3 + $0xb4] sm:$0xf] %v5625_v16  ;;  %vm16865_vm2 = vmpackc.low %vm16862_vm9, %vm16864_vm15  ;;  %v5883_v11 = vrot.slane %v5881_v22, 4  ;;  %v11950_v13 = vld [vmem:[#allocation9 + $0xb0] sm:$0xff]  ;;  %vm16872_vm8 = vnez %v16871_v37 }
 0x26c   : > { %5300 = vmatmul.bf16.gmra.mxu3 %v10336_v24  ;;  %v3801_v55 = vpop.f32.mrf.mxu0  ;;  %5988 = vst [vmem:[#allocation3 + $0xb0] sm:$0xf] %v5882_v28  ;;  %v11856_v28 = vld [vmem:[#allocation2 + $0x124] sm:$0xf]  ;;  %vm16874_vm9 = vnez %v16873_v42 }
 0x26d   : > { %v3871_v39 = vpack.c.bf16 %v3855_v0, %v3855_v0  ;;  %v3802_v60 = vadd.f32 %v3801_v55, %v14945_v48  ;;  %6963 = vmatpush.bf16.msrb.mxu3 %v11950_v13  ;;  %v11952_v0 = vld [vmem:[#allocation3 + $0x34] sm:$0xf]  ;;  %vm16875_vm15 = vmpackc.low %vm16872_vm8, %vm16874_vm9 }
 0x26e   : > { %v4423_v61 = vpop.f32.mrf.mxu2  ;;  %v4377_v44 = vpop.f32.mrf.mxu1  ;;  %v5503_v34 = vld [vmem:[#allocation3 + $0xc4] sm:$0xf] }
 0x26f   : > { %v5762_v59 = vld [vmem:[#allocation3 + $0xc4] sm:$0xf]  ;;  %v4424_v3 = vadd.f32 %v4423_v61, %v4374_v51  ;;  %v4475_v63 = vpop.f32.mrf.mxu3  ;;  %v5536_v24 = vsel %vm16865_vm2, %v5503_v34, 0  ;;  %3889 = vst [vmem:[#allocation3 + $0xd0] sm:$0xf] %v3871_v39  ;;  %v3820_v18 = vadd.f32 %v3802_v60, %v14942_v36  ;;  %4795 = vmatmul.bf16.gmra.mxu0 %v10144_v29  ;;  %v11934_v60 = vld [vmem:[#allocation9 + $0x30] sm:$0xff] }
 0x270   : > { %v5795_v48 = vsel %vm16870_vm7, %v5762_v59, 0  ;;  %v5627_v51 = vrot.slane %v5536_v24, 7  ;;  %4844 = vmatmul.bf16.gmra.mxu1 %v10148_v15  ;;  %v16876_v15 = vld [vmem:[#allocation63_spill] sm:$0xff]  ;;  %v16878_v39 = vld [vmem:[#allocation62_spill] sm:$0xff] }
 0x271   : > { %v5884_v26 = vrot.slane %v5795_v48, 5  ;;  %v15207_v25 = vadd.f32 %v4472_v1, %v4424_v3  ;;  %v3840_v27 = vadd.f32 %v14953_v31, %v3820_v18  ;;  %4893 = vmatmul.bf16.gmra.mxu2 %v10152_v47  ;;  %vm16877_vm2 = vnez %v16876_v15  ;;  %v10253_v47 = vld [vmem:[#allocation2 + $0x12c] sm:$0xf0]  ;;  %6865 = vmatpush.bf16.msrb.mxu1 %v11934_v60  ;;  %v11941_v15 = vld [vmem:[#allocation9 + $0x68] sm:$0xff] }
 0x272   : > { %v5628_v49 = vsel %vm12693_vm0, %v5626_v10, %v5627_v51  ;;  %v5629_v29 = vrot.slane %v5627_v51, 4  ;;  %vm16879_vm3 = vnez %v16878_v39  ;;  %v10450_v48 = vor.u32 %v11952_v0, %v10447_v53  ;;  %v11953_v51 = vld [vmem:[#allocation3 + $0x38] sm:$0xf0]  ;;  %v16881_v53 = vld [vmem:[#allocation67_spill] sm:$0xff]  ;;  %6915 = vmatpush.bf16.msrb.mxu2 %v11941_v15 }
 0x273   : > { %v5885_v14 = vsel %vm12674_vm13, %v5883_v11, %v5884_v26  ;;  %v3856_v36 = vmax.f32 %v3840_v27, 0.0  ;;  %5730 = vst [vmem:[#allocation3 + $0xc0] sm:$0xf] %v5628_v49  ;;  %vm16880_vm10 = vmpackc.low %vm16877_vm2, %vm16879_vm3  ;;  %v5886_v23 = vrot.slane %v5884_v26, 4  ;;  %v10256_v10 = vor.u32 %v11856_v28, %v10253_v47  ;;  %v16888_v28 = vld [vmem:[#allocation65_spill] sm:$0xff]  ;;  %v11949_v39 = vld [vmem:[#allocation9 + $0xa8] sm:$0xff] }
 0x274   : > { %v3803_v5 = vpop.f32.mrf.mxu0  ;;  %5989 = vst [vmem:[#allocation3 + $0xbc] sm:$0xf] %v5885_v14  ;;  %v10260_v11 = vor.u32 %v11858_v19, %v10259_v38  ;;  %v10445_v14 = vld [vmem:[#allocation3 + $0x30] sm:$0xf]  ;;  %vm16882_vm7 = vnez %v16881_v53  ;;  %vm16889_vm2 = vnez %v16888_v28  ;;  %6964 = vmatpush.bf16.msrb.mxu3 %v11949_v39  ;;  %v10459_v38 = vld [vmem:[#allocation3 + $0x54] sm:$0xf0] }
 0x275   : > { %v3872_v1 = vpack.c.bf16 %v3856_v36, %v3856_v36  ;;  %v3804_v22 = vadd.f32 %v3803_v5, %v14955_v6  ;;  %v16891_v19 = vld [vmem:[#allocation69_spill] sm:$0xff]  ;;  %v10457_v15 = vld [vmem:[#allocation3 + $0x48] sm:$0xf] }
 0x276   : > { %v4426_v35 = vpop.f32.mrf.mxu2  ;;  %v4379_v31 = vpop.f32.mrf.mxu1  ;;  %v5504_v45 = vld [vmem:[#allocation3 + $0xd0] sm:$0xf] }
 0x277   : > { %v5763_v7 = vld [vmem:[#allocation3 + $0xd0] sm:$0xf]  ;;  %v4427_v62 = vadd.f32 %v4426_v35, %v4377_v44  ;;  %v4477_v16 = vpop.f32.mrf.mxu3  ;;  %v5537_v55 = vsel %vm16875_vm15, %v5504_v45, 0  ;;  %3890 = vst [vmem:[#allocation3 + $0xdc] sm:$0xf] %v3872_v1  ;;  %v3821_v61 = vadd.f32 %v3804_v22, %v14947_v4  ;;  %v10446_v35 = vor.u32 %v11953_v51, %v10445_v14 }
 0x278   : > { %v5796_v6 = vsel %vm16880_vm10, %v5763_v7, 0  ;;  %v11998_v44 = vld [vmem:[#allocation9 + $0x170] sm:$0xff]  ;;  %v5630_v34 = vrot.slane %v5537_v55, 7  ;;  %vm16892_vm10 = vnez %v16891_v19  ;;  %v11859_v51 = vld [vmem:[#allocation2 + $0x13c] sm:$0xf]  ;;  %v11996_v19 = vld [vmem:[#allocation9 + $0x160] sm:$0xff] }
 0x279   : > { %v5887_v59 = vrot.slane %v5796_v6, 5  ;;  %v15226_v3 = vadd.f32 %v4475_v63, %v4427_v62  ;;  %v3841_v24 = vadd.f32 %v12276_v57, %v3821_v61  ;;  %6544 = vmatpush.bf16.msrb.mxu0 %v11998_v44  ;;  %v16883_v45 = vld [vmem:[#allocation64_spill] sm:$0xff]  ;;  %v16886_v62 = vld [vmem:[#allocation66_spill] sm:$0xff] }
 0x27a   : > { %v5631_v4 = vsel %vm12693_vm0, %v5629_v29, %v5630_v34  ;;  %vm16884_vm8 = vnez %v16883_v45  ;;  %vm16887_vm15 = vnez %v16886_v62  ;;  %v5632_v29 = vrot.slane %v5630_v34, 4 }
 0x27b   : > { %v5888_v18 = vsel %vm12674_vm13, %v5886_v23, %v5887_v59  ;;  %v3857_v63 = vmax.f32 %v3841_v24, 0.0  ;;  %5731 = vst [vmem:[#allocation3 + $0xcc] sm:$0xf] %v5631_v4  ;;  %vm16885_vm9 = vmpackc.low %vm16882_vm7, %vm16884_vm8  ;;  %v5889_v55 = vrot.slane %v5887_v59, 4  ;;  %v11955_v24 = vld [vmem:[#allocation3 + $0x4c] sm:$0xf] }
 0x27c   : > { %6502 = vmatmul.bf16.vlgmr.msra.gmra.mxu3 %v10450_v48  ;;  %v4761_v26 = vpop.f32.mrf.mxu0  ;;  %5990 = vst [vmem:[#allocation3 + $0xc8] sm:$0xf] %v5888_v18  ;;  %vm16890_vm3 = vmpackc.low %vm16887_vm15, %vm16889_vm2  ;;  %v16893_v48 = vld [vmem:[#allocation68_spill] sm:$0xff]  ;;  %v16896_v18 = vld [vmem:[#allocation71_spill] sm:$0xff] }
 0x27d   : > { %v3873_v27 = vpack.c.bf16 %v3857_v63, %v3857_v63  ;;  %v4762_v13 = vadd.f32 %v4761_v26, %v14961_v54  ;;  %vm16894_vm7 = vnez %v16893_v48  ;;  %v16898_v63 = vld [vmem:[#allocation70_spill] sm:$0xff]  ;;  %v11933_v26 = vld [vmem:[#allocation9 + $0x28] sm:$0xff]  ;;  %v11862_v48 = vld [vmem:[#allocation2 + $0x154] sm:$0xf] }
 0x27e   : > { %v4428_v50 = vpop.f32.mrf.mxu2  ;;  %v4810_v49 = vpop.f32.mrf.mxu1  ;;  %v5505_v36 = vld [vmem:[#allocation3 + $0xdc] sm:$0xf]  ;;  %vm16895_vm8 = vmpackc.low %vm16892_vm10, %vm16894_vm7  ;;  %vm16899_vm15 = vnez %v16898_v63  ;;  %6866 = vmatpush.bf16.msrb.mxu1 %v11933_v26  ;;  %v11958_v63 = vld [vmem:[#allocation3 + $0x64] sm:$0xf] }
 0x27f   : > { %v5764_v5 = vld [vmem:[#allocation3 + $0xdc] sm:$0xf]  ;;  %v4429_v1 = vadd.f32 %v4428_v50, %v4379_v31  ;;  %v15236_v22 = vpop.f32.mrf.mxu3  ;;  %v5538_v7 = vsel %vm16885_vm9, %v5505_v36, 0  ;;  %3891 = vst [vmem:[#allocation3 + $0xe8] sm:$0xf] %v3873_v27  ;;  %v4811_v0 = vadd.f32 %v4810_v49, %v4762_v13  ;;  %5314 = vmatmul.bf16.vlgmr.msra.gmra.mxu0 %v10256_v10  ;;  %vm16897_vm9 = vnez %v16896_v18 }
 0x280   : > { %v5797_v54 = vsel %vm16890_vm3, %v5764_v5, 0  ;;  %v5633_v31 = vrot.slane %v5538_v7, 7  ;;  %5363 = vmatmul.bf16.vlgmr.msra.gmra.mxu1 %v10260_v11  ;;  %vm16900_vm2 = vmpackc.low %vm16897_vm9, %vm16899_vm15  ;;  %v11997_v11 = vld [vmem:[#allocation9 + $0x168] sm:$0xff]  ;;  %v10271_v36 = vld [vmem:[#allocation2 + $0x140] sm:$0xf] }
 0x281   : > { %v5890_v37 = vrot.slane %v5797_v54, 5  ;;  %v15248_v42 = vadd.f32 %v4477_v16, %v4429_v1  ;;  %6453 = vmatmul.bf16.vlgmr.msra.gmra.mxu2 %v10446_v35  ;;  %v10265_v13 = vld [vmem:[#allocation2 + $0x144] sm:$0xf0]  ;;  %v11861_v5 = vld [vmem:[#allocation2 + $0x148] sm:$0xf0]  ;;  %v10462_v1 = vor.u32 %v11955_v24, %v10459_v38  ;;  %6545 = vmatpush.bf16.msrb.mxu0 %v11997_v11  ;;  %v11932_v38 = vld [vmem:[#allocation9 + $0x20] sm:$0xff] }
 0x282   : > { %v5634_v6 = vsel %vm12693_vm0, %v5632_v29, %v5633_v31  ;;  %v5635_v49 = vrot.slane %v5633_v31, 4  ;;  %v10268_v45 = vor.u32 %v11859_v51, %v10265_v13  ;;  %v10272_v62 = vor.u32 %v11861_v5, %v10271_v36  ;;  %v11956_v29 = vld [vmem:[#allocation3 + $0x50] sm:$0xf0]  ;;  %v10277_v18 = vld [vmem:[#allocation2 + $0x15c] sm:$0xf0]  ;;  %6867 = vmatpush.bf16.msrb.mxu1 %v11932_v38 }
 0x283   : > { %v5891_v61 = vsel %vm12674_vm13, %v5889_v55, %v5890_v37  ;;  %5732 = vst [vmem:[#allocation3 + $0xd8] sm:$0xf] %v5634_v6  ;;  %v5892_v14 = vrot.slane %v5890_v37, 4  ;;  %v10458_v39 = vor.u32 %v11956_v29, %v10457_v15  ;;  %v11940_v6 = vld [vmem:[#allocation9 + $0x60] sm:$0xff]  ;;  %v10280_v11 = vor.u32 %v11862_v48, %v10277_v18  ;;  %v11959_v5 = vld [vmem:[#allocation3 + $0x68] sm:$0xf0] }
 0x284   : > { %v4763_v60 = vpop.f32.mrf.mxu0  ;;  %5991 = vst [vmem:[#allocation3 + $0xd4] sm:$0xf] %v5891_v61  ;;  %v11948_v61 = vld [vmem:[#allocation9 + $0xa0] sm:$0xff]  ;;  %6916 = vmatpush.bf16.msrb.mxu2 %v11940_v6 }
 0x285   : > { %v4764_v16 = vadd.f32 %v4763_v60, %v14976_v58  ;;  %6965 = vmatpush.bf16.msrb.mxu3 %v11948_v61  ;;  %v11864_v51 = vld [vmem:[#allocation2 + $0x160] sm:$0xf0]  ;;  %6546 = vmatpush.bf16.msrb.mxu0 %v11996_v19  ;;  %v11931_v61 = vld [vmem:[#allocation9 + $0x18] sm:$0xff] }
 0x286   : > { %v4859_v44 = vpop.f32.mrf.mxu2  ;;  %v4812_v34 = vpop.f32.mrf.mxu1  ;;  %v5506_v47 = vld [vmem:[#allocation3 + $0xe8] sm:$0xf]  ;;  %6868 = vmatpush.bf16.msrb.mxu1 %v11931_v61 }
 0x287   : > { %v5765_v59 = vld [vmem:[#allocation3 + $0xe8] sm:$0xf]  ;;  %v15255_v23 = vadd.f32 %v4859_v44, %v4811_v0  ;;  %v15257_v57 = vpop.f32.mrf.mxu3  ;;  %v15264_v4 = vsel %vm16895_vm8, %v5506_v47, 0  ;;  %v4813_v10 = vadd.f32 %v4812_v34, %v4764_v16 }
 0x288   : > { %v15271_v58 = vsel %vm16900_vm2, %v5765_v59, 0  ;;  %v5636_v27 = vrot.slane %v15264_v4, 7  ;;  %v10471_v59 = vld [vmem:[#allocation3 + $0x6c] sm:$0xf0]  ;;  %v10307_v61 = vld [vmem:[#allocation2 + $0x188] sm:$0xf] }
 0x289   : > { %v5893_v50 = vrot.slane %v15271_v58, 5  ;;  %v10474_v26 = vor.u32 %v11958_v63, %v10471_v59  ;;  %v10295_v59 = vld [vmem:[#allocation2 + $0x170] sm:$0xf] }
 0x28a   : > { %v5637_v35 = vsel %vm12693_vm0, %v5635_v49, %v5636_v27 }
 0x28b   : > { %v5894_v53 = vsel %vm12674_vm13, %v5892_v14, %v5893_v50  ;;  %5733 = vst [vmem:[#allocation3 + $0xe4] sm:$0xf] %v5637_v35 }
 0x28c   : > { %6507 = vmatmul.bf16.gmra.mxu3 %v10462_v1  ;;  %v4766_v7 = vpop.f32.mrf.mxu0  ;;  %5992 = vst [vmem:[#allocation3 + $0xe0] sm:$0xf] %v5894_v53 }
 0x28d   : > { %v4767_v54 = vadd.f32 %v4766_v7, %v14998_v41 }
 0x28e   : > { %v4861_v28 = vpop.f32.mrf.mxu2  ;;  %v4815_v0 = vpop.f32.mrf.mxu1 }
 0x28f   : > { %v15284_v31 = vadd.f32 %v4861_v28, %v4813_v10  ;;  %v15286_v37 = vpop.f32.mrf.mxu3  ;;  %v4816_v55 = vadd.f32 %v4815_v0, %v4767_v54  ;;  %5319 = vmatmul.bf16.gmra.mxu0 %v10268_v45  ;;  %v10283_v10 = vld [vmem:[#allocation2 + $0x158] sm:$0xf]  ;;  %v10469_v45 = vld [vmem:[#allocation3 + $0x60] sm:$0xf] }
 0x290   : > { %5368 = vmatmul.bf16.gmra.mxu1 %v10272_v62  ;;  %v10284_v13 = vor.u32 %v11864_v51, %v10283_v10  ;;  %v10470_v7 = vor.u32 %v11959_v5, %v10469_v45  ;;  %v11939_v62 = vld [vmem:[#allocation9 + $0x58] sm:$0xff]  ;;  %v11962_v51 = vld [vmem:[#allocation3 + $0x80] sm:$0xf0] }
 0x291   : > { %6458 = vmatmul.bf16.gmra.mxu2 %v10458_v39  ;;  %v11947_v28 = vld [vmem:[#allocation9 + $0x98] sm:$0xff]  ;;  %v10483_v39 = vld [vmem:[#allocation3 + $0x84] sm:$0xf0] }
 0x292   : > { %6917 = vmatpush.bf16.msrb.mxu2 %v11939_v62  ;;  %6966 = vmatpush.bf16.msrb.mxu3 %v11947_v28  ;;  %v10495_v28 = vld [vmem:[#allocation3 + $0x9c] sm:$0xf0] }
 0x294   : > { %v4768_v60 = vpop.f32.mrf.mxu0 }
 0x295   : > { %v4769_v41 = vadd.f32 %v4768_v60, %v15017_v21  ;;  %v11995_v60 = vld [vmem:[#allocation9 + $0x158] sm:$0xff] }
 0x296   : > { %v4864_v44 = vpop.f32.mrf.mxu2  ;;  %v4817_v16 = vpop.f32.mrf.mxu1  ;;  %6547 = vmatpush.bf16.msrb.mxu0 %v11995_v60  ;;  %v11870_v60 = vld [vmem:[#allocation2 + $0x190] sm:$0xf0] }
 0x297   : > { %v15289_v34 = vadd.f32 %v4864_v44, %v4816_v55  ;;  %v15291_v47 = vpop.f32.mrf.mxu3  ;;  %v4818_v24 = vadd.f32 %v4817_v16, %v4769_v41  ;;  %v11865_v44 = vld [vmem:[#allocation2 + $0x16c] sm:$0xf]  ;;  %v10289_v41 = vld [vmem:[#allocation2 + $0x174] sm:$0xf0]  ;;  %v11961_v16 = vld [vmem:[#allocation3 + $0x7c] sm:$0xf] }
 0x298   : > { %v10486_v38 = vor.u32 %v11961_v16, %v10483_v39  ;;  %v10292_v19 = vor.u32 %v11865_v44, %v10289_v41  ;;  %v10301_v39 = vld [vmem:[#allocation2 + $0x18c] sm:$0xf0]  ;;  %v10308_v16 = vor.u32 %v11870_v60, %v10307_v61 }
 0x29c   : > { %6512 = vmatmul.bf16.gmra.mxu3 %v10474_v26  ;;  %v4771_v21 = vpop.f32.mrf.mxu0 }
 0x29d   : > { %v4772_v14 = vadd.f32 %v4771_v21, %v15036_v20 }
 0x29e   : > { %v4866_v49 = vpop.f32.mrf.mxu2  ;;  %v4820_v36 = vpop.f32.mrf.mxu1 }
 0x29f   : > { %v15294_v1 = vadd.f32 %v4866_v49, %v4818_v24  ;;  %v15296_v35 = vpop.f32.mrf.mxu3  ;;  %v4821_v53 = vadd.f32 %v4820_v36, %v4772_v14  ;;  %5324 = vmatmul.bf16.gmra.mxu0 %v10280_v11  ;;  %v11867_v24 = vld [vmem:[#allocation2 + $0x178] sm:$0xf0]  ;;  %v11938_v14 = vld [vmem:[#allocation9 + $0x50] sm:$0xff] }
 0x2a0   : > { %5373 = vmatmul.bf16.gmra.mxu1 %v10284_v13  ;;  %v10296_v48 = vor.u32 %v11867_v24, %v10295_v59  ;;  %v10481_v13 = vld [vmem:[#allocation3 + $0x78] sm:$0xf]  ;;  %v11946_v36 = vld [vmem:[#allocation9 + $0x90] sm:$0xff]  ;;  %6918 = vmatpush.bf16.msrb.mxu2 %v11938_v14 }
 0x2a1   : > { %6463 = vmatmul.bf16.gmra.mxu2 %v10470_v7  ;;  %v10482_v49 = vor.u32 %v11962_v51, %v10481_v13  ;;  %6967 = vmatpush.bf16.msrb.mxu3 %v11946_v36  ;;  %v11937_v51 = vld [vmem:[#allocation9 + $0x48] sm:$0xff] }
 0x2a4   : > { %v4773_v54 = vpop.f32.mrf.mxu0  ;;  %6919 = vmatpush.bf16.msrb.mxu2 %v11937_v51 }
 0x2a5   : > { %v4774_v20 = vadd.f32 %v4773_v54, %v15055_v9 }
 0x2a6   : > { %v4869_v0 = vpop.f32.mrf.mxu2  ;;  %v4822_v29 = vpop.f32.mrf.mxu1 }
 0x2a7   : > { %v15299_v55 = vadd.f32 %v4869_v0, %v4821_v53  ;;  %v15301_v15 = vpop.f32.mrf.mxu3  ;;  %v4823_v6 = vadd.f32 %v4822_v29, %v4774_v20  ;;  %v11930_v0 = vld [vmem:[#allocation9 + $0x10] sm:$0xff]  ;;  %v11868_v29 = vld [vmem:[#allocation2 + $0x184] sm:$0xf] }
 0x2a8   : > { %v11994_v20 = vld [vmem:[#allocation9 + $0x150] sm:$0xff]  ;;  %6869 = vmatpush.bf16.msrb.mxu1 %v11930_v0  ;;  %v10304_v41 = vor.u32 %v11868_v29, %v10301_v39  ;;  %v10313_v0 = vld [vmem:[#allocation2 + $0x1a4] sm:$0xf0]  ;;  %v10319_v29 = vld [vmem:[#allocation2 + $0x1a0] sm:$0xf] }
 0x2a9   : > { %6548 = vmatpush.bf16.msrb.mxu0 %v11994_v20  ;;  %v11967_v20 = vld [vmem:[#allocation3 + $0xac] sm:$0xf] }
 0x2aa   : > { %v11873_v39 = vld [vmem:[#allocation2 + $0x1a8] sm:$0xf0] }
 0x2ab   : > { %v10320_v60 = vor.u32 %v11873_v39, %v10319_v29  ;;  %v11876_v29 = vld [vmem:[#allocation2 + $0x1c0] sm:$0xf0] }
 0x2ac   : > { %6517 = vmatmul.bf16.gmra.mxu3 %v10486_v38  ;;  %v4776_v9 = vpop.f32.mrf.mxu0 }
 0x2ad   : > { %v4777_v63 = vadd.f32 %v4776_v9, %v15074_v43 }
 0x2ae   : > { %v4871_v18 = vpop.f32.mrf.mxu2  ;;  %v4825_v10 = vpop.f32.mrf.mxu1 }
 0x2af   : > { %v15304_v26 = vadd.f32 %v4871_v18, %v4823_v6  ;;  %v15306_v11 = vpop.f32.mrf.mxu3  ;;  %v4826_v21 = vadd.f32 %v4825_v10, %v4777_v63  ;;  %5329 = vmatmul.bf16.gmra.mxu0 %v10292_v19  ;;  %v11964_v6 = vld [vmem:[#allocation3 + $0x94] sm:$0xf]  ;;  %v11965_v19 = vld [vmem:[#allocation3 + $0x98] sm:$0xf0]  ;;  %v10493_v63 = vld [vmem:[#allocation3 + $0x90] sm:$0xf] }
 0x2b0   : > { %5378 = vmatmul.bf16.gmra.mxu1 %v10296_v48  ;;  %v10498_v44 = vor.u32 %v11964_v6, %v10495_v28  ;;  %v10494_v10 = vor.u32 %v11965_v19, %v10493_v63  ;;  %v11993_v28 = vld [vmem:[#allocation9 + $0x148] sm:$0xff]  ;;  %v11936_v63 = vld [vmem:[#allocation9 + $0x40] sm:$0xff] }
 0x2b1   : > { %6468 = vmatmul.bf16.gmra.mxu2 %v10482_v49  ;;  %6549 = vmatpush.bf16.msrb.mxu0 %v11993_v28  ;;  %v10505_v19 = vld [vmem:[#allocation3 + $0xa8] sm:$0xf]  ;;  %v11874_v28 = vld [vmem:[#allocation2 + $0x1b4] sm:$0xf] }
 0x2b2   : > { %6920 = vmatpush.bf16.msrb.mxu2 %v11936_v63 }
 0x2b4   : > { %v4778_v5 = vpop.f32.mrf.mxu0 }
 0x2b5   : > { %v4779_v43 = vadd.f32 %v4778_v5, %v15093_v8 }
 0x2b6   : > { %v4874_v53 = vpop.f32.mrf.mxu2  ;;  %v4827_v45 = vpop.f32.mrf.mxu1 }
 0x2b7   : > { %v15309_v7 = vadd.f32 %v4874_v53, %v4826_v21  ;;  %v15311_v62 = vpop.f32.mrf.mxu3  ;;  %v4828_v54 = vadd.f32 %v4827_v45, %v4779_v43  ;;  %v11945_v21 = vld [vmem:[#allocation9 + $0x88] sm:$0xff]  ;;  %v10507_v53 = vld [vmem:[#allocation3 + $0xb4] sm:$0xf0] }
 0x2b8   : > { %6968 = vmatpush.bf16.msrb.mxu3 %v11945_v21  ;;  %v11929_v45 = vld [vmem:[#allocation9 + $0x8] sm:$0xff]  ;;  %v10510_v6 = vor.u32 %v11967_v20, %v10507_v53  ;;  %v10331_v20 = vld [vmem:[#allocation2 + $0x1b8] sm:$0xf] }
 0x2b9   : > { %6870 = vmatpush.bf16.msrb.mxu1 %v11929_v45  ;;  %v11992_v45 = vld [vmem:[#allocation9 + $0x140] sm:$0xff] }
 0x2ba   : > { %6550 = vmatpush.bf16.msrb.mxu0 %v11992_v45  ;;  %v11973_v45 = vld [vmem:[#allocation3 + $0xdc] sm:$0xf] }
 0x2bc   : > { %6522 = vmatmul.bf16.gmra.mxu3 %v10498_v44  ;;  %v4781_v8 = vpop.f32.mrf.mxu0 }
 0x2bd   : > { %v4782_v24 = vadd.f32 %v4781_v8, %v15112_v17 }
 0x2be   : > { %v4876_v59 = vpop.f32.mrf.mxu2  ;;  %v4830_v38 = vpop.f32.mrf.mxu1 }
 0x2bf   : > { %v15314_v9 = vadd.f32 %v4876_v59, %v4828_v54  ;;  %v15316_v48 = vpop.f32.mrf.mxu3  ;;  %v4831_v18 = vadd.f32 %v4830_v38, %v4782_v24  ;;  %5334 = vmatmul.bf16.gmra.mxu0 %v10304_v41  ;;  %v11871_v54 = vld [vmem:[#allocation2 + $0x19c] sm:$0xf] }
 0x2c0   : > { %5383 = vmatmul.bf16.gmra.mxu1 %v10308_v16  ;;  %v10316_v61 = vor.u32 %v11871_v54, %v10313_v0  ;;  %v11968_v16 = vld [vmem:[#allocation3 + $0xb0] sm:$0xf0]  ;;  %v10325_v54 = vld [vmem:[#allocation2 + $0x1bc] sm:$0xf0]  ;;  %v11970_v0 = vld [vmem:[#allocation3 + $0xc4] sm:$0xf] }
 0x2c1   : > { %6473 = vmatmul.bf16.gmra.mxu2 %v10494_v10  ;;  %v11944_v10 = vld [vmem:[#allocation9 + $0x80] sm:$0xff] }
 0x2c2   : > { %6969 = vmatpush.bf16.msrb.mxu3 %v11944_v10 }
 0x2c4   : > { %v4783_v13 = vpop.f32.mrf.mxu0 }
 0x2c5   : > { %v4784_v17 = vadd.f32 %v4783_v13, %v15131_v32 }
 0x2c6   : > { %v4879_v49 = vpop.f32.mrf.mxu2  ;;  %v4832_v14 = vpop.f32.mrf.mxu1 }
 0x2c7   : > { %v15319_v36 = vadd.f32 %v4879_v49, %v4831_v18  ;;  %v15321_v5 = vpop.f32.mrf.mxu3  ;;  %v4833_v43 = vadd.f32 %v4832_v14, %v4784_v17  ;;  %v10506_v18 = vor.u32 %v11968_v16, %v10505_v19  ;;  %v10519_v14 = vld [vmem:[#allocation3 + $0xcc] sm:$0xf0]  ;;  %v10517_v19 = vld [vmem:[#allocation3 + $0xc0] sm:$0xf] }
 0x2c8   : > { %v10522_v39 = vor.u32 %v11970_v0, %v10519_v14 }
 0x2cc   : > { %6527 = vmatmul.bf16.gmra.mxu3 %v10510_v6  ;;  %v4786_v32 = vpop.f32.mrf.mxu0  ;;  %v10328_v6 = vor.u32 %v11874_v28, %v10325_v54  ;;  %v10343_v28 = vld [vmem:[#allocation2 + $0x1d0] sm:$0xf]  ;;  %v11879_v54 = vld [vmem:[#allocation2 + $0x1d8] sm:$0xf0] }
 0x2cd   : > { %v4787_v41 = vadd.f32 %v4786_v32, %v15150_v40 }
 0x2ce   : > { %v4881_v44 = vpop.f32.mrf.mxu2  ;;  %v4835_v8 = vpop.f32.mrf.mxu1 }
 0x2cf   : > { %v15324_v59 = vadd.f32 %v4881_v44, %v4833_v43  ;;  %v15326_v24 = vpop.f32.mrf.mxu3  ;;  %v4836_v38 = vadd.f32 %v4835_v8, %v4787_v41  ;;  %5339 = vmatmul.bf16.gmra.mxu0 %v10316_v61  ;;  %v11928_v43 = vld [vmem:[#allocation9] sm:$0xff]  ;;  %v10332_v61 = vor.u32 %v11876_v29, %v10331_v20  ;;  %v11971_v41 = vld [vmem:[#allocation3 + $0xc8] sm:$0xf0] }
 0x2d0   : > { %5388 = vmatmul.bf16.gmra.mxu1 %v10320_v60 }
 0x2d1   : > { %6478 = vmatmul.bf16.gmra.mxu2 %v10506_v18  ;;  %6871 = vmatpush.bf16.msrb.mxu1 %v11928_v43  ;;  %v10518_v18 = vor.u32 %v11971_v41, %v10517_v19  ;;  %v10337_v43 = vld [vmem:[#allocation2 + $0x1d4] sm:$0xf0] }
 0x2d2   : > { %v10529_v41 = vld [vmem:[#allocation3 + $0xd8] sm:$0xf] }
 0x2d4   : > { %v4788_v51 = vpop.f32.mrf.mxu0 }
 0x2d5   : > { %v4789_v40 = vadd.f32 %v4788_v51, %v15169_v2 }
 0x2d6   : > { %v4884_v21 = vpop.f32.mrf.mxu2  ;;  %v4837_v13 = vpop.f32.mrf.mxu1 }
 0x2d7   : > { %v15329_v49 = vadd.f32 %v4884_v21, %v4836_v38  ;;  %v15331_v17 = vpop.f32.mrf.mxu3  ;;  %v4838_v53 = vadd.f32 %v4837_v13, %v4789_v40  ;;  %v10531_v13 = vld [vmem:[#allocation3 + $0xe4] sm:$0xf0] }
 0x2d8   : > { %v10534_v0 = vor.u32 %v11973_v45, %v10531_v13  ;;  %v12127_v13 = vld [vmem:[#allocation9 + $0xf8] sm:$0xff] }
 0x2d9   : > { %8015 = vmatpush.bf16.msra.mxu3 %v12127_v13  ;;  %v12126_v13 = vld [vmem:[#allocation9 + $0xf0] sm:$0xff] }
 0x2dc   : > { %6532 = vmatmul.bf16.gmra.mxu3 %v10522_v39  ;;  %v4791_v2 = vpop.f32.mrf.mxu0  ;;  %v10344_v39 = vor.u32 %v11879_v54, %v10343_v28  ;;  %v10637_v28 = vld [vmem:[#allocation3] sm:$0xf]  ;;  %v11905_v54 = vld [vmem:[#allocation3 + $0x8] sm:$0xf0] }
 0x2dd   : > { %v4792_v60 = vadd.f32 %v4791_v2, %v15188_v12  ;;  %8016 = vmatpush.bf16.msra.mxu3 %v12126_v13 }
 0x2de   : > { %v4886_v32 = vpop.f32.mrf.mxu2  ;;  %v4840_v44 = vpop.f32.mrf.mxu1 }
 0x2df   : > { %v15334_v8 = vadd.f32 %v4886_v32, %v4838_v53  ;;  %v15336_v16 = vpop.f32.mrf.mxu3  ;;  %v4841_v38 = vadd.f32 %v4840_v44, %v4792_v60  ;;  %5344 = vmatmul.bf16.gmra.mxu0 %v10328_v6  ;;  %v11877_v53 = vld [vmem:[#allocation2 + $0x1cc] sm:$0xf] }
 0x2e0   : > { %5393 = vmatmul.bf16.gmra.mxu1 %v10332_v61  ;;  %v10340_v20 = vor.u32 %v11877_v53, %v10337_v43  ;;  %v11974_v61 = vld [vmem:[#allocation3 + $0xe0] sm:$0xf0] }
 0x2e1   : > { %6483 = vmatmul.bf16.gmra.mxu2 %v10518_v18  ;;  %v10645_v18 = vld [vmem:[#allocation3 + $0x8] sm:$0xf] }
 0x2e4   : > { %v4793_v63 = vpop.f32.mrf.mxu0 }
 0x2e5   : > { %v4794_v51 = vadd.f32 %v4793_v63, %v15207_v25  ;;  %v11906_v63 = vld [vmem:[#allocation3 + $0x10] sm:$0xf0] }
 0x2e6   : > { %v4889_v10 = vpop.f32.mrf.mxu2  ;;  %v4842_v21 = vpop.f32.mrf.mxu1  ;;  %v10646_v45 = vor.u32 %v11906_v63, %v10645_v18 }
 0x2e7   : > { %v15339_v40 = vadd.f32 %v4889_v10, %v4841_v38  ;;  %v15341_v12 = vpop.f32.mrf.mxu3  ;;  %v4843_v14 = vadd.f32 %v4842_v21, %v4794_v51  ;;  %v10530_v38 = vor.u32 %v11974_v61, %v10529_v41 }
 0x2ec   : > { %6537 = vmatmul.bf16.gmra.mxu3 %v10534_v0  ;;  %v4796_v29 = vpop.f32.mrf.mxu0  ;;  %v11954_v0 = vld [vmem:[#allocation3 + $0x40] sm:$0xf0] }
 0x2ed   : > { %v4797_v25 = vadd.f32 %v4796_v29, %v15226_v3  ;;  %v12047_v3 = vld [vmem:[#allocation9 + $0x238] sm:$0xff] }
 0x2ee   : > { %v4891_v6 = vpop.f32.mrf.mxu2  ;;  %v4845_v2 = vpop.f32.mrf.mxu1  ;;  %7464 = vmatpush.bf16.msra.mxu2 %v12047_v3  ;;  %v12031_v29 = vld [vmem:[#allocation9 + $0x1b8] sm:$0xff]  ;;  %v12046_v3 = vld [vmem:[#allocation9 + $0x230] sm:$0xff] }
 0x2ef   : > { %v15344_v32 = vadd.f32 %v4891_v6, %v4843_v14  ;;  %v15346_v60 = vpop.f32.mrf.mxu3  ;;  %v4846_v44 = vadd.f32 %v4845_v2, %v4797_v25  ;;  %5349 = vmatmul.bf16.gmra.mxu0 %v10340_v20  ;;  %v12039_v20 = vld [vmem:[#allocation9 + $0x1f8] sm:$0xff]  ;;  %v10639_v6 = vld [vmem:[#allocation3 + $0xc] sm:$0xf0]  ;;  %v10638_v2 = vor.u32 %v11905_v54, %v10637_v28  ;;  %v11909_v28 = vld [vmem:[#allocation3 + $0x28] sm:$0xf0] }
 0x2f0   : > { %5398 = vmatmul.bf16.gmra.mxu1 %v10344_v39  ;;  %v11904_v39 = vld [vmem:[#allocation3 + $0x4] sm:$0xf]  ;;  %v10453_v25 = vld [vmem:[#allocation3 + $0x38] sm:$0xf]  ;;  %7366 = vmatpush.bf16.msra.mxu0 %v12031_v29 }
 0x2f1   : > { %6488 = vmatmul.bf16.gmra.mxu2 %v10530_v38  ;;  %7415 = vmatpush.bf16.msra.mxu1 %v12039_v20  ;;  %v10454_v38 = vor.u32 %v11954_v0, %v10453_v25  ;;  %v10642_v18 = vor.u32 %v11904_v39, %v10639_v6 }
 0x2f2   : > { %7465 = vmatpush.bf16.msra.mxu2 %v12046_v3  ;;  %v10651_v3 = vld [vmem:[#allocation3 + $0x24] sm:$0xf0] }
 0x2f4   : > { %v4798_v19 = vpop.f32.mrf.mxu0 }
 0x2f5   : > { %v4799_v51 = vadd.f32 %v4798_v19, %v15248_v42 }
 0x2f6   : > { %v4894_v10 = vpop.f32.mrf.mxu2  ;;  %v4847_v21 = vpop.f32.mrf.mxu1 }
 0x2f7   : > { %v15349_v53 = vadd.f32 %v4894_v10, %v4846_v44  ;;  %v15351_v14 = vpop.f32.mrf.mxu3  ;;  %v4848_v43 = vadd.f32 %v4847_v21, %v4799_v51  ;;  %v15359_v51 = vld [vmem:[%s15951_s3] ss:$0 sm:$0xff] }
 0x2fc   : > { %6970 = vmatmul.bf16.vlgmr.msrb.gmra.mxu3 %v10646_v45  ;;  %v5315_v42 = vpop.f32.mrf.mxu0 }
 0x2fd   : > { %v5316_v44 = vadd.f32 %v5315_v42, %v15236_v22 }
 0x2fe   : > { %v4896_v61 = vpop.f32.mrf.mxu2  ;;  %v5364_v41 = vpop.f32.mrf.mxu1 }
 0x2ff   : > { %v15354_v19 = vadd.f32 %v4896_v61, %v4848_v43  ;;  %v6503_v63 = vpop.f32.mrf.mxu3  ;;  %v5365_v10 = vadd.f32 %v5364_v41, %v5316_v44  ;;  %6551 = vmatmul.bf16.vlgmr.msrb.gmra.mxu0 %v10454_v38  ;;  %v10657_v43 = vld [vmem:[#allocation3 + $0x20] sm:$0xf]  ;;  %v10649_v61 = vld [vmem:[#allocation3 + $0x18] sm:$0xf]  ;;  %v11908_v44 = vld [vmem:[#allocation3 + $0x20] sm:$0xf0] }
 0x300   : > { %6872 = vmatmul.bf16.vlgmr.msrb.gmra.mxu1 %v10638_v2  ;;  %v10658_v25 = vor.u32 %v11909_v28, %v10657_v43  ;;  %v11957_v41 = vld [vmem:[#allocation3 + $0x58] sm:$0xf0]  ;;  %v12038_v38 = vld [vmem:[#allocation9 + $0x1f0] sm:$0xff]  ;;  %v10650_v13 = vor.u32 %v11908_v44, %v10649_v61  ;;  %v16903_v61 = vld [vmem:[#allocation74_spill] sm:$0xff] }
 0x301   : > { %v5404_v21 = vadd.f32 %v5365_v10, %v15255_v23  ;;  %6921 = vmatmul.bf16.vlgmr.msrb.gmra.mxu2 %v10642_v18  ;;  %v12030_v18 = vld [vmem:[#allocation9 + $0x1b0] sm:$0xff]  ;;  %7416 = vmatpush.bf16.msra.mxu1 %v12038_v38  ;;  %vm16904_vm10 = vnez %v16903_v61  ;;  %v16906_v38 = vld [vmem:[#allocation73_spill] sm:$0xff] }
 0x302   : > { %7367 = vmatpush.bf16.msra.mxu0 %v12030_v18  ;;  %vm16907_vm8 = vnez %v16906_v38  ;;  %v5638_v18 = vrot.slane %v5636_v27, 4  ;;  %v16913_v61 = vld [vmem:[#allocation76_spill] sm:$0xff]  ;;  %v16916_v38 = vld [vmem:[#allocation83_spill] sm:$0xff] }
 0x303   : > { %v5424_v22 = vadd.f32 %v15359_v51, %v5404_v21  ;;  %v11907_v21 = vld [vmem:[#allocation3 + $0x1c] sm:$0xf] }
 0x304   : > { %v5317_v45 = vpop.f32.mrf.mxu0 }
 0x305   : > { %v5440_v54 = vmax.f32 %v5424_v22, 0.0  ;;  %v5318_v20 = vadd.f32 %v5317_v45, %v15257_v57 }
 0x306   : > { %v6454_v0 = vpop.f32.mrf.mxu2  ;;  %v5366_v29 = vpop.f32.mrf.mxu1 }
 0x307   : > { %v15364_v39 = vadd.f32 %v6503_v63, %v6454_v0  ;;  %v6505_v6 = vpop.f32.mrf.mxu3  ;;  %v5456_v42 = vpack.c.bf16 %v5440_v54, %v5440_v54  ;;  %v5367_v23 = vadd.f32 %v5366_v29, %v5318_v20  ;;  %v10465_v63 = vld [vmem:[#allocation3 + $0x50] sm:$0xf]  ;;  %v10654_v0 = vor.u32 %v11907_v21, %v10651_v3  ;;  %v12045_v3 = vld [vmem:[#allocation9 + $0x228] sm:$0xff] }
 0x308   : > { %v10466_v28 = vor.u32 %v11957_v41, %v10465_v63  ;;  %v5895_v63 = vrot.slane %v5893_v50, 4  ;;  %7466 = vmatpush.bf16.msra.mxu2 %v12045_v3  ;;  %v11912_v50 = vld [vmem:[#allocation3 + $0x40] sm:$0xf0] }
 0x309   : > { %5474 = vst [vmem:[#allocation3 + $0xf4] sm:$0xf] %v5456_v42  ;;  %v5405_v2 = vadd.f32 %v5367_v23, %v15284_v31 }
 0x30b   : > { %v5425_v10 = vadd.f32 %v15359_v51, %v5405_v2  ;;  %v16901_v2 = vld [vmem:[#allocation75_spill] sm:$0xff] }
 0x30c   : > { %6975 = vmatmul.bf16.gmra.mxu3 %v10658_v25  ;;  %v5320_v57 = vpop.f32.mrf.mxu0  ;;  %vm16902_vm3 = vnez %v16901_v2  ;;  %v16911_v2 = vld [vmem:[#allocation77_spill] sm:$0xff] }
 0x30d   : > { %v5441_v22 = vmax.f32 %v5425_v10, 0.0  ;;  %v5321_v43 = vadd.f32 %v5320_v57, %v15286_v37  ;;  %vm16905_vm7 = vmpackc.low %vm16902_vm3, %vm16904_vm10  ;;  %v16908_v37 = vld [vmem:[#allocation72_spill] sm:$0xff]  ;;  %v12125_v57 = vld [vmem:[#allocation9 + $0xe8] sm:$0xff]  ;;  %vm16912_vm2 = vnez %v16911_v2  ;;  %vm16914_vm3 = vnez %v16913_v61 }
 0x30e   : > { %v6456_v45 = vpop.f32.mrf.mxu2  ;;  %v5369_v31 = vpop.f32.mrf.mxu1  ;;  %vm16909_vm9 = vnez %v16908_v37  ;;  %8017 = vmatpush.bf16.msra.mxu3 %v12125_v57  ;;  %vm16915_vm10 = vmpackc.low %vm16912_vm2, %vm16914_vm3 }
 0x30f   : > { %v15369_v54 = vadd.f32 %v6505_v6, %v6456_v45  ;;  %v6508_v20 = vpop.f32.mrf.mxu3  ;;  %v5457_v29 = vpack.c.bf16 %v5441_v22, %v5441_v22  ;;  %v5370_v42 = vadd.f32 %v5369_v31, %v5321_v43  ;;  %6556 = vmatmul.bf16.gmra.mxu0 %v10466_v28  ;;  %vm16910_vm15 = vmpackc.low %vm16907_vm8, %vm16909_vm9 }
 0x310   : > { %v5507_v23 = vld [vmem:[#allocation3 + $0xf4] sm:$0xf]  ;;  %6877 = vmatmul.bf16.gmra.mxu1 %v10650_v13 }
 0x311   : > { %v5766_v25 = vld [vmem:[#allocation3 + $0xf4] sm:$0xf]  ;;  %v5540_v44 = vsel %vm16905_vm7, %v5507_v23, 0  ;;  %5475 = vst [vmem:[#allocation3 + $0x100] sm:$0xf] %v5457_v29  ;;  %v5406_v41 = vadd.f32 %v5370_v42, %v15289_v34  ;;  %6926 = vmatmul.bf16.gmra.mxu2 %v10654_v0  ;;  %vm16917_vm7 = vnez %v16916_v38 }
 0x312   : > { %v5799_v6 = vsel %vm16910_vm15, %v5766_v25, 0  ;;  %v5639_v10 = vrot.slane %v5540_v44, 7  ;;  %v10669_v25 = vld [vmem:[#allocation3 + $0x38] sm:$0xf]  ;;  %v11910_v38 = vld [vmem:[#allocation3 + $0x34] sm:$0xf] }
 0x313   : > { %v5896_v21 = vrot.slane %v5799_v6, 5  ;;  %v5426_v13 = vadd.f32 %v15359_v51, %v5406_v41  ;;  %v11960_v6 = vld [vmem:[#allocation3 + $0x70] sm:$0xf0]  ;;  %v10670_v41 = vor.u32 %v11912_v50, %v10669_v25 }
 0x314   : > { %v5640_v22 = vsel %vm12693_vm0, %v5638_v18, %v5639_v10  ;;  %v5322_v45 = vpop.f32.mrf.mxu0  ;;  %v5641_v18 = vrot.slane %v5639_v10, 4 }
 0x315   : > { %v5897_v4 = vsel %vm12674_vm13, %v5895_v63, %v5896_v21  ;;  %5734 = vst [vmem:[#allocation3 + $0xf0] sm:$0xf] %v5640_v22  ;;  %v5442_v27 = vmax.f32 %v5426_v13, 0.0  ;;  %v5323_v43 = vadd.f32 %v5322_v45, %v15291_v47  ;;  %v16918_v47 = vld [vmem:[#allocation82_spill] sm:$0xff]  ;;  %v12037_v63 = vld [vmem:[#allocation9 + $0x1e8] sm:$0xff]  ;;  %v5898_v22 = vrot.slane %v5896_v21, 4 }
 0x316   : > { %v6459_v34 = vpop.f32.mrf.mxu2  ;;  %v5371_v31 = vpop.f32.mrf.mxu1  ;;  %5993 = vst [vmem:[#allocation3 + $0xec] sm:$0xf] %v5897_v4  ;;  %vm16919_vm8 = vnez %v16918_v47  ;;  %v12029_v13 = vld [vmem:[#allocation9 + $0x1a8] sm:$0xff]  ;;  %v11911_v4 = vld [vmem:[#allocation3 + $0x38] sm:$0xf0]  ;;  %7417 = vmatpush.bf16.msra.mxu1 %v12037_v63 }
 0x317   : > { %v15392_v28 = vadd.f32 %v6508_v20, %v6459_v34  ;;  %v6510_v58 = vpop.f32.mrf.mxu3  ;;  %v5458_v0 = vpack.c.bf16 %v5442_v27, %v5442_v27  ;;  %v5372_v29 = vadd.f32 %v5371_v31, %v5323_v43  ;;  %vm16920_vm9 = vmpackc.low %vm16917_vm7, %vm16919_vm8  ;;  %v10477_v34 = vld [vmem:[#allocation3 + $0x68] sm:$0xf]  ;;  %v10663_v43 = vld [vmem:[#allocation3 + $0x3c] sm:$0xf0]  ;;  %7368 = vmatpush.bf16.msra.mxu0 %v12029_v13 }
 0x318   : > { %v5508_v42 = vld [vmem:[#allocation3 + $0x100] sm:$0xf] }
 0x319   : > { %v5767_v23 = vld [vmem:[#allocation3 + $0x100] sm:$0xf]  ;;  %v5541_v44 = vsel %vm16915_vm10, %v5508_v42, 0  ;;  %5476 = vst [vmem:[#allocation3 + $0x10c] sm:$0xf] %v5458_v0  ;;  %v5407_v37 = vadd.f32 %v5372_v29, %v15294_v1  ;;  %v10478_v29 = vor.u32 %v11960_v6, %v10477_v34 }
 0x31a   : > { %v5800_v20 = vsel %vm16920_vm9, %v5767_v23, 0  ;;  %v5642_v3 = vrot.slane %v5541_v44, 7  ;;  %v10661_v42 = vld [vmem:[#allocation3 + $0x30] sm:$0xf] }
 0x31b   : > { %v5899_v57 = vrot.slane %v5800_v20, 5  ;;  %v5427_v45 = vadd.f32 %v15359_v51, %v5407_v37  ;;  %v10662_v25 = vor.u32 %v11911_v4, %v10661_v42  ;;  %v10666_v37 = vor.u32 %v11910_v38, %v10663_v43  ;;  %v12044_v4 = vld [vmem:[#allocation9 + $0x220] sm:$0xff] }
 0x31c   : > { %6980 = vmatmul.bf16.gmra.mxu3 %v10670_v41  ;;  %v5325_v27 = vpop.f32.mrf.mxu0  ;;  %v5643_v1 = vsel %vm12693_vm0, %v5641_v18, %v5642_v3  ;;  %v16921_v41 = vld [vmem:[#allocation79_spill] sm:$0xff]  ;;  %v16926_v18 = vld [vmem:[#allocation85_spill] sm:$0xff]  ;;  %v5644_v34 = vrot.slane %v5642_v3, 4  ;;  %7467 = vmatpush.bf16.msra.mxu2 %v12044_v4  ;;  %v12036_v4 = vld [vmem:[#allocation9 + $0x1e0] sm:$0xff] }
 0x31d   : > { %v5900_v10 = vsel %vm12674_vm13, %v5898_v22, %v5899_v57  ;;  %v5443_v31 = vmax.f32 %v5427_v45, 0.0  ;;  %v5326_v0 = vadd.f32 %v5325_v27, %v15296_v35  ;;  %5735 = vst [vmem:[#allocation3 + $0xfc] sm:$0xf] %v5643_v1  ;;  %vm16922_vm15 = vnez %v16921_v41  ;;  %v16923_v35 = vld [vmem:[#allocation78_spill] sm:$0xff]  ;;  %7418 = vmatpush.bf16.msra.mxu1 %v12036_v4 }
 0x31e   : > { %v6461_v50 = vpop.f32.mrf.mxu2  ;;  %v5374_v21 = vpop.f32.mrf.mxu1  ;;  %5994 = vst [vmem:[#allocation3 + $0xf8] sm:$0xf] %v5900_v10  ;;  %vm16924_vm2 = vnez %v16923_v35  ;;  %vm16927_vm10 = vnez %v16926_v18  ;;  %v12124_v27 = vld [vmem:[#allocation9 + $0xe0] sm:$0xff]  ;;  %v5901_v43 = vrot.slane %v5899_v57, 4  ;;  %v11915_v57 = vld [vmem:[#allocation3 + $0x58] sm:$0xf0] }
 0x31f   : > { %v15411_v23 = vadd.f32 %v6510_v58, %v6461_v50  ;;  %v6513_v2 = vpop.f32.mrf.mxu3  ;;  %v5459_v61 = vpack.c.bf16 %v5443_v31, %v5443_v31  ;;  %v5375_v44 = vadd.f32 %v5374_v21, %v5326_v0  ;;  %6561 = vmatmul.bf16.gmra.mxu0 %v10478_v29  ;;  %vm16925_vm3 = vmpackc.low %vm16922_vm15, %vm16924_vm2  ;;  %v16928_v58 = vld [vmem:[#allocation84_spill] sm:$0xff]  ;;  %8018 = vmatpush.bf16.msra.mxu3 %v12124_v27  ;;  %v16936_v35 = vld [vmem:[#allocation87_spill] sm:$0xff] }
 0x320   : > { %v5509_v47 = vld [vmem:[#allocation3 + $0x10c] sm:$0xf]  ;;  %6882 = vmatmul.bf16.gmra.mxu1 %v10662_v25  ;;  %vm16929_vm7 = vnez %v16928_v58  ;;  %v12028_v27 = vld [vmem:[#allocation9 + $0x1a0] sm:$0xff] }
 0x321   : > { %v5768_v20 = vld [vmem:[#allocation3 + $0x10c] sm:$0xf]  ;;  %v5542_v6 = vsel %vm16925_vm3, %v5509_v47, 0  ;;  %vm16930_vm8 = vmpackc.low %vm16927_vm10, %vm16929_vm7  ;;  %5477 = vst [vmem:[#allocation3 + $0x118] sm:$0xf] %v5459_v61  ;;  %v5408_v13 = vadd.f32 %v5375_v44, %v15299_v55  ;;  %6931 = vmatmul.bf16.gmra.mxu2 %v10666_v37  ;;  %v16933_v37 = vld [vmem:[#allocation80_spill] sm:$0xff]  ;;  %vm16937_vm3 = vnez %v16936_v35  ;;  %7369 = vmatpush.bf16.msra.mxu0 %v12028_v27 }
 0x322   : > { %v5801_v63 = vsel %vm16930_vm8, %v5768_v20, 0  ;;  %v5645_v22 = vrot.slane %v5542_v6, 7  ;;  %v10681_v47 = vld [vmem:[#allocation3 + $0x50] sm:$0xf]  ;;  %v16931_v20 = vld [vmem:[#allocation81_spill] sm:$0xff]  ;;  %vm16934_vm15 = vnez %v16933_v37 }
 0x323   : > { %v5902_v45 = vrot.slane %v5801_v63, 5  ;;  %v5428_v1 = vadd.f32 %v15359_v51, %v5408_v13  ;;  %vm16932_vm9 = vnez %v16931_v20  ;;  %v11963_v18 = vld [vmem:[#allocation3 + $0x88] sm:$0xf0]  ;;  %v10682_v58 = vor.u32 %v11915_v57, %v10681_v47 }
 0x324   : > { %v5327_v10 = vpop.f32.mrf.mxu0  ;;  %v5646_v31 = vsel %vm12693_vm0, %v5644_v34, %v5645_v22  ;;  %vm16935_vm2 = vmpackc.low %vm16932_vm9, %vm16934_vm15  ;;  %v5647_v34 = vrot.slane %v5645_v22, 4  ;;  %v11913_v37 = vld [vmem:[#allocation3 + $0x4c] sm:$0xf] }
 0x325   : > { %v5903_v50 = vsel %vm12674_vm13, %v5901_v43, %v5902_v45  ;;  %v5444_v0 = vmax.f32 %v5428_v1, 0.0  ;;  %v5328_v21 = vadd.f32 %v5327_v10, %v15301_v15  ;;  %5736 = vst [vmem:[#allocation3 + $0x108] sm:$0xf] %v5646_v31  ;;  %v16938_v15 = vld [vmem:[#allocation86_spill] sm:$0xff]  ;;  %v5904_v43 = vrot.slane %v5902_v45, 4 }
 0x326   : > { %v6464_v55 = vpop.f32.mrf.mxu2  ;;  %v5376_v29 = vpop.f32.mrf.mxu1  ;;  %5995 = vst [vmem:[#allocation3 + $0x104] sm:$0xf] %v5903_v50  ;;  %vm16939_vm10 = vnez %v16938_v15  ;;  %v11914_v10 = vld [vmem:[#allocation3 + $0x50] sm:$0xf0]  ;;  %v10489_v50 = vld [vmem:[#allocation3 + $0x80] sm:$0xf] }
 0x327   : > { %v15430_v42 = vadd.f32 %v6513_v2, %v6464_v55  ;;  %v6515_v3 = vpop.f32.mrf.mxu3  ;;  %v5460_v25 = vpack.c.bf16 %v5444_v0, %v5444_v0  ;;  %v5377_v61 = vadd.f32 %v5376_v29, %v5328_v21  ;;  %vm16940_vm7 = vmpackc.low %vm16937_vm3, %vm16939_vm10  ;;  %v10675_v0 = vld [vmem:[#allocation3 + $0x54] sm:$0xf0]  ;;  %v10490_v57 = vor.u32 %v11963_v18, %v10489_v50 }
 0x328   : > { %v5510_v44 = vld [vmem:[#allocation3 + $0x118] sm:$0xf]  ;;  %v10678_v15 = vor.u32 %v11913_v37, %v10675_v0 }
 0x329   : > { %v5769_v38 = vld [vmem:[#allocation3 + $0x118] sm:$0xf]  ;;  %v5543_v41 = vsel %vm16935_vm2, %v5510_v44, 0  ;;  %5478 = vst [vmem:[#allocation3 + $0x124] sm:$0xf] %v5460_v25  ;;  %v5409_v6 = vadd.f32 %v5377_v61, %v15304_v26 }
 0x32a   : > { %v5802_v2 = vsel %vm16940_vm7, %v5769_v38, 0  ;;  %v5648_v63 = vrot.slane %v5543_v41, 7  ;;  %v10673_v25 = vld [vmem:[#allocation3 + $0x48] sm:$0xf]  ;;  %v16946_v18 = vld [vmem:[#allocation89_spill] sm:$0xff] }
 0x32b   : > { %v5905_v13 = vrot.slane %v5802_v2, 5  ;;  %v5429_v1 = vadd.f32 %v15359_v51, %v5409_v6  ;;  %v10674_v44 = vor.u32 %v11914_v10, %v10673_v25  ;;  %v16941_v2 = vld [vmem:[#allocation91_spill] sm:$0xff]  ;;  %vm16947_vm2 = vnez %v16946_v18  ;;  %v16951_v37 = vld [vmem:[#allocation93_spill] sm:$0xff] }
 0x32c   : > { %6985 = vmatmul.bf16.gmra.mxu3 %v10682_v58  ;;  %v5330_v31 = vpop.f32.mrf.mxu0  ;;  %v5649_v26 = vsel %vm12693_vm0, %v5647_v34, %v5648_v63  ;;  %vm16942_vm8 = vnez %v16941_v2  ;;  %v5650_v10 = vrot.slane %v5648_v63, 4  ;;  %vm16952_vm7 = vnez %v16951_v37 }
 0x32d   : > { %v5906_v55 = vsel %vm12674_vm13, %v5904_v43, %v5905_v13  ;;  %v5445_v21 = vmax.f32 %v5429_v1, 0.0  ;;  %v5331_v22 = vadd.f32 %v5330_v31, %v15306_v11  ;;  %5737 = vst [vmem:[#allocation3 + $0x114] sm:$0xf] %v5649_v26  ;;  %v16943_v11 = vld [vmem:[#allocation90_spill] sm:$0xff]  ;;  %v12043_v43 = vld [vmem:[#allocation9 + $0x218] sm:$0xff]  ;;  %v5907_v31 = vrot.slane %v5905_v13, 4 }
 0x32e   : > { %v6466_v29 = vpop.f32.mrf.mxu2  ;;  %v5379_v45 = vpop.f32.mrf.mxu1  ;;  %5996 = vst [vmem:[#allocation3 + $0x110] sm:$0xf] %v5906_v55  ;;  %vm16944_vm9 = vnez %v16943_v11  ;;  %v12123_v1 = vld [vmem:[#allocation9 + $0xd8] sm:$0xff]  ;;  %7468 = vmatpush.bf16.msra.mxu2 %v12043_v43  ;;  %v11918_v13 = vld [vmem:[#allocation3 + $0x70] sm:$0xf0] }
 0x32f   : > { %v15449_v61 = vadd.f32 %v6515_v3, %v6466_v29  ;;  %v6518_v38 = vpop.f32.mrf.mxu3  ;;  %v5461_v47 = vpack.c.bf16 %v5445_v21, %v5445_v21  ;;  %v5380_v20 = vadd.f32 %v5379_v45, %v5331_v22  ;;  %6566 = vmatmul.bf16.gmra.mxu0 %v10490_v57  ;;  %vm16945_vm15 = vmpackc.low %vm16942_vm8, %vm16944_vm9  ;;  %v16948_v3 = vld [vmem:[#allocation88_spill] sm:$0xff]  ;;  %8019 = vmatpush.bf16.msra.mxu3 %v12123_v1  ;;  %v11966_v11 = vld [vmem:[#allocation3 + $0xa0] sm:$0xf0] }
 0x330   : > { %v5511_v41 = vld [vmem:[#allocation3 + $0x124] sm:$0xf]  ;;  %6887 = vmatmul.bf16.gmra.mxu1 %v10674_v44  ;;  %vm16949_vm3 = vnez %v16948_v3 }
 0x331   : > { %v5770_v35 = vld [vmem:[#allocation3 + $0x124] sm:$0xf]  ;;  %v5544_v6 = vsel %vm16945_vm15, %v5511_v41, 0  ;;  %vm16950_vm10 = vmpackc.low %vm16947_vm2, %vm16949_vm3  ;;  %5479 = vst [vmem:[#allocation3 + $0x130] sm:$0xf] %v5461_v47  ;;  %v5410_v4 = vadd.f32 %v5380_v20, %v15309_v7  ;;  %6936 = vmatmul.bf16.gmra.mxu2 %v10678_v15  ;;  %v16953_v41 = vld [vmem:[#allocation92_spill] sm:$0xff] }
 0x332   : > { %v5803_v58 = vsel %vm16950_vm10, %v5770_v35, 0  ;;  %v5651_v27 = vrot.slane %v5544_v6, 7  ;;  %v10693_v20 = vld [vmem:[#allocation3 + $0x68] sm:$0xf]  ;;  %vm16954_vm8 = vnez %v16953_v41 }
 0x333   : > { %v5908_v34 = vrot.slane %v5803_v58, 5  ;;  %v5430_v50 = vadd.f32 %v15359_v51, %v5410_v4  ;;  %vm16955_vm9 = vmpackc.low %vm16952_vm7, %vm16954_vm8  ;;  %v16956_v15 = vld [vmem:[#allocation95_spill] sm:$0xff]  ;;  %v10694_v6 = vor.u32 %v11918_v13, %v10693_v20  ;;  %v12035_v58 = vld [vmem:[#allocation9 + $0x1d8] sm:$0xff] }
 0x334   : > { %v5332_v0 = vpop.f32.mrf.mxu0  ;;  %v5652_v26 = vsel %vm12693_vm0, %v5650_v10, %v5651_v27  ;;  %vm16957_vm15 = vnez %v16956_v15  ;;  %v12027_v4 = vld [vmem:[#allocation9 + $0x198] sm:$0xff]  ;;  %v5653_v43 = vrot.slane %v5651_v27, 4  ;;  %7419 = vmatpush.bf16.msra.mxu1 %v12035_v58  ;;  %v11916_v20 = vld [vmem:[#allocation3 + $0x64] sm:$0xf]  ;;  %v16961_v15 = vld [vmem:[#allocation99_spill] sm:$0xff] }
 0x335   : > { %v5909_v55 = vsel %vm12674_vm13, %v5907_v31, %v5908_v34  ;;  %v5446_v21 = vmax.f32 %v5430_v50, 0.0  ;;  %v5333_v29 = vadd.f32 %v5332_v0, %v15311_v62  ;;  %5738 = vst [vmem:[#allocation3 + $0x120] sm:$0xf] %v5652_v26  ;;  %v16958_v62 = vld [vmem:[#allocation94_spill] sm:$0xff]  ;;  %v5910_v1 = vrot.slane %v5908_v34, 4  ;;  %7370 = vmatpush.bf16.msra.mxu0 %v12027_v4  ;;  %v12042_v4 = vld [vmem:[#allocation9 + $0x210] sm:$0xff] }
 0x336   : > { %v6469_v7 = vpop.f32.mrf.mxu2  ;;  %v5381_v22 = vpop.f32.mrf.mxu1  ;;  %5997 = vst [vmem:[#allocation3 + $0x11c] sm:$0xf] %v5909_v55  ;;  %vm16959_vm2 = vnez %v16958_v62  ;;  %v11917_v31 = vld [vmem:[#allocation3 + $0x68] sm:$0xf0]  ;;  %v10501_v0 = vld [vmem:[#allocation3 + $0x98] sm:$0xf]  ;;  %vm16962_vm10 = vnez %v16961_v15  ;;  %7469 = vmatpush.bf16.msra.mxu2 %v12042_v4 }
 0x337   : > { %v15468_v45 = vadd.f32 %v6518_v38, %v6469_v7  ;;  %v6520_v63 = vpop.f32.mrf.mxu3  ;;  %v5462_v57 = vpack.c.bf16 %v5446_v21, %v5446_v21  ;;  %v5382_v25 = vadd.f32 %v5381_v22, %v5333_v29  ;;  %vm16960_vm3 = vmpackc.low %vm16957_vm15, %vm16959_vm2  ;;  %v10687_v26 = vld [vmem:[#allocation3 + $0x6c] sm:$0xf0]  ;;  %v10502_v29 = vor.u32 %v11966_v11, %v10501_v0  ;;  %v10685_v22 = vld [vmem:[#allocation3 + $0x60] sm:$0xf] }
 0x338   : > { %v5512_v44 = vld [vmem:[#allocation3 + $0x130] sm:$0xf] }
 0x339   : > { %v5771_v47 = vld [vmem:[#allocation3 + $0x130] sm:$0xf]  ;;  %v5545_v35 = vsel %vm16955_vm9, %v5512_v44, 0  ;;  %5480 = vst [vmem:[#allocation3 + $0x13c] sm:$0xf] %v5462_v57  ;;  %v5411_v2 = vadd.f32 %v5382_v25, %v15314_v9  ;;  %v10686_v57 = vor.u32 %v11917_v31, %v10685_v22 }
 0x33a   : > { %v5804_v38 = vsel %vm16960_vm3, %v5771_v47, 0  ;;  %v5654_v18 = vrot.slane %v5545_v35, 7  ;;  %v10690_v35 = vor.u32 %v11916_v20, %v10687_v26 }
 0x33b   : > { %v5911_v3 = vrot.slane %v5804_v38, 5  ;;  %v5431_v10 = vadd.f32 %v15359_v51, %v5411_v2  ;;  %v16966_v38 = vld [vmem:[#allocation97_spill] sm:$0xff] }
 0x33c   : > { %6990 = vmatmul.bf16.gmra.mxu3 %v10694_v6  ;;  %v5335_v50 = vpop.f32.mrf.mxu0  ;;  %v5655_v9 = vsel %vm12693_vm0, %v5653_v43, %v5654_v18  ;;  %vm16967_vm9 = vnez %v16966_v38  ;;  %v12122_v43 = vld [vmem:[#allocation9 + $0xd0] sm:$0xff] }
 0x33d   : > { %v5912_v55 = vsel %vm12674_vm13, %v5910_v1, %v5911_v3  ;;  %v5447_v21 = vmax.f32 %v5431_v10, 0.0  ;;  %v5336_v27 = vadd.f32 %v5335_v50, %v15316_v48  ;;  %5739 = vst [vmem:[#allocation3 + $0x12c] sm:$0xf] %v5655_v9  ;;  %v16963_v48 = vld [vmem:[#allocation98_spill] sm:$0xff]  ;;  %v5656_v1 = vrot.slane %v5654_v18, 4  ;;  %8020 = vmatpush.bf16.msra.mxu3 %v12122_v43  ;;  %v12034_v38 = vld [vmem:[#allocation9 + $0x1d0] sm:$0xff] }
 0x33e   : > { %v6471_v7 = vpop.f32.mrf.mxu2  ;;  %v5384_v34 = vpop.f32.mrf.mxu1  ;;  %5998 = vst [vmem:[#allocation3 + $0x128] sm:$0xf] %v5912_v55  ;;  %vm16964_vm7 = vnez %v16963_v48  ;;  %v5913_v10 = vrot.slane %v5911_v3, 4  ;;  %v11921_v3 = vld [vmem:[#allocation3 + $0x88] sm:$0xf0]  ;;  %7420 = vmatpush.bf16.msra.mxu1 %v12034_v38 }
 0x33f   : > { %v15487_v13 = vadd.f32 %v6520_v63, %v6471_v7  ;;  %v6523_v25 = vpop.f32.mrf.mxu3  ;;  %v5463_v44 = vpack.c.bf16 %v5447_v21, %v5447_v21  ;;  %v5385_v47 = vadd.f32 %v5384_v34, %v5336_v27  ;;  %6571 = vmatmul.bf16.gmra.mxu0 %v10502_v29  ;;  %vm16965_vm8 = vmpackc.low %vm16962_vm10, %vm16964_vm7  ;;  %v16968_v63 = vld [vmem:[#allocation96_spill] sm:$0xff]  ;;  %v11920_v43 = vld [vmem:[#allocation3 + $0x80] sm:$0xf0] }
 0x340   : > { %v5513_v37 = vld [vmem:[#allocation3 + $0x13c] sm:$0xf]  ;;  %6892 = vmatmul.bf16.gmra.mxu1 %v10686_v57  ;;  %vm16969_vm15 = vnez %v16968_v63  ;;  %v10705_v57 = vld [vmem:[#allocation3 + $0x80] sm:$0xf]  ;;  %v12026_v63 = vld [vmem:[#allocation9 + $0x190] sm:$0xff] }
 0x341   : > { %v5772_v41 = vld [vmem:[#allocation3 + $0x13c] sm:$0xf]  ;;  %v5546_v62 = vsel %vm16965_vm8, %v5513_v37, 0  ;;  %vm16970_vm2 = vmpackc.low %vm16967_vm9, %vm16969_vm15  ;;  %5481 = vst [vmem:[#allocation3 + $0x148] sm:$0xf] %v5463_v44  ;;  %v5412_v11 = vadd.f32 %v5385_v47, %v15319_v36  ;;  %6941 = vmatmul.bf16.gmra.mxu2 %v10690_v35  ;;  %v16973_v47 = vld [vmem:[#allocation100_spill] sm:$0xff]  ;;  %v10706_v15 = vor.u32 %v11921_v3, %v10705_v57  ;;  %7371 = vmatpush.bf16.msra.mxu0 %v12026_v63 }
 0x342   : > { %v5805_v2 = vsel %vm16970_vm2, %v5772_v41, 0  ;;  %v5657_v6 = vrot.slane %v5546_v62, 7  ;;  %v16971_v44 = vld [vmem:[#allocation101_spill] sm:$0xff]  ;;  %vm16974_vm10 = vnez %v16973_v47  ;;  %v16976_v37 = vld [vmem:[#allocation103_spill] sm:$0xff] }
 0x343   : > { %v5914_v58 = vrot.slane %v5805_v2, 5  ;;  %v5432_v31 = vadd.f32 %v15359_v51, %v5412_v11  ;;  %vm16972_vm3 = vnez %v16971_v44  ;;  %vm16977_vm8 = vnez %v16976_v37  ;;  %v11969_v35 = vld [vmem:[#allocation3 + $0xb8] sm:$0xf0]  ;;  %v16981_v47 = vld [vmem:[#allocation107_spill] sm:$0xff] }
 0x344   : > { %v5337_v50 = vpop.f32.mrf.mxu0  ;;  %v5658_v0 = vsel %vm12693_vm0, %v5656_v1, %v5657_v6  ;;  %vm16975_vm7 = vmpackc.low %vm16972_vm3, %vm16974_vm10  ;;  %v5659_v2 = vrot.slane %v5657_v6, 4  ;;  %vm16982_vm2 = vnez %v16981_v47  ;;  %v16986_v37 = vld [vmem:[#allocation105_spill] sm:$0xff]  ;;  %v12121_v38 = vld [vmem:[#allocation9 + $0xc8] sm:$0xff] }
 0x345   : > { %v5915_v26 = vsel %vm12674_vm13, %v5913_v10, %v5914_v58  ;;  %v5448_v9 = vmax.f32 %v5432_v31, 0.0  ;;  %v5338_v55 = vadd.f32 %v5337_v50, %v15321_v5  ;;  %5740 = vst [vmem:[#allocation3 + $0x138] sm:$0xf] %v5658_v0  ;;  %v16978_v5 = vld [vmem:[#allocation102_spill] sm:$0xff]  ;;  %v5916_v11 = vrot.slane %v5914_v58, 4  ;;  %8021 = vmatpush.bf16.msra.mxu3 %v12121_v38 }
 0x346   : > { %v6474_v36 = vpop.f32.mrf.mxu2  ;;  %v5386_v21 = vpop.f32.mrf.mxu1  ;;  %5999 = vst [vmem:[#allocation3 + $0x134] sm:$0xf] %v5915_v26  ;;  %vm16979_vm9 = vnez %v16978_v5  ;;  %v10513_v10 = vld [vmem:[#allocation3 + $0xb0] sm:$0xf]  ;;  %v10699_v31 = vld [vmem:[#allocation3 + $0x84] sm:$0xf0] }
 0x347   : > { %v15506_v7 = vadd.f32 %v6523_v25, %v6474_v36  ;;  %v6525_v18 = vpop.f32.mrf.mxu3  ;;  %v5464_v27 = vpack.c.bf16 %v5448_v9, %v5448_v9  ;;  %v5387_v34 = vadd.f32 %v5386_v21, %v5338_v55  ;;  %vm16980_vm15 = vmpackc.low %vm16977_vm8, %vm16979_vm9  ;;  %v10514_v9 = vor.u32 %v11969_v35, %v10513_v10  ;;  %v10697_v36 = vld [vmem:[#allocation3 + $0x78] sm:$0xf]  ;;  %v10525_v38 = vld [vmem:[#allocation3 + $0xc8] sm:$0xf] }
 0x348   : > { %v5514_v29 = vld [vmem:[#allocation3 + $0x148] sm:$0xf]  ;;  %v10698_v21 = vor.u32 %v11920_v43, %v10697_v36  ;;  %v16991_v36 = vld [vmem:[#allocation110_spill] sm:$0xff] }
 0x349   : > { %v5773_v22 = vld [vmem:[#allocation3 + $0x148] sm:$0xf]  ;;  %v5547_v20 = vsel %vm16975_vm7, %v5514_v29, 0  ;;  %5482 = vst [vmem:[#allocation3 + $0x154] sm:$0xf] %v5464_v27  ;;  %v5413_v41 = vadd.f32 %v5387_v34, %v15324_v59  ;;  %vm16987_vm7 = vnez %v16986_v37 }
 0x34a   : > { %v5806_v25 = vsel %vm16980_vm15, %v5773_v22, 0  ;;  %v5660_v48 = vrot.slane %v5547_v20, 7  ;;  %v11919_v29 = vld [vmem:[#allocation3 + $0x7c] sm:$0xf]  ;;  %vm16992_vm15 = vnez %v16991_v36 }
 0x34b   : > { %v5917_v62 = vrot.slane %v5806_v25, 5  ;;  %v5433_v4 = vadd.f32 %v15359_v51, %v5413_v41  ;;  %v10702_v44 = vor.u32 %v11919_v29, %v10699_v31 }
 0x34c   : > { %6995 = vmatmul.bf16.gmra.mxu3 %v10706_v15  ;;  %v5340_v1 = vpop.f32.mrf.mxu0  ;;  %v5661_v59 = vsel %vm12693_vm0, %v5659_v2, %v5660_v48  ;;  %v12041_v15 = vld [vmem:[#allocation9 + $0x208] sm:$0xff]  ;;  %v5662_v63 = vrot.slane %v5660_v48, 4 }
 0x34d   : > { %v5918_v50 = vsel %vm12674_vm13, %v5916_v11, %v5917_v62  ;;  %v5449_v0 = vmax.f32 %v5433_v4, 0.0  ;;  %v5341_v6 = vadd.f32 %v5340_v1, %v15326_v24  ;;  %5741 = vst [vmem:[#allocation3 + $0x144] sm:$0xf] %v5661_v59  ;;  %v16983_v24 = vld [vmem:[#allocation106_spill] sm:$0xff]  ;;  %v5919_v2 = vrot.slane %v5917_v62, 4  ;;  %7470 = vmatpush.bf16.msra.mxu2 %v12041_v15 }
 0x34e   : > { %v6476_v26 = vpop.f32.mrf.mxu2  ;;  %v5389_v58 = vpop.f32.mrf.mxu1  ;;  %6000 = vst [vmem:[#allocation3 + $0x140] sm:$0xf] %v5918_v50  ;;  %vm16984_vm3 = vnez %v16983_v24  ;;  %v11924_v62 = vld [vmem:[#allocation3 + $0xa0] sm:$0xf0]  ;;  %v12033_v24 = vld [vmem:[#allocation9 + $0x1c8] sm:$0xff] }
 0x34f   : > { %v15525_v55 = vadd.f32 %v6525_v18, %v6476_v26  ;;  %v6528_v3 = vpop.f32.mrf.mxu3  ;;  %v5465_v27 = vpack.c.bf16 %v5449_v0, %v5449_v0  ;;  %v5390_v34 = vadd.f32 %v5389_v58, %v5341_v6  ;;  %6576 = vmatmul.bf16.gmra.mxu0 %v10514_v9  ;;  %vm16985_vm10 = vmpackc.low %vm16982_vm2, %vm16984_vm3  ;;  %v16988_v18 = vld [vmem:[#allocation104_spill] sm:$0xff]  ;;  %v10717_v9 = vld [vmem:[#allocation3 + $0x98] sm:$0xf]  ;;  %7421 = vmatpush.bf16.msra.mxu1 %v12033_v24 }
 0x350   : > { %v5515_v22 = vld [vmem:[#allocation3 + $0x154] sm:$0xf]  ;;  %6897 = vmatmul.bf16.gmra.mxu1 %v10698_v21  ;;  %vm16989_vm8 = vnez %v16988_v18  ;;  %v16993_v21 = vld [vmem:[#allocation109_spill] sm:$0xff]  ;;  %v12024_v24 = vld [vmem:[#allocation9 + $0x180] sm:$0xff] }
 0x351   : > { %v5774_v57 = vld [vmem:[#allocation3 + $0x154] sm:$0xf]  ;;  %v5548_v20 = vsel %vm16985_vm10, %v5515_v22, 0  ;;  %vm16990_vm9 = vmpackc.low %vm16987_vm7, %vm16989_vm8  ;;  %5483 = vst [vmem:[#allocation3 + $0x160] sm:$0xf] %v5465_v27  ;;  %v5414_v25 = vadd.f32 %v5390_v34, %v15329_v49  ;;  %6946 = vmatmul.bf16.gmra.mxu2 %v10702_v44  ;;  %vm16994_vm2 = vnez %v16993_v21  ;;  %v17006_v21 = vld [vmem:[#allocation114_spill] sm:$0xff] }
 0x352   : > { %v5807_v5 = vsel %vm16990_vm9, %v5774_v57, 0  ;;  %v5663_v41 = vrot.slane %v5548_v20, 7  ;;  %vm16995_vm3 = vmpackc.low %vm16992_vm15, %vm16994_vm2  ;;  %v16996_v34 = vld [vmem:[#allocation112_spill] sm:$0xff]  ;;  %v10718_v57 = vor.u32 %v11924_v62, %v10717_v9  ;;  %v12025_v20 = vld [vmem:[#allocation9 + $0x188] sm:$0xff] }
 0x353   : > { %v5920_v35 = vrot.slane %v5807_v5, 5  ;;  %v5434_v11 = vadd.f32 %v15359_v51, %v5414_v25  ;;  %vm16997_vm10 = vnez %v16996_v34  ;;  %v11972_v22 = vld [vmem:[#allocation3 + $0xd0] sm:$0xf0]  ;;  %v11923_v25 = vld [vmem:[#allocation3 + $0x98] sm:$0xf0]  ;;  %7372 = vmatpush.bf16.msra.mxu0 %v12025_v20 }
 0x354   : > { %v5342_v4 = vpop.f32.mrf.mxu0  ;;  %v5664_v43 = vsel %vm12693_vm0, %v5662_v63, %v5663_v41  ;;  %v5665_v37 = vrot.slane %v5663_v41, 4  ;;  %v10711_v63 = vld [vmem:[#allocation3 + $0x9c] sm:$0xf0]  ;;  %v17001_v9 = vld [vmem:[#allocation117_spill] sm:$0xff] }
 0x355   : > { %v5921_v1 = vsel %vm12674_vm13, %v5919_v2, %v5920_v35  ;;  %v5450_v10 = vmax.f32 %v5434_v11, 0.0  ;;  %v5343_v31 = vadd.f32 %v5342_v4, %v15331_v17  ;;  %5742 = vst [vmem:[#allocation3 + $0x150] sm:$0xf] %v5664_v43  ;;  %v16998_v17 = vld [vmem:[#allocation111_spill] sm:$0xff]  ;;  %v5922_v18 = vrot.slane %v5920_v35, 4 }
 0x356   : > { %v6479_v49 = vpop.f32.mrf.mxu2  ;;  %v5391_v59 = vpop.f32.mrf.mxu1  ;;  %6001 = vst [vmem:[#allocation3 + $0x14c] sm:$0xf] %v5921_v1  ;;  %vm16999_vm7 = vnez %v16998_v17  ;;  %v10526_v43 = vor.u32 %v11972_v22, %v10525_v38  ;;  %v10709_v1 = vld [vmem:[#allocation3 + $0x90] sm:$0xf]  ;;  %vm17002_vm9 = vnez %v17001_v9  ;;  %v12040_v17 = vld [vmem:[#allocation9 + $0x200] sm:$0xff] }
 0x357   : > { %v15544_v50 = vadd.f32 %v6528_v3, %v6479_v49  ;;  %v6530_v48 = vpop.f32.mrf.mxu3  ;;  %v5466_v0 = vpack.c.bf16 %v5450_v10, %v5450_v10  ;;  %v5392_v26 = vadd.f32 %v5391_v59, %v5343_v31  ;;  %vm17000_vm8 = vmpackc.low %vm16997_vm10, %vm16999_vm7  ;;  %v10710_v49 = vor.u32 %v11923_v25, %v10709_v1  ;;  %7471 = vmatpush.bf16.msra.mxu2 %v12040_v17  ;;  %v11975_v1 = vld [vmem:[#allocation3 + $0xe8] sm:$0xf0]  ;;  %v11926_v17 = vld [vmem:[#allocation3 + $0xb0] sm:$0xf0] }
 0x358   : > { %v5516_v6 = vld [vmem:[#allocation3 + $0x160] sm:$0xf]  ;;  %7373 = vmatpush.bf16.msra.mxu0 %v12024_v24 }
 0x359   : > { %v5775_v58 = vld [vmem:[#allocation3 + $0x160] sm:$0xf]  ;;  %v5549_v27 = vsel %vm16995_vm3, %v5516_v6, 0  ;;  %5484 = vst [vmem:[#allocation3 + $0x16c] sm:$0xf] %v5466_v0  ;;  %v5415_v29 = vadd.f32 %v5392_v26, %v15334_v8  ;;  %vm17007_vm3 = vnez %v17006_v21  ;;  %v12087_v21 = vld [vmem:[#allocation9 + $0x78] sm:$0xff] }
 0x35a   : > { %v5808_v3 = vsel %vm17000_vm8, %v5775_v58, 0  ;;  %v5666_v44 = vrot.slane %v5549_v27, 7  ;;  %v11922_v0 = vld [vmem:[#allocation3 + $0x94] sm:$0xf]  ;;  %v10537_v24 = vld [vmem:[#allocation3 + $0xe0] sm:$0xf] }
 0x35b   : > { %v5923_v47 = vrot.slane %v5808_v3, 5  ;;  %v5435_v5 = vadd.f32 %v15359_v51, %v5415_v29  ;;  %v10714_v58 = vor.u32 %v11922_v0, %v10711_v63  ;;  %v12120_v3 = vld [vmem:[#allocation9 + $0xc0] sm:$0xff] }
 0x35c   : > { %7000 = vmatmul.bf16.gmra.mxu3 %v10718_v57  ;;  %v5345_v15 = vpop.f32.mrf.mxu0  ;;  %v5667_v8 = vsel %vm12693_vm0, %v5665_v37, %v5666_v44  ;;  %v12032_v57 = vld [vmem:[#allocation9 + $0x1c0] sm:$0xff]  ;;  %v5668_v20 = vrot.slane %v5666_v44, 4  ;;  %v11927_v44 = vld [vmem:[#allocation3 + $0xb8] sm:$0xf0] }
 0x35d   : > { %v5924_v2 = vsel %vm12674_vm13, %v5922_v18, %v5923_v47  ;;  %v5451_v11 = vmax.f32 %v5435_v5, 0.0  ;;  %v5346_v41 = vadd.f32 %v5345_v15, %v15336_v16  ;;  %5743 = vst [vmem:[#allocation3 + $0x15c] sm:$0xf] %v5667_v8  ;;  %v17003_v16 = vld [vmem:[#allocation116_spill] sm:$0xff]  ;;  %v5925_v37 = vrot.slane %v5923_v47, 4  ;;  %8022 = vmatpush.bf16.msra.mxu3 %v12120_v3  ;;  %7422 = vmatpush.bf16.msra.mxu1 %v12032_v57  ;;  %v17016_v0 = vld [vmem:[#allocation122_spill] sm:$0xff] }
 0x35e   : > { %v6481_v4 = vpop.f32.mrf.mxu2  ;;  %v5394_v35 = vpop.f32.mrf.mxu1  ;;  %6002 = vst [vmem:[#allocation3 + $0x158] sm:$0xf] %v5924_v2  ;;  %vm17004_vm15 = vnez %v17003_v16  ;;  %v12135_v3 = vld [vmem:[#allocation9 + $0x138] sm:$0xff] }
 0x35f   : > { %v15563_v10 = vadd.f32 %v6530_v48, %v6481_v4  ;;  %v6533_v31 = vpop.f32.mrf.mxu3  ;;  %v5467_v59 = vpack.c.bf16 %v5451_v11, %v5451_v11  ;;  %v5395_v62 = vadd.f32 %v5394_v35, %v5346_v41  ;;  %6581 = vmatmul.bf16.gmra.mxu0 %v10526_v43  ;;  %vm17005_vm2 = vmpackc.low %vm17002_vm9, %vm17004_vm15  ;;  %v17008_v48 = vld [vmem:[#allocation113_spill] sm:$0xff]  ;;  %v10729_v41 = vld [vmem:[#allocation3 + $0xb0] sm:$0xf] }
 0x360   : > { %v5517_v26 = vld [vmem:[#allocation3 + $0x16c] sm:$0xf]  ;;  %6902 = vmatmul.bf16.gmra.mxu1 %v10710_v49  ;;  %vm17009_vm10 = vnez %v17008_v48  ;;  %v10730_v49 = vor.u32 %v11927_v44, %v10729_v41  ;;  %v12143_v48 = vld [vmem:[#allocation9 + $0x178] sm:$0xff]  ;;  %8064 = vmatpush.bf16.msrb.mxu0 %v12135_v3 }
 0x361   : > { %v5776_v6 = vld [vmem:[#allocation3 + $0x16c] sm:$0xf]  ;;  %v5550_v36 = vsel %vm17005_vm2, %v5517_v26, 0  ;;  %vm17010_vm7 = vmpackc.low %vm17007_vm3, %vm17009_vm10  ;;  %5485 = vst [vmem:[#allocation3 + $0x178] sm:$0xf] %v5467_v59  ;;  %v5416_v34 = vadd.f32 %v5395_v62, %v15339_v40  ;;  %6951 = vmatmul.bf16.gmra.mxu2 %v10714_v58  ;;  %v17013_v62 = vld [vmem:[#allocation118_spill] sm:$0xff]  ;;  %vm17017_vm2 = vnez %v17016_v0  ;;  %8483 = vmatpush.bf16.msrb.mxu3 %v12087_v21 }
 0x362   : > { %v5809_v27 = vsel %vm17010_vm7, %v5776_v6, 0  ;;  %v5669_v29 = vrot.slane %v5550_v36, 7  ;;  %v17011_v59 = vld [vmem:[#allocation119_spill] sm:$0xff]  ;;  %vm17014_vm9 = vnez %v17013_v62  ;;  %v17018_v26 = vld [vmem:[#allocation121_spill] sm:$0xff]  ;;  %8113 = vmatpush.bf16.msrb.mxu1 %v12143_v48 }
 0x363   : > { %v5926_v22 = vrot.slane %v5809_v27, 5  ;;  %v5436_v18 = vadd.f32 %v15359_v51, %v5416_v34  ;;  %vm17012_vm8 = vnez %v17011_v59  ;;  %vm17019_vm3 = vnez %v17018_v26  ;;  %v12079_v36 = vld [vmem:[#allocation9 + $0x38] sm:$0xff]  ;;  %v12078_v26 = vld [vmem:[#allocation9 + $0x30] sm:$0xff] }
 0x364   : > { %v5347_v5 = vpop.f32.mrf.mxu0  ;;  %v5670_v25 = vsel %vm12693_vm0, %v5668_v20, %v5669_v29  ;;  %vm17015_vm15 = vmpackc.low %vm17012_vm8, %vm17014_vm9  ;;  %v5671_v58 = vrot.slane %v5669_v29, 4  ;;  %v10723_v20 = vld [vmem:[#allocation3 + $0xb4] sm:$0xf0]  ;;  %8434 = vmatpush.bf16.msrb.mxu2 %v12079_v36 }
 0x365   : > { %v5927_v40 = vsel %vm12674_vm13, %v5925_v37, %v5926_v22  ;;  %v5452_v15 = vmax.f32 %v5436_v18, 0.0  ;;  %v5348_v63 = vadd.f32 %v5347_v5, %v15341_v12  ;;  %5744 = vst [vmem:[#allocation3 + $0x168] sm:$0xf] %v5670_v25  ;;  %vm17020_vm10 = vmpackc.low %vm17017_vm2, %vm17019_vm3  ;;  %v5928_v27 = vrot.slane %v5926_v22, 4 }
 0x366   : > { %v6484_v38 = vpop.f32.mrf.mxu2  ;;  %v5396_v8 = vpop.f32.mrf.mxu1  ;;  %6003 = vst [vmem:[#allocation3 + $0x164] sm:$0xf] %v5927_v40  ;;  %v10538_v25 = vor.u32 %v11975_v1, %v10537_v24  ;;  %v10721_v40 = vld [vmem:[#allocation3 + $0xa8] sm:$0xf] }
 0x367   : > { %v15582_v47 = vadd.f32 %v6533_v31, %v6484_v38  ;;  %v6535_v2 = vpop.f32.mrf.mxu3  ;;  %v5468_v11 = vpack.c.bf16 %v5452_v15, %v5452_v15  ;;  %v5397_v4 = vadd.f32 %v5396_v8, %v5348_v63  ;;  %v10722_v38 = vor.u32 %v11926_v17, %v10721_v40 }
 0x368   : > { %v5518_v35 = vld [vmem:[#allocation3 + $0x178] sm:$0xf]  ;;  %8435 = vmatpush.bf16.msrb.mxu2 %v12078_v26 }
 0x369   : > { %v5777_v43 = vld [vmem:[#allocation3 + $0x178] sm:$0xf]  ;;  %v5551_v12 = vsel %vm17015_vm15, %v5518_v35, 0  ;;  %5486 = vst [vmem:[#allocation3 + $0x184] sm:$0xf] %v5468_v11  ;;  %v5417_v6 = vadd.f32 %v5397_v4, %v15344_v32 }
 0x36a   : > { %v5810_v31 = vsel %vm17020_vm10, %v5777_v43, 0  ;;  %v5672_v9 = vrot.slane %v5551_v12, 7  ;;  %v11925_v11 = vld [vmem:[#allocation3 + $0xac] sm:$0xf]  ;;  %v17023_v43 = vld [vmem:[#allocation125_spill] sm:$0xff] }
 0x36b   : > { %v5929_v16 = vrot.slane %v5810_v31, 5  ;;  %v5437_v34 = vadd.f32 %v15359_v51, %v5417_v6  ;;  %v10726_v35 = vor.u32 %v11925_v11, %v10723_v20  ;;  %vm17024_vm8 = vnez %v17023_v43  ;;  %v12086_v31 = vld [vmem:[#allocation9 + $0x70] sm:$0xff]  ;;  %v12000_v43 = vld [vmem:[#allocation3 + $0x64] sm:$0xf] }
 0x36c   : > { %7005 = vmatmul.bf16.gmra.mxu3 %v10730_v49  ;;  %v5350_v57 = vpop.f32.mrf.mxu0  ;;  %v5673_v32 = vsel %vm12693_vm0, %v5671_v58, %v5672_v9  ;;  %v17026_v49 = vld [vmem:[#allocation124_spill] sm:$0xff]  ;;  %v5674_v6 = vrot.slane %v5672_v9, 4 }
 0x36d   : > { %v5930_v29 = vsel %vm12674_vm13, %v5928_v27, %v5929_v16  ;;  %v5453_v37 = vmax.f32 %v5437_v34, 0.0  ;;  %v5351_v22 = vadd.f32 %v5350_v57, %v15346_v60  ;;  %5745 = vst [vmem:[#allocation3 + $0x174] sm:$0xf] %v5673_v32  ;;  %v17021_v60 = vld [vmem:[#allocation126_spill] sm:$0xff]  ;;  %vm17027_vm15 = vnez %v17026_v49  ;;  %8484 = vmatpush.bf16.msrb.mxu3 %v12086_v31  ;;  %v11021_v20 = vld [vmem:[#allocation3 + $0xf0] sm:$0xf] }
 0x36e   : > { %v6486_v18 = vpop.f32.mrf.mxu2  ;;  %v5399_v5 = vpop.f32.mrf.mxu1  ;;  %6004 = vst [vmem:[#allocation3 + $0x170] sm:$0xf] %v5930_v29  ;;  %vm17022_vm7 = vnez %v17021_v60  ;;  %v5931_v58 = vrot.slane %v5929_v16, 4  ;;  %v12097_v16 = vld [vmem:[#allocation3 + $0xf8] sm:$0xf0] }
 0x36f   : > { %v15601_v15 = vadd.f32 %v6535_v2, %v6486_v18  ;;  %v6538_v63 = vpop.f32.mrf.mxu3  ;;  %v5469_v8 = vpack.c.bf16 %v5453_v37, %v5453_v37  ;;  %v5400_v44 = vadd.f32 %v5399_v5, %v5351_v22  ;;  %6586 = vmatmul.bf16.gmra.mxu0 %v10538_v25  ;;  %vm17025_vm9 = vmpackc.low %vm17022_vm7, %vm17024_vm8  ;;  %v17028_v2 = vld [vmem:[#allocation123_spill] sm:$0xff]  ;;  %v12142_v37 = vld [vmem:[#allocation9 + $0x170] sm:$0xff]  ;;  %v11022_v40 = vor.u32 %v12097_v16, %v11021_v20 }
 0x370   : > { %v5519_v4 = vld [vmem:[#allocation3 + $0x184] sm:$0xf]  ;;  %6907 = vmatmul.bf16.gmra.mxu1 %v10722_v38  ;;  %vm17029_vm2 = vnez %v17028_v2  ;;  %v17031_v18 = vld [vmem:[#allocation128_spill] sm:$0xff]  ;;  %v17033_v22 = vld [vmem:[#allocation127_spill] sm:$0xff] }
 0x371   : > { %v5778_v41 = vld [vmem:[#allocation3 + $0x184] sm:$0xf]  ;;  %v5552_v1 = vsel %vm17025_vm9, %v5519_v4, 0  ;;  %vm17030_vm3 = vmpackc.low %vm17027_vm15, %vm17029_vm2  ;;  %5487 = vst [vmem:[#allocation3 + $0x190] sm:$0xf] %v5469_v8  ;;  %v5418_v62 = vadd.f32 %v5400_v44, %v15349_v53  ;;  %6956 = vmatmul.bf16.gmra.mxu2 %v10726_v35  ;;  %vm17032_vm10 = vnez %v17031_v18  ;;  %vm17034_vm7 = vnez %v17033_v22  ;;  %v12134_v38 = vld [vmem:[#allocation9 + $0x130] sm:$0xff]  ;;  %8114 = vmatpush.bf16.msrb.mxu1 %v12142_v37 }
 0x372   : > { %v5811_v59 = vsel %vm17030_vm3, %v5778_v41, 0  ;;  %v5675_v12 = vrot.slane %v5552_v1, 7  ;;  %vm17035_vm8 = vmpackc.low %vm17032_vm10, %vm17034_vm7  ;;  %vm17036_vm9 = vnez %v16712_v33  ;;  %vm17037_vm15 = vnez %v16710_v52  ;;  %v12001_v44 = vld [vmem:[#allocation3 + $0x68] sm:$0xf0]  ;;  %v12277_v41 = vld [vmem:[%s15951_s3] ss:$0 sm:$0xff]  ;;  %8065 = vmatpush.bf16.msrb.mxu0 %v12134_v38 }
 0x373   : > { %v5932_v0 = vrot.slane %v5811_v59, 5  ;;  %v5438_v36 = vadd.f32 %v15359_v51, %v5418_v62  ;;  %vm17038_vm2 = vmpackc.low %vm17036_vm9, %vm17037_vm15  ;;  %v10831_v35 = vld [vmem:[#allocation3 + $0x6c] sm:$0xf0]  ;;  %v10829_v60 = vld [vmem:[#allocation3 + $0x60] sm:$0xf] }
 0x374   : > { %v5352_v21 = vpop.f32.mrf.mxu0  ;;  %v5676_v48 = vsel %vm12693_vm0, %v5674_v6, %v5675_v12  ;;  %v5677_v11 = vrot.slane %v5675_v12, 4  ;;  %v10830_v12 = vor.u32 %v12001_v44, %v10829_v60  ;;  %v10834_v31 = vor.u32 %v12000_v43, %v10831_v35  ;;  %vm17040_vm3 = vmpackc.low %vm14815_vm12, %vm14809_vm5  ;;  %v12085_v20 = vld [vmem:[#allocation9 + $0x68] sm:$0xff]  ;;  %v5782_v37 = vld [vmem:[#allocation3 + $0x1b4] sm:$0x1] }
 0x375   : > { %v5933_v27 = vsel %vm12674_vm13, %v5931_v58, %v5932_v0  ;;  %v5454_v34 = vmax.f32 %v5438_v36, 0.0  ;;  %v5353_v17 = vadd.f32 %v5352_v21, %v15351_v14  ;;  %5746 = vst [vmem:[#allocation3 + $0x180] sm:$0xf] %v5676_v48  ;;  %v5934_v4 = vrot.slane %v5932_v0, 4  ;;  %v12002_v0 = vld [vmem:[#allocation3 + $0x70] sm:$0xf0]  ;;  %8485 = vmatpush.bf16.msrb.mxu3 %v12085_v20  ;;  %vm17055_vm15 = vmpackc.low %vm14881_vm14, %vm14876_vm6 }
 0x376   : > { %v6489_v53 = vpop.f32.mrf.mxu2  ;;  %v5401_v3 = vpop.f32.mrf.mxu1  ;;  %6005 = vst [vmem:[#allocation3 + $0x17c] sm:$0xf] %v5933_v27  ;;  %v10837_v21 = vld [vmem:[#allocation3 + $0x68] sm:$0xf]  ;;  %v12100_v44 = vld [vmem:[#allocation3 + $0x110] sm:$0xf0] }
 0x377   : > { %v15620_v57 = vadd.f32 %v6538_v63, %v6489_v53  ;;  %v6540_v9 = vpop.f32.mrf.mxu3  ;;  %v5470_v51 = vpack.c.bf16 %v5454_v34, %v5454_v34  ;;  %v5402_v24 = vadd.f32 %v5401_v3, %v5353_v17  ;;  %v10838_v34 = vor.u32 %v12002_v0, %v10837_v21  ;;  %v17041_v17 = vld [vmem:[#allocation130_spill] sm:$0xff]  ;;  %v17043_v3 = vld [vmem:[#allocation129_spill] sm:$0xff]  ;;  %v12141_v60 = vld [vmem:[#allocation9 + $0x168] sm:$0xff] }
 0x378   : > { %v5520_v32 = vld [vmem:[#allocation3 + $0x190] sm:$0xf]  ;;  %vm17042_vm10 = vnez %v17041_v17  ;;  %vm17044_vm7 = vnez %v17043_v3  ;;  %8115 = vmatpush.bf16.msrb.mxu1 %v12141_v60  ;;  %v10843_v21 = vld [vmem:[#allocation3 + $0x84] sm:$0xf0]  ;;  %v12003_v20 = vld [vmem:[#allocation3 + $0x7c] sm:$0xf] }
 0x379   : > { %v5779_v29 = vld [vmem:[#allocation3 + $0x190] sm:$0xf]  ;;  %v5553_v5 = vsel %vm17035_vm8, %v5520_v32, 0  ;;  %5488 = vst [vmem:[#allocation3 + $0x19c] sm:$0xf] %v5470_v51  ;;  %v5419_v25 = vadd.f32 %v5402_v24, %v15354_v19  ;;  %vm17045_vm8 = vmpackc.low %vm17042_vm10, %vm17044_vm7  ;;  %v12077_v24 = vld [vmem:[#allocation9 + $0x28] sm:$0xff] }
 0x37a   : > { %v5812_v14 = vsel %vm17038_vm2, %v5779_v29, 0  ;;  %v5678_v63 = vrot.slane %v5553_v5, 7  ;;  %8436 = vmatpush.bf16.msrb.mxu2 %v12077_v24  ;;  %v17050_v43 = vld [vmem:[#allocation132_spill] sm:$0xff]  ;;  %v12007_v60 = vld [vmem:[#allocation3 + $0x98] sm:$0xf0] }
 0x37b   : > { %v5935_v8 = vrot.slane %v5812_v14, 5  ;;  %v5439_v33 = vadd.f32 %v12277_v41, %v5419_v25  ;;  %v11033_v41 = vld [vmem:[#allocation3 + $0x108] sm:$0xf]  ;;  %vm17051_vm5 = vnez %v17050_v43 }
 0x37c   : > { %8023 = vmatmul.bf16.vlgmr.msra.gmra.mxu3 %v11022_v40  ;;  %v6552_v52 = vpop.f32.mrf.mxu0  ;;  %v5679_v19 = vsel %vm12693_vm0, %v5677_v11, %v5678_v63  ;;  %v5680_v32 = vrot.slane %v5678_v63, 4  ;;  %v5815_v11 = vsel %vm2064_vm11, %v5782_v37, 0 }
 0x37d   : > { %v5936_v1 = vsel %vm12674_vm13, %v5934_v4, %v5935_v8  ;;  %v5455_v49 = vmax.f32 %v5439_v33, 0.0  ;;  %v6553_v59 = vadd.f32 %v6552_v52, %v15364_v39  ;;  %5747 = vst [vmem:[#allocation3 + $0x18c] sm:$0xf] %v5679_v19  ;;  %v5937_v29 = vrot.slane %v5935_v8, 4  ;;  %v12103_v8 = vld [vmem:[#allocation3 + $0x128] sm:$0xf0] }
 0x37e   : > { %v6491_v2 = vpop.f32.mrf.mxu2  ;;  %v6873_v62 = vpop.f32.mrf.mxu1  ;;  %6006 = vst [vmem:[#allocation3 + $0x188] sm:$0xf] %v5936_v1 }
 0x37f   : > { %v15641_v26 = vadd.f32 %v6540_v9, %v6491_v2  ;;  %v6971_v6 = vpop.f32.mrf.mxu3  ;;  %v5471_v58 = vpack.c.bf16 %v5455_v49, %v5455_v49  ;;  %v6874_v36 = vadd.f32 %v6873_v62, %v6553_v59  ;;  %7374 = vmatmul.bf16.vlgmr.msra.gmra.mxu0 %v10830_v12  ;;  %v11034_v59 = vor.u32 %v12100_v44, %v11033_v41  ;;  %v12133_v62 = vld [vmem:[#allocation9 + $0x128] sm:$0xff]  ;;  %v12140_v41 = vld [vmem:[#allocation9 + $0x160] sm:$0xff] }
 0x380   : > { %v5521_v48 = vld [vmem:[#allocation3 + $0x19c] sm:$0xf]  ;;  %7423 = vmatmul.bf16.vlgmr.msra.gmra.mxu1 %v10834_v31  ;;  %v5944_v12 = vrot.slane %v5815_v11, 5  ;;  %8066 = vmatpush.bf16.msrb.mxu0 %v12133_v62  ;;  %v12008_v62 = vld [vmem:[#allocation3 + $0xa0] sm:$0xf0] }
 0x381   : > { %v5780_v27 = vld [vmem:[#allocation3 + $0x19c] sm:$0xf]  ;;  %v5554_v53 = vsel %vm17040_vm3, %v5521_v48, 0  ;;  %5489 = vst [vmem:[#allocation3 + $0x1a8] sm:$0xf] %v5471_v58  ;;  %7472 = vmatmul.bf16.vlgmr.msra.gmra.mxu2 %v10838_v34  ;;  %8116 = vmatpush.bf16.msrb.mxu1 %v12140_v41 }
 0x382   : > { %v5813_v9 = vsel %vm17045_vm8, %v5780_v27, 0  ;;  %v5681_v16 = vrot.slane %v5554_v53, 7  ;;  %v10841_v27 = vld [vmem:[#allocation3 + $0x78] sm:$0xf] }
 0x383   : > { %v5938_v51 = vrot.slane %v5813_v9, 5 }
 0x384   : > { %v6554_v30 = vpop.f32.mrf.mxu0  ;;  %v5682_v18 = vsel %vm12693_vm0, %v5680_v32, %v5681_v16  ;;  %v5683_v58 = vrot.slane %v5681_v16, 4  ;;  %v12005_v16 = vld [vmem:[#allocation3 + $0x88] sm:$0xf0]  ;;  %v10846_v32 = vor.u32 %v12003_v20, %v10843_v21 }
 0x385   : > { %v5939_v22 = vsel %vm12674_vm13, %v5937_v29, %v5938_v51  ;;  %v6555_v14 = vadd.f32 %v6554_v30, %v15369_v54  ;;  %5748 = vst [vmem:[#allocation3 + $0x198] sm:$0xf] %v5682_v18  ;;  %v17048_v54 = vld [vmem:[#allocation133_spill] sm:$0xff]  ;;  %v10849_v30 = vld [vmem:[#allocation3 + $0x80] sm:$0xf] }
 0x386   : > { %v6922_v5 = vpop.f32.mrf.mxu2  ;;  %v6875_v25 = vpop.f32.mrf.mxu1  ;;  %6007 = vst [vmem:[#allocation3 + $0x194] sm:$0xf] %v5939_v22  ;;  %vm17049_vm12 = vnez %v17048_v54  ;;  %v12076_v22 = vld [vmem:[#allocation9 + $0x20] sm:$0xff] }
 0x387   : > { %v6923_v40 = vadd.f32 %v6922_v5, %v6874_v36  ;;  %v6973_v38 = vpop.f32.mrf.mxu3  ;;  %v6876_v4 = vadd.f32 %v6875_v25, %v6555_v14  ;;  %vm17052_vm9 = vmpackc.low %vm17049_vm12, %vm17051_vm5  ;;  %v5940_v36 = vrot.slane %v5938_v51, 4  ;;  %v12084_v5 = vld [vmem:[#allocation9 + $0x60] sm:$0xff]  ;;  %8437 = vmatpush.bf16.msrb.mxu2 %v12076_v22 }
 0x388   : > { %v5522_v33 = vld [vmem:[#allocation3 + $0x1a8] sm:$0x7]  ;;  %8486 = vmatpush.bf16.msrb.mxu3 %v12084_v5  ;;  %v10855_v54 = vld [vmem:[#allocation3 + $0x9c] sm:$0xf0] }
 0x389   : > { %v5781_v35 = vld [vmem:[#allocation3 + $0x1a8] sm:$0xf]  ;;  %v15663_v52 = vadd.f32 %v6971_v6, %v6923_v40  ;;  %v5555_v19 = vsel %vm17052_vm9, %v5522_v33, 0  ;;  %v12004_v6 = vld [vmem:[#allocation3 + $0x80] sm:$0xf0] }
 0x38a   : > { %v5814_v2 = vsel %vm17055_vm15, %v5781_v35, 0  ;;  %v5684_v0 = vrot.slane %v5555_v19, 7  ;;  %v10842_v24 = vor.u32 %v12004_v6, %v10841_v27  ;;  %v12132_v33 = vld [vmem:[#allocation9 + $0x120] sm:$0xff]  ;;  %v10853_v19 = vld [vmem:[#allocation3 + $0x90] sm:$0xf]  ;;  %v12083_v27 = vld [vmem:[#allocation9 + $0x58] sm:$0xff] }
 0x38b   : > { %v5941_v31 = vrot.slane %v5814_v2, 5  ;;  %8067 = vmatpush.bf16.msrb.mxu0 %v12132_v33  ;;  %v10854_v2 = vor.u32 %v12007_v60, %v10853_v19  ;;  %v12074_v33 = vld [vmem:[#allocation9 + $0x10] sm:$0xff] }
 0x38c   : > { %8028 = vmatmul.bf16.gmra.mxu3 %v11034_v59  ;;  %v6557_v48 = vpop.f32.mrf.mxu0  ;;  %v5685_v34 = vsel %vm12693_vm0, %v5683_v58, %v5684_v0  ;;  %v12006_v59 = vld [vmem:[#allocation3 + $0x94] sm:$0xf]  ;;  %v10861_v58 = vld [vmem:[#allocation3 + $0x98] sm:$0xf] }
 0x38d   : > { %v5942_v39 = vsel %vm12674_vm13, %v5940_v36, %v5941_v31  ;;  %v5943_v53 = vrot.slane %v5941_v31, 4  ;;  %v6558_v3 = vadd.f32 %v6557_v48, %v15392_v28  ;;  %5749 = vst [vmem:[#allocation3 + $0x1a4] sm:$0xf] %v5685_v34  ;;  %v10850_v28 = vor.u32 %v12005_v16, %v10849_v30  ;;  %v12075_v48 = vld [vmem:[#allocation9 + $0x18] sm:$0xff]  ;;  %8487 = vmatpush.bf16.msrb.mxu3 %v12083_v27 }
 0x38e   : > { %v6924_v17 = vpop.f32.mrf.mxu2  ;;  %v6878_v9 = vpop.f32.mrf.mxu1  ;;  %6008 = vst [vmem:[#allocation3 + $0x1a0] sm:$0xf] %v5942_v39  ;;  %v10858_v0 = vor.u32 %v12006_v59, %v10855_v54  ;;  %v10862_v21 = vor.u32 %v12008_v62, %v10861_v58  ;;  %8438 = vmatpush.bf16.msrb.mxu2 %v12075_v48  ;;  %v11057_v16 = vld [vmem:[#allocation3 + $0x138] sm:$0xf]  ;;  %v11069_v59 = vld [vmem:[#allocation3 + $0x150] sm:$0xf] }
 0x38f   : > { %v6925_v51 = vadd.f32 %v6924_v17, %v6876_v4  ;;  %v6976_v29 = vpop.f32.mrf.mxu3  ;;  %v5945_v37 = vsel %vm12674_vm13, %v5943_v53, %v5944_v12  ;;  %v6879_v56 = vadd.f32 %v6878_v9, %v6558_v3  ;;  %7379 = vmatmul.bf16.gmra.mxu0 %v10842_v24  ;;  %v12106_v9 = vld [vmem:[#allocation3 + $0x140] sm:$0xf0]  ;;  %v12138_v62 = vld [vmem:[#allocation9 + $0x150] sm:$0xff] }
 0x390   : > { %6009 = vst [vmem:[#allocation3 + $0x1ac] sm:$0xf] %v5945_v37  ;;  %7428 = vmatmul.bf16.gmra.mxu1 %v10846_v32  ;;  %v12131_v32 = vld [vmem:[#allocation9 + $0x118] sm:$0xff]  ;;  %v12010_v37 = vld [vmem:[#allocation3 + $0xb0] sm:$0xf0] }
 0x391   : > { %v15682_v18 = vadd.f32 %v6973_v38, %v6925_v51  ;;  %7477 = vmatmul.bf16.gmra.mxu2 %v10850_v28  ;;  %v11045_v38 = vld [vmem:[#allocation3 + $0x120] sm:$0xf]  ;;  %v12139_v51 = vld [vmem:[#allocation9 + $0x158] sm:$0xff]  ;;  %8068 = vmatpush.bf16.msrb.mxu0 %v12131_v32  ;;  %v10865_v28 = vld [vmem:[#allocation3 + $0xa8] sm:$0xf] }
 0x392   : > { %v11046_v35 = vor.u32 %v12103_v8, %v11045_v38  ;;  %8117 = vmatpush.bf16.msrb.mxu1 %v12139_v51  ;;  %8439 = vmatpush.bf16.msrb.mxu2 %v12074_v33  ;;  %v12073_v32 = vld [vmem:[#allocation9 + $0x8] sm:$0xff] }
 0x394   : > { %v6559_v14 = vpop.f32.mrf.mxu0 }
 0x395   : > { %v6560_v40 = vadd.f32 %v6559_v14, %v15411_v23  ;;  %v10866_v14 = vor.u32 %v12010_v37, %v10865_v28 }
 0x396   : > { %v6927_v25 = vpop.f32.mrf.mxu2  ;;  %v6880_v46 = vpop.f32.mrf.mxu1  ;;  %8118 = vmatpush.bf16.msrb.mxu1 %v12138_v62  ;;  %8440 = vmatpush.bf16.msrb.mxu2 %v12073_v32 }
 0x397   : > { %v6928_v44 = vadd.f32 %v6927_v25, %v6879_v56  ;;  %v6978_v63 = vpop.f32.mrf.mxu3  ;;  %v6881_v11 = vadd.f32 %v6880_v46, %v6560_v40  ;;  %v10867_v56 = vld [vmem:[#allocation3 + $0xb4] sm:$0xf0]  ;;  %v12009_v25 = vld [vmem:[#allocation3 + $0xac] sm:$0xf]  ;;  %v12011_v40 = vld [vmem:[#allocation3 + $0xb8] sm:$0xf0] }
 0x399   : > { %v15685_v4 = vadd.f32 %v6976_v29, %v6928_v44  ;;  %v11058_v29 = vor.u32 %v12106_v9, %v11057_v16  ;;  %v10870_v44 = vor.u32 %v12009_v25, %v10867_v56  ;;  %v11081_v25 = vld [vmem:[#allocation3 + $0x168] sm:$0xf] }
 0x39c   : > { %8033 = vmatmul.bf16.gmra.mxu3 %v11046_v35  ;;  %v6562_v43 = vpop.f32.mrf.mxu0  ;;  %v12082_v35 = vld [vmem:[#allocation9 + $0x50] sm:$0xff] }
 0x39d   : > { %v6563_v23 = vadd.f32 %v6562_v43, %v15430_v42  ;;  %8488 = vmatpush.bf16.msrb.mxu3 %v12082_v35 }
 0x39e   : > { %v6929_v1 = vpop.f32.mrf.mxu2  ;;  %v6883_v49 = vpop.f32.mrf.mxu1 }
 0x39f   : > { %v6930_v12 = vadd.f32 %v6929_v1, %v6881_v11  ;;  %v6981_v31 = vpop.f32.mrf.mxu3  ;;  %v6884_v6 = vadd.f32 %v6883_v49, %v6563_v23  ;;  %7384 = vmatmul.bf16.gmra.mxu0 %v10854_v2  ;;  %v10873_v11 = vld [vmem:[#allocation3 + $0xb0] sm:$0xf]  ;;  %v12109_v23 = vld [vmem:[#allocation3 + $0x158] sm:$0xf0] }
 0x3a0   : > { %7433 = vmatmul.bf16.gmra.mxu1 %v10858_v0  ;;  %v10874_v41 = vor.u32 %v12011_v40, %v10873_v11  ;;  %v11070_v0 = vor.u32 %v12109_v23, %v11069_v59  ;;  %v12137_v40 = vld [vmem:[#allocation9 + $0x148] sm:$0xff] }
 0x3a1   : > { %v15688_v36 = vadd.f32 %v6978_v63, %v6930_v12  ;;  %7482 = vmatmul.bf16.gmra.mxu2 %v10862_v21  ;;  %v12130_v12 = vld [vmem:[#allocation9 + $0x110] sm:$0xff]  ;;  %v10877_v21 = vld [vmem:[#allocation3 + $0xc0] sm:$0xf]  ;;  %8119 = vmatpush.bf16.msrb.mxu1 %v12137_v40 }
 0x3a2   : > { %8069 = vmatpush.bf16.msrb.mxu0 %v12130_v12  ;;  %v12072_v12 = vld [vmem:[#allocation9] sm:$0xff] }
 0x3a3   : > { %8441 = vmatpush.bf16.msrb.mxu2 %v12072_v12 }
 0x3a4   : > { %v6564_v34 = vpop.f32.mrf.mxu0 }
 0x3a5   : > { %v6565_v39 = vadd.f32 %v6564_v34, %v15449_v61 }
 0x3a6   : > { %v6932_v42 = vpop.f32.mrf.mxu2  ;;  %v6885_v53 = vpop.f32.mrf.mxu1 }
 0x3a7   : > { %v6933_v17 = vadd.f32 %v6932_v42, %v6884_v6  ;;  %v6983_v3 = vpop.f32.mrf.mxu3  ;;  %v6886_v24 = vadd.f32 %v6885_v53, %v6565_v39  ;;  %v10879_v6 = vld [vmem:[#allocation3 + $0xcc] sm:$0xf0]  ;;  %v12012_v42 = vld [vmem:[#allocation3 + $0xc4] sm:$0xf]  ;;  %v12014_v39 = vld [vmem:[#allocation3 + $0xd0] sm:$0xf0] }
 0x3a9   : > { %v15691_v20 = vadd.f32 %v6981_v31, %v6933_v17  ;;  %v12013_v31 = vld [vmem:[#allocation3 + $0xc8] sm:$0xf0]  ;;  %v10882_v17 = vor.u32 %v12012_v42, %v10879_v6  ;;  %v11093_v42 = vld [vmem:[#allocation3 + $0x180] sm:$0xf] }
 0x3aa   : > { %v10878_v34 = vor.u32 %v12013_v31, %v10877_v21 }
 0x3ac   : > { %8038 = vmatmul.bf16.gmra.mxu3 %v11058_v29  ;;  %v6567_v30 = vpop.f32.mrf.mxu0  ;;  %v12081_v29 = vld [vmem:[#allocation9 + $0x48] sm:$0xff] }
 0x3ad   : > { %v6568_v61 = vadd.f32 %v6567_v30, %v15468_v45  ;;  %8489 = vmatpush.bf16.msrb.mxu3 %v12081_v29 }
 0x3ae   : > { %v6934_v22 = vpop.f32.mrf.mxu2  ;;  %v6888_v5 = vpop.f32.mrf.mxu1 }
 0x3af   : > { %v6935_v46 = vadd.f32 %v6934_v22, %v6886_v24  ;;  %v6986_v63 = vpop.f32.mrf.mxu3  ;;  %v6889_v8 = vadd.f32 %v6888_v5, %v6568_v61  ;;  %7389 = vmatmul.bf16.gmra.mxu0 %v10866_v14  ;;  %v10885_v24 = vld [vmem:[#allocation3 + $0xc8] sm:$0xf]  ;;  %v12112_v61 = vld [vmem:[#allocation3 + $0x170] sm:$0xf0] }
 0x3b0   : > { %7438 = vmatmul.bf16.gmra.mxu1 %v10870_v44  ;;  %v10886_v51 = vor.u32 %v12014_v39, %v10885_v24  ;;  %v11082_v44 = vor.u32 %v12112_v61, %v11081_v25  ;;  %v12136_v39 = vld [vmem:[#allocation9 + $0x140] sm:$0xff] }
 0x3b1   : > { %v15694_v38 = vadd.f32 %v6983_v3, %v6935_v46  ;;  %7487 = vmatmul.bf16.gmra.mxu2 %v10874_v41  ;;  %v12129_v46 = vld [vmem:[#allocation9 + $0x108] sm:$0xff]  ;;  %v10889_v41 = vld [vmem:[#allocation3 + $0xd8] sm:$0xf]  ;;  %8120 = vmatpush.bf16.msrb.mxu1 %v12136_v39 }
 0x3b2   : > { %8070 = vmatpush.bf16.msrb.mxu0 %v12129_v46  ;;  %v12183_v46 = vld [vmem:[#allocation9 + $0x1f8] sm:$0xff] }
 0x3b3   : > { %8984 = vmatpush.bf16.msra.mxu2 %v12183_v46  ;;  %v11029_v46 = vld [vmem:[#allocation3 + $0xf8] sm:$0xf] }
 0x3b4   : > { %v6569_v60 = vpop.f32.mrf.mxu0 }
 0x3b5   : > { %v6570_v54 = vadd.f32 %v6569_v60, %v15487_v13 }
 0x3b6   : > { %v6937_v45 = vpop.f32.mrf.mxu2  ;;  %v6890_v43 = vpop.f32.mrf.mxu1 }
 0x3b7   : > { %v6938_v19 = vadd.f32 %v6937_v45, %v6889_v8  ;;  %v6988_v1 = vpop.f32.mrf.mxu3  ;;  %v6891_v49 = vadd.f32 %v6890_v43, %v6570_v54  ;;  %v10891_v8 = vld [vmem:[#allocation3 + $0xe4] sm:$0xf0]  ;;  %v12015_v45 = vld [vmem:[#allocation3 + $0xdc] sm:$0xf]  ;;  %v12017_v54 = vld [vmem:[#allocation3 + $0xe8] sm:$0xf0] }
 0x3b9   : > { %v15697_v2 = vadd.f32 %v6986_v63, %v6938_v19  ;;  %v12016_v63 = vld [vmem:[#allocation3 + $0xe0] sm:$0xf0]  ;;  %v10894_v19 = vor.u32 %v12015_v45, %v10891_v8  ;;  %v11105_v45 = vld [vmem:[#allocation3 + $0x198] sm:$0xf] }
 0x3ba   : > { %v10890_v60 = vor.u32 %v12016_v63, %v10889_v41 }
 0x3bc   : > { %8043 = vmatmul.bf16.gmra.mxu3 %v11070_v0  ;;  %v6572_v58 = vpop.f32.mrf.mxu0  ;;  %v12080_v0 = vld [vmem:[#allocation9 + $0x40] sm:$0xff] }
 0x3bd   : > { %v6573_v13 = vadd.f32 %v6572_v58, %v15506_v7  ;;  %8490 = vmatpush.bf16.msrb.mxu3 %v12080_v0 }
 0x3be   : > { %v6939_v48 = vpop.f32.mrf.mxu2  ;;  %v6893_v27 = vpop.f32.mrf.mxu1 }
 0x3bf   : > { %v6940_v53 = vadd.f32 %v6939_v48, %v6891_v49  ;;  %v6991_v3 = vpop.f32.mrf.mxu3  ;;  %v6894_v9 = vadd.f32 %v6893_v27, %v6573_v13  ;;  %7394 = vmatmul.bf16.gmra.mxu0 %v10878_v34  ;;  %v10897_v49 = vld [vmem:[#allocation3 + $0xe0] sm:$0xf]  ;;  %v12115_v13 = vld [vmem:[#allocation3 + $0x188] sm:$0xf0] }
 0x3c0   : > { %7443 = vmatmul.bf16.gmra.mxu1 %v10882_v17  ;;  %v10898_v62 = vor.u32 %v12017_v54, %v10897_v49  ;;  %v11094_v17 = vor.u32 %v12115_v13, %v11093_v42 }
 0x3c1   : > { %v15700_v16 = vadd.f32 %v6988_v1, %v6940_v53  ;;  %7492 = vmatmul.bf16.gmra.mxu2 %v10886_v51  ;;  %v12128_v53 = vld [vmem:[#allocation9 + $0x100] sm:$0xff]  ;;  %v10901_v51 = vld [vmem:[#allocation3 + $0xf0] sm:$0xf] }
 0x3c2   : > { %8071 = vmatpush.bf16.msrb.mxu0 %v12128_v53 }
 0x3c4   : > { %v6574_v37 = vpop.f32.mrf.mxu0 }
 0x3c5   : > { %v6575_v56 = vadd.f32 %v6574_v37, %v15525_v55 }
 0x3c6   : > { %v6942_v7 = vpop.f32.mrf.mxu2  ;;  %v6895_v30 = vpop.f32.mrf.mxu1 }
 0x3c7   : > { %v6943_v28 = vadd.f32 %v6942_v7, %v6894_v9  ;;  %v6993_v22 = vpop.f32.mrf.mxu3  ;;  %v6896_v5 = vadd.f32 %v6895_v30, %v6575_v56  ;;  %v10903_v9 = vld [vmem:[#allocation3 + $0xfc] sm:$0xf0]  ;;  %v12018_v7 = vld [vmem:[#allocation3 + $0xf4] sm:$0xf]  ;;  %v12020_v56 = vld [vmem:[#allocation3 + $0x100] sm:$0xf0] }
 0x3c9   : > { %v15703_v14 = vadd.f32 %v6991_v3, %v6943_v28  ;;  %v12019_v3 = vld [vmem:[#allocation3 + $0xf8] sm:$0xf0]  ;;  %v10906_v28 = vor.u32 %v12018_v7, %v10903_v9  ;;  %v12048_v7 = vld [vmem:[#allocation3 + $0xc4] sm:$0xf] }
 0x3ca   : > { %v10902_v37 = vor.u32 %v12019_v3, %v10901_v51  ;;  %v11215_v51 = vld [vmem:[#allocation3 + $0xcc] sm:$0xf0] }
 0x3cc   : > { %8048 = vmatmul.bf16.gmra.mxu3 %v11082_v44  ;;  %v6577_v11 = vpop.f32.mrf.mxu0  ;;  %v12191_v44 = vld [vmem:[#allocation9 + $0x238] sm:$0xff] }
 0x3cd   : > { %v6578_v55 = vadd.f32 %v6577_v11, %v15544_v50  ;;  %9033 = vmatpush.bf16.msra.mxu3 %v12191_v44  ;;  %v12049_v44 = vld [vmem:[#allocation3 + $0xc8] sm:$0xf0] }
 0x3ce   : > { %v6944_v33 = vpop.f32.mrf.mxu2  ;;  %v6898_v35 = vpop.f32.mrf.mxu1 }
 0x3cf   : > { %v6945_v43 = vadd.f32 %v6944_v33, %v6896_v5  ;;  %v6996_v1 = vpop.f32.mrf.mxu3  ;;  %v6899_v23 = vadd.f32 %v6898_v35, %v6578_v55  ;;  %7399 = vmatmul.bf16.gmra.mxu0 %v10890_v60  ;;  %v10909_v5 = vld [vmem:[#allocation3 + $0xf8] sm:$0xf]  ;;  %v12118_v55 = vld [vmem:[#allocation3 + $0x1a0] sm:$0xf0] }
 0x3d0   : > { %7448 = vmatmul.bf16.gmra.mxu1 %v10894_v19  ;;  %v10910_v40 = vor.u32 %v12020_v56, %v10909_v5  ;;  %v11106_v54 = vor.u32 %v12118_v55, %v11105_v45  ;;  %v10915_v19 = vld [vmem:[#allocation3 + $0x114] sm:$0xf0]  ;;  %v11218_v56 = vor.u32 %v12048_v7, %v11215_v51 }
 0x3d1   : > { %v15706_v59 = vadd.f32 %v6993_v22, %v6945_v43  ;;  %7497 = vmatmul.bf16.gmra.mxu2 %v10898_v62  ;;  %v12022_v43 = vld [vmem:[#allocation3 + $0x110] sm:$0xf0] }
 0x3d4   : > { %v6579_v31 = vpop.f32.mrf.mxu0 }
 0x3d5   : > { %v6580_v6 = vadd.f32 %v6579_v31, %v15563_v10  ;;  %v12023_v31 = vld [vmem:[#allocation3 + $0x118] sm:$0xf0] }
 0x3d6   : > { %v6947_v50 = vpop.f32.mrf.mxu2  ;;  %v6900_v58 = vpop.f32.mrf.mxu1 }
 0x3d7   : > { %v6948_v21 = vadd.f32 %v6947_v50, %v6899_v23  ;;  %v6998_v48 = vpop.f32.mrf.mxu3  ;;  %v6901_v27 = vadd.f32 %v6900_v58, %v6580_v6  ;;  %v10913_v23 = vld [vmem:[#allocation3 + $0x108] sm:$0xf] }
 0x3d8   : > { %v10914_v0 = vor.u32 %v12022_v43, %v10913_v23 }
 0x3d9   : > { %v15709_v34 = vadd.f32 %v6996_v1, %v6948_v21  ;;  %v12175_v21 = vld [vmem:[#allocation9 + $0x1b8] sm:$0xff] }
 0x3da   : > { %8935 = vmatpush.bf16.msra.mxu1 %v12175_v21  ;;  %v12101_v21 = vld [vmem:[#allocation3 + $0x118] sm:$0xf0] }
 0x3dc   : > { %8053 = vmatmul.bf16.gmra.mxu3 %v11094_v17  ;;  %v6582_v24 = vpop.f32.mrf.mxu0 }
 0x3dd   : > { %v6583_v10 = vadd.f32 %v6582_v24, %v15582_v47 }
 0x3de   : > { %v6949_v32 = vpop.f32.mrf.mxu2  ;;  %v6903_v29 = vpop.f32.mrf.mxu1 }
 0x3df   : > { %v6950_v30 = vadd.f32 %v6949_v32, %v6901_v27  ;;  %v7001_v22 = vpop.f32.mrf.mxu3  ;;  %v6904_v61 = vadd.f32 %v6903_v29, %v6583_v10  ;;  %7404 = vmatmul.bf16.gmra.mxu0 %v10902_v37  ;;  %v10921_v27 = vld [vmem:[#allocation3 + $0x110] sm:$0xf] }
 0x3e0   : > { %7453 = vmatmul.bf16.gmra.mxu1 %v10906_v28  ;;  %v10922_v39 = vor.u32 %v12023_v31, %v10921_v27  ;;  %v12182_v32 = vld [vmem:[#allocation9 + $0x1f0] sm:$0xff]  ;;  %v12098_v28 = vld [vmem:[#allocation3 + $0x100] sm:$0xf0]  ;;  %v12051_v31 = vld [vmem:[#allocation3 + $0xdc] sm:$0xf] }
 0x3e1   : > { %v15712_v25 = vadd.f32 %v6998_v48, %v6950_v30  ;;  %7502 = vmatmul.bf16.gmra.mxu2 %v10910_v40  ;;  %v12095_v48 = vld [vmem:[#allocation9 + $0xb8] sm:$0xff]  ;;  %v12190_v10 = vld [vmem:[#allocation9 + $0x230] sm:$0xff]  ;;  %v11023_v30 = vld [vmem:[#allocation3 + $0xfc] sm:$0xf0] }
 0x3e2   : > { %8532 = vmatpush.bf16.msra.mxu0 %v12095_v48  ;;  %8985 = vmatpush.bf16.msra.mxu2 %v12182_v32  ;;  %v12173_v32 = vld [vmem:[#allocation9 + $0x1a8] sm:$0xff] }
 0x3e3   : > { %9034 = vmatpush.bf16.msra.mxu3 %v12190_v10  ;;  %v12093_v10 = vld [vmem:[#allocation9 + $0xa8] sm:$0xff] }
 0x3e4   : > { %v6584_v63 = vpop.f32.mrf.mxu0 }
 0x3e5   : > { %v6585_v8 = vadd.f32 %v6584_v63, %v15601_v15  ;;  %v12021_v15 = vld [vmem:[#allocation3 + $0x10c] sm:$0xf] }
 0x3e6   : > { %v6952_v47 = vpop.f32.mrf.mxu2  ;;  %v6905_v11 = vpop.f32.mrf.mxu1  ;;  %v10918_v6 = vor.u32 %v12021_v15, %v10915_v19 }
 0x3e7   : > { %v6953_v41 = vadd.f32 %v6952_v47, %v6904_v61  ;;  %v7003_v33 = vpop.f32.mrf.mxu3  ;;  %v6906_v35 = vadd.f32 %v6905_v11, %v6585_v8  ;;  %v12096_v61 = vld [vmem:[#allocation3 + $0xf4] sm:$0xf]  ;;  %v11030_v47 = vor.u32 %v12098_v28, %v11029_v46 }
 0x3e8   : > { %v11026_v40 = vor.u32 %v12096_v61, %v11023_v30  ;;  %v12174_v11 = vld [vmem:[#allocation9 + $0x1b0] sm:$0xff] }
 0x3e9   : > { %v15715_v60 = vadd.f32 %v7001_v22, %v6953_v41  ;;  %v12094_v41 = vld [vmem:[#allocation9 + $0xb0] sm:$0xff]  ;;  %8936 = vmatpush.bf16.msra.mxu1 %v12174_v11 }
 0x3ea   : > { %8533 = vmatpush.bf16.msra.mxu0 %v12094_v41  ;;  %v12054_v11 = vld [vmem:[#allocation3 + $0xf4] sm:$0xf] }
 0x3ec   : > { %8058 = vmatmul.bf16.gmra.mxu3 %v11106_v54  ;;  %v6587_v1 = vpop.f32.mrf.mxu0 }
 0x3ed   : > { %v6588_v62 = vadd.f32 %v6587_v1, %v15620_v57  ;;  %v11227_v1 = vld [vmem:[#allocation3 + $0xe4] sm:$0xf0]  ;;  %8937 = vmatpush.bf16.msra.mxu1 %v12173_v32  ;;  %v11251_v32 = vld [vmem:[#allocation3 + $0x114] sm:$0xf0] }
 0x3ee   : > { %v6954_v49 = vpop.f32.mrf.mxu2  ;;  %v6908_v12 = vpop.f32.mrf.mxu1  ;;  %8534 = vmatpush.bf16.msra.mxu0 %v12093_v10  ;;  %v12179_v10 = vld [vmem:[#allocation9 + $0x1d8] sm:$0xff] }
 0x3ef   : > { %v6955_v50 = vadd.f32 %v6954_v49, %v6906_v35  ;;  %v7006_v58 = vpop.f32.mrf.mxu3  ;;  %v6909_v13 = vadd.f32 %v6908_v12, %v6588_v62  ;;  %7409 = vmatmul.bf16.gmra.mxu0 %v10914_v0  ;;  %v15730_v49 = vld [vmem:[%s15952_s4] ss:$0 sm:$0xff]  ;;  %v12181_v12 = vld [vmem:[#allocation9 + $0x1e8] sm:$0xff] }
 0x3f0   : > { %7458 = vmatmul.bf16.gmra.mxu1 %v10918_v6  ;;  %v12189_v0 = vld [vmem:[#allocation9 + $0x228] sm:$0xff]  ;;  %8986 = vmatpush.bf16.msra.mxu2 %v12181_v12 }
 0x3f1   : > { %v15718_v42 = vadd.f32 %v7003_v33, %v6955_v50  ;;  %7507 = vmatmul.bf16.gmra.mxu2 %v10922_v39  ;;  %v11213_v33 = vld [vmem:[#allocation3 + $0xc0] sm:$0xf]  ;;  %9035 = vmatpush.bf16.msra.mxu3 %v12189_v0  ;;  %v11230_v50 = vor.u32 %v12051_v31, %v11227_v1  ;;  %v12099_v39 = vld [vmem:[#allocation3 + $0x10c] sm:$0xf]  ;;  %v12102_v1 = vld [vmem:[#allocation3 + $0x124] sm:$0xf] }
 0x3f2   : > { %v11214_v35 = vor.u32 %v12049_v44, %v11213_v33  ;;  %v11239_v44 = vld [vmem:[#allocation3 + $0xfc] sm:$0xf0]  ;;  %v12055_v31 = vld [vmem:[#allocation3 + $0xf8] sm:$0xf0] }
 0x3f3   : > { %v11242_v41 = vor.u32 %v12054_v11, %v11239_v44  ;;  %v12058_v11 = vld [vmem:[#allocation3 + $0x110] sm:$0xf0] }
 0x3f4   : > { %v6589_v57 = vpop.f32.mrf.mxu0 }
 0x3f5   : > { %v6590_v17 = vadd.f32 %v6589_v57, %v15641_v26 }
 0x3f6   : > { %v6957_v53 = vpop.f32.mrf.mxu2  ;;  %v6910_v3 = vpop.f32.mrf.mxu1 }
 0x3f7   : > { %v6958_v9 = vadd.f32 %v6957_v53, %v6909_v13  ;;  %v7008_v24 = vpop.f32.mrf.mxu3  ;;  %v6911_v29 = vadd.f32 %v6910_v3, %v6590_v17  ;;  %v11041_v3 = vld [vmem:[#allocation3 + $0x110] sm:$0xf] }
 0x3f9   : > { %v15721_v37 = vadd.f32 %v7006_v58, %v6958_v9  ;;  %v11035_v58 = vld [vmem:[#allocation3 + $0x114] sm:$0xf0]  ;;  %v12052_v9 = vld [vmem:[#allocation3 + $0xe0] sm:$0xf0] }
 0x3fa   : > { %v11038_v17 = vor.u32 %v12099_v39, %v11035_v58  ;;  %v12172_v58 = vld [vmem:[#allocation9 + $0x1a0] sm:$0xff] }
 0x3fb   : > { %8938 = vmatpush.bf16.msra.mxu1 %v12172_v58  ;;  %v11263_v58 = vld [vmem:[#allocation3 + $0x12c] sm:$0xf0] }
 0x3fc   : > { %8491 = vmatmul.bf16.vlgmr.msrb.gmra.mxu3 %v11218_v56  ;;  %v7375_v22 = vpop.f32.mrf.mxu0 }
 0x3fe   : > { %v6959_v5 = vpop.f32.mrf.mxu2  ;;  %v7424_v26 = vpop.f32.mrf.mxu1 }
 0x3ff   : > { %v6960_v63 = vadd.f32 %v6959_v5, %v6911_v29  ;;  %v15723_v8 = vpop.f32.mrf.mxu3  ;;  %8072 = vmatmul.bf16.vlgmr.msrb.gmra.mxu0 %v11026_v40  ;;  %v7425_v45 = vadd.f32 %v7424_v26, %v7375_v22  ;;  %v11225_v29 = vld [vmem:[#allocation3 + $0xd8] sm:$0xf] }
 0x400   : > { %8121 = vmatmul.bf16.vlgmr.msrb.gmra.mxu1 %v11030_v47  ;;  %v11226_v56 = vor.u32 %v12052_v9, %v11225_v29  ;;  %v12188_v47 = vld [vmem:[#allocation9 + $0x220] sm:$0xff]  ;;  %v12187_v29 = vld [vmem:[#allocation9 + $0x218] sm:$0xff] }
 0x401   : > { %v15725_v55 = vadd.f32 %v7008_v24, %v6960_v63  ;;  %8442 = vmatmul.bf16.vlgmr.msrb.gmra.mxu2 %v11214_v35  ;;  %v11042_v24 = vor.u32 %v12101_v21, %v11041_v3  ;;  %v12180_v63 = vld [vmem:[#allocation9 + $0x1e0] sm:$0xff]  ;;  %9036 = vmatpush.bf16.msra.mxu3 %v12188_v47  ;;  %v11047_v35 = vld [vmem:[#allocation3 + $0x12c] sm:$0xf0] }
 0x402   : > { %8987 = vmatpush.bf16.msra.mxu2 %v12180_v63  ;;  %v11050_v0 = vor.u32 %v12102_v1, %v11047_v35  ;;  %v12092_v21 = vld [vmem:[#allocation9 + $0xa0] sm:$0xff]  ;;  %v12171_v35 = vld [vmem:[#allocation9 + $0x198] sm:$0xff] }
 0x403   : > { %8535 = vmatpush.bf16.msra.mxu0 %v12092_v21  ;;  %8939 = vmatpush.bf16.msra.mxu1 %v12171_v35  ;;  %v12178_v21 = vld [vmem:[#allocation9 + $0x1d0] sm:$0xff]  ;;  %v11275_v35 = vld [vmem:[#allocation3 + $0x144] sm:$0xf0] }
 0x404   : > { %v7377_v54 = vpop.f32.mrf.mxu0 }
 0x405   : > { %9037 = vmatpush.bf16.msra.mxu3 %v12187_v29 }
 0x406   : > { %v7473_v43 = vpop.f32.mrf.mxu2  ;;  %v7426_v19 = vpop.f32.mrf.mxu1  ;;  %8988 = vmatpush.bf16.msra.mxu2 %v12179_v10 }
 0x407   : > { %v7474_v23 = vadd.f32 %v7473_v43, %v7425_v45  ;;  %v15732_v62 = vpop.f32.mrf.mxu3  ;;  %v7427_v13 = vadd.f32 %v7426_v19, %v7377_v54  ;;  %v12104_v45 = vld [vmem:[#allocation3 + $0x130] sm:$0xf0] }
 0x409   : > { %v7513_v15 = vadd.f32 %v7474_v23, %v15663_v52 }
 0x40a   : > { %8989 = vmatpush.bf16.msra.mxu2 %v12178_v21 }
 0x40b   : > { %v7533_v6 = vadd.f32 %v15730_v49, %v7513_v15  ;;  %v11053_v15 = vld [vmem:[#allocation3 + $0x128] sm:$0xf] }
 0x40c   : > { %8496 = vmatmul.bf16.gmra.mxu3 %v11230_v50  ;;  %v7380_v27 = vpop.f32.mrf.mxu0  ;;  %v11054_v50 = vor.u32 %v12104_v45, %v11053_v15  ;;  %v12091_v45 = vld [vmem:[#allocation9 + $0x98] sm:$0xff] }
 0x40d   : > { %v7549_v48 = vmax.f32 %v7533_v6, 0.0  ;;  %8536 = vmatpush.bf16.msra.mxu0 %v12091_v45  ;;  %v12177_v45 = vld [vmem:[#allocation9 + $0x1c8] sm:$0xff] }
 0x40e   : > { %v7475_v57 = vpop.f32.mrf.mxu2  ;;  %v7429_v53 = vpop.f32.mrf.mxu1  ;;  %8990 = vmatpush.bf16.msra.mxu2 %v12177_v45 }
 0x40f   : > { %7565 = vst [vmem:[%s15737_s26] sm:$0xff] %v7549_v48  ;;  %v7476_v52 = vadd.f32 %v7475_v57, %v7427_v13  ;;  %v15740_v51 = vpop.f32.mrf.mxu3  ;;  %8077 = vmatmul.bf16.gmra.mxu0 %v11038_v17  ;;  %v7430_v22 = vadd.f32 %v7429_v53, %v7380_v27  ;;  %v11237_v48 = vld [vmem:[#allocation3 + $0xf0] sm:$0xf] }
 0x410   : > { %8126 = vmatmul.bf16.gmra.mxu1 %v11042_v24  ;;  %v11238_v27 = vor.u32 %v12055_v31, %v11237_v48  ;;  %v12186_v48 = vld [vmem:[#allocation9 + $0x210] sm:$0xff] }
 0x411   : > { %v7514_v7 = vadd.f32 %v7476_v52, %v15682_v18  ;;  %8447 = vmatmul.bf16.gmra.mxu2 %v11226_v56  ;;  %9038 = vmatpush.bf16.msra.mxu3 %v12186_v48 }
 0x413   : > { %v7534_v30 = vadd.f32 %v15730_v49, %v7514_v7  ;;  %v12057_v7 = vld [vmem:[#allocation3 + $0x10c] sm:$0xf] }
 0x414   : > { %v7382_v61 = vpop.f32.mrf.mxu0  ;;  %v11254_v56 = vor.u32 %v12057_v7, %v11251_v32  ;;  %v12061_v7 = vld [vmem:[#allocation3 + $0x128] sm:$0xf0] }
 0x415   : > { %v7550_v28 = vmax.f32 %v7534_v30, 0.0 }
 0x416   : > { %v7478_v5 = vpop.f32.mrf.mxu2  ;;  %v7431_v26 = vpop.f32.mrf.mxu1 }
 0x417   : > { %7566 = vst [vmem:[%s15737_s26 + $0x8] sm:$0xff] %v7550_v28  ;;  %v7479_v40 = vadd.f32 %v7478_v5, %v7430_v22  ;;  %v15745_v46 = vpop.f32.mrf.mxu3  ;;  %v7432_v43 = vadd.f32 %v7431_v26, %v7382_v61  ;;  %v11059_v28 = vld [vmem:[#allocation3 + $0x144] sm:$0xf0]  ;;  %v12107_v22 = vld [vmem:[#allocation3 + $0x148] sm:$0xf0] }
 0x419   : > { %v7515_v18 = vadd.f32 %v7479_v40, %v15685_v4  ;;  %v12105_v40 = vld [vmem:[#allocation3 + $0x13c] sm:$0xf] }
 0x41a   : > { %v11062_v47 = vor.u32 %v12105_v40, %v11059_v28  ;;  %v12170_v28 = vld [vmem:[#allocation9 + $0x190] sm:$0xff] }
 0x41b   : > { %v7535_v33 = vadd.f32 %v15730_v49, %v7515_v18  ;;  %v11065_v18 = vld [vmem:[#allocation3 + $0x140] sm:$0xf]  ;;  %8940 = vmatpush.bf16.msra.mxu1 %v12170_v28 }
 0x41c   : > { %8501 = vmatmul.bf16.gmra.mxu3 %v11242_v41  ;;  %v7385_v19 = vpop.f32.mrf.mxu0  ;;  %v11066_v41 = vor.u32 %v12107_v22, %v11065_v18  ;;  %v12090_v22 = vld [vmem:[#allocation9 + $0x90] sm:$0xff]  ;;  %v11287_v28 = vld [vmem:[#allocation3 + $0x15c] sm:$0xf0] }
 0x41d   : > { %v7551_v54 = vmax.f32 %v7535_v33, 0.0  ;;  %8537 = vmatpush.bf16.msra.mxu0 %v12090_v22  ;;  %v12176_v22 = vld [vmem:[#allocation9 + $0x1c0] sm:$0xff] }
 0x41e   : > { %v7480_v23 = vpop.f32.mrf.mxu2  ;;  %v7434_v12 = vpop.f32.mrf.mxu1  ;;  %8991 = vmatpush.bf16.msra.mxu2 %v12176_v22  ;;  %v11113_v22 = vld [vmem:[#allocation3 + $0x1a0] sm:$0xf] }
 0x41f   : > { %7567 = vst [vmem:[%s15737_s26 + $0x10] sm:$0xff] %v7551_v54  ;;  %v7481_v4 = vadd.f32 %v7480_v23, %v7432_v43  ;;  %v15750_v6 = vpop.f32.mrf.mxu3  ;;  %8082 = vmatmul.bf16.gmra.mxu0 %v11050_v0  ;;  %v7435_v53 = vadd.f32 %v7434_v12, %v7385_v19  ;;  %v11249_v54 = vld [vmem:[#allocation3 + $0x108] sm:$0xf] }
 0x420   : > { %8131 = vmatmul.bf16.gmra.mxu1 %v11054_v50  ;;  %v11250_v19 = vor.u32 %v12058_v11, %v11249_v54  ;;  %v12185_v54 = vld [vmem:[#allocation9 + $0x208] sm:$0xff] }
 0x421   : > { %v7516_v13 = vadd.f32 %v7481_v4, %v15688_v36  ;;  %8452 = vmatmul.bf16.gmra.mxu2 %v11238_v27  ;;  %9039 = vmatpush.bf16.msra.mxu3 %v12185_v54 }
 0x423   : > { %v7536_v39 = vadd.f32 %v15730_v49, %v7516_v13  ;;  %v12060_v13 = vld [vmem:[#allocation3 + $0x124] sm:$0xf] }
 0x424   : > { %v7387_v17 = vpop.f32.mrf.mxu0  ;;  %v11266_v27 = vor.u32 %v12060_v13, %v11263_v58  ;;  %v12064_v13 = vld [vmem:[#allocation3 + $0x140] sm:$0xf0] }
 0x425   : > { %v7552_v57 = vmax.f32 %v7536_v39, 0.0 }
 0x426   : > { %v7483_v3 = vpop.f32.mrf.mxu2  ;;  %v7436_v9 = vpop.f32.mrf.mxu1 }
 0x427   : > { %7568 = vst [vmem:[%s15737_s26 + $0x18] sm:$0xff] %v7552_v57  ;;  %v7484_v52 = vadd.f32 %v7483_v3, %v7435_v53  ;;  %v15755_v24 = vpop.f32.mrf.mxu3  ;;  %v7437_v5 = vadd.f32 %v7436_v9, %v7387_v17  ;;  %v11071_v57 = vld [vmem:[#allocation3 + $0x15c] sm:$0xf0]  ;;  %v12110_v53 = vld [vmem:[#allocation3 + $0x160] sm:$0xf0] }
 0x429   : > { %v7517_v36 = vadd.f32 %v7484_v52, %v15691_v20  ;;  %v12108_v52 = vld [vmem:[#allocation3 + $0x154] sm:$0xf] }
 0x42a   : > { %v11074_v29 = vor.u32 %v12108_v52, %v11071_v57  ;;  %v12169_v57 = vld [vmem:[#allocation9 + $0x188] sm:$0xff] }
 0x42b   : > { %v7537_v30 = vadd.f32 %v15730_v49, %v7517_v36  ;;  %v11077_v36 = vld [vmem:[#allocation3 + $0x158] sm:$0xf]  ;;  %8941 = vmatpush.bf16.msra.mxu1 %v12169_v57 }
 0x42c   : > { %8506 = vmatmul.bf16.gmra.mxu3 %v11254_v56  ;;  %v7390_v26 = vpop.f32.mrf.mxu0  ;;  %v11078_v56 = vor.u32 %v12110_v53, %v11077_v36  ;;  %v12089_v53 = vld [vmem:[#allocation9 + $0x88] sm:$0xff]  ;;  %v11299_v57 = vld [vmem:[#allocation3 + $0x174] sm:$0xf0] }
 0x42d   : > { %v7553_v61 = vmax.f32 %v7537_v30, 0.0  ;;  %8538 = vmatpush.bf16.msra.mxu0 %v12089_v53 }
 0x42e   : > { %v7485_v44 = vpop.f32.mrf.mxu2  ;;  %v7439_v63 = vpop.f32.mrf.mxu1 }
 0x42f   : > { %7569 = vst [vmem:[%s15737_s26 + $0x20] sm:$0xff] %v7553_v61  ;;  %v7486_v20 = vadd.f32 %v7485_v44, %v7437_v5  ;;  %v15760_v33 = vpop.f32.mrf.mxu3  ;;  %8087 = vmatmul.bf16.gmra.mxu0 %v11062_v47  ;;  %v7440_v12 = vadd.f32 %v7439_v63, %v7390_v26  ;;  %v11261_v61 = vld [vmem:[#allocation3 + $0x120] sm:$0xf] }
 0x430   : > { %8136 = vmatmul.bf16.gmra.mxu1 %v11066_v41  ;;  %v11262_v26 = vor.u32 %v12061_v7, %v11261_v61  ;;  %v12184_v61 = vld [vmem:[#allocation9 + $0x200] sm:$0xff] }
 0x431   : > { %v7518_v43 = vadd.f32 %v7486_v20, %v15694_v38  ;;  %8457 = vmatmul.bf16.gmra.mxu2 %v11250_v19  ;;  %9040 = vmatpush.bf16.msra.mxu3 %v12184_v61  ;;  %v12070_v61 = vld [vmem:[#allocation3 + $0x170] sm:$0xf0] }
 0x433   : > { %v7538_v1 = vadd.f32 %v15730_v49, %v7518_v43  ;;  %v12063_v43 = vld [vmem:[#allocation3 + $0x13c] sm:$0xf] }
 0x434   : > { %v7392_v0 = vpop.f32.mrf.mxu0  ;;  %v11278_v19 = vor.u32 %v12063_v43, %v11275_v35  ;;  %v12067_v43 = vld [vmem:[#allocation3 + $0x158] sm:$0xf0] }
 0x435   : > { %v7554_v23 = vmax.f32 %v7538_v1, 0.0 }
 0x436   : > { %v7488_v15 = vpop.f32.mrf.mxu2  ;;  %v7441_v31 = vpop.f32.mrf.mxu1 }
 0x437   : > { %7570 = vst [vmem:[%s15737_s26 + $0x28] sm:$0xff] %v7554_v23  ;;  %v7489_v4 = vadd.f32 %v7488_v15, %v7440_v12  ;;  %v15765_v50 = vpop.f32.mrf.mxu3  ;;  %v7442_v3 = vadd.f32 %v7441_v31, %v7392_v0  ;;  %v11083_v23 = vld [vmem:[#allocation3 + $0x174] sm:$0xf0]  ;;  %v12113_v12 = vld [vmem:[#allocation3 + $0x178] sm:$0xf0] }
 0x439   : > { %v7519_v38 = vadd.f32 %v7489_v4, %v15697_v2  ;;  %v12111_v4 = vld [vmem:[#allocation3 + $0x16c] sm:$0xf] }
 0x43a   : > { %v11086_v48 = vor.u32 %v12111_v4, %v11083_v23  ;;  %v12168_v23 = vld [vmem:[#allocation9 + $0x180] sm:$0xff] }
 0x43b   : > { %v7539_v39 = vadd.f32 %v15730_v49, %v7519_v38  ;;  %v11089_v38 = vld [vmem:[#allocation3 + $0x170] sm:$0xf]  ;;  %8942 = vmatpush.bf16.msra.mxu1 %v12168_v23  ;;  %v12050_v23 = vld [vmem:[#allocation3 + $0xd0] sm:$0xf0] }
 0x43c   : > { %8511 = vmatmul.bf16.gmra.mxu3 %v11266_v27  ;;  %v7395_v9 = vpop.f32.mrf.mxu0  ;;  %v11090_v27 = vor.u32 %v12113_v12, %v11089_v38  ;;  %v12088_v12 = vld [vmem:[#allocation9 + $0x80] sm:$0xff] }
 0x43d   : > { %v7555_v17 = vmax.f32 %v7539_v39, 0.0  ;;  %8539 = vmatpush.bf16.msra.mxu0 %v12088_v12  ;;  %v12145_v12 = vld [vmem:[#allocation3 + $0x128] sm:$0xf0] }
 0x43e   : > { %v7490_v32 = vpop.f32.mrf.mxu2  ;;  %v7444_v10 = vpop.f32.mrf.mxu1 }
 0x43f   : > { %7571 = vst [vmem:[%s15737_s26 + $0x30] sm:$0xff] %v7555_v17  ;;  %v7491_v2 = vadd.f32 %v7490_v32, %v7442_v3  ;;  %v15770_v30 = vpop.f32.mrf.mxu3  ;;  %8092 = vmatmul.bf16.gmra.mxu0 %v11074_v29  ;;  %v7445_v63 = vadd.f32 %v7444_v10, %v7395_v9  ;;  %v11273_v17 = vld [vmem:[#allocation3 + $0x138] sm:$0xf] }
 0x440   : > { %8141 = vmatmul.bf16.gmra.mxu1 %v11078_v56  ;;  %v11274_v9 = vor.u32 %v12064_v13, %v11273_v17 }
 0x441   : > { %v7520_v5 = vadd.f32 %v7491_v2, %v15700_v16  ;;  %8462 = vmatmul.bf16.gmra.mxu2 %v11262_v26 }
 0x443   : > { %v7540_v40 = vadd.f32 %v15730_v49, %v7520_v5  ;;  %v12066_v5 = vld [vmem:[#allocation3 + $0x154] sm:$0xf] }
 0x444   : > { %v7397_v47 = vpop.f32.mrf.mxu0  ;;  %v11290_v26 = vor.u32 %v12066_v5, %v11287_v28 }
 0x445   : > { %v7556_v44 = vmax.f32 %v7540_v40, 0.0 }
 0x446   : > { %v7493_v18 = vpop.f32.mrf.mxu2  ;;  %v7446_v11 = vpop.f32.mrf.mxu1 }
 0x447   : > { %7572 = vst [vmem:[%s15737_s26 + $0x38] sm:$0xff] %v7556_v44  ;;  %v7494_v20 = vadd.f32 %v7493_v18, %v7445_v63  ;;  %v15775_v41 = vpop.f32.mrf.mxu3  ;;  %v7447_v15 = vadd.f32 %v7446_v11, %v7397_v47  ;;  %v11095_v44 = vld [vmem:[#allocation3 + $0x18c] sm:$0xf0]  ;;  %v12116_v63 = vld [vmem:[#allocation3 + $0x190] sm:$0xf0] }
 0x449   : > { %v7521_v16 = vadd.f32 %v7494_v20, %v15703_v14  ;;  %v12114_v20 = vld [vmem:[#allocation3 + $0x184] sm:$0xf] }
 0x44a   : > { %v11098_v54 = vor.u32 %v12114_v20, %v11095_v44 }
 0x44b   : > { %v7541_v1 = vadd.f32 %v15730_v49, %v7521_v16  ;;  %v11101_v16 = vld [vmem:[#allocation3 + $0x188] sm:$0xf] }
 0x44c   : > { %8516 = vmatmul.bf16.gmra.mxu3 %v11278_v19  ;;  %v7400_v31 = vpop.f32.mrf.mxu0  ;;  %v11102_v19 = vor.u32 %v12116_v63, %v11101_v16  ;;  %v12146_v16 = vld [vmem:[#allocation3 + $0x130] sm:$0xf0] }
 0x44d   : > { %v7557_v0 = vmax.f32 %v7541_v1, 0.0 }
 0x44e   : > { %v7495_v58 = vpop.f32.mrf.mxu2  ;;  %v7449_v21 = vpop.f32.mrf.mxu1 }
 0x44f   : > { %7573 = vst [vmem:[%s15737_s26 + $0x40] sm:$0xff] %v7557_v0  ;;  %v7496_v14 = vadd.f32 %v7495_v58, %v7447_v15  ;;  %v15780_v39 = vpop.f32.mrf.mxu3  ;;  %8097 = vmatmul.bf16.gmra.mxu0 %v11086_v48  ;;  %v7450_v10 = vadd.f32 %v7449_v21, %v7400_v31  ;;  %v11285_v0 = vld [vmem:[#allocation3 + $0x150] sm:$0xf] }
 0x450   : > { %8146 = vmatmul.bf16.gmra.mxu1 %v11090_v27  ;;  %v11286_v31 = vor.u32 %v12067_v43, %v11285_v0 }
 0x451   : > { %v7522_v3 = vadd.f32 %v7496_v14, %v15706_v59  ;;  %8467 = vmatmul.bf16.gmra.mxu2 %v11274_v9  ;;  %v11107_v9 = vld [vmem:[#allocation3 + $0x1a4] sm:$0xf0] }
 0x453   : > { %v7542_v52 = vadd.f32 %v15730_v49, %v7522_v3 }
 0x454   : > { %v7402_v29 = vpop.f32.mrf.mxu0 }
 0x455   : > { %v7558_v32 = vmax.f32 %v7542_v52, 0.0  ;;  %v12119_v52 = vld [vmem:[#allocation3 + $0x1a8] sm:$0xf0] }
 0x456   : > { %v7498_v36 = vpop.f32.mrf.mxu2  ;;  %v7451_v7 = vpop.f32.mrf.mxu1 }
 0x457   : > { %7574 = vst [vmem:[%s15737_s26 + $0x48] sm:$0xff] %v7558_v32  ;;  %v7499_v2 = vadd.f32 %v7498_v36, %v7450_v10  ;;  %v15785_v56 = vpop.f32.mrf.mxu3  ;;  %v7452_v18 = vadd.f32 %v7451_v7, %v7402_v29  ;;  %v12117_v36 = vld [vmem:[#allocation3 + $0x19c] sm:$0xf] }
 0x458   : > { %v11110_v28 = vor.u32 %v12117_v36, %v11107_v9 }
 0x459   : > { %v7523_v59 = vadd.f32 %v7499_v2, %v15709_v34 }
 0x45b   : > { %v7543_v40 = vadd.f32 %v15730_v49, %v7523_v59  ;;  %v11114_v59 = vor.u32 %v12119_v52, %v11113_v22 }
 0x45c   : > { %8521 = vmatmul.bf16.gmra.mxu3 %v11290_v26  ;;  %v7405_v11 = vpop.f32.mrf.mxu0  ;;  %v11297_v26 = vld [vmem:[#allocation3 + $0x168] sm:$0xf] }
 0x45d   : > { %v7559_v47 = vmax.f32 %v7543_v40, 0.0  ;;  %v11298_v44 = vor.u32 %v12070_v61, %v11297_v26  ;;  %v12148_v26 = vld [vmem:[#allocation3 + $0x140] sm:$0xf0] }
 0x45e   : > { %v7500_v35 = vpop.f32.mrf.mxu2  ;;  %v7454_v45 = vpop.f32.mrf.mxu1 }
 0x45f   : > { %7575 = vst [vmem:[%s15737_s26 + $0x50] sm:$0xff] %v7559_v47  ;;  %v7501_v34 = vadd.f32 %v7500_v35, %v7452_v18  ;;  %v15790_v1 = vpop.f32.mrf.mxu3  ;;  %8102 = vmatmul.bf16.gmra.mxu0 %v11098_v54  ;;  %v7455_v21 = vadd.f32 %v7454_v45, %v7405_v11 }
 0x460   : > { %8151 = vmatmul.bf16.gmra.mxu1 %v11102_v19 }
 0x461   : > { %v7524_v15 = vadd.f32 %v7501_v34, %v15712_v25  ;;  %8472 = vmatmul.bf16.gmra.mxu2 %v11286_v31  ;;  %v12069_v25 = vld [vmem:[#allocation3 + $0x16c] sm:$0xf]  ;;  %v11413_v34 = vld [vmem:[#allocation3 + $0x128] sm:$0xf] }
 0x462   : > { %v11302_v17 = vor.u32 %v12069_v25, %v11299_v57 }
 0x463   : > { %v7544_v4 = vadd.f32 %v15730_v49, %v7524_v15 }
 0x464   : > { %v7407_v48 = vpop.f32.mrf.mxu0 }
 0x465   : > { %v7560_v58 = vmax.f32 %v7544_v4, 0.0  ;;  %v11221_v4 = vld [vmem:[#allocation3 + $0xc8] sm:$0xf] }
 0x466   : > { %v7503_v38 = vpop.f32.mrf.mxu2  ;;  %v7456_v13 = vpop.f32.mrf.mxu1 }
 0x467   : > { %7576 = vst [vmem:[%s15737_s26 + $0x58] sm:$0xff] %v7560_v58  ;;  %v7504_v14 = vadd.f32 %v7503_v38, %v7455_v21  ;;  %v15795_v27 = vpop.f32.mrf.mxu3  ;;  %v7457_v10 = vadd.f32 %v7456_v13, %v7407_v48  ;;  %v11222_v38 = vor.u32 %v12050_v23, %v11221_v4  ;;  %v11405_v13 = vld [vmem:[#allocation3 + $0x120] sm:$0xf] }
 0x468   : > { %v11406_v57 = vor.u32 %v12145_v12, %v11405_v13  ;;  %v12151_v13 = vld [vmem:[#allocation3 + $0x158] sm:$0xf0] }
 0x469   : > { %v7525_v53 = vadd.f32 %v7504_v14, %v15715_v60  ;;  %v11407_v14 = vld [vmem:[#allocation3 + $0x12c] sm:$0xf0] }
 0x46b   : > { %v7545_v3 = vadd.f32 %v15730_v49, %v7525_v53 }
 0x46c   : > { %8526 = vmatmul.bf16.gmra.mxu3 %v11302_v17  ;;  %v7410_v29 = vpop.f32.mrf.mxu0  ;;  %v12144_v17 = vld [vmem:[#allocation3 + $0x124] sm:$0xf] }
 0x46d   : > { %v7561_v32 = vmax.f32 %v7545_v3, 0.0  ;;  %v11410_v9 = vor.u32 %v12144_v17, %v11407_v14 }
 0x46e   : > { %v7505_v7 = vpop.f32.mrf.mxu2  ;;  %v7459_v2 = vpop.f32.mrf.mxu1 }
 0x46f   : > { %7577 = vst [vmem:[%s15737_s26 + $0x60] sm:$0xff] %v7561_v32  ;;  %v7506_v60 = vadd.f32 %v7505_v7, %v7457_v10  ;;  %v15800_v5 = vpop.f32.mrf.mxu3  ;;  %8107 = vmatmul.bf16.gmra.mxu0 %v11110_v28  ;;  %v7460_v18 = vadd.f32 %v7459_v2, %v7410_v29  ;;  %v12149_v28 = vld [vmem:[#allocation3 + $0x148] sm:$0xf0] }
 0x470   : > { %8156 = vmatmul.bf16.gmra.mxu1 %v11114_v59  ;;  %v12053_v59 = vld [vmem:[#allocation3 + $0xe8] sm:$0xf0] }
 0x471   : > { %v7526_v40 = vadd.f32 %v7506_v60, %v15718_v42  ;;  %8477 = vmatmul.bf16.gmra.mxu2 %v11298_v44  ;;  %v11414_v42 = vor.u32 %v12146_v16, %v11413_v34  ;;  %v11425_v60 = vld [vmem:[#allocation3 + $0x140] sm:$0xf] }
 0x473   : > { %v7546_v63 = vadd.f32 %v15730_v49, %v7526_v40  ;;  %v11233_v40 = vld [vmem:[#allocation3 + $0xe0] sm:$0xf] }
 0x474   : > { %v7412_v11 = vpop.f32.mrf.mxu0 }
 0x475   : > { %v7562_v47 = vmax.f32 %v7546_v63, 0.0 }
 0x476   : > { %v7508_v20 = vpop.f32.mrf.mxu2  ;;  %v7461_v35 = vpop.f32.mrf.mxu1 }
 0x477   : > { %7578 = vst [vmem:[%s15737_s26 + $0x68] sm:$0xff] %v7562_v47  ;;  %v7509_v45 = vadd.f32 %v7508_v20, %v7460_v18  ;;  %v15805_v54 = vpop.f32.mrf.mxu3  ;;  %v7462_v15 = vadd.f32 %v7461_v35, %v7412_v11  ;;  %v11417_v18 = vld [vmem:[#allocation3 + $0x138] sm:$0xf]  ;;  %v11419_v11 = vld [vmem:[#allocation3 + $0x144] sm:$0xf0] }
 0x478   : > { %v11418_v35 = vor.u32 %v12148_v26, %v11417_v18 }
 0x479   : > { %v7527_v43 = vadd.f32 %v7509_v45, %v15721_v37 }
 0x47b   : > { %v7547_v19 = vadd.f32 %v15730_v49, %v7527_v43  ;;  %v12147_v43 = vld [vmem:[#allocation3 + $0x13c] sm:$0xf] }
 0x47c   : > { %9041 = vmatmul.bf16.vlgmr.msra.gmra.mxu3 %v11414_v42  ;;  %v8073_v31 = vpop.f32.mrf.mxu0  ;;  %v11422_v42 = vor.u32 %v12147_v43, %v11419_v11 }
 0x47d   : > { %v7563_v0 = vmax.f32 %v7547_v19, 0.0  ;;  %v8074_v21 = vadd.f32 %v8073_v31, %v15723_v8  ;;  %v12152_v31 = vld [vmem:[#allocation3 + $0x160] sm:$0xf0] }
 0x47e   : > { %v7510_v58 = vpop.f32.mrf.mxu2  ;;  %v8122_v48 = vpop.f32.mrf.mxu1 }
 0x47f   : > { %7579 = vst [vmem:[%s15737_s26 + $0x70] sm:$0xff] %v7563_v0  ;;  %v7511_v37 = vadd.f32 %v7510_v58, %v7462_v15  ;;  %v8492_v53 = vpop.f32.mrf.mxu3  ;;  %v8123_v25 = vadd.f32 %v8122_v48, %v8074_v21  ;;  %8540 = vmatmul.bf16.vlgmr.msra.gmra.mxu0 %v11222_v38  ;;  %v11437_v21 = vld [vmem:[#allocation3 + $0x158] sm:$0xf]  ;;  %v12056_v38 = vld [vmem:[#allocation3 + $0x100] sm:$0xf0] }
 0x480   : > { %8943 = vmatmul.bf16.vlgmr.msra.gmra.mxu1 %v11406_v57  ;;  %v11438_v48 = vor.u32 %v12152_v31, %v11437_v21 }
 0x481   : > { %v7528_v3 = vadd.f32 %v7511_v37, %v15725_v55  ;;  %8992 = vmatmul.bf16.vlgmr.msra.gmra.mxu2 %v11410_v9  ;;  %v11426_v55 = vor.u32 %v12149_v28, %v11425_v60  ;;  %v11245_v37 = vld [vmem:[#allocation3 + $0xf8] sm:$0xf] }
 0x482   : > { %v11246_v17 = vor.u32 %v12056_v38, %v11245_v37 }
 0x483   : > { %v7548_v52 = vadd.f32 %v15730_v49, %v7528_v3  ;;  %v11431_v3 = vld [vmem:[#allocation3 + $0x15c] sm:$0xf0] }
 0x484   : > { %v8075_v32 = vpop.f32.mrf.mxu0 }
 0x485   : > { %v7564_v8 = vmax.f32 %v7548_v52, 0.0  ;;  %v8076_v29 = vadd.f32 %v8075_v32, %v15732_v62  ;;  %v11234_v62 = vor.u32 %v12053_v59, %v11233_v40 }
 0x486   : > { %v8443_v10 = vpop.f32.mrf.mxu2  ;;  %v8124_v36 = vpop.f32.mrf.mxu1 }
 0x487   : > { %7580 = vst [vmem:[%s15737_s26 + $0x78] sm:$0xff] %v7564_v8  ;;  %v8444_v7 = vadd.f32 %v8443_v10, %v8123_v25  ;;  %v8494_v2 = vpop.f32.mrf.mxu3  ;;  %v8125_v22 = vadd.f32 %v8124_v36, %v8076_v29  ;;  %v12150_v10 = vld [vmem:[#allocation3 + $0x154] sm:$0xf] }
 0x488   : > { %v11434_v36 = vor.u32 %v12150_v10, %v11431_v3 }
 0x489   : > { %v15815_v61 = vadd.f32 %v8492_v53, %v8444_v7 }
 0x48c   : > { %9046 = vmatmul.bf16.gmra.mxu3 %v11426_v55  ;;  %v8078_v49 = vpop.f32.mrf.mxu0  ;;  %v12155_v55 = vld [vmem:[#allocation3 + $0x178] sm:$0xf0] }
 0x48d   : > { %v8079_v63 = vadd.f32 %v8078_v49, %v15740_v51  ;;  %v11449_v49 = vld [vmem:[#allocation3 + $0x170] sm:$0xf] }
 0x48e   : > { %v8445_v44 = vpop.f32.mrf.mxu2  ;;  %v8127_v47 = vpop.f32.mrf.mxu1  ;;  %v11450_v40 = vor.u32 %v12155_v55, %v11449_v49 }
 0x48f   : > { %v8446_v20 = vadd.f32 %v8445_v44, %v8125_v22  ;;  %v8497_v45 = vpop.f32.mrf.mxu3  ;;  %v8128_v16 = vadd.f32 %v8127_v47, %v8079_v63  ;;  %8545 = vmatmul.bf16.gmra.mxu0 %v11234_v62  ;;  %v12059_v44 = vld [vmem:[#allocation3 + $0x118] sm:$0xf0]  ;;  %v12154_v63 = vld [vmem:[#allocation3 + $0x170] sm:$0xf0]  ;;  %v11257_v62 = vld [vmem:[#allocation3 + $0x110] sm:$0xf] }
 0x490   : > { %8948 = vmatmul.bf16.gmra.mxu1 %v11418_v35  ;;  %v11258_v35 = vor.u32 %v12059_v44, %v11257_v62 }
 0x491   : > { %v15818_v34 = vadd.f32 %v8494_v2, %v8446_v20  ;;  %8997 = vmatmul.bf16.gmra.mxu2 %v11422_v42 }
 0x494   : > { %v8080_v19 = vpop.f32.mrf.mxu0 }
 0x495   : > { %v8081_v12 = vadd.f32 %v8080_v19, %v15745_v46  ;;  %v11429_v46 = vld [vmem:[#allocation3 + $0x150] sm:$0xf] }
 0x496   : > { %v8448_v23 = vpop.f32.mrf.mxu2  ;;  %v8129_v51 = vpop.f32.mrf.mxu1  ;;  %v11430_v52 = vor.u32 %v12151_v13, %v11429_v46 }
 0x497   : > { %v8449_v0 = vadd.f32 %v8448_v23, %v8128_v16  ;;  %v8499_v15 = vpop.f32.mrf.mxu3  ;;  %v8130_v4 = vadd.f32 %v8129_v51, %v8081_v12  ;;  %v12153_v23 = vld [vmem:[#allocation3 + $0x16c] sm:$0xf] }
 0x499   : > { %v15821_v58 = vadd.f32 %v8497_v45, %v8449_v0  ;;  %v11443_v45 = vld [vmem:[#allocation3 + $0x174] sm:$0xf0] }
 0x49a   : > { %v11446_v51 = vor.u32 %v12153_v23, %v11443_v45 }
 0x49c   : > { %9051 = vmatmul.bf16.gmra.mxu3 %v11438_v48  ;;  %v8083_v14 = vpop.f32.mrf.mxu0  ;;  %v12158_v48 = vld [vmem:[#allocation3 + $0x190] sm:$0xf0] }
 0x49d   : > { %v8084_v53 = vadd.f32 %v8083_v14, %v15750_v6  ;;  %v11461_v14 = vld [vmem:[#allocation3 + $0x188] sm:$0xf] }
 0x49e   : > { %v8450_v57 = vpop.f32.mrf.mxu2  ;;  %v8132_v25 = vpop.f32.mrf.mxu1  ;;  %v11462_v37 = vor.u32 %v12158_v48, %v11461_v14  ;;  %v12164_v48 = vld [vmem:[#allocation3 + $0x1c0] sm:$0xf0] }
 0x49f   : > { %v8451_v9 = vadd.f32 %v8450_v57, %v8130_v4  ;;  %v8502_v8 = vpop.f32.mrf.mxu3  ;;  %v8133_v32 = vadd.f32 %v8132_v25, %v8084_v53  ;;  %8550 = vmatmul.bf16.gmra.mxu0 %v11246_v17  ;;  %v12062_v57 = vld [vmem:[#allocation3 + $0x130] sm:$0xf0]  ;;  %v12157_v53 = vld [vmem:[#allocation3 + $0x188] sm:$0xf0]  ;;  %v11269_v17 = vld [vmem:[#allocation3 + $0x128] sm:$0xf] }
 0x4a0   : > { %8953 = vmatmul.bf16.gmra.mxu1 %v11430_v52  ;;  %v11270_v52 = vor.u32 %v12062_v57, %v11269_v17 }
 0x4a1   : > { %v15824_v29 = vadd.f32 %v8499_v15, %v8451_v9  ;;  %9002 = vmatmul.bf16.gmra.mxu2 %v11434_v36 }
 0x4a4   : > { %v8085_v7 = vpop.f32.mrf.mxu0 }
 0x4a5   : > { %v8086_v28 = vadd.f32 %v8085_v7, %v15755_v24  ;;  %v11441_v24 = vld [vmem:[#allocation3 + $0x168] sm:$0xf] }
 0x4a6   : > { %v8453_v2 = vpop.f32.mrf.mxu2  ;;  %v8134_v6 = vpop.f32.mrf.mxu1  ;;  %v11442_v43 = vor.u32 %v12154_v63, %v11441_v24 }
 0x4a7   : > { %v8454_v22 = vadd.f32 %v8453_v2, %v8133_v32  ;;  %v8504_v60 = vpop.f32.mrf.mxu3  ;;  %v8135_v59 = vadd.f32 %v8134_v6, %v8086_v28  ;;  %v12156_v2 = vld [vmem:[#allocation3 + $0x184] sm:$0xf] }
 0x4a9   : > { %v15827_v26 = vadd.f32 %v8502_v8, %v8454_v22  ;;  %v11455_v8 = vld [vmem:[#allocation3 + $0x18c] sm:$0xf0] }
 0x4aa   : > { %v11458_v6 = vor.u32 %v12156_v2, %v11455_v8 }
 0x4ac   : > { %9056 = vmatmul.bf16.gmra.mxu3 %v11450_v40  ;;  %v8088_v47 = vpop.f32.mrf.mxu0  ;;  %v12161_v40 = vld [vmem:[#allocation3 + $0x1a8] sm:$0xf0] }
 0x4ad   : > { %v8089_v11 = vadd.f32 %v8088_v47, %v15760_v33  ;;  %v11473_v47 = vld [vmem:[#allocation3 + $0x1a0] sm:$0xf] }
 0x4ae   : > { %v8455_v18 = vpop.f32.mrf.mxu2  ;;  %v8137_v20 = vpop.f32.mrf.mxu1  ;;  %v11474_v62 = vor.u32 %v12161_v40, %v11473_v47  ;;  %v12167_v40 = vld [vmem:[#allocation3 + $0x1d8] sm:$0xf0] }
 0x4af   : > { %v8456_v16 = vadd.f32 %v8455_v18, %v8135_v59  ;;  %v8507_v42 = vpop.f32.mrf.mxu3  ;;  %v8138_v19 = vadd.f32 %v8137_v20, %v8089_v11  ;;  %8555 = vmatmul.bf16.gmra.mxu0 %v11258_v35  ;;  %v12065_v18 = vld [vmem:[#allocation3 + $0x148] sm:$0xf0]  ;;  %v12160_v11 = vld [vmem:[#allocation3 + $0x1a0] sm:$0xf0]  ;;  %v11281_v35 = vld [vmem:[#allocation3 + $0x140] sm:$0xf] }
 0x4b0   : > { %8958 = vmatmul.bf16.gmra.mxu1 %v11442_v43  ;;  %v11282_v43 = vor.u32 %v12065_v18, %v11281_v35 }
 0x4b1   : > { %v15830_v12 = vadd.f32 %v8504_v60, %v8456_v16  ;;  %9007 = vmatmul.bf16.gmra.mxu2 %v11446_v51 }
 0x4b4   : > { %v8090_v0 = vpop.f32.mrf.mxu0 }
 0x4b5   : > { %v8091_v31 = vadd.f32 %v8090_v0, %v15765_v50  ;;  %v11453_v50 = vld [vmem:[#allocation3 + $0x180] sm:$0xf] }
 0x4b6   : > { %v8458_v15 = vpop.f32.mrf.mxu2  ;;  %v8139_v33 = vpop.f32.mrf.mxu1  ;;  %v11454_v10 = vor.u32 %v12157_v53, %v11453_v50  ;;  %v11479_v50 = vld [vmem:[#allocation3 + $0x1bc] sm:$0xf0] }
 0x4b7   : > { %v8459_v4 = vadd.f32 %v8458_v15, %v8138_v19  ;;  %v8509_v21 = vpop.f32.mrf.mxu3  ;;  %v8140_v38 = vadd.f32 %v8139_v33, %v8091_v31  ;;  %v12159_v15 = vld [vmem:[#allocation3 + $0x19c] sm:$0xf] }
 0x4b9   : > { %v15833_v13 = vadd.f32 %v8507_v42, %v8459_v4  ;;  %v11467_v42 = vld [vmem:[#allocation3 + $0x1a4] sm:$0xf0] }
 0x4ba   : > { %v11470_v33 = vor.u32 %v12159_v15, %v11467_v42 }
 0x4bc   : > { %9061 = vmatmul.bf16.gmra.mxu3 %v11462_v37  ;;  %v8093_v25 = vpop.f32.mrf.mxu0 }
 0x4bd   : > { %v8094_v3 = vadd.f32 %v8093_v25, %v15770_v30 }
 0x4be   : > { %v8460_v46 = vpop.f32.mrf.mxu2  ;;  %v8142_v9 = vpop.f32.mrf.mxu1 }
 0x4bf   : > { %v8461_v32 = vadd.f32 %v8460_v46, %v8140_v38  ;;  %v8512_v36 = vpop.f32.mrf.mxu3  ;;  %v8143_v7 = vadd.f32 %v8142_v9, %v8094_v3  ;;  %8560 = vmatmul.bf16.gmra.mxu0 %v11270_v52  ;;  %v11477_v46 = vld [vmem:[#allocation3 + $0x1b0] sm:$0xf]  ;;  %v12163_v3 = vld [vmem:[#allocation3 + $0x1b8] sm:$0xf0]  ;;  %v12068_v9 = vld [vmem:[#allocation3 + $0x160] sm:$0xf0] }
 0x4c0   : > { %8963 = vmatmul.bf16.gmra.mxu1 %v11454_v10  ;;  %v12162_v52 = vld [vmem:[#allocation3 + $0x1b4] sm:$0xf]  ;;  %v11478_v10 = vor.u32 %v12163_v3, %v11477_v46 }
 0x4c1   : > { %v15836_v28 = vadd.f32 %v8509_v21, %v8461_v32  ;;  %9012 = vmatmul.bf16.gmra.mxu2 %v11458_v6  ;;  %v11485_v21 = vld [vmem:[#allocation3 + $0x1b8] sm:$0xf] }
 0x4c2   : > { %v11486_v25 = vor.u32 %v12164_v48, %v11485_v21  ;;  %v11293_v32 = vld [vmem:[#allocation3 + $0x158] sm:$0xf] }
 0x4c3   : > { %v11294_v2 = vor.u32 %v12068_v9, %v11293_v32 }
 0x4c4   : > { %v8095_v22 = vpop.f32.mrf.mxu0 }
 0x4c5   : > { %v8096_v55 = vadd.f32 %v8095_v22, %v15775_v41  ;;  %v11465_v41 = vld [vmem:[#allocation3 + $0x198] sm:$0xf]  ;;  %v11482_v22 = vor.u32 %v12162_v52, %v11479_v50 }
 0x4c6   : > { %v8463_v60 = vpop.f32.mrf.mxu2  ;;  %v8144_v30 = vpop.f32.mrf.mxu1  ;;  %v11466_v23 = vor.u32 %v12160_v11, %v11465_v41  ;;  %v11491_v41 = vld [vmem:[#allocation3 + $0x1d4] sm:$0xf0] }
 0x4c7   : > { %v8464_v59 = vadd.f32 %v8463_v60, %v8143_v7  ;;  %v8514_v49 = vpop.f32.mrf.mxu3  ;;  %v8145_v44 = vadd.f32 %v8144_v30, %v8096_v55 }
 0x4c9   : > { %v15839_v63 = vadd.f32 %v8512_v36, %v8464_v59 }
 0x4cc   : > { %9066 = vmatmul.bf16.gmra.mxu3 %v11474_v62  ;;  %v8098_v20 = vpop.f32.mrf.mxu0 }
 0x4cd   : > { %v8099_v45 = vadd.f32 %v8098_v20, %v15780_v39 }
 0x4ce   : > { %v8465_v24 = vpop.f32.mrf.mxu2  ;;  %v8147_v16 = vpop.f32.mrf.mxu1 }
 0x4cf   : > { %v8466_v19 = vadd.f32 %v8465_v24, %v8145_v44  ;;  %v8517_v51 = vpop.f32.mrf.mxu3  ;;  %v8148_v0 = vadd.f32 %v8147_v16, %v8099_v45  ;;  %8565 = vmatmul.bf16.gmra.mxu0 %v11282_v43  ;;  %v11489_v24 = vld [vmem:[#allocation3 + $0x1c8] sm:$0xf]  ;;  %v12166_v45 = vld [vmem:[#allocation3 + $0x1d0] sm:$0xf0]  ;;  %v12071_v16 = vld [vmem:[#allocation3 + $0x178] sm:$0xf0] }
 0x4d0   : > { %8968 = vmatmul.bf16.gmra.mxu1 %v11466_v23  ;;  %v12165_v43 = vld [vmem:[#allocation3 + $0x1cc] sm:$0xf]  ;;  %v11490_v23 = vor.u32 %v12166_v45, %v11489_v24 }
 0x4d1   : > { %v15842_v31 = vadd.f32 %v8514_v49, %v8466_v19  ;;  %9017 = vmatmul.bf16.gmra.mxu2 %v11470_v33  ;;  %v11497_v49 = vld [vmem:[#allocation3 + $0x1d0] sm:$0xf] }
 0x4d2   : > { %v11498_v20 = vor.u32 %v12167_v40, %v11497_v49  ;;  %v11305_v19 = vld [vmem:[#allocation3 + $0x170] sm:$0xf] }
 0x4d3   : > { %v11306_v15 = vor.u32 %v12071_v16, %v11305_v19 }
 0x4d4   : > { %v8100_v4 = vpop.f32.mrf.mxu0 }
 0x4d5   : > { %v8101_v39 = vadd.f32 %v8100_v4, %v15785_v56  ;;  %v11494_v4 = vor.u32 %v12165_v43, %v11491_v41 }
 0x4d6   : > { %v8468_v38 = vpop.f32.mrf.mxu2  ;;  %v8149_v14 = vpop.f32.mrf.mxu1 }
 0x4d7   : > { %v8469_v37 = vadd.f32 %v8468_v38, %v8148_v0  ;;  %v8519_v57 = vpop.f32.mrf.mxu3  ;;  %v8150_v53 = vadd.f32 %v8149_v14, %v8101_v39 }
 0x4d9   : > { %v15845_v17 = vadd.f32 %v8517_v51, %v8469_v37 }
 0x4dc   : > { %9071 = vmatmul.bf16.gmra.mxu3 %v11486_v25  ;;  %v8103_v8 = vpop.f32.mrf.mxu0 }
 0x4dd   : > { %v8104_v7 = vadd.f32 %v8103_v8, %v15790_v1 }
 0x4de   : > { %v8470_v36 = vpop.f32.mrf.mxu2  ;;  %v8152_v56 = vpop.f32.mrf.mxu1 }
 0x4df   : > { %v8471_v6 = vadd.f32 %v8470_v36, %v8150_v53  ;;  %v8522_v60 = vpop.f32.mrf.mxu3  ;;  %v8153_v55 = vadd.f32 %v8152_v56, %v8104_v7  ;;  %8570 = vmatmul.bf16.gmra.mxu0 %v11294_v2 }
 0x4e0   : > { %8973 = vmatmul.bf16.gmra.mxu1 %v11478_v10 }
 0x4e1   : > { %v15848_v30 = vadd.f32 %v8519_v57, %v8471_v6  ;;  %9022 = vmatmul.bf16.gmra.mxu2 %v11482_v22  ;;  %v15865_v22 = vld [vmem:[%s15952_s4] ss:$0 sm:$0xff] }
 0x4e4   : > { %v8105_v59 = vpop.f32.mrf.mxu0 }
 0x4e5   : > { %v8106_v47 = vadd.f32 %v8105_v59, %v15795_v27 }
 0x4e6   : > { %v8473_v44 = vpop.f32.mrf.mxu2  ;;  %v8154_v62 = vpop.f32.mrf.mxu1 }
 0x4e7   : > { %v8474_v18 = vadd.f32 %v8473_v44, %v8153_v55  ;;  %v8524_v1 = vpop.f32.mrf.mxu3  ;;  %v8155_v11 = vadd.f32 %v8154_v62, %v8106_v47 }
 0x4e9   : > { %v15851_v35 = vadd.f32 %v8522_v60, %v8474_v18 }
 0x4ec   : > { %9076 = vmatmul.bf16.gmra.mxu3 %v11498_v20  ;;  %v8108_v42 = vpop.f32.mrf.mxu0 }
 0x4ed   : > { %v8109_v0 = vadd.f32 %v8108_v42, %v15800_v5 }
 0x4ee   : > { %v8475_v51 = vpop.f32.mrf.mxu2  ;;  %v8157_v27 = vpop.f32.mrf.mxu1 }
 0x4ef   : > { %v8476_v33 = vadd.f32 %v8475_v51, %v8155_v11  ;;  %v8527_v21 = vpop.f32.mrf.mxu3  ;;  %v8158_v48 = vadd.f32 %v8157_v27, %v8109_v0  ;;  %8575 = vmatmul.bf16.gmra.mxu0 %v11306_v15 }
 0x4f0   : > { %8978 = vmatmul.bf16.gmra.mxu1 %v11490_v23 }
 0x4f1   : > { %v15854_v38 = vadd.f32 %v8524_v1, %v8476_v33  ;;  %9027 = vmatmul.bf16.gmra.mxu2 %v11494_v4 }
 0x4f4   : > { %v8110_v39 = vpop.f32.mrf.mxu0 }
 0x4f5   : > { %v8111_v37 = vadd.f32 %v8110_v39, %v15805_v54 }
 0x4f6   : > { %v8478_v14 = vpop.f32.mrf.mxu2  ;;  %v8159_v57 = vpop.f32.mrf.mxu1 }
 0x4f7   : > { %v8479_v53 = vadd.f32 %v8478_v14, %v8158_v48  ;;  %v8529_v25 = vpop.f32.mrf.mxu3  ;;  %v8160_v46 = vadd.f32 %v8159_v57, %v8111_v37 }
 0x4f9   : > { %v15857_v5 = vadd.f32 %v8527_v21, %v8479_v53 }
 0x4fc   : > { %v8541_v3 = vpop.f32.mrf.mxu0 }
 0x4fd   : > { %v8542_v54 = vadd.f32 %v8541_v3, %v15815_v61 }
 0x4fe   : > { %v8480_v9 = vpop.f32.mrf.mxu2  ;;  %v8944_v52 = vpop.f32.mrf.mxu1 }
 0x4ff   : > { %v8481_v50 = vadd.f32 %v8480_v9, %v8160_v46  ;;  %v9042_v8 = vpop.f32.mrf.mxu3 }
 0x501   : > { %v15859_v32 = vadd.f32 %v8529_v25, %v8481_v50 }
 0x504   : > { %v8543_v10 = vpop.f32.mrf.mxu0 }
 0x505   : > { %v8544_v18 = vadd.f32 %v8543_v10, %v15818_v34 }
 0x506   : > { %v8993_v36 = vpop.f32.mrf.mxu2  ;;  %v8946_v7 = vpop.f32.mrf.mxu1 }
 0x507   : > { %v8994_v56 = vadd.f32 %v8993_v36, %v8944_v52  ;;  %v9044_v2 = vpop.f32.mrf.mxu3 }
 0x509   : > { %v9043_v6 = vadd.f32 %v9042_v8, %v8994_v56 }
 0x50b   : > { %v9082_v60 = vadd.f32 %v9043_v6, %v8542_v54 }
 0x50c   : > { %v8546_v59 = vpop.f32.mrf.mxu0 }
 0x50d   : > { %v9102_v55 = vadd.f32 %v15865_v22, %v9082_v60  ;;  %v8547_v42 = vadd.f32 %v8546_v59, %v15821_v58 }
 0x50e   : > { %v8995_v49 = vpop.f32.mrf.mxu2  ;;  %v8949_v40 = vpop.f32.mrf.mxu1 }
 0x50f   : > { %v9118_v44 = vmax.f32 %v9102_v55, 0.0  ;;  %v8996_v47 = vadd.f32 %v8995_v49, %v8946_v7  ;;  %v9047_v62 = vpop.f32.mrf.mxu3 }
 0x511   : > { %11595 = vst [vmem:[%s15737_s26 + $0x80] sm:$0xff] %v9118_v44  ;;  %v9045_v61 = vadd.f32 %v9044_v2, %v8996_v47 }
 0x513   : > { %v9083_v1 = vadd.f32 %v9045_v61, %v8544_v18 }
 0x514   : > { %v8548_v20 = vpop.f32.mrf.mxu0 }
 0x515   : > { %v9103_v11 = vadd.f32 %v15865_v22, %v9083_v1  ;;  %v8549_v21 = vadd.f32 %v8548_v20, %v15824_v29 }
 0x516   : > { %v8998_v24 = vpop.f32.mrf.mxu2  ;;  %v8951_v45 = vpop.f32.mrf.mxu1 }
 0x517   : > { %v9119_v16 = vmax.f32 %v9103_v11, 0.0  ;;  %v8999_v43 = vadd.f32 %v8998_v24, %v8949_v40  ;;  %v9049_v41 = vpop.f32.mrf.mxu3 }
 0x519   : > { %11596 = vst [vmem:[%s15737_s26 + $0x88] sm:$0xff] %v9119_v16  ;;  %v9048_v19 = vadd.f32 %v9047_v62, %v8999_v43 }
 0x51b   : > { %v9084_v23 = vadd.f32 %v9048_v19, %v8547_v42 }
 0x51c   : > { %v8551_v0 = vpop.f32.mrf.mxu0 }
 0x51d   : > { %v9104_v51 = vadd.f32 %v15865_v22, %v9084_v23  ;;  %v8552_v3 = vadd.f32 %v8551_v0, %v15827_v26 }
 0x51e   : > { %v9000_v34 = vpop.f32.mrf.mxu2  ;;  %v8954_v27 = vpop.f32.mrf.mxu1 }
 0x51f   : > { %v9120_v15 = vmax.f32 %v9104_v51, 0.0  ;;  %v9001_v33 = vadd.f32 %v9000_v34, %v8951_v45  ;;  %v9052_v4 = vpop.f32.mrf.mxu3 }
 0x521   : > { %11597 = vst [vmem:[%s15737_s26 + $0x90] sm:$0xff] %v9120_v15  ;;  %v9050_v48 = vadd.f32 %v9049_v41, %v9001_v33 }
 0x523   : > { %v9085_v39 = vadd.f32 %v9050_v48, %v8549_v21 }
 0x524   : > { %v8553_v37 = vpop.f32.mrf.mxu0 }
 0x525   : > { %v9105_v14 = vadd.f32 %v15865_v22, %v9085_v39  ;;  %v8554_v2 = vadd.f32 %v8553_v37, %v15830_v12 }
 0x526   : > { %v9003_v58 = vpop.f32.mrf.mxu2  ;;  %v8956_v57 = vpop.f32.mrf.mxu1 }
 0x527   : > { %v9121_v53 = vmax.f32 %v9105_v14, 0.0  ;;  %v9004_v25 = vadd.f32 %v9003_v58, %v8954_v27  ;;  %v9054_v46 = vpop.f32.mrf.mxu3 }
 0x529   : > { %11598 = vst [vmem:[%s15737_s26 + $0x98] sm:$0xff] %v9121_v53  ;;  %v9053_v9 = vadd.f32 %v9052_v4, %v9004_v25 }
 0x52b   : > { %v9086_v52 = vadd.f32 %v9053_v9, %v8552_v3 }
 0x52c   : > { %v8556_v8 = vpop.f32.mrf.mxu0 }
 0x52d   : > { %v9106_v50 = vadd.f32 %v15865_v22, %v9086_v52  ;;  %v8557_v47 = vadd.f32 %v8556_v8, %v15833_v13 }
 0x52e   : > { %v9005_v29 = vpop.f32.mrf.mxu2  ;;  %v8959_v10 = vpop.f32.mrf.mxu1 }
 0x52f   : > { %v9122_v36 = vmax.f32 %v9106_v50, 0.0  ;;  %v9006_v7 = vadd.f32 %v9005_v29, %v8956_v57  ;;  %v9057_v56 = vpop.f32.mrf.mxu3 }
 0x531   : > { %11599 = vst [vmem:[%s15737_s26 + $0xa0] sm:$0xff] %v9122_v36  ;;  %v9055_v54 = vadd.f32 %v9054_v46, %v9006_v7 }
 0x533   : > { %v9087_v6 = vadd.f32 %v9055_v54, %v8554_v2 }
 0x534   : > { %v8558_v55 = vpop.f32.mrf.mxu0 }
 0x535   : > { %v9107_v60 = vadd.f32 %v15865_v22, %v9087_v6  ;;  %v8559_v16 = vadd.f32 %v8558_v55, %v15836_v28 }
 0x536   : > { %v9008_v26 = vpop.f32.mrf.mxu2  ;;  %v8961_v59 = vpop.f32.mrf.mxu1 }
 0x537   : > { %v9123_v49 = vmax.f32 %v9107_v60, 0.0  ;;  %v9009_v40 = vadd.f32 %v9008_v26, %v8959_v10  ;;  %v9059_v44 = vpop.f32.mrf.mxu3 }
 0x539   : > { %11600 = vst [vmem:[%s15737_s26 + $0xa8] sm:$0xff] %v9123_v49  ;;  %v9058_v62 = vadd.f32 %v9057_v56, %v9009_v40 }
 0x53b   : > { %v9088_v18 = vadd.f32 %v9058_v62, %v8557_v47 }
 0x53c   : > { %v8561_v1 = vpop.f32.mrf.mxu0 }
 0x53d   : > { %v9108_v61 = vadd.f32 %v15865_v22, %v9088_v18  ;;  %v8562_v27 = vadd.f32 %v8561_v1, %v15839_v63 }
 0x53e   : > { %v9010_v12 = vpop.f32.mrf.mxu2  ;;  %v8964_v11 = vpop.f32.mrf.mxu1 }
 0x53f   : > { %v9124_v20 = vmax.f32 %v9108_v61, 0.0  ;;  %v9011_v24 = vadd.f32 %v9010_v12, %v8961_v59  ;;  %v9062_v45 = vpop.f32.mrf.mxu3 }
 0x541   : > { %11601 = vst [vmem:[%s15737_s26 + $0xb0] sm:$0xff] %v9124_v20  ;;  %v9060_v43 = vadd.f32 %v9059_v44, %v9011_v24 }
 0x543   : > { %v9089_v41 = vadd.f32 %v9060_v43, %v8559_v16 }
 0x544   : > { %v8563_v19 = vpop.f32.mrf.mxu0 }
 0x545   : > { %v9109_v42 = vadd.f32 %v15865_v22, %v9089_v41  ;;  %v8564_v58 = vadd.f32 %v8563_v19, %v15842_v31 }
 0x546   : > { %v9013_v13 = vpop.f32.mrf.mxu2  ;;  %v8966_v23 = vpop.f32.mrf.mxu1 }
 0x547   : > { %v9125_v51 = vmax.f32 %v9109_v42, 0.0  ;;  %v9014_v0 = vadd.f32 %v9013_v13, %v8964_v11  ;;  %v9064_v34 = vpop.f32.mrf.mxu3 }
 0x549   : > { %11602 = vst [vmem:[%s15737_s26 + $0xb8] sm:$0xff] %v9125_v51  ;;  %v9063_v15 = vadd.f32 %v9062_v45, %v9014_v0 }
 0x54b   : > { %v9090_v33 = vadd.f32 %v9063_v15, %v8562_v27 }
 0x54c   : > { %v8566_v21 = vpop.f32.mrf.mxu0 }
 0x54d   : > { %v9110_v4 = vadd.f32 %v15865_v22, %v9090_v33  ;;  %v8567_v8 = vadd.f32 %v8566_v21, %v15845_v17 }
 0x54e   : > { %v9015_v28 = vpop.f32.mrf.mxu2  ;;  %v8969_v48 = vpop.f32.mrf.mxu1 }
 0x54f   : > { %v9126_v39 = vmax.f32 %v9110_v4, 0.0  ;;  %v9016_v14 = vadd.f32 %v9015_v28, %v8966_v23  ;;  %v9067_v37 = vpop.f32.mrf.mxu3 }
 0x551   : > { %11603 = vst [vmem:[%s15737_s26 + $0xc0] sm:$0xff] %v9126_v39  ;;  %v9065_v57 = vadd.f32 %v9064_v34, %v9016_v14 }
 0x553   : > { %v9091_v53 = vadd.f32 %v9065_v57, %v8564_v58 }
 0x554   : > { %v8568_v46 = vpop.f32.mrf.mxu0 }
 0x555   : > { %v9111_v25 = vadd.f32 %v15865_v22, %v9091_v53  ;;  %v8569_v6 = vadd.f32 %v8568_v46, %v15848_v30 }
 0x556   : > { %v9018_v63 = vpop.f32.mrf.mxu2  ;;  %v8971_v3 = vpop.f32.mrf.mxu1 }
 0x557   : > { %v9127_v9 = vmax.f32 %v9111_v25, 0.0  ;;  %v9019_v52 = vadd.f32 %v9018_v63, %v8969_v48  ;;  %v9069_v50 = vpop.f32.mrf.mxu3 }
 0x559   : > { %11604 = vst [vmem:[%s15737_s26 + $0xc8] sm:$0xff] %v9127_v9  ;;  %v9068_v29 = vadd.f32 %v9067_v37, %v9019_v52 }
 0x55b   : > { %v9092_v10 = vadd.f32 %v9068_v29, %v8567_v8 }
 0x55c   : > { %v8571_v2 = vpop.f32.mrf.mxu0 }
 0x55d   : > { %v9112_v36 = vadd.f32 %v15865_v22, %v9092_v10  ;;  %v8572_v44 = vadd.f32 %v8571_v2, %v15851_v35 }
 0x55e   : > { %v9020_v31 = vpop.f32.mrf.mxu2  ;;  %v8974_v54 = vpop.f32.mrf.mxu1 }
 0x55f   : > { %v9128_v7 = vmax.f32 %v9112_v36, 0.0  ;;  %v9021_v56 = vadd.f32 %v9020_v31, %v8971_v3  ;;  %v9072_v55 = vpop.f32.mrf.mxu3 }
 0x561   : > { %11605 = vst [vmem:[%s15737_s26 + $0xd0] sm:$0xff] %v9128_v7  ;;  %v9070_v60 = vadd.f32 %v9069_v50, %v9021_v56 }
 0x563   : > { %v9093_v26 = vadd.f32 %v9070_v60, %v8569_v6 }
 0x564   : > { %v8573_v62 = vpop.f32.mrf.mxu0 }
 0x565   : > { %v9113_v59 = vadd.f32 %v15865_v22, %v9093_v26  ;;  %v8574_v24 = vadd.f32 %v8573_v62, %v15854_v38 }
 0x566   : > { %v9023_v17 = vpop.f32.mrf.mxu2  ;;  %v8976_v18 = vpop.f32.mrf.mxu1 }
 0x567   : > { %v9129_v49 = vmax.f32 %v9113_v59, 0.0  ;;  %v9024_v40 = vadd.f32 %v9023_v17, %v8974_v54  ;;  %v9074_v1 = vpop.f32.mrf.mxu3 }
 0x569   : > { %11606 = vst [vmem:[%s15737_s26 + $0xd8] sm:$0xff] %v9129_v49  ;;  %v9073_v47 = vadd.f32 %v9072_v55, %v9024_v40 }
 0x56b   : > { %v9094_v61 = vadd.f32 %v9073_v47, %v8572_v44 }
 0x56c   : > { %v8576_v43 = vpop.f32.mrf.mxu0 }
 0x56d   : > { %v9114_v30 = vadd.f32 %v15865_v22, %v9094_v61  ;;  %v8577_v51 = vadd.f32 %v8576_v43, %v15857_v5 }
 0x56e   : > { %v9025_v12 = vpop.f32.mrf.mxu2  ;;  %v8979_v41 = vpop.f32.mrf.mxu1 }
 0x56f   : > { %v9130_v11 = vmax.f32 %v9114_v30, 0.0  ;;  %v9026_v20 = vadd.f32 %v9025_v12, %v8976_v18  ;;  %v9077_v19 = vpop.f32.mrf.mxu3 }
 0x571   : > { %11607 = vst [vmem:[%s15737_s26 + $0xe0] sm:$0xff] %v9130_v11  ;;  %v9075_v45 = vadd.f32 %v9074_v1, %v9026_v20 }
 0x573   : > { %v9095_v16 = vadd.f32 %v9075_v45, %v8574_v24 }
 0x574   : > { %v8578_v27 = vpop.f32.mrf.mxu0 }
 0x575   : > { %v9115_v35 = vadd.f32 %v15865_v22, %v9095_v16  ;;  %v8579_v5 = vadd.f32 %v8578_v27, %v15859_v32 }
 0x576   : > { %v9028_v42 = vpop.f32.mrf.mxu2  ;;  %v8981_v15 = vpop.f32.mrf.mxu1 }
 0x577   : > { %v9131_v13 = vmax.f32 %v9115_v35, 0.0  ;;  %v9029_v23 = vadd.f32 %v9028_v42, %v8979_v41  ;;  %v9079_v28 = vpop.f32.mrf.mxu3 }
 0x579   : > { %11608 = vst [vmem:[%s15737_s26 + $0xe8] sm:$0xff] %v9131_v13  ;;  %v9078_v0 = vadd.f32 %v9077_v19, %v9029_v23 }
 0x57b   : > { %v9096_v34 = vadd.f32 %v9078_v0, %v8577_v51 }
 0x57d   : > { %v9116_v38 = vadd.f32 %v15865_v22, %v9096_v34 }
 0x57e   : > { %v9030_v33 = vpop.f32.mrf.mxu2 }
 0x57f   : > { %v9132_v4 = vmax.f32 %v9116_v38, 0.0  ;;  %v9031_v21 = vadd.f32 %v9030_v33, %v8981_v15 }
 0x581   : > { %11609 = vst [vmem:[%s15737_s26 + $0xf0] sm:$0xff] %v9132_v4  ;;  %v9080_v48 = vadd.f32 %v9079_v28, %v9031_v21 }
 0x583   : > { %v9097_v39 = vadd.f32 %v9080_v48, %v8579_v5 }
 0x585   : > { %v9117_v14 = vadd.f32 %v15865_v22, %v9097_v39 }
 0x587   : > { %v9133_v37 = vmax.f32 %v9117_v14, 0.0 }
 0x589   : > { %11610 = vst [vmem:[%s15737_s26 + $0xf8] sm:$0xff] %v9133_v37 }
 0x58a   : > { %12395 = shalt.err (!%p12392_p10)
}
 0x58b   : > { %s12446_s1 = smov 128   ;;  %s12447_s26 = smov 8  }
 0x58c   : > { %12206 = dma.vmem_to_hbm [thread:$0]  (%p12550_p3), %s9165_s30, 4096, %s9167_s9, %s9152_s22, %s12446_s1, %s12446_s1, %s12447_s26  }
 0x58d PF: > { %s9181_s27 = sand.u32 1, %s12426_s18   ;;  %p17056_p12 = scmp.ge.s32.totalorder %s12438_s21, 2 }
 0x58e   : > { %s9182_s11 = scalar_lea.sflag [#allocation6], %s9181_s27 }
 0x58f   : > { %p12220_p13 = pnand %p17056_p12, %p12513_p6 }
 0x591   : > { %p12221_p0 = pneg %p12220_p13 }
 0x593   : > { %12421 = dma.done.wait (%p12221_p0), %s9182_s11, 4096  }
 0x594   : > { %12423 = vsyncadd (%p12221_p0), %s9182_s11, 4294963200  ;;  %p19_p5 = scmp.ge.s32.totalorder %s12540_s14, 4   ;;  %s17057_s18 = smov %s12430_s19 }
 0x595   : > { %s17058_s19 = smov %s12434_s20  ;;  %s17059_s20 = smov %s12556_s23 }
 0x596   : > { %s17060_s21 = smov %s12540_s14  ;;  %21 = sbr.rel (!%p19_p5) target bundleno = 8 (0x8), region = 110 }
 0x59b   :  { %9188 = vsyncpa [#allocation5], 1 }
 0x59c   :  { %9190 = vsyncpa [#allocation5 + $0x1], 1 }
 0x59d   :  { %9191 = vsyncpa [#allocation8], 1 }
 0x59e   :  { %9192 = vsyncpa [#allocation6], 1 }
 0x59f   :  { %9194 = vsyncpa [#allocation6 + $0x1], 1 }

</bundles_post_ra>
